<compile_context>
chip_gen: v7x
topology: tpu7x:2x2x1
jax: 0.10.0
libtpu: 0.0.40
codegen_flags: <defaults>
</compile_context>

<pallas_src>
import functools

import jax
import jax.numpy as jnp
from jax.experimental import pallas as pl
from jax.experimental.pallas import tpu as pltpu


_HALO = 8     # sublane-aligned halo band; only 1 row per band is actually consumed
_EP = 128     # lane-padded entity-logit width (>= edim) -> lane-dense output store


def _fused_kernel(h1_ref, h2_ref, h3_ref, h4_ref,   # (1, S, H) each (full sequence block)
                  wc_ref,                            # (3, 4H, 2H) bf16 conv taps (t-1, t, t+1)
                  bc_ref,                            # (1, 2H) f32 conv bias
                  w1_ref, b1_ref,                    # (2H, 2H) bf16, (1, 2H) f32
                  w2_ref, b2_ref,                    # (2H, EP) bf16, (1, EP) f32 (-1e30 pad)
                  out_ref,                           # (1, TILE_S, EP) f32 log-softmax
                  xpad_ref,                          # VMEM scratch (TILE_S + 2*HALO, 4H) f32
                  *, tile_s, hdim, n_tiles):
    c_in = 4 * hdim
    j = pl.program_id(1)
    t0 = pl.multiple_of(j * tile_s, 8)          # global sequence offset of this tile

    h_refs = (h1_ref, h2_ref, h3_ref, h4_ref)

    # ---- build the seq-padded, lane-concatenated window in VMEM (no HBM concat/pad) ----
    # rows [_HALO, _HALO+tile_s) hold x[t0 .. t0+tile_s); rows _HALO-1 / _HALO+tile_s are
    # the only halo rows ever read, so only those two rows are initialised.
    for i, hr in enumerate(h_refs):
        xpad_ref[pl.ds(_HALO, tile_s), pl.ds(i * hdim, hdim)] = (
            hr[0, pl.ds(t0, tile_s), :].astype(jnp.float32))

    zero_row = jnp.zeros((1, c_in), jnp.float32)
    xpad_ref[pl.ds(_HALO - 1, 1), :] = zero_row            # seq padding (left)
    xpad_ref[pl.ds(_HALO + tile_s, 1), :] = zero_row       # seq padding (right)

    if n_tiles > 1:
        @pl.when(j > 0)
        def _fill_top_halo():
            for i, hr in enumerate(h_refs):
                xpad_ref[pl.ds(_HALO - 1, 1), pl.ds(i * hdim, hdim)] = (
                    hr[0, pl.ds(t0 - 1, 1), :].astype(jnp.float32))

        @pl.when(j < n_tiles - 1)
        def _fill_bottom_halo():
            for i, hr in enumerate(h_refs):
                xpad_ref[pl.ds(_HALO + tile_s, 1), pl.ds(i * hdim, hdim)] = (
                    hr[0, pl.ds(t0 + tile_s, 1), :].astype(jnp.float32))

    # ---- "cnn": k=3 Conv1d over sequence = three shifted-ref MXU matmuls (bf16 operands) ----
    x_m1 = xpad_ref[pl.ds(_HALO - 1, tile_s), :].astype(jnp.bfloat16)
    x_0 = xpad_ref[pl.ds(_HALO, tile_s), :].astype(jnp.bfloat16)
    x_p1 = xpad_ref[pl.ds(_HALO + 1, tile_s), :].astype(jnp.bfloat16)
    acc = jnp.dot(x_m1, wc_ref[0], preferred_element_type=jnp.float32)
    acc = acc + jnp.dot(x_0, wc_ref[1], preferred_element_type=jnp.float32)
    acc = acc + jnp.dot(x_p1, wc_ref[2], preferred_element_type=jnp.float32)
    h = jnp.maximum(acc + bc_ref[...], 0.0)                    # ReLU

    # ---- Classifier: linear1 -> (dropout: eval identity) -> mish -> linear2 -> log-softmax ----
    y = jnp.dot(h.astype(jnp.bfloat16), w1_ref[...],
                preferred_element_type=jnp.float32) + b1_ref[...]
    y = y * jnp.tanh(jax.nn.softplus(y))                       # mish
    logits = jnp.dot(y.astype(jnp.bfloat16), w2_ref[...],
                     preferred_element_type=jnp.float32) + b2_ref[...]
    # Padded lanes carry a -1e30 bias -> exp()==0, so log-softmax over 128 lanes is
    # numerically identical to log-softmax over the real edim lanes.
    m = jnp.max(logits, axis=-1, keepdims=True)
    z = logits - m
    lse = jnp.log(jnp.sum(jnp.exp(z), axis=-1, keepdims=True))
    out_ref[0] = z - lse


def _pick_tile(seq_len, max_tile=256):
    if seq_len <= max_tile:
        return seq_len
    best = 8
    for t in range(8, max_tile + 1, 8):
        if seq_len % t == 0:
            best = t
    return best


def _vmem_limit_bytes(S, H, tile_s, c_in, c_mid, ep):
    f32, bf16 = 4, 2
    act_in = 4 * S * H * f32 * 2                                    # h1..h4 blocks, dbl-buffered
    weights = (3 * c_in * c_mid + c_mid * c_mid + c_mid * ep) * bf16 * 2
    biases = (2 * c_mid + ep) * f32 * 2
    out = tile_s * ep * f32 * 2
    scratch = (tile_s + 2 * _HALO) * c_in * f32
    total = act_in + weights + biases + out + scratch
    return int(min(100 << 20, max(32 << 20, 1.5 * total + (2 << 20))))


def joint_entity_relation_forward(hidden_states, params, *, hdim, edim, tile_s=None):
    """hidden_states: tuple of 4 arrays, each [B, S, hdim]  (last four BERT layers)."""
    h1, h2, h3, h4 = hidden_states
    B, S, H = h1.shape
    assert H == hdim and S % 8 == 0
    c_in, c_mid = 4 * hdim, 2 * hdim
    wc, bc, w1, b1, w2p, b2p = params
    ep = w2p.shape[-1]
    assert edim <= ep

    if tile_s is None:
        tile_s = _pick_tile(S)
    assert S % tile_s == 0 and tile_s % 8 == 0
    n_tiles = S // tile_s

    kernel = functools.partial(_fused_kernel, tile_s=tile_s, hdim=hdim, n_tiles=n_tiles)

    h_spec = pl.BlockSpec((1, S, H), lambda b, j: (b, 0, 0))
    out_spec = pl.BlockSpec((1, tile_s, ep), lambda b, j: (b, j, 0))

    def build(single_buffer_weights):
        def w_spec(shape):
            idx = lambda b, j: (0,) * len(shape)
            if single_buffer_weights:
                # Constant index_map -> one resident copy is enough; halves weight VMEM.
                return pl.BlockSpec(shape, idx, pipeline_mode=pl.Buffered(1))
            return pl.BlockSpec(shape, idx)

        return pl.pallas_call(
            kernel,
            out_shape=jax.ShapeDtypeStruct((B, S, ep), jnp.float32),
            grid_spec=pltpu.PrefetchScalarGridSpec(
                num_scalar_prefetch=0,
                grid=(B, n_tiles),
                in_specs=[h_spec, h_spec, h_spec, h_spec,
                          w_spec(wc.shape), w_spec(bc.shape),
                          w_spec(w1.shape), w_spec(b1.shape),
                          w_spec(w2p.shape), w_spec(b2p.shape)],
                out_specs=out_spec,
                scratch_shapes=[pltpu.VMEM((tile_s + 2 * _HALO, c_in), jnp.float32)],
            ),
            compiler_params=pltpu.CompilerParams(
                dimension_semantics=("parallel", "parallel"),
                vmem_limit_bytes=_vmem_limit_bytes(S, H, tile_s, c_in, c_mid, ep)),
        )

    args = (h1, h2, h3, h4, wc, bc, w1, b1, w2p, b2p)
    try:
        out_full = jax.block_until_ready(build(True)(*args))
    except Exception:
        # pl.Buffered(1) (single-buffered constant weights) support varies across JAX
        # versions; fall back to default double-buffering rather than failing the run.
        out_full = build(False)(*args)
    return out_full[..., :edim]


def init_params(key, hdim, edim, ep=_EP):
    c_in, c_mid = 4 * hdim, 2 * hdim
    ks = jax.random.split(key, 6)
    sc = 1.0 / jnp.sqrt(c_in)
    s1 = 1.0 / jnp.sqrt(c_mid)
    wc = (jax.random.normal(ks[0], (3, c_in, c_mid), jnp.float32) * sc).astype(jnp.bfloat16)
    bc = jax.random.normal(ks[1], (1, c_mid), jnp.float32) * 0.01
    w1 = (jax.random.normal(ks[2], (c_mid, c_mid), jnp.float32) * s1).astype(jnp.bfloat16)
    b1 = jax.random.normal(ks[3], (1, c_mid), jnp.float32) * 0.01
    w2 = jax.random.normal(ks[4], (c_mid, edim), jnp.float32) * s1
    b2 = jax.random.normal(ks[5], (1, edim), jnp.float32) * 0.01
    # Lane-pad the classifier head: zero weight columns + -1e30 bias so padded logits
    # vanish under log-softmax and the kernel's output store is lane-dense (128 wide).
    w2p = jnp.zeros((c_mid, ep), jnp.float32).at[:, :edim].set(w2).astype(jnp.bfloat16)
    b2p = jnp.full((1, ep), -1e30, jnp.float32).at[:, :edim].set(b2)
    return (wc, bc, w1, b1, w2p, b2p)


def reference_forward(hidden_states, params, *, hdim, edim):
    """Pure-JAX reference mirroring the kernel's bf16-operand / f32-accumulate math."""
    wc, bc, w1, b1, w2p, b2p = params
    emb = jnp.concatenate(hidden_states, axis=-1).astype(jnp.float32)          # (B, S, 4H)
    S = emb.shape[1]
    xb = jnp.pad(emb, ((0, 0), (1, 1), (0, 0))).astype(jnp.bfloat16)           # (B, S+2, 4H)
    acc = jnp.einsum('bsk,kc->bsc', xb[:, 0:S], wc[0],
                     preferred_element_type=jnp.float32)
    acc = acc + jnp.einsum('bsk,kc->bsc', xb[:, 1:S + 1], wc[1],
                           preferred_element_type=jnp.float32)
    acc = acc + jnp.einsum('bsk,kc->bsc', xb[:, 2:S + 2], wc[2],
                           preferred_element_type=jnp.float32)
    h = jnp.maximum(acc + bc, 0.0)
    y = jnp.einsum('bsk,kc->bsc', h.astype(jnp.bfloat16), w1,
                   preferred_element_type=jnp.float32) + b1
    y = y * jnp.tanh(jax.nn.softplus(y))
    logits = jnp.einsum('bsk,kc->bsc', y.astype(jnp.bfloat16), w2p,
                        preferred_element_type=jnp.float32) + b2p
    return jax.nn.log_softmax(logits, axis=-1)[..., :edim]


if __name__ == "__main__":
    # Small-but-representative shapes: hdim=128 (stands in for 768), edim=6
    # (len(utils.ENTITIES)), batch=2, seq=128.  tile_s=64 -> 2 sequence tiles per batch
    # element so the halo / megacore path is actually exercised and validated.
    B, S, HDIM, EDIM = 2, 128, 128, 6

    key = jax.random.PRNGKey(0)
    k_h, k_p = jax.random.split(key)
    hk = jax.random.split(k_h, 4)
    hidden_states = tuple(
        jax.random.normal(hk[i], (B, S, HDIM), jnp.float32) for i in range(4))

    params = init_params(k_p, HDIM, EDIM)

    out = joint_entity_relation_forward(hidden_states, params, hdim=HDIM, edim=EDIM,
                                        tile_s=64)
    out = jax.block_until_ready(out)

    ref = reference_forward(hidden_states, params, hdim=HDIM, edim=EDIM)
    assert out.shape == (B, S, EDIM)
    assert jnp.allclose(out, ref, atol=1e-2, rtol=1e-2), "mismatch vs JAX reference"

    print("KERNEL_OK")
</pallas_src>

<mosaic_0001>
module attributes {stable_mosaic.version = 11 : i64} {
  func.func @_fused_kernel(%arg0: i32, %arg1: i32, %arg2: memref<1x128x128xf32, #tpu.memory_space<vmem>>, %arg3: memref<1x128x128xf32, #tpu.memory_space<vmem>>, %arg4: memref<1x128x128xf32, #tpu.memory_space<vmem>>, %arg5: memref<1x128x128xf32, #tpu.memory_space<vmem>>, %arg6: memref<3x512x256xbf16, #tpu.memory_space<vmem>>, %arg7: memref<1x256xf32, #tpu.memory_space<vmem>>, %arg8: memref<256x256xbf16, #tpu.memory_space<vmem>>, %arg9: memref<1x256xf32, #tpu.memory_space<vmem>>, %arg10: memref<256x128xbf16, #tpu.memory_space<vmem>>, %arg11: memref<1x128xf32, #tpu.memory_space<vmem>>, %arg12: memref<1x64x128xf32, #tpu.memory_space<vmem>>, %arg13: memref<80x512xf32, #tpu.memory_space<vmem>>) attributes {dimension_semantics = [#tpu.dimension_semantics<parallel>, #tpu.dimension_semantics<parallel>], iteration_bounds = array<i64: 2, 2>, scalar_prefetch = 0 : i64, scratch_operands = 1 : i64, tpu.core_type = #tpu.core_type<tc>, window_params = [{transform_indices = @transform_0, window_bounds = array<i64: 1, 128, 128>}, {transform_indices = @transform_1, window_bounds = array<i64: 1, 128, 128>}, {transform_indices = @transform_2, window_bounds = array<i64: 1, 128, 128>}, {transform_indices = @transform_3, window_bounds = array<i64: 1, 128, 128>}, {pipeline_mode = #tpu.pipeline_mode<synchronous>, transform_indices = @transform_4, window_bounds = array<i64: 3, 512, 256>}, {pipeline_mode = #tpu.pipeline_mode<synchronous>, transform_indices = @transform_5, window_bounds = array<i64: 1, 256>}, {pipeline_mode = #tpu.pipeline_mode<synchronous>, transform_indices = @transform_6, window_bounds = array<i64: 256, 256>}, {pipeline_mode = #tpu.pipeline_mode<synchronous>, transform_indices = @transform_7, window_bounds = array<i64: 1, 256>}, {pipeline_mode = #tpu.pipeline_mode<synchronous>, transform_indices = @transform_8, window_bounds = array<i64: 256, 128>}, {pipeline_mode = #tpu.pipeline_mode<synchronous>, transform_indices = @transform_9, window_bounds = array<i64: 1, 128>}, {transform_indices = @transform_10, window_bounds = array<i64: 1, 64, 128>}]} {
    %c64_i32 = arith.constant 64 : i32
    %0 = arith.muli %arg1, %c64_i32 : i32
    %1 = tpu.assume_multiple %0, 8 : i32
    %c0 = arith.constant 0 : index
    %2 = arith.index_cast %1 : i32 to index
    %c0_0 = arith.constant 0 : index
    %3 = vector.load %arg2[%c0, %2, %c0_0] : memref<1x128x128xf32, #tpu.memory_space<vmem>>, vector<1x64x128xf32>
    %4 = vector.shape_cast %3 : vector<1x64x128xf32> to vector<64x128xf32>
    %c8 = arith.constant 8 : index
    %c0_1 = arith.constant 0 : index
    %5 = vector.load %arg13[%c8, %c0_1] : memref<80x512xf32, #tpu.memory_space<vmem>>, vector<64x128xf32>
    tpu.vector_store %arg13[%c8, %c0_1], %4 {strides = array<i32>} : memref<80x512xf32, #tpu.memory_space<vmem>>, vector<64x128xf32>,
    %c0_2 = arith.constant 0 : index
    %6 = arith.index_cast %1 : i32 to index
    %c0_3 = arith.constant 0 : index
    %7 = vector.load %arg3[%c0_2, %6, %c0_3] : memref<1x128x128xf32, #tpu.memory_space<vmem>>, vector<1x64x128xf32>
    %8 = vector.shape_cast %7 : vector<1x64x128xf32> to vector<64x128xf32>
    %c8_4 = arith.constant 8 : index
    %c128 = arith.constant 128 : index
    %9 = vector.load %arg13[%c8_4, %c128] : memref<80x512xf32, #tpu.memory_space<vmem>>, vector<64x128xf32>
    tpu.vector_store %arg13[%c8_4, %c128], %8 {strides = array<i32>} : memref<80x512xf32, #tpu.memory_space<vmem>>, vector<64x128xf32>,
    %c0_5 = arith.constant 0 : index
    %10 = arith.index_cast %1 : i32 to index
    %c0_6 = arith.constant 0 : index
    %11 = vector.load %arg4[%c0_5, %10, %c0_6] : memref<1x128x128xf32, #tpu.memory_space<vmem>>, vector<1x64x128xf32>
    %12 = vector.shape_cast %11 : vector<1x64x128xf32> to vector<64x128xf32>
    %c8_7 = arith.constant 8 : index
    %c256 = arith.constant 256 : index
    %13 = vector.load %arg13[%c8_7, %c256] : memref<80x512xf32, #tpu.memory_space<vmem>>, vector<64x128xf32>
    tpu.vector_store %arg13[%c8_7, %c256], %12 {strides = array<i32>} : memref<80x512xf32, #tpu.memory_space<vmem>>, vector<64x128xf32>,
    %c0_8 = arith.constant 0 : index
    %14 = arith.index_cast %1 : i32 to index
    %c0_9 = arith.constant 0 : index
    %15 = vector.load %arg5[%c0_8, %14, %c0_9] : memref<1x128x128xf32, #tpu.memory_space<vmem>>, vector<1x64x128xf32>
    %16 = vector.shape_cast %15 : vector<1x64x128xf32> to vector<64x128xf32>
    %c8_10 = arith.constant 8 : index
    %c384 = arith.constant 384 : index
    %17 = vector.load %arg13[%c8_10, %c384] : memref<80x512xf32, #tpu.memory_space<vmem>>, vector<64x128xf32>
    tpu.vector_store %arg13[%c8_10, %c384], %16 {strides = array<i32>} : memref<80x512xf32, #tpu.memory_space<vmem>>, vector<64x128xf32>,
    %cst = arith.constant 0.000000e+00 : f32
    %18 = vector.broadcast %cst : f32 to vector<1x512xf32>
    %c7 = arith.constant 7 : index
    %c0_11 = arith.constant 0 : index
    %19 = vector.load %arg13[%c7, %c0_11] : memref<80x512xf32, #tpu.memory_space<vmem>>, vector<1x512xf32>
    tpu.vector_store %arg13[%c7, %c0_11], %18 {strides = array<i32>} : memref<80x512xf32, #tpu.memory_space<vmem>>, vector<1x512xf32>,
    %c72 = arith.constant 72 : index
    %c0_12 = arith.constant 0 : index
    %20 = vector.load %arg13[%c72, %c0_12] : memref<80x512xf32, #tpu.memory_space<vmem>>, vector<1x512xf32>
    tpu.vector_store %arg13[%c72, %c0_12], %18 {strides = array<i32>} : memref<80x512xf32, #tpu.memory_space<vmem>>, vector<1x512xf32>,
    %c0_i32 = arith.constant 0 : i32
    %21 = arith.cmpi sgt, %arg1, %c0_i32 : i32
    %22 = arith.extui %21 : i1 to i32
    %c0_i32_13 = arith.constant 0 : i32
    %23 = arith.cmpi ne, %22, %c0_i32_13 : i32
    scf.if %23 {
      %c1_i32_50 = arith.constant 1 : i32
      %90 = arith.subi %1, %c1_i32_50 : i32
      %c0_51 = arith.constant 0 : index
      %91 = arith.index_cast %90 : i32 to index
      %c0_52 = arith.constant 0 : index
      %92 = vector.load %arg2[%c0_51, %91, %c0_52] : memref<1x128x128xf32, #tpu.memory_space<vmem>>, vector<1x1x128xf32>
      %93 = vector.shape_cast %92 : vector<1x1x128xf32> to vector<1x128xf32>
      %c7_53 = arith.constant 7 : index
      %c0_54 = arith.constant 0 : index
      %94 = vector.load %arg13[%c7_53, %c0_54] : memref<80x512xf32, #tpu.memory_space<vmem>>, vector<1x128xf32>
      tpu.vector_store %arg13[%c7_53, %c0_54], %93 {strides = array<i32>} : memref<80x512xf32, #tpu.memory_space<vmem>>, vector<1x128xf32>,
      %c1_i32_55 = arith.constant 1 : i32
      %95 = arith.subi %1, %c1_i32_55 : i32
      %c0_56 = arith.constant 0 : index
      %96 = arith.index_cast %95 : i32 to index
      %c0_57 = arith.constant 0 : index
      %97 = vector.load %arg3[%c0_56, %96, %c0_57] : memref<1x128x128xf32, #tpu.memory_space<vmem>>, vector<1x1x128xf32>
      %98 = vector.shape_cast %97 : vector<1x1x128xf32> to vector<1x128xf32>
      %c7_58 = arith.constant 7 : index
      %c128_59 = arith.constant 128 : index
      %99 = vector.load %arg13[%c7_58, %c128_59] : memref<80x512xf32, #tpu.memory_space<vmem>>, vector<1x128xf32>
      tpu.vector_store %arg13[%c7_58, %c128_59], %98 {strides = array<i32>} : memref<80x512xf32, #tpu.memory_space<vmem>>, vector<1x128xf32>,
      %c1_i32_60 = arith.constant 1 : i32
      %100 = arith.subi %1, %c1_i32_60 : i32
      %c0_61 = arith.constant 0 : index
      %101 = arith.index_cast %100 : i32 to index
      %c0_62 = arith.constant 0 : index
      %102 = vector.load %arg4[%c0_61, %101, %c0_62] : memref<1x128x128xf32, #tpu.memory_space<vmem>>, vector<1x1x128xf32>
      %103 = vector.shape_cast %102 : vector<1x1x128xf32> to vector<1x128xf32>
      %c7_63 = arith.constant 7 : index
      %c256_64 = arith.constant 256 : index
      %104 = vector.load %arg13[%c7_63, %c256_64] : memref<80x512xf32, #tpu.memory_space<vmem>>, vector<1x128xf32>
      tpu.vector_store %arg13[%c7_63, %c256_64], %103 {strides = array<i32>} : memref<80x512xf32, #tpu.memory_space<vmem>>, vector<1x128xf32>,
      %c1_i32_65 = arith.constant 1 : i32
      %105 = arith.subi %1, %c1_i32_65 : i32
      %c0_66 = arith.constant 0 : index
      %106 = arith.index_cast %105 : i32 to index
      %c0_67 = arith.constant 0 : index
      %107 = vector.load %arg5[%c0_66, %106, %c0_67] : memref<1x128x128xf32, #tpu.memory_space<vmem>>, vector<1x1x128xf32>
      %108 = vector.shape_cast %107 : vector<1x1x128xf32> to vector<1x128xf32>
      %c7_68 = arith.constant 7 : index
      %c384_69 = arith.constant 384 : index
      %109 = vector.load %arg13[%c7_68, %c384_69] : memref<80x512xf32, #tpu.memory_space<vmem>>, vector<1x128xf32>
      tpu.vector_store %arg13[%c7_68, %c384_69], %108 {strides = array<i32>} : memref<80x512xf32, #tpu.memory_space<vmem>>, vector<1x128xf32>,
    } else {
    }
    %c1_i32 = arith.constant 1 : i32
    %24 = arith.cmpi slt, %arg1, %c1_i32 : i32
    %25 = arith.extui %24 : i1 to i32
    %c0_i32_14 = arith.constant 0 : i32
    %26 = arith.cmpi ne, %25, %c0_i32_14 : i32
    scf.if %26 {
      %c64_i32_50 = arith.constant 64 : i32
      %90 = arith.addi %1, %c64_i32_50 : i32
      %c0_51 = arith.constant 0 : index
      %91 = arith.index_cast %90 : i32 to index
      %c0_52 = arith.constant 0 : index
      %92 = vector.load %arg2[%c0_51, %91, %c0_52] : memref<1x128x128xf32, #tpu.memory_space<vmem>>, vector<1x1x128xf32>
      %93 = vector.shape_cast %92 : vector<1x1x128xf32> to vector<1x128xf32>
      %c72_53 = arith.constant 72 : index
      %c0_54 = arith.constant 0 : index
      %94 = vector.load %arg13[%c72_53, %c0_54] : memref<80x512xf32, #tpu.memory_space<vmem>>, vector<1x128xf32>
      tpu.vector_store %arg13[%c72_53, %c0_54], %93 {strides = array<i32>} : memref<80x512xf32, #tpu.memory_space<vmem>>, vector<1x128xf32>,
      %c64_i32_55 = arith.constant 64 : i32
      %95 = arith.addi %1, %c64_i32_55 : i32
      %c0_56 = arith.constant 0 : index
      %96 = arith.index_cast %95 : i32 to index
      %c0_57 = arith.constant 0 : index
      %97 = vector.load %arg3[%c0_56, %96, %c0_57] : memref<1x128x128xf32, #tpu.memory_space<vmem>>, vector<1x1x128xf32>
      %98 = vector.shape_cast %97 : vector<1x1x128xf32> to vector<1x128xf32>
      %c72_58 = arith.constant 72 : index
      %c128_59 = arith.constant 128 : index
      %99 = vector.load %arg13[%c72_58, %c128_59] : memref<80x512xf32, #tpu.memory_space<vmem>>, vector<1x128xf32>
      tpu.vector_store %arg13[%c72_58, %c128_59], %98 {strides = array<i32>} : memref<80x512xf32, #tpu.memory_space<vmem>>, vector<1x128xf32>,
      %c64_i32_60 = arith.constant 64 : i32
      %100 = arith.addi %1, %c64_i32_60 : i32
      %c0_61 = arith.constant 0 : index
      %101 = arith.index_cast %100 : i32 to index
      %c0_62 = arith.constant 0 : index
      %102 = vector.load %arg4[%c0_61, %101, %c0_62] : memref<1x128x128xf32, #tpu.memory_space<vmem>>, vector<1x1x128xf32>
      %103 = vector.shape_cast %102 : vector<1x1x128xf32> to vector<1x128xf32>
      %c72_63 = arith.constant 72 : index
      %c256_64 = arith.constant 256 : index
      %104 = vector.load %arg13[%c72_63, %c256_64] : memref<80x512xf32, #tpu.memory_space<vmem>>, vector<1x128xf32>
      tpu.vector_store %arg13[%c72_63, %c256_64], %103 {strides = array<i32>} : memref<80x512xf32, #tpu.memory_space<vmem>>, vector<1x128xf32>,
      %c64_i32_65 = arith.constant 64 : i32
      %105 = arith.addi %1, %c64_i32_65 : i32
      %c0_66 = arith.constant 0 : index
      %106 = arith.index_cast %105 : i32 to index
      %c0_67 = arith.constant 0 : index
      %107 = vector.load %arg5[%c0_66, %106, %c0_67] : memref<1x128x128xf32, #tpu.memory_space<vmem>>, vector<1x1x128xf32>
      %108 = vector.shape_cast %107 : vector<1x1x128xf32> to vector<1x128xf32>
      %c72_68 = arith.constant 72 : index
      %c384_69 = arith.constant 384 : index
      %109 = vector.load %arg13[%c72_68, %c384_69] : memref<80x512xf32, #tpu.memory_space<vmem>>, vector<1x128xf32>
      tpu.vector_store %arg13[%c72_68, %c384_69], %108 {strides = array<i32>} : memref<80x512xf32, #tpu.memory_space<vmem>>, vector<1x128xf32>,
    } else {
    }
    %c7_15 = arith.constant 7 : index
    %c0_16 = arith.constant 0 : index
    %27 = vector.load %arg13[%c7_15, %c0_16] : memref<80x512xf32, #tpu.memory_space<vmem>>, vector<64x512xf32>
    %28 = arith.truncf %27 : vector<64x512xf32> to vector<64x512xbf16>
    %c8_17 = arith.constant 8 : index
    %c0_18 = arith.constant 0 : index
    %29 = vector.load %arg13[%c8_17, %c0_18] : memref<80x512xf32, #tpu.memory_space<vmem>>, vector<64x512xf32>
    %30 = arith.truncf %29 : vector<64x512xf32> to vector<64x512xbf16>
    %c9 = arith.constant 9 : index
    %c0_19 = arith.constant 0 : index
    %31 = vector.load %arg13[%c9, %c0_19] : memref<80x512xf32, #tpu.memory_space<vmem>>, vector<64x512xf32>
    %32 = arith.truncf %31 : vector<64x512xf32> to vector<64x512xbf16>
    %c0_20 = arith.constant 0 : index
    %c0_21 = arith.constant 0 : index
    %c0_22 = arith.constant 0 : index
    %33 = vector.load %arg6[%c0_20, %c0_21, %c0_22] : memref<3x512x256xbf16, #tpu.memory_space<vmem>>, vector<1x512x256xbf16>
    %34 = vector.shape_cast %33 : vector<1x512x256xbf16> to vector<512x256xbf16>
    %cst_23 = arith.constant dense<0.000000e+00> : vector<64x256xf32>
    %35 = tpu.matmul %28, %34, %cst_23 {dimension_numbers = #tpu.dot_dimension_numbers<[1], [0], [0], [1], [0, 0, 1, 1], [], []>} : vector<64x512xbf16>, vector<512x256xbf16>, vector<64x256xf32> -> vector<64x256xf32>
    %c1 = arith.constant 1 : index
    %c0_24 = arith.constant 0 : index
    %c0_25 = arith.constant 0 : index
    %36 = vector.load %arg6[%c1, %c0_24, %c0_25] : memref<3x512x256xbf16, #tpu.memory_space<vmem>>, vector<1x512x256xbf16>
    %37 = vector.shape_cast %36 : vector<1x512x256xbf16> to vector<512x256xbf16>
    %cst_26 = arith.constant dense<0.000000e+00> : vector<64x256xf32>
    %38 = tpu.matmul %30, %37, %cst_26 {dimension_numbers = #tpu.dot_dimension_numbers<[1], [0], [0], [1], [0, 0, 1, 1], [], []>} : vector<64x512xbf16>, vector<512x256xbf16>, vector<64x256xf32> -> vector<64x256xf32>
    %39 = arith.addf %35, %38 : vector<64x256xf32>
    %c2 = arith.constant 2 : index
    %c0_27 = arith.constant 0 : index
    %c0_28 = arith.constant 0 : index
    %40 = vector.load %arg6[%c2, %c0_27, %c0_28] : memref<3x512x256xbf16, #tpu.memory_space<vmem>>, vector<1x512x256xbf16>
    %41 = vector.shape_cast %40 : vector<1x512x256xbf16> to vector<512x256xbf16>
    %cst_29 = arith.constant dense<0.000000e+00> : vector<64x256xf32>
    %42 = tpu.matmul %32, %41, %cst_29 {dimension_numbers = #tpu.dot_dimension_numbers<[1], [0], [0], [1], [0, 0, 1, 1], [], []>} : vector<64x512xbf16>, vector<512x256xbf16>, vector<64x256xf32> -> vector<64x256xf32>
    %43 = arith.addf %39, %42 : vector<64x256xf32>
    %c0_30 = arith.constant 0 : index
    %c0_31 = arith.constant 0 : index
    %44 = vector.load %arg7[%c0_30, %c0_31] : memref<1x256xf32, #tpu.memory_space<vmem>>, vector<1x256xf32>
    %45 = vector.broadcast %44 : vector<1x256xf32> to vector<64x256xf32>
    %46 = arith.addf %43, %45 : vector<64x256xf32>
    %cst_32 = arith.constant 0.000000e+00 : f32
    %47 = vector.broadcast %cst_32 : f32 to vector<64x256xf32>
    %48 = arith.maximumf %46, %47 : vector<64x256xf32>
    %49 = arith.truncf %48 : vector<64x256xf32> to vector<64x256xbf16>
    %c0_33 = arith.constant 0 : index
    %c0_34 = arith.constant 0 : index
    %50 = vector.load %arg8[%c0_33, %c0_34] : memref<256x256xbf16, #tpu.memory_space<vmem>>, vector<256x256xbf16>
    %cst_35 = arith.constant dense<0.000000e+00> : vector<64x256xf32>
    %51 = tpu.matmul %49, %50, %cst_35 {dimension_numbers = #tpu.dot_dimension_numbers<[1], [0], [0], [1], [0, 0, 1, 1], [], []>} : vector<64x256xbf16>, vector<256x256xbf16>, vector<64x256xf32> -> vector<64x256xf32>
    %c0_36 = arith.constant 0 : index
    %c0_37 = arith.constant 0 : index
    %52 = vector.load %arg9[%c0_36, %c0_37] : memref<1x256xf32, #tpu.memory_space<vmem>>, vector<1x256xf32>
    %53 = vector.broadcast %52 : vector<1x256xf32> to vector<64x256xf32>
    %54 = arith.addf %51, %53 : vector<64x256xf32>
    %cst_38 = arith.constant 0.000000e+00 : f32
    %55 = vector.broadcast %cst_38 : f32 to vector<64x256xf32>
    %56 = arith.maximumf %54, %55 : vector<64x256xf32>
    %57 = vector.broadcast %cst_38 : f32 to vector<64x256xf32>
    %58 = arith.subf %54, %57 : vector<64x256xf32>
    %59 = arith.cmpf one, %58, %58 : vector<64x256xf32>
    %60 = vector.broadcast %cst_38 : f32 to vector<64x256xf32>
    %61 = arith.addf %54, %60 : vector<64x256xf32>
    %62 = math.absf %58 : vector<64x256xf32>
    %cst_39 = arith.constant 0.000000e+00 : f32
    %63 = vector.broadcast %cst_39 : f32 to vector<64x256xf32>
    %64 = arith.subf %63, %62 : vector<64x256xf32>
    %65 = math.exp %64 : vector<64x256xf32>
    %66 = math.log1p %65 : vector<64x256xf32>
    %67 = arith.addf %56, %66 : vector<64x256xf32>
    %68 = arith.select %59, %61, %67 : vector<64x256xi1>, vector<64x256xf32>
    %69 = math.tanh %68 : vector<64x256xf32>
    %70 = arith.mulf %54, %69 : vector<64x256xf32>
    %71 = arith.truncf %70 : vector<64x256xf32> to vector<64x256xbf16>
    %c0_40 = arith.constant 0 : index
    %c0_41 = arith.constant 0 : index
    %72 = vector.load %arg10[%c0_40, %c0_41] : memref<256x128xbf16, #tpu.memory_space<vmem>>, vector<256x128xbf16>
    %cst_42 = arith.constant dense<0.000000e+00> : vector<64x128xf32>
    %73 = tpu.matmul %71, %72, %cst_42 {dimension_numbers = #tpu.dot_dimension_numbers<[1], [0], [0], [1], [0, 0, 1, 1], [], []>} : vector<64x256xbf16>, vector<256x128xbf16>, vector<64x128xf32> -> vector<64x128xf32>
    %c0_43 = arith.constant 0 : index
    %c0_44 = arith.constant 0 : index
    %74 = vector.load %arg11[%c0_43, %c0_44] : memref<1x128xf32, #tpu.memory_space<vmem>>, vector<1x128xf32>
    %75 = vector.broadcast %74 : vector<1x128xf32> to vector<64x128xf32>
    %76 = arith.addf %73, %75 : vector<64x128xf32>
    %cst_45 = arith.constant dense<0xFF800000> : vector<64xf32>
    %77 = vector.multi_reduction <maximumf>, %76, %cst_45 [1] : vector<64x128xf32> to vector<64xf32>
    %78 = vector.shape_cast %77 : vector<64xf32> to vector<64x1xf32>
    %79 = vector.broadcast %78 : vector<64x1xf32> to vector<64x128xf32>
    %80 = arith.subf %76, %79 : vector<64x128xf32>
    %81 = math.exp %80 : vector<64x128xf32>
    %cst_46 = arith.constant dense<0.000000e+00> : vector<64xf32>
    %82 = vector.multi_reduction <add>, %81, %cst_46 [1] : vector<64x128xf32> to vector<64xf32>
    %83 = vector.shape_cast %82 : vector<64xf32> to vector<64x1xf32>
    %84 = math.log %83 : vector<64x1xf32>
    %85 = vector.broadcast %84 : vector<64x1xf32> to vector<64x128xf32>
    %86 = arith.subf %80, %85 : vector<64x128xf32>
    %c0_47 = arith.constant 0 : index
    %c0_48 = arith.constant 0 : index
    %c0_49 = arith.constant 0 : index
    %87 = vector.load %arg12[%c0_47, %c0_48, %c0_49] : memref<1x64x128xf32, #tpu.memory_space<vmem>>, vector<1x64x128xf32>
    %88 = vector.shape_cast %87 : vector<1x64x128xf32> to vector<64x128xf32>
    %89 = vector.shape_cast %86 : vector<64x128xf32> to vector<1x64x128xf32>
    tpu.vector_store %arg12[%c0_47, %c0_48, %c0_49], %89 {strides = array<i32>} : memref<1x64x128xf32, #tpu.memory_space<vmem>>, vector<1x64x128xf32>,
    return
  }
  func.func @transform_0(%arg0: i32, %arg1: i32) -> (i32, i32, i32) {
    %c0_i32 = arith.constant 0 : i32
    %c0_i32_0 = arith.constant 0 : i32
    %c0_i32_1 = arith.constant 0 : i32
    return %arg0, %c0_i32, %c0_i32_0 : i32, i32, i32
  }
  func.func @transform_1(%arg0: i32, %arg1: i32) -> (i32, i32, i32) {
    %c0_i32 = arith.constant 0 : i32
    %c0_i32_0 = arith.constant 0 : i32
    %c0_i32_1 = arith.constant 0 : i32
    return %arg0, %c0_i32, %c0_i32_0 : i32, i32, i32
  }
  func.func @transform_2(%arg0: i32, %arg1: i32) -> (i32, i32, i32) {
    %c0_i32 = arith.constant 0 : i32
    %c0_i32_0 = arith.constant 0 : i32
    %c0_i32_1 = arith.constant 0 : i32
    return %arg0, %c0_i32, %c0_i32_0 : i32, i32, i32
  }
  func.func @transform_3(%arg0: i32, %arg1: i32) -> (i32, i32, i32) {
    %c0_i32 = arith.constant 0 : i32
    %c0_i32_0 = arith.constant 0 : i32
    %c0_i32_1 = arith.constant 0 : i32
    return %arg0, %c0_i32, %c0_i32_0 : i32, i32, i32
  }
  func.func @transform_4(%arg0: i32, %arg1: i32) -> (i32, i32, i32) {
    %c0_i32 = arith.constant 0 : i32
    %c0_i32_0 = arith.constant 0 : i32
    %c0_i32_1 = arith.constant 0 : i32
    %c0_i32_2 = arith.constant 0 : i32
    return %c0_i32, %c0_i32_0, %c0_i32_1 : i32, i32, i32
  }
  func.func @transform_5(%arg0: i32, %arg1: i32) -> (i32, i32) {
    %c0_i32 = arith.constant 0 : i32
    %c0_i32_0 = arith.constant 0 : i32
    %c0_i32_1 = arith.constant 0 : i32
    return %c0_i32, %c0_i32_0 : i32, i32
  }
  func.func @transform_6(%arg0: i32, %arg1: i32) -> (i32, i32) {
    %c0_i32 = arith.constant 0 : i32
    %c0_i32_0 = arith.constant 0 : i32
    %c0_i32_1 = arith.constant 0 : i32
    return %c0_i32, %c0_i32_0 : i32, i32
  }
  func.func @transform_7(%arg0: i32, %arg1: i32) -> (i32, i32) {
    %c0_i32 = arith.constant 0 : i32
    %c0_i32_0 = arith.constant 0 : i32
    %c0_i32_1 = arith.constant 0 : i32
    return %c0_i32, %c0_i32_0 : i32, i32
  }
  func.func @transform_8(%arg0: i32, %arg1: i32) -> (i32, i32) {
    %c0_i32 = arith.constant 0 : i32
    %c0_i32_0 = arith.constant 0 : i32
    %c0_i32_1 = arith.constant 0 : i32
    return %c0_i32, %c0_i32_0 : i32, i32
  }
  func.func @transform_9(%arg0: i32, %arg1: i32) -> (i32, i32) {
    %c0_i32 = arith.constant 0 : i32
    %c0_i32_0 = arith.constant 0 : i32
    %c0_i32_1 = arith.constant 0 : i32
    return %c0_i32, %c0_i32_0 : i32, i32
  }
  func.func @transform_10(%arg0: i32, %arg1: i32) -> (i32, i32, i32) {
    %c0_i32 = arith.constant 0 : i32
    %c0_i32_0 = arith.constant 0 : i32
    return %arg0, %arg1, %c0_i32 : i32, i32, i32
  }
}

module attributes {stable_mosaic.version = 11 : i64} {
  func.func @_fused_kernel(%arg0: i32, %arg1: i32, %arg2: memref<1x128x128xf32, #tpu.memory_space<vmem>>, %arg3: memref<1x128x128xf32, #tpu.memory_space<vmem>>, %arg4: memref<1x128x128xf32, #tpu.memory_space<vmem>>, %arg5: memref<1x128x128xf32, #tpu.memory_space<vmem>>, %arg6: memref<3x512x256xbf16, #tpu.memory_space<vmem>>, %arg7: memref<1x256xf32, #tpu.memory_space<vmem>>, %arg8: memref<256x256xbf16, #tpu.memory_space<vmem>>, %arg9: memref<1x256xf32, #tpu.memory_space<vmem>>, %arg10: memref<256x128xbf16, #tpu.memory_space<vmem>>, %arg11: memref<1x128xf32, #tpu.memory_space<vmem>>, %arg12: memref<1x64x128xf32, #tpu.memory_space<vmem>>, %arg13: memref<80x512xf32, #tpu.memory_space<vmem>>) attributes {dimension_semantics = [#tpu.dimension_semantics<parallel>, #tpu.dimension_semantics<parallel>], iteration_bounds = array<i64: 2, 2>, scalar_prefetch = 0 : i64, scratch_operands = 1 : i64, tpu.core_type = #tpu.core_type<tc>, window_params = [{transform_indices = @transform_0, window_bounds = array<i64: 1, 128, 128>}, {transform_indices = @transform_1, window_bounds = array<i64: 1, 128, 128>}, {transform_indices = @transform_2, window_bounds = array<i64: 1, 128, 128>}, {transform_indices = @transform_3, window_bounds = array<i64: 1, 128, 128>}, {pipeline_mode = #tpu.pipeline_mode<synchronous>, transform_indices = @transform_4, window_bounds = array<i64: 3, 512, 256>}, {pipeline_mode = #tpu.pipeline_mode<synchronous>, transform_indices = @transform_5, window_bounds = array<i64: 1, 256>}, {pipeline_mode = #tpu.pipeline_mode<synchronous>, transform_indices = @transform_6, window_bounds = array<i64: 256, 256>}, {pipeline_mode = #tpu.pipeline_mode<synchronous>, transform_indices = @transform_7, window_bounds = array<i64: 1, 256>}, {pipeline_mode = #tpu.pipeline_mode<synchronous>, transform_indices = @transform_8, window_bounds = array<i64: 256, 128>}, {pipeline_mode = #tpu.pipeline_mode<synchronous>, transform_indices = @transform_9, window_bounds = array<i64: 1, 128>}, {transform_indices = @transform_10, window_bounds = array<i64: 1, 64, 128>}]} {
    %c64_i32 = arith.constant 64 : i32
    %0 = arith.muli %arg1, %c64_i32 : i32
    %1 = tpu.assume_multiple %0, 8 : i32
    %c0 = arith.constant 0 : index
    %2 = arith.index_cast %1 : i32 to index
    %c0_0 = arith.constant 0 : index
    %3 = vector.load %arg2[%c0, %2, %c0_0] : memref<1x128x128xf32, #tpu.memory_space<vmem>>, vector<1x64x128xf32>
    %4 = vector.shape_cast %3 : vector<1x64x128xf32> to vector<64x128xf32>
    %c8 = arith.constant 8 : index
    %c0_1 = arith.constant 0 : index
    %5 = vector.load %arg13[%c8, %c0_1] : memref<80x512xf32, #tpu.memory_space<vmem>>, vector<64x128xf32>
    tpu.vector_store %arg13[%c8, %c0_1], %4 {strides = array<i32>} : memref<80x512xf32, #tpu.memory_space<vmem>>, vector<64x128xf32>,
    %c0_2 = arith.constant 0 : index
    %6 = arith.index_cast %1 : i32 to index
    %c0_3 = arith.constant 0 : index
    %7 = vector.load %arg3[%c0_2, %6, %c0_3] : memref<1x128x128xf32, #tpu.memory_space<vmem>>, vector<1x64x128xf32>
    %8 = vector.shape_cast %7 : vector<1x64x128xf32> to vector<64x128xf32>
    %c8_4 = arith.constant 8 : index
    %c128 = arith.constant 128 : index
    %9 = vector.load %arg13[%c8_4, %c128] : memref<80x512xf32, #tpu.memory_space<vmem>>, vector<64x128xf32>
    tpu.vector_store %arg13[%c8_4, %c128], %8 {strides = array<i32>} : memref<80x512xf32, #tpu.memory_space<vmem>>, vector<64x128xf32>,
    %c0_5 = arith.constant 0 : index
    %10 = arith.index_cast %1 : i32 to index
    %c0_6 = arith.constant 0 : index
    %11 = vector.load %arg4[%c0_5, %10, %c0_6] : memref<1x128x128xf32, #tpu.memory_space<vmem>>, vector<1x64x128xf32>
    %12 = vector.shape_cast %11 : vector<1x64x128xf32> to vector<64x128xf32>
    %c8_7 = arith.constant 8 : index
    %c256 = arith.constant 256 : index
    %13 = vector.load %arg13[%c8_7, %c256] : memref<80x512xf32, #tpu.memory_space<vmem>>, vector<64x128xf32>
    tpu.vector_store %arg13[%c8_7, %c256], %12 {strides = array<i32>} : memref<80x512xf32, #tpu.memory_space<vmem>>, vector<64x128xf32>,
    %c0_8 = arith.constant 0 : index
    %14 = arith.index_cast %1 : i32 to index
    %c0_9 = arith.constant 0 : index
    %15 = vector.load %arg5[%c0_8, %14, %c0_9] : memref<1x128x128xf32, #tpu.memory_space<vmem>>, vector<1x64x128xf32>
    %16 = vector.shape_cast %15 : vector<1x64x128xf32> to vector<64x128xf32>
    %c8_10 = arith.constant 8 : index
    %c384 = arith.constant 384 : index
    %17 = vector.load %arg13[%c8_10, %c384] : memref<80x512xf32, #tpu.memory_space<vmem>>, vector<64x128xf32>
    tpu.vector_store %arg13[%c8_10, %c384], %16 {strides = array<i32>} : memref<80x512xf32, #tpu.memory_space<vmem>>, vector<64x128xf32>,
    %cst = arith.constant 0.000000e+00 : f32
    %18 = vector.broadcast %cst : f32 to vector<1x512xf32>
    %c7 = arith.constant 7 : index
    %c0_11 = arith.constant 0 : index
    %19 = vector.load %arg13[%c7, %c0_11] : memref<80x512xf32, #tpu.memory_space<vmem>>, vector<1x512xf32>
    tpu.vector_store %arg13[%c7, %c0_11], %18 {strides = array<i32>} : memref<80x512xf32, #tpu.memory_space<vmem>>, vector<1x512xf32>,
    %c72 = arith.constant 72 : index
    %c0_12 = arith.constant 0 : index
    %20 = vector.load %arg13[%c72, %c0_12] : memref<80x512xf32, #tpu.memory_space<vmem>>, vector<1x512xf32>
    tpu.vector_store %arg13[%c72, %c0_12], %18 {strides = array<i32>} : memref<80x512xf32, #tpu.memory_space<vmem>>, vector<1x512xf32>,
    %c0_i32 = arith.constant 0 : i32
    %21 = arith.cmpi sgt, %arg1, %c0_i32 : i32
    %22 = arith.extui %21 : i1 to i32
    %c0_i32_13 = arith.constant 0 : i32
    %23 = arith.cmpi ne, %22, %c0_i32_13 : i32
    scf.if %23 {
      %c1_i32_50 = arith.constant 1 : i32
      %90 = arith.subi %1, %c1_i32_50 : i32
      %c0_51 = arith.constant 0 : index
      %91 = arith.index_cast %90 : i32 to index
      %c0_52 = arith.constant 0 : index
      %92 = vector.load %arg2[%c0_51, %91, %c0_52] : memref<1x128x128xf32, #tpu.memory_space<vmem>>, vector<1x1x128xf32>
      %93 = vector.shape_cast %92 : vector<1x1x128xf32> to vector<1x128xf32>
      %c7_53 = arith.constant 7 : index
      %c0_54 = arith.constant 0 : index
      %94 = vector.load %arg13[%c7_53, %c0_54] : memref<80x512xf32, #tpu.memory_space<vmem>>, vector<1x128xf32>
      tpu.vector_store %arg13[%c7_53, %c0_54], %93 {strides = array<i32>} : memref<80x512xf32, #tpu.memory_space<vmem>>, vector<1x128xf32>,
      %c1_i32_55 = arith.constant 1 : i32
      %95 = arith.subi %1, %c1_i32_55 : i32
      %c0_56 = arith.constant 0 : index
      %96 = arith.index_cast %95 : i32 to index
      %c0_57 = arith.constant 0 : index
      %97 = vector.load %arg3[%c0_56, %96, %c0_57] : memref<1x128x128xf32, #tpu.memory_space<vmem>>, vector<1x1x128xf32>
      %98 = vector.shape_cast %97 : vector<1x1x128xf32> to vector<1x128xf32>
      %c7_58 = arith.constant 7 : index
      %c128_59 = arith.constant 128 : index
      %99 = vector.load %arg13[%c7_58, %c128_59] : memref<80x512xf32, #tpu.memory_space<vmem>>, vector<1x128xf32>
      tpu.vector_store %arg13[%c7_58, %c128_59], %98 {strides = array<i32>} : memref<80x512xf32, #tpu.memory_space<vmem>>, vector<1x128xf32>,
      %c1_i32_60 = arith.constant 1 : i32
      %100 = arith.subi %1, %c1_i32_60 : i32
      %c0_61 = arith.constant 0 : index
      %101 = arith.index_cast %100 : i32 to index
      %c0_62 = arith.constant 0 : index
      %102 = vector.load %arg4[%c0_61, %101, %c0_62] : memref<1x128x128xf32, #tpu.memory_space<vmem>>, vector<1x1x128xf32>
      %103 = vector.shape_cast %102 : vector<1x1x128xf32> to vector<1x128xf32>
      %c7_63 = arith.constant 7 : index
      %c256_64 = arith.constant 256 : index
      %104 = vector.load %arg13[%c7_63, %c256_64] : memref<80x512xf32, #tpu.memory_space<vmem>>, vector<1x128xf32>
      tpu.vector_store %arg13[%c7_63, %c256_64], %103 {strides = array<i32>} : memref<80x512xf32, #tpu.memory_space<vmem>>, vector<1x128xf32>,
      %c1_i32_65 = arith.constant 1 : i32
      %105 = arith.subi %1, %c1_i32_65 : i32
      %c0_66 = arith.constant 0 : index
      %106 = arith.index_cast %105 : i32 to index
      %c0_67 = arith.constant 0 : index
      %107 = vector.load %arg5[%c0_66, %106, %c0_67] : memref<1x128x128xf32, #tpu.memory_space<vmem>>, vector<1x1x128xf32>
      %108 = vector.shape_cast %107 : vector<1x1x128xf32> to vector<1x128xf32>
      %c7_68 = arith.constant 7 : index
      %c384_69 = arith.constant 384 : index
      %109 = vector.load %arg13[%c7_68, %c384_69] : memref<80x512xf32, #tpu.memory_space<vmem>>, vector<1x128xf32>
      tpu.vector_store %arg13[%c7_68, %c384_69], %108 {strides = array<i32>} : memref<80x512xf32, #tpu.memory_space<vmem>>, vector<1x128xf32>,
    } else {
    }
    %c1_i32 = arith.constant 1 : i32
    %24 = arith.cmpi slt, %arg1, %c1_i32 : i32
    %25 = arith.extui %24 : i1 to i32
    %c0_i32_14 = arith.constant 0 : i32
    %26 = arith.cmpi ne, %25, %c0_i32_14 : i32
    scf.if %26 {
      %c64_i32_50 = arith.constant 64 : i32
      %90 = arith.addi %1, %c64_i32_50 : i32
      %c0_51 = arith.constant 0 : index
      %91 = arith.index_cast %90 : i32 to index
      %c0_52 = arith.constant 0 : index
      %92 = vector.load %arg2[%c0_51, %91, %c0_52] : memref<1x128x128xf32, #tpu.memory_space<vmem>>, vector<1x1x128xf32>
      %93 = vector.shape_cast %92 : vector<1x1x128xf32> to vector<1x128xf32>
      %c72_53 = arith.constant 72 : index
      %c0_54 = arith.constant 0 : index
      %94 = vector.load %arg13[%c72_53, %c0_54] : memref<80x512xf32, #tpu.memory_space<vmem>>, vector<1x128xf32>
      tpu.vector_store %arg13[%c72_53, %c0_54], %93 {strides = array<i32>} : memref<80x512xf32, #tpu.memory_space<vmem>>, vector<1x128xf32>,
      %c64_i32_55 = arith.constant 64 : i32
      %95 = arith.addi %1, %c64_i32_55 : i32
      %c0_56 = arith.constant 0 : index
      %96 = arith.index_cast %95 : i32 to index
      %c0_57 = arith.constant 0 : index
      %97 = vector.load %arg3[%c0_56, %96, %c0_57] : memref<1x128x128xf32, #tpu.memory_space<vmem>>, vector<1x1x128xf32>
      %98 = vector.shape_cast %97 : vector<1x1x128xf32> to vector<1x128xf32>
      %c72_58 = arith.constant 72 : index
      %c128_59 = arith.constant 128 : index
      %99 = vector.load %arg13[%c72_58, %c128_59] : memref<80x512xf32, #tpu.memory_space<vmem>>, vector<1x128xf32>
      tpu.vector_store %arg13[%c72_58, %c128_59], %98 {strides = array<i32>} : memref<80x512xf32, #tpu.memory_space<vmem>>, vector<1x128xf32>,
      %c64_i32_60 = arith.constant 64 : i32
      %100 = arith.addi %1, %c64_i32_60 : i32
      %c0_61 = arith.constant 0 : index
      %101 = arith.index_cast %100 : i32 to index
      %c0_62 = arith.constant 0 : index
      %102 = vector.load %arg4[%c0_61, %101, %c0_62] : memref<1x128x128xf32, #tpu.memory_space<vmem>>, vector<1x1x128xf32>
      %103 = vector.shape_cast %102 : vector<1x1x128xf32> to vector<1x128xf32>
      %c72_63 = arith.constant 72 : index
      %c256_64 = arith.constant 256 : index
      %104 = vector.load %arg13[%c72_63, %c256_64] : memref<80x512xf32, #tpu.memory_space<vmem>>, vector<1x128xf32>
      tpu.vector_store %arg13[%c72_63, %c256_64], %103 {strides = array<i32>} : memref<80x512xf32, #tpu.memory_space<vmem>>, vector<1x128xf32>,
      %c64_i32_65 = arith.constant 64 : i32
      %105 = arith.addi %1, %c64_i32_65 : i32
      %c0_66 = arith.constant 0 : index
      %106 = arith.index_cast %105 : i32 to index
      %c0_67 = arith.constant 0 : index
      %107 = vector.load %arg5[%c0_66, %106, %c0_67] : memref<1x128x128xf32, #tpu.memory_space<vmem>>, vector<1x1x128xf32>
      %108 = vector.shape_cast %107 : vector<1x1x128xf32> to vector<1x128xf32>
      %c72_68 = arith.constant 72 : index
      %c384_69 = arith.constant 384 : index
      %109 = vector.load %arg13[%c72_68, %c384_69] : memref<80x512xf32, #tpu.memory_space<vmem>>, vector<1x128xf32>
      tpu.vector_store %arg13[%c72_68, %c384_69], %108 {strides = array<i32>} : memref<80x512xf32, #tpu.memory_space<vmem>>, vector<1x128xf32>,
    } else {
    }
    %c7_15 = arith.constant 7 : index
    %c0_16 = arith.constant 0 : index
    %27 = vector.load %arg13[%c7_15, %c0_16] : memref<80x512xf32, #tpu.memory_space<vmem>>, vector<64x512xf32>
    %28 = arith.truncf %27 : vector<64x512xf32> to vector<64x512xbf16>
    %c8_17 = arith.constant 8 : index
    %c0_18 = arith.constant 0 : index
    %29 = vector.load %arg13[%c8_17, %c0_18] : memref<80x512xf32, #tpu.memory_space<vmem>>, vector<64x512xf32>
    %30 = arith.truncf %29 : vector<64x512xf32> to vector<64x512xbf16>
    %c9 = arith.constant 9 : index
    %c0_19 = arith.constant 0 : index
    %31 = vector.load %arg13[%c9, %c0_19] : memref<80x512xf32, #tpu.memory_space<vmem>>, vector<64x512xf32>
    %32 = arith.truncf %31 : vector<64x512xf32> to vector<64x512xbf16>
    %c0_20 = arith.constant 0 : index
    %c0_21 = arith.constant 0 : index
    %c0_22 = arith.constant 0 : index
    %33 = vector.load %arg6[%c0_20, %c0_21, %c0_22] : memref<3x512x256xbf16, #tpu.memory_space<vmem>>, vector<1x512x256xbf16>
    %34 = vector.shape_cast %33 : vector<1x512x256xbf16> to vector<512x256xbf16>
    %cst_23 = arith.constant dense<0.000000e+00> : vector<64x256xf32>
    %35 = tpu.matmul %28, %34, %cst_23 {dimension_numbers = #tpu.dot_dimension_numbers<[1], [0], [0], [1], [0, 0, 1, 1], [], []>} : vector<64x512xbf16>, vector<512x256xbf16>, vector<64x256xf32> -> vector<64x256xf32>
    %c1 = arith.constant 1 : index
    %c0_24 = arith.constant 0 : index
    %c0_25 = arith.constant 0 : index
    %36 = vector.load %arg6[%c1, %c0_24, %c0_25] : memref<3x512x256xbf16, #tpu.memory_space<vmem>>, vector<1x512x256xbf16>
    %37 = vector.shape_cast %36 : vector<1x512x256xbf16> to vector<512x256xbf16>
    %cst_26 = arith.constant dense<0.000000e+00> : vector<64x256xf32>
    %38 = tpu.matmul %30, %37, %cst_26 {dimension_numbers = #tpu.dot_dimension_numbers<[1], [0], [0], [1], [0, 0, 1, 1], [], []>} : vector<64x512xbf16>, vector<512x256xbf16>, vector<64x256xf32> -> vector<64x256xf32>
    %39 = arith.addf %35, %38 : vector<64x256xf32>
    %c2 = arith.constant 2 : index
    %c0_27 = arith.constant 0 : index
    %c0_28 = arith.constant 0 : index
    %40 = vector.load %arg6[%c2, %c0_27, %c0_28] : memref<3x512x256xbf16, #tpu.memory_space<vmem>>, vector<1x512x256xbf16>
    %41 = vector.shape_cast %40 : vector<1x512x256xbf16> to vector<512x256xbf16>
    %cst_29 = arith.constant dense<0.000000e+00> : vector<64x256xf32>
    %42 = tpu.matmul %32, %41, %cst_29 {dimension_numbers = #tpu.dot_dimension_numbers<[1], [0], [0], [1], [0, 0, 1, 1], [], []>} : vector<64x512xbf16>, vector<512x256xbf16>, vector<64x256xf32> -> vector<64x256xf32>
    %43 = arith.addf %39, %42 : vector<64x256xf32>
    %c0_30 = arith.constant 0 : index
    %c0_31 = arith.constant 0 : index
    %44 = vector.load %arg7[%c0_30, %c0_31] : memref<1x256xf32, #tpu.memory_space<vmem>>, vector<1x256xf32>
    %45 = vector.broadcast %44 : vector<1x256xf32> to vector<64x256xf32>
    %46 = arith.addf %43, %45 : vector<64x256xf32>
    %cst_32 = arith.constant 0.000000e+00 : f32
    %47 = vector.broadcast %cst_32 : f32 to vector<64x256xf32>
    %48 = arith.maximumf %46, %47 : vector<64x256xf32>
    %49 = arith.truncf %48 : vector<64x256xf32> to vector<64x256xbf16>
    %c0_33 = arith.constant 0 : index
    %c0_34 = arith.constant 0 : index
    %50 = vector.load %arg8[%c0_33, %c0_34] : memref<256x256xbf16, #tpu.memory_space<vmem>>, vector<256x256xbf16>
    %cst_35 = arith.constant dense<0.000000e+00> : vector<64x256xf32>
    %51 = tpu.matmul %49, %50, %cst_35 {dimension_numbers = #tpu.dot_dimension_numbers<[1], [0], [0], [1], [0, 0, 1, 1], [], []>} : vector<64x256xbf16>, vector<256x256xbf16>, vector<64x256xf32> -> vector<64x256xf32>
    %c0_36 = arith.constant 0 : index
    %c0_37 = arith.constant 0 : index
    %52 = vector.load %arg9[%c0_36, %c0_37] : memref<1x256xf32, #tpu.memory_space<vmem>>, vector<1x256xf32>
    %53 = vector.broadcast %52 : vector<1x256xf32> to vector<64x256xf32>
    %54 = arith.addf %51, %53 : vector<64x256xf32>
    %cst_38 = arith.constant 0.000000e+00 : f32
    %55 = vector.broadcast %cst_38 : f32 to vector<64x256xf32>
    %56 = arith.maximumf %54, %55 : vector<64x256xf32>
    %57 = vector.broadcast %cst_38 : f32 to vector<64x256xf32>
    %58 = arith.subf %54, %57 : vector<64x256xf32>
    %59 = arith.cmpf one, %58, %58 : vector<64x256xf32>
    %60 = vector.broadcast %cst_38 : f32 to vector<64x256xf32>
    %61 = arith.addf %54, %60 : vector<64x256xf32>
    %62 = math.absf %58 : vector<64x256xf32>
    %cst_39 = arith.constant 0.000000e+00 : f32
    %63 = vector.broadcast %cst_39 : f32 to vector<64x256xf32>
    %64 = arith.subf %63, %62 : vector<64x256xf32>
    %65 = math.exp %64 : vector<64x256xf32>
    %66 = math.log1p %65 : vector<64x256xf32>
    %67 = arith.addf %56, %66 : vector<64x256xf32>
    %68 = arith.select %59, %61, %67 : vector<64x256xi1>, vector<64x256xf32>
    %69 = math.tanh %68 : vector<64x256xf32>
    %70 = arith.mulf %54, %69 : vector<64x256xf32>
    %71 = arith.truncf %70 : vector<64x256xf32> to vector<64x256xbf16>
    %c0_40 = arith.constant 0 : index
    %c0_41 = arith.constant 0 : index
    %72 = vector.load %arg10[%c0_40, %c0_41] : memref<256x128xbf16, #tpu.memory_space<vmem>>, vector<256x128xbf16>
    %cst_42 = arith.constant dense<0.000000e+00> : vector<64x128xf32>
    %73 = tpu.matmul %71, %72, %cst_42 {dimension_numbers = #tpu.dot_dimension_numbers<[1], [0], [0], [1], [0, 0, 1, 1], [], []>} : vector<64x256xbf16>, vector<256x128xbf16>, vector<64x128xf32> -> vector<64x128xf32>
    %c0_43 = arith.constant 0 : index
    %c0_44 = arith.constant 0 : index
    %74 = vector.load %arg11[%c0_43, %c0_44] : memref<1x128xf32, #tpu.memory_space<vmem>>, vector<1x128xf32>
    %75 = vector.broadcast %74 : vector<1x128xf32> to vector<64x128xf32>
    %76 = arith.addf %73, %75 : vector<64x128xf32>
    %cst_45 = arith.constant dense<0xFF800000> : vector<64xf32>
    %77 = vector.multi_reduction <maximumf>, %76, %cst_45 [1] : vector<64x128xf32> to vector<64xf32>
    %78 = vector.shape_cast %77 : vector<64xf32> to vector<64x1xf32>
    %79 = vector.broadcast %78 : vector<64x1xf32> to vector<64x128xf32>
    %80 = arith.subf %76, %79 : vector<64x128xf32>
    %81 = math.exp %80 : vector<64x128xf32>
    %cst_46 = arith.constant dense<0.000000e+00> : vector<64xf32>
    %82 = vector.multi_reduction <add>, %81, %cst_46 [1] : vector<64x128xf32> to vector<64xf32>
    %83 = vector.shape_cast %82 : vector<64xf32> to vector<64x1xf32>
    %84 = math.log %83 : vector<64x1xf32>
    %85 = vector.broadcast %84 : vector<64x1xf32> to vector<64x128xf32>
    %86 = arith.subf %80, %85 : vector<64x128xf32>
    %c0_47 = arith.constant 0 : index
    %c0_48 = arith.constant 0 : index
    %c0_49 = arith.constant 0 : index
    %87 = vector.load %arg12[%c0_47, %c0_48, %c0_49] : memref<1x64x128xf32, #tpu.memory_space<vmem>>, vector<1x64x128xf32>
    %88 = vector.shape_cast %87 : vector<1x64x128xf32> to vector<64x128xf32>
    %89 = vector.shape_cast %86 : vector<64x128xf32> to vector<1x64x128xf32>
    tpu.vector_store %arg12[%c0_47, %c0_48, %c0_49], %89 {strides = array<i32>} : memref<1x64x128xf32, #tpu.memory_space<vmem>>, vector<1x64x128xf32>,
    return
  }
  func.func @transform_0(%arg0: i32, %arg1: i32) -> (i32, i32, i32) {
    %c0_i32 = arith.constant 0 : i32
    %c0_i32_0 = arith.constant 0 : i32
    %c0_i32_1 = arith.constant 0 : i32
    return %arg0, %c0_i32, %c0_i32_0 : i32, i32, i32
  }
  func.func @transform_1(%arg0: i32, %arg1: i32) -> (i32, i32, i32) {
    %c0_i32 = arith.constant 0 : i32
    %c0_i32_0 = arith.constant 0 : i32
    %c0_i32_1 = arith.constant 0 : i32
    return %arg0, %c0_i32, %c0_i32_0 : i32, i32, i32
  }
  func.func @transform_2(%arg0: i32, %arg1: i32) -> (i32, i32, i32) {
    %c0_i32 = arith.constant 0 : i32
    %c0_i32_0 = arith.constant 0 : i32
    %c0_i32_1 = arith.constant 0 : i32
    return %arg0, %c0_i32, %c0_i32_0 : i32, i32, i32
  }
  func.func @transform_3(%arg0: i32, %arg1: i32) -> (i32, i32, i32) {
    %c0_i32 = arith.constant 0 : i32
    %c0_i32_0 = arith.constant 0 : i32
    %c0_i32_1 = arith.constant 0 : i32
    return %arg0, %c0_i32, %c0_i32_0 : i32, i32, i32
  }
  func.func @transform_4(%arg0: i32, %arg1: i32) -> (i32, i32, i32) {
    %c0_i32 = arith.constant 0 : i32
    %c0_i32_0 = arith.constant 0 : i32
    %c0_i32_1 = arith.constant 0 : i32
    %c0_i32_2 = arith.constant 0 : i32
    return %c0_i32, %c0_i32_0, %c0_i32_1 : i32, i32, i32
  }
  func.func @transform_5(%arg0: i32, %arg1: i32) -> (i32, i32) {
    %c0_i32 = arith.constant 0 : i32
    %c0_i32_0 = arith.constant 0 : i32
    %c0_i32_1 = arith.constant 0 : i32
    return %c0_i32, %c0_i32_0 : i32, i32
  }
  func.func @transform_6(%arg0: i32, %arg1: i32) -> (i32, i32) {
    %c0_i32 = arith.constant 0 : i32
    %c0_i32_0 = arith.constant 0 : i32
    %c0_i32_1 = arith.constant 0 : i32
    return %c0_i32, %c0_i32_0 : i32, i32
  }
  func.func @transform_7(%arg0: i32, %arg1: i32) -> (i32, i32) {
    %c0_i32 = arith.constant 0 : i32
    %c0_i32_0 = arith.constant 0 : i32
    %c0_i32_1 = arith.constant 0 : i32
    return %c0_i32, %c0_i32_0 : i32, i32
  }
  func.func @transform_8(%arg0: i32, %arg1: i32) -> (i32, i32) {
    %c0_i32 = arith.constant 0 : i32
    %c0_i32_0 = arith.constant 0 : i32
    %c0_i32_1 = arith.constant 0 : i32
    return %c0_i32, %c0_i32_0 : i32, i32
  }
  func.func @transform_9(%arg0: i32, %arg1: i32) -> (i32, i32) {
    %c0_i32 = arith.constant 0 : i32
    %c0_i32_0 = arith.constant 0 : i32
    %c0_i32_1 = arith.constant 0 : i32
    return %c0_i32, %c0_i32_0 : i32, i32
  }
  func.func @transform_10(%arg0: i32, %arg1: i32) -> (i32, i32, i32) {
    %c0_i32 = arith.constant 0 : i32
    %c0_i32_0 = arith.constant 0 : i32
    return %arg0, %arg1, %c0_i32 : i32, i32, i32
  }
}

</mosaic_0001>

<bundles_post_ra>
// kernel: tpu_custom_call.1
= control target key start
LH: loop header
LB: loop body
LE: loop exit
PB: predicated region body
PF: predicated region fallthrough
CT: control target
= control target key end

     0   :  { %s6555_s0 = inlined_call_operand.hbm [shape: f32[2,128,128], index: 0, kind: input, shape index: {}]   ;;  %s6556_s1 = inlined_call_operand.hbm [shape: f32[2,128,128], index: 1, kind: input, shape index: {}]   ;;  %s6557_s2 = inlined_call_operand.hbm [shape: f32[2,128,128], index: 2, kind: input, shape index: {}]   ;;  %s6558_s3 = inlined_call_operand.hbm [shape: f32[2,128,128], index: 3, kind: input, shape index: {}]   ;;  %s6559_s4 = inlined_call_operand.hbm [shape: bf16[3,512,256], index: 4, kind: input, shape index: {}]   ;;  %s6560_s5 = inlined_call_operand.vmem [shape: f32[1,256], index: 5, kind: input, shape index: {}]   ;;  %s6561_s6 = inlined_call_operand.hbm [shape: bf16[256,256], index: 6, kind: input, shape index: {}]   ;;  %s6562_s7 = inlined_call_operand.vmem [shape: f32[1,256], index: 7, kind: input, shape index: {}]   ;;  %s6563_s8 = inlined_call_operand.hbm [shape: bf16[256,128], index: 8, kind: input, shape index: {}]   ;;  %s6564_s9 = inlined_call_operand.vmem [shape: f32[1,128], index: 9, kind: input, shape index: {}]   ;;  %s6565_s10 = inlined_call_operand.hbm [shape: f32[2,128,128], index: 10, kind: output, shape index: {}]  }
   0x1   :  { %6594 = sst [smem:[#allocation34_spill]] %s6555_s0 }
   0x2   :  { %6595 = sst [smem:[#allocation35_spill]] %s6556_s1 }
   0x3   :  { %6596 = sst [smem:[#allocation36_spill]] %s6559_s4 }
   0x4   :  { %6597 = sst [smem:[#allocation37_spill]] %s6560_s5 }
   0x5   :  { %6598 = sst [smem:[#allocation38_spill]] %s6561_s6 }
   0x6   :  { %6599 = sst [smem:[#allocation39_spill]] %s6562_s7 }
   0x7   :  { %6600 = sst [smem:[#allocation40_spill]] %s6564_s9 }
   0x8   :  { %6601 = sst [smem:[#allocation41_spill]] %s6565_s10 }
   0x9   :  { %15 = vsyncpa [#allocation4], 0 }
   0xa   :  { %17 = vsyncpa [#allocation4 + $0x1], 0 }
   0xb   :  { %18 = vsyncpa [#allocation7], 0 }
   0xc   :  { %20 = vsyncpa [#allocation7 + $0x1], 0 }
   0xd   :  { %21 = vsyncpa [#allocation10], 0 }
   0xe   :  { %23 = vsyncpa [#allocation10 + $0x1], 0 }
   0xf   :  { %24 = vsyncpa [#allocation13], 0 }
  0x10   :  { %25 = vsyncpa [#allocation5], 0 }
  0x11   :  { %27 = vsyncpa [#allocation5 + $0x1], 0  ;;  %s5390_s13 = smov 0   ;;  %s5392_s14 = smov 0  }
  0x12   :  { %s5394_s15 = smov 0   ;;  %s5396_s16 = smov 0  }
  0x13   :  { %s5398_s17 = smov 0   ;;  %s5400_s18 = smov 0  }
  0x14   :  { %s5402_s19 = smov 0   ;;  %s5404_s20 = smov 0  }
  0x15   :  { %s5406_s21 = smov 0   ;;  %s5408_s22 = smov 0  }
  0x16   :  { %s5410_s23 = smov 0  }
  0x17 LB: > { %6602 = sst [smem:[#allocation22_spill]] %s5278_s13  ;;  %s5444_s24 = sadd.s32 4294967295, %s5318_s23   ;;  %s5318_s23 = sphi %s5410_s23, %s33_s23   ;;  %s5314_s22 = sphi %s5408_s22, %s6681_s22   ;;  %s5310_s21 = sphi %s5406_s21, %s6680_s21   ;;  %s5306_s20 = sphi %s5404_s20, %s6679_s20   ;;  %s5302_s19 = sphi %s5402_s19, %s6687_s19   ;;  %s5298_s18 = sphi %s5400_s18, %s6686_s18   ;;  %s5294_s17 = sphi %s5398_s17, %s6685_s17   ;;  %s5290_s16 = sphi %s5396_s16, %s6684_s16   ;;  %s5286_s15 = sphi %s5394_s15, %s6683_s15   ;;  %s5282_s14 = sphi %s5392_s14, %s6682_s14   ;;  %s5278_s13 = sphi %s5390_s13, %s6676_s13  }
  0x18   : > { %6603 = sst [smem:[#allocation23_spill]] %s5282_s14  ;;  %s3928_s25 = sadd.s32 4294967294, %s5318_s23  }
  0x19   : > { %6604 = sst [smem:[#allocation24_spill]] %s5302_s19  ;;  %p59_p0 = scmp.ne.s32.totalorder %s5298_s18, %s5294_s17 }
  0x1a   : > { %6605 = sst [smem:[#allocation25_spill]] %s5306_s20  ;;  %p60_p1 = scmp.eq.s32.totalorder %s5318_s23, 0 }
  0x1b   : > { %6606 = sst [smem:[#allocation26_spill]] %s5310_s21  ;;  %p65_p2 = scmp.ne.s32.totalorder %s5294_s17, %s5290_s16 }
  0x1c   : > { %6607 = sst [smem:[#allocation27_spill]] %s5314_s22  ;;  %p6571_p3 = scmp.eq.s32.totalorder %s5444_s24, 0 }
  0x1d   : > { %6608 = sst [smem:[#allocation28_spill]] %s5444_s24  ;;  %p5454_p4 = por %p60_p1, %p59_p0 }
  0x1e   : > { %p294_p5 = scmp.ne.s32.totalorder %s5286_s15, %s5282_s14  ;;  %p5462_p6 = por %p6571_p3, %p65_p2 }
  0x1f   : > { %s6609_s28 = scalar_select %p5454_p4, 1, 0 }
  0x20   : > { %s6610_s29 = scalar_select %p5462_p6, 1, 0 }
  0x21   : > { %p295_p7 = scmp.eq.s32.totalorder %s5444_s24, 3  ;;  %p300_p8 = scmp.ne.s32.totalorder %s5282_s14, %s5278_s13 }
  0x22   : > { %p301_p9 = scmp.eq.s32.totalorder %s3928_s25, 3  ;;  %p3929_p11 = scmp.ge.s32.totalorder %s5318_s23, 1 }
  0x23   : > { %p5469_p10 = por %p295_p7, %p294_p5  ;;  %p308_p13 = scmp.lt.s32.totalorder %s5318_s23, 5 }
  0x24   : > { %p5474_p12 = por %p301_p9, %p300_p8  ;;  %s5320_s16 = smov [#allocation11]  }
  0x25   : > { %s6611_s30 = scalar_select %p5469_p10, 1, 0 }
  0x26   : > { %s6613_s11 = scalar_select %p5474_p12, 1, 0 }
  0x27   : > { %6612 = sst [smem:[#allocation29_spill]] %s6611_s30  ;;  %p5479_p0 = pnand %p3929_p11, %p308_p13 }
  0x28   : > { %6614 = sst [smem:[#allocation30_spill]] %s6613_s11  ;;  %s320_s27 = sshll.u32 %s5320_s16, 4  ;;  %s321_s27 = int_to_ptr.vmem [resolvable:$true] %s320_s27 }
  0x29   : > { %s6615_s12 = scalar_select %p5479_p0, 1, 0 }
  0x2a   : > { %p4360_p1 = pneg %p5479_p0  ;;  %s5321_s26 = smov [#allocation12]  }
  0x2b   : > { %s336_s13 = sshll.u32 %s5321_s26, 4  ;;  %s6617_s4 = sld [smem:[#allocation36_spill]]  ;;  %s5491_s13 = int_to_ptr.vmem [resolvable:$true] %s336_s13 }
  0x2c   : > { %p5487_p2 = pnand %p4360_p1, %p6571_p3 }
  0x2e   : > { %s6616_s25 = scalar_select %p5487_p2, 1, 0 }
  0x2f   : > { %p5501_p7 = pneg %p5487_p2 }
  0x31   : > { %s4976_s30 = scalar_lea.hbm %s6617_s4, 24576 }
  0x32   : > { %p4977_p5 = scmp.ne.s32.totalorder %s6617_s4, %s4976_s30  ;;  %p4983_p11 = scmp.lt.u32.totalorder %s4976_s30, %s6617_s4 }
  0x33   : > { %s6618_s16 = scalar_select %p5501_p7, 1, 0 }
  0x34   : > { %p4979_p8 = pnand %p5501_p7, %p4977_p5 }
  0x36   : > { %p4980_p9 = pneg %p4979_p8 }
  0x38   : > { %p4985_p13 = pnand %p4983_p11, %p4980_p9 }
  0x3a   : > { %4988 = shalt.err (!%p4985_p13)
}
  0x3b   : > { %s4989_s10 = scalar_lea.vmem %s321_s27, 24576  ;;  %p4997_p10 = scmp.lt.s32.totalorder %s321_s27, %s321_s27 }
  0x3c   : > { %p4990_p1 = scmp.ne.s32.totalorder %s321_s27, %s4989_s10  ;;  %p4998_p6 = scmp.lt.s32.totalorder %s4989_s10, %s4989_s10 }
  0x3e   : > { %p4992_p3 = pnand %p4990_p1, %p5501_p7  ;;  %p4999_p0 = por %p4998_p6, %p4997_p10 }
  0x40   : > { %p4993_p12 = pneg %p4992_p3 }
  0x42   : > { %p5000_p4 = pnand %p4999_p0, %p4993_p12 }
  0x44   : > { %5003 = shalt.err (!%p5000_p4)
}
  0x45   : > { %s6580_s9 = smov 128   ;;  %s6583_s20 = smov 8  }
  0x46   : > { %4363 = dma.hbm_to_vmem [thread:$0]  (!%p5487_p2), %s6617_s4, 24576, %s321_s27, [#allocation10], %s6580_s9, %s6580_s9, %s6583_s20  }
  0x47   : > { %s6619_s6 = sld [smem:[#allocation38_spill]] }
  0x4d   : > { %s5004_s5 = scalar_lea.hbm %s6619_s6, 4096 }
  0x4e   : > { %p5005_p3 = scmp.ne.s32.totalorder %s6619_s6, %s5004_s5  ;;  %p5011_p10 = scmp.lt.u32.totalorder %s5004_s5, %s6619_s6 }
  0x50   : > { %p5007_p4 = pnand %p5005_p3, %p5501_p7 }
  0x52   : > { %p5008_p6 = pneg %p5007_p4 }
  0x54   : > { %p5013_p12 = pnand %p5011_p10, %p5008_p6 }
  0x56   : > { %5016 = shalt.err (!%p5013_p12)
}
  0x57   : > { %s5017_s27 = scalar_lea.vmem %s5491_s13, 4096  ;;  %p5025_p9 = scmp.lt.s32.totalorder %s5491_s13, %s5491_s13 }
  0x58   : > { %p5018_p0 = scmp.ne.s32.totalorder %s5491_s13, %s5017_s27  ;;  %p5026_p11 = scmp.lt.s32.totalorder %s5017_s27, %s5017_s27 }
  0x5a   : > { %p5020_p5 = pnand %p5018_p0, %p5501_p7  ;;  %p5027_p13 = por %p5026_p11, %p5025_p9 }
  0x5c   : > { %p5021_p8 = pneg %p5020_p5 }
  0x5e   : > { %p5028_p1 = pnand %p5027_p13, %p5021_p8 }
  0x60   : > { %5031 = shalt.err (!%p5028_p1)
}
  0x61   : > { %4366 = dma.hbm_to_vmem [thread:$0]  (!%p5487_p2), %s6619_s6, 4096, %s5491_s13, [#allocation13], %s6580_s9, %s6580_s9, %s6583_s20  }
  0x62   : > { %s42_s19 = sadd.s32 1, %s5310_s21  ;;  %s45_s24 = sadd.s32 1, %s5314_s22 }
  0x63   : > { %p43_p3 = scmp.ge.s32.totalorder %s42_s19, 2  ;;  %p4390_p4 = scmp.lt.s32.totalorder %s5318_s23, 4 }
  0x64   : > { %s6582_s7 = sand.u32 1, %s5298_s18   ;;  %s5551_s30 = sshll.u32 %s5314_s22, 11 }
  0x65   : > { %s6689_s19 = smov (%p43_p3, %s42_s19), 0  ;;  %s6691_s24 = smov (!%p43_p3, %s45_s24), %s5314_s22 }
  0x66   : > { %6620 = sst [smem:[#allocation31_spill]] %s6689_s19  ;;  %s280_s11 = ssub.s32 %s5310_s21, %s6689_s19 }
  0x67   : > { %s5560_s13 = sshll.u32 %s6582_s7, 7  ;;  %p47_p6 = scmp.ge.s32.totalorder %s6691_s24, 2 }
  0x68   : > { %p6621_p10 = scmp.ne.s32.totalorder %s6609_s28, 0  ;;  %s6624_s1 = sld [smem:[#allocation35_spill]] }
  0x69   : > { %s6693_s24 = smov (%p47_p6, %s6691_s24), 0  ;;  %s394_s7 = scalar_lea.vmem [#allocation6], %s5560_s13 }
  0x6a   : > { %p5564_p12 = pnand %p4390_p4, %p6621_p10  ;;  %6623 = sst [smem:[#allocation32_spill]] %s6693_s24 }
  0x6b   : > { %s49_s27 = ssub.s32 %s5314_s22, %s6693_s24  ;;  %s401_s20 = sshll.u32 %s394_s7, 4  ;;  %s5590_s20 = int_to_ptr.vmem [resolvable:$true] %s401_s20 }
  0x6c   : > { %s6622_s26 = scalar_select %p5564_p12, 1, 0 }
  0x6d   : > { %p50_p0 = scmp.eq.s32.totalorder %s49_s27, 0  ;;  %s281_s28 = sor.u32 %s280_s11, %s49_s27 }
  0x6e   : > { %s5577_s9 = scalar_lea.hbm %s6624_s1, %s5551_s30  ;;  %p282_p5 = scmp.eq.s32.totalorder %s281_s28, 0 }
  0x6f   : > { %s6625_s4 = sadd.s32 1, %s5298_s18  ;;  %s6627_s6 = sadd.s32 1, %s5286_s15 }
  0x70   : > { %s5583_s10 = scalar_select %p50_p0, %s5298_s18, %s6625_s4  }
  0x71   : > { %s5588_s19 = scalar_select %p282_p5, %s5286_s15, %s6627_s6  }
  0x72   : > { %6626 = sst [smem:[#allocation33_spill]] %s5583_s10  ;;  %s6628_s5 = sand.u32 1, %s5318_s23  }
  0x73   : > { %s5594_s14 = scalar_lea.sflag [#allocation7], %s6628_s5  ;;  %s5032_s24 = scalar_lea.hbm %s5577_s9, 2048 }
  0x74   : > { %p5033_p8 = scmp.ne.s32.totalorder %s5577_s9, %s5032_s24  ;;  %p5600_p9 = pneg %p5564_p12 }
  0x75   : > { %s5037_s6 = scalar_lea.hbm %s6624_s1, 4096  ;;  %p5038_p1 = scmp.lt.u32.totalorder %s5577_s9, %s6624_s1 }
  0x76   : > { %p5035_p11 = pnand %p5600_p9, %p5033_p8  ;;  %p5039_p3 = scmp.lt.u32.totalorder %s5037_s6, %s5032_s24 }
  0x77   : > { %p5041_p6 = scmp.lt.u32.totalorder %s5032_s24, %s5577_s9 }
  0x78   : > { %p5036_p13 = pneg %p5035_p11  ;;  %p5040_p4 = por %p5039_p3, %p5038_p1 }
  0x7a   : > { %p5042_p10 = por %p5041_p6, %p5040_p4 }
  0x7c   : > { %p5043_p0 = pnand %p5042_p10, %p5036_p13 }
  0x7e   : > { %5046 = shalt.err (!%p5043_p0)
}
  0x7f   : > { %s5047_s5 = scalar_lea.vmem %s5590_s20, 2048  ;;  %s5324_s4 = smov [#allocation6]  }
  0x80   : > { %p5048_p5 = scmp.ne.s32.totalorder %s5590_s20, %s5047_s5  ;;  %s5052_s7 = sshll.u32 %s5324_s4, 4  ;;  %s5053_s7 = int_to_ptr.vmem [resolvable:$false] %s5052_s7 }
  0x81   : > { %s5054_s27 = scalar_lea.vmem %s5053_s7, 4096  ;;  %p5055_p2 = scmp.lt.s32.totalorder %s5590_s20, %s5053_s7 }
  0x82   : > { %p5050_p8 = pnand %p5048_p5, %p5600_p9  ;;  %p5056_p7 = scmp.lt.s32.totalorder %s5054_s27, %s5047_s5 }
  0x84   : > { %p5051_p11 = pneg %p5050_p8  ;;  %p5057_p1 = por %p5056_p7, %p5055_p2 }
  0x86   : > { %p5058_p3 = pnand %p5057_p1, %p5051_p11 }
  0x88   : > { %5061 = shalt.err (!%p5058_p3)
}
  0x89   : > { %s6630_s24 = smov 8   ;;  %s6631_s6 = smov 128  }
  0x8a   : > { %4376 = dma.hbm_to_vmem [thread:$0]  (!%p5564_p12), %s5577_s9, 2048, %s5590_s20, %s5594_s14, %s6631_s6, %s6631_s6, %s6630_s24  }
  0x8b   : > { %s5325_s28 = smov [#allocation14]   ;;  %s5062_s5 = scalar_lea.hbm %s6563_s8, 2048 }
  0x8c   : > { %s352_s1 = sshll.u32 %s5325_s28, 4  ;;  %p5063_p2 = scmp.ne.s32.totalorder %s6563_s8, %s5062_s5  ;;  %s353_s1 = int_to_ptr.vmem [resolvable:$true] %s352_s1 }
  0x8d   : > { %p6632_p7 = scmp.ne.s32.totalorder %s6618_s16, 0  ;;  %p5069_p6 = scmp.lt.u32.totalorder %s5062_s5, %s6563_s8 }
  0x8f   : > { %p5065_p13 = pnand %p5063_p2, %p6632_p7 }
  0x91   : > { %p5066_p4 = pneg %p5065_p13 }
  0x93   : > { %p5071_p10 = pnand %p5069_p6, %p5066_p4 }
  0x95   : > { %5074 = shalt.err (!%p5071_p10)
}
  0x96   : > { %s5075_s9 = scalar_lea.vmem %s353_s1, 2048  ;;  %p5083_p11 = scmp.lt.s32.totalorder %s353_s1, %s353_s1 }
  0x97   : > { %p5076_p0 = scmp.ne.s32.totalorder %s353_s1, %s5075_s9  ;;  %p5084_p1 = scmp.lt.s32.totalorder %s5075_s9, %s5075_s9 }
  0x99   : > { %p5078_p5 = pnand %p5076_p0, %p6632_p7  ;;  %p5085_p3 = por %p5084_p1, %p5083_p11 }
  0x9b   : > { %p5079_p8 = pneg %p5078_p5 }
  0x9d   : > { %p5086_p12 = pnand %p5085_p3, %p5079_p8 }
  0x9f   : > { %5089 = shalt.err (!%p5086_p12)
}
  0xa0   : > { %s5326_s22 = smov 64   ;;  %s5327_s21 = smov 4  }
  0xa1   : > { %p6633_p2 = scmp.ne.s32.totalorder %s6616_s25, 0  ;;  %s6634_s0 = sld [smem:[#allocation34_spill]] }
  0xa2   : > { %s373_s5 = scalar_lea.vmem [#allocation3], %s5560_s13  ;;  %s5658_s25 = scalar_lea.hbm %s6557_s2, %s5551_s30 }
  0xa3   : > { %4369 = dma.hbm_to_vmem [thread:$0]  (!%p6633_p2), %s6563_s8, 2048, %s353_s1, [#allocation13], %s5326_s22, %s5326_s22, %s5327_s21  }
  0xa4   : > { %s380_s7 = sshll.u32 %s373_s5, 4  ;;  %s6635_s20 = sand.u32 1, %s5298_s18   ;;  %s5652_s7 = int_to_ptr.vmem [resolvable:$true] %s380_s7 }
  0xa5   : > { %s5662_s1 = scalar_lea.sflag [#allocation4], %s6635_s20 }
  0xa7   : > { %s5649_s4 = scalar_lea.hbm %s6634_s0, %s5551_s30  ;;  %s5095_s16 = scalar_lea.hbm %s6634_s0, 4096 }
  0xa8   : > { %s5090_s22 = scalar_lea.hbm %s5649_s4, 2048  ;;  %p5096_p4 = scmp.lt.u32.totalorder %s5649_s4, %s6634_s0 }
  0xa9   : > { %p5091_p12 = scmp.ne.s32.totalorder %s5649_s4, %s5090_s22  ;;  %p5097_p6 = scmp.lt.u32.totalorder %s5095_s16, %s5090_s22 }
  0xaa   : > { %p5099_p0 = scmp.lt.u32.totalorder %s5090_s22, %s5649_s4 }
  0xab   : > { %p5093_p7 = pnand %p5091_p12, %p5600_p9  ;;  %p5098_p10 = por %p5097_p6, %p5096_p4 }
  0xad   : > { %p5094_p13 = pneg %p5093_p7  ;;  %p5100_p5 = por %p5099_p0, %p5098_p10 }
  0xaf   : > { %p5101_p8 = pnand %p5100_p5, %p5094_p13 }
  0xb1   : > { %5104 = shalt.err (!%p5101_p8)
}
  0xb2   : > { %s5105_s27 = scalar_lea.vmem %s5652_s7, 2048  ;;  %s5328_s9 = smov [#allocation3]  }
  0xb3   : > { %p5106_p11 = scmp.ne.s32.totalorder %s5652_s7, %s5105_s27  ;;  %s5110_s20 = sshll.u32 %s5328_s9, 4  ;;  %s5111_s20 = int_to_ptr.vmem [resolvable:$false] %s5110_s20 }
  0xb4   : > { %s5112_s21 = scalar_lea.vmem %s5111_s20, 4096  ;;  %p5113_p2 = scmp.lt.s32.totalorder %s5652_s7, %s5111_s20 }
  0xb5   : > { %p5108_p1 = pnand %p5106_p11, %p5600_p9  ;;  %p5114_p12 = scmp.lt.s32.totalorder %s5112_s21, %s5105_s27 }
  0xb7   : > { %p5109_p3 = pneg %p5108_p1  ;;  %p5115_p7 = por %p5114_p12, %p5113_p2 }
  0xb9   : > { %p5116_p4 = pnand %p5115_p7, %p5109_p3 }
  0xbb   : > { %5119 = shalt.err (!%p5116_p4)
}
  0xbc   : > { %p6636_p13 = scmp.ne.s32.totalorder %s6622_s26, 0  ;;  %s415_s22 = scalar_lea.vmem [#allocation8], %s5560_s13 }
  0xbd   : > { %s422_s10 = sshll.u32 %s415_s22, 4  ;;  %s5696_s5 = scalar_lea.hbm %s6558_s3, %s5551_s30  ;;  %s5690_s10 = int_to_ptr.vmem [resolvable:$true] %s422_s10 }
  0xbe   : > { %4373 = dma.hbm_to_vmem [thread:$0]  (!%p6636_p13), %s5649_s4, 2048, %s5652_s7, %s5662_s1, %s6631_s6, %s6631_s6, %s6630_s24  }
  0xbf   : > { %s5120_s27 = scalar_lea.hbm %s5658_s25, 2048  ;;  %s5125_s21 = scalar_lea.hbm %s6557_s2, 4096 }
  0xc0   : > { %p5121_p6 = scmp.ne.s32.totalorder %s5658_s25, %s5120_s27  ;;  %p5126_p5 = scmp.lt.u32.totalorder %s5658_s25, %s6557_s2 }
  0xc1   : > { %p5127_p8 = scmp.lt.u32.totalorder %s5125_s21, %s5120_s27  ;;  %p5129_p1 = scmp.lt.u32.totalorder %s5120_s27, %s5658_s25 }
  0xc2   : > { %p5123_p10 = pnand %p5121_p6, %p5600_p9 }
  0xc3   : > { %p5128_p11 = por %p5127_p8, %p5126_p5 }
  0xc4   : > { %p5124_p0 = pneg %p5123_p10 }
  0xc5   : > { %p5130_p3 = por %p5129_p1, %p5128_p11 }
  0xc7   : > { %p5131_p2 = pnand %p5130_p3, %p5124_p0 }
  0xc9   : > { %5134 = shalt.err (!%p5131_p2)
}
  0xca   : > { %s5135_s30 = scalar_lea.vmem %s5690_s10, 2048  ;;  %s5329_s7 = smov [#allocation8]  }
  0xcb   : > { %p5136_p12 = scmp.ne.s32.totalorder %s5690_s10, %s5135_s30  ;;  %s5140_s1 = sshll.u32 %s5329_s7, 4  ;;  %s5141_s1 = int_to_ptr.vmem [resolvable:$false] %s5140_s1 }
  0xcc   : > { %s5142_s0 = scalar_lea.vmem %s5141_s1, 4096  ;;  %p5143_p6 = scmp.lt.s32.totalorder %s5690_s10, %s5141_s1 }
  0xcd   : > { %p5138_p7 = pnand %p5136_p12, %p5600_p9  ;;  %p5144_p10 = scmp.lt.s32.totalorder %s5142_s0, %s5135_s30 }
  0xcf   : > { %p5139_p4 = pneg %p5138_p7  ;;  %p5145_p5 = por %p5144_p10, %p5143_p6 }
  0xd1   : > { %p5146_p8 = pnand %p5145_p5, %p5139_p4 }
  0xd3   : > { %5149 = shalt.err (!%p5146_p8)
}
  0xd4   : > { %4379 = dma.hbm_to_vmem [thread:$0]  (!%p6636_p13), %s5658_s25, 2048, %s5690_s10, %s5594_s14, %s6631_s6, %s6631_s6, %s6630_s24  }
  0xd5   : > { %s436_s22 = scalar_lea.vmem [#allocation9], %s5560_s13  ;;  %s6637_s28 = sand.u32 1, %s5318_s23  }
  0xd6   : > { %s443_s16 = sshll.u32 %s436_s22, 4  ;;  %s5728_s27 = scalar_lea.sflag [#allocation10], %s6637_s28  ;;  %s5724_s16 = int_to_ptr.vmem [resolvable:$true] %s443_s16 }
  0xd7   : > { %s5150_s9 = scalar_lea.hbm %s5696_s5, 2048  ;;  %s5155_s4 = scalar_lea.hbm %s6558_s3, 4096 }
  0xd8   : > { %p5151_p0 = scmp.ne.s32.totalorder %s5696_s5, %s5150_s9  ;;  %p5156_p3 = scmp.lt.u32.totalorder %s5696_s5, %s6558_s3 }
  0xd9   : > { %p5157_p2 = scmp.lt.u32.totalorder %s5155_s4, %s5150_s9  ;;  %p5159_p7 = scmp.lt.u32.totalorder %s5150_s9, %s5696_s5 }
  0xda   : > { %p5153_p11 = pnand %p5151_p0, %p5600_p9 }
  0xdb   : > { %p5158_p12 = por %p5157_p2, %p5156_p3 }
  0xdc   : > { %p5154_p1 = pneg %p5153_p11 }
  0xdd   : > { %p5160_p4 = por %p5159_p7, %p5158_p12 }
  0xdf   : > { %p5161_p6 = pnand %p5160_p4, %p5154_p1 }
  0xe1   : > { %5164 = shalt.err (!%p5161_p6)
}
  0xe2   : > { %s5165_s13 = scalar_lea.vmem %s5724_s16, 2048  ;;  %s5330_s14 = smov [#allocation9]  }
  0xe3   : > { %p5166_p10 = scmp.ne.s32.totalorder %s5724_s16, %s5165_s13  ;;  %s5170_s25 = sshll.u32 %s5330_s14, 4  ;;  %s5171_s25 = int_to_ptr.vmem [resolvable:$false] %s5170_s25 }
  0xe4   : > { %s5172_s10 = scalar_lea.vmem %s5171_s25, 4096  ;;  %p5173_p0 = scmp.lt.s32.totalorder %s5724_s16, %s5171_s25 }
  0xe5   : > { %p5168_p5 = pnand %p5166_p10, %p5600_p9  ;;  %p5174_p11 = scmp.lt.s32.totalorder %s5172_s10, %s5165_s13 }
  0xe7   : > { %p5169_p8 = pneg %p5168_p5  ;;  %p5175_p3 = por %p5174_p11, %p5173_p0 }
  0xe9   : > { %p5176_p2 = pnand %p5175_p3, %p5169_p8 }
  0xeb   : > { %5179 = shalt.err (!%p5176_p2)
}
  0xec   : > { %4382 = dma.hbm_to_vmem [thread:$0]  (!%p6636_p13), %s5696_s5, 2048, %s5724_s16, %s5728_s27, %s6631_s6, %s6631_s6, %s6630_s24  }
  0xed   : > { %p6638_p9 = scmp.ne.s32.totalorder %s6615_s12, 0 }
  0xee   : > { %s457_s11 = sand.u32 (!%p6638_p9), 1, %s5294_s17   ;;  %p6639_p1 = scmp.ne.s32.totalorder (!%p6638_p9), %s6610_s29, 0 }
  0xef   : > { %455 = sbr.rel (%p6638_p9) target bundleno = 1657 (0x679), region = 60  ;;  %s5758_s1 = sshll.u32 (!%p6638_p9), %s457_s11, 7 }
  0xf0   : > { %s458_s0 = scalar_lea.sflag (!%p6638_p9), [#allocation4], %s457_s11  ;;  %s461_s22 = scalar_lea.vmem (!%p6638_p9), [#allocation3], %s5758_s1 }
  0xf6   : > { %5253 = dma.done.wait (%p6639_p1), %s458_s0, 2048  }
  0xf7   : > { %5255 = vsyncadd (%p6639_p1), %s458_s0, 4294965248  ;;  %s6640_s26 = sld [smem:[#allocation28_spill]]  ;;  %s470_s12 = scalar_lea.vmem [#allocation6], %s5758_s1 }
  0xfd   : > { %s466_s24 = sand.u32 1, %s6640_s26  }
  0xfe   : > { %s467_s6 = scalar_lea.sflag [#allocation7], %s466_s24 }
  0xff   : > { %5257 = dma.done.wait (%p6639_p1), %s467_s6, 4096  }
 0x100   : > { %5259 = vsyncadd (%p6639_p1), %s467_s6, 4294963200  ;;  %s479_s5 = scalar_lea.vmem [#allocation8], %s5758_s1  ;;  %s485_s16 = scalar_lea.sflag [#allocation10], %s466_s24 }
 0x101   : > { %s488_s28 = scalar_lea.vmem [#allocation9], %s5758_s1 }
 0x102   : > { %5261 = dma.done.wait (%p6639_p1), %s485_s16, 2048  }
 0x103   : > { %5263 = vsyncadd (%p6639_p1), %s485_s16, 4294965248  ;;  %p6641_p13 = scmp.eq.s32.totalorder %s6640_s26, 0 }
 0x105   : > { %5265 = dma.done.wait (%p6641_p13), [#allocation10], 24576   ;;  %p6642_p12 = pmov %p6641_p13 }
 0x107   : > { %5267 = vsyncadd (%p6642_p12), [#allocation10], 4294942720  ;;  %p6643_p7 = pmov %p6642_p12 }
 0x109   : > { %5269 = dma.done.wait (%p6643_p7), [#allocation13], 6144   ;;  %p6644_p4 = pmov %p6643_p7 }
 0x10a   : > { %s6645_s27 = sld [smem:[#allocation23_spill]]  ;;  %s6646_s9 = sld [smem:[#allocation24_spill]]  ;;  %v623_v0 = vlaneseq  ;;  %v5331_v1 = vmov 0.0  }
 0x10b   : > { %5271 = vsyncadd (%p6644_p4), [#allocation13], 4294961152 }
 0x10c   : > { %vm625_vm0 = vcmp.lt.s32.totalorder %v623_v0, 512 }
 0x10d   : > { %628 = vst.msk [vmem:[#allocation2 + $0x7] ss:$8 sm:$0xf] %vm625_vm0, %v5331_v1  ;;  %631 = vst.msk [vmem:[#allocation2 + $0x120] ss:$8 sm:$0xf] %vm625_vm0, %v5331_v1 }
 0x110   : > { %s549_s20 = sand.u32 1, %s6645_s27   ;;  %s5791_s21 = sshll.u32 %s6646_s9, 6 }
 0x111   : > { %s5788_s29 = sshll.u32 %s549_s20, 6  ;;  %s5797_s4 = scalar_lea.vmem %s461_s22, %s5791_s21 [#allocation3] }
 0x112   : > { %s5802_s30 = scalar_lea.vmem %s470_s12, %s5791_s21 [#allocation6]  ;;  %v556_v2 = vld [vmem:[%s5797_s4] sm:$0xff]  ;;  %v557_v3 = vld [vmem:[%s5797_s4 + $0x8] sm:$0xff]  ;;  %v558_v4 = vld [vmem:[%s5797_s4 + $0x10] sm:$0xff]  ;;  %s5816_s7 = scalar_lea.vmem %s479_s5, %s5791_s21 [#allocation8] }
 0x113   : > { %564 = vst [vmem:[#allocation2 + $0x20] sm:$0xff] %v556_v2  ;;  %565 = vst [vmem:[#allocation2 + $0x40] sm:$0xff] %v557_v3  ;;  %v559_v5 = vld [vmem:[%s5797_s4 + $0x18] sm:$0xff]  ;;  %v560_v6 = vld [vmem:[%s5797_s4 + $0x20] sm:$0xff]  ;;  %s5830_s13 = scalar_lea.vmem %s488_s28, %s5791_s21 [#allocation9]  ;;  %s5847_s14 = scalar_lea.vmem [#allocation15], %s5788_s29 }
 0x114   : > { %566 = vst [vmem:[#allocation2 + $0x60] sm:$0xff] %v558_v4  ;;  %v561_v7 = vld [vmem:[%s5797_s4 + $0x28] sm:$0xff]  ;;  %567 = vst [vmem:[#allocation2 + $0x80] sm:$0xff] %v559_v5  ;;  %v562_v8 = vld [vmem:[%s5797_s4 + $0x30] sm:$0xff]  ;;  %p3956_p6 = scmp.le.s32.totalorder %s6646_s9, 0 }
 0x115   : > { %568 = vst [vmem:[#allocation2 + $0xa0] sm:$0xff] %v560_v6  ;;  %569 = vst [vmem:[#allocation2 + $0xc0] sm:$0xff] %v561_v7  ;;  %v563_v9 = vld [vmem:[%s5797_s4 + $0x38] sm:$0xff]  ;;  %v573_v10 = vld [vmem:[%s5802_s30] sm:$0xff]  ;;  %s3957_s25 = sadd.s32 (!%p3956_p6), 4294967295, %s5791_s21 }
 0x116   : > { %570 = vst [vmem:[#allocation2 + $0xe0] sm:$0xff] %v562_v8  ;;  %571 = vst [vmem:[#allocation2 + $0x100] sm:$0xff] %v563_v9  ;;  %v574_v11 = vld [vmem:[%s5802_s30 + $0x8] sm:$0xff]  ;;  %v575_v12 = vld [vmem:[%s5802_s30 + $0x10] sm:$0xff]  ;;  %s638_s10 = scalar_lea.vmem (!%p3956_p6), %s461_s22, %s3957_s25 [#allocation3]  ;;  %s641_s11 = scalar_lea.vmem (!%p3956_p6), %s470_s12, %s3957_s25 [#allocation6] }
 0x117   : > { %581 = vst [vmem:[#allocation2 + $0x28] sm:$0xff] %v573_v10  ;;  %v576_v13 = vld [vmem:[%s5802_s30 + $0x18] sm:$0xff]  ;;  %582 = vst [vmem:[#allocation2 + $0x48] sm:$0xff] %v574_v11  ;;  %v577_v14 = vld [vmem:[%s5802_s30 + $0x20] sm:$0xff]  ;;  %s644_s0 = scalar_lea.vmem (!%p3956_p6), %s479_s5, %s3957_s25 [#allocation8]  ;;  %s647_s26 = scalar_lea.vmem (!%p3956_p6), %s488_s28, %s3957_s25 [#allocation9] }
 0x118   : > { %583 = vst [vmem:[#allocation2 + $0x68] sm:$0xff] %v575_v12  ;;  %584 = vst [vmem:[#allocation2 + $0x88] sm:$0xff] %v576_v13  ;;  %v578_v15 = vld [vmem:[%s5802_s30 + $0x28] sm:$0xff]  ;;  %v579_v16 = vld [vmem:[%s5802_s30 + $0x30] sm:$0xff] }
 0x119   : > { %585 = vst [vmem:[#allocation2 + $0xa8] sm:$0xff] %v577_v14  ;;  %586 = vst [vmem:[#allocation2 + $0xc8] sm:$0xff] %v578_v15  ;;  %v580_v17 = vld [vmem:[%s5802_s30 + $0x38] sm:$0xff]  ;;  %v590_v18 = vld [vmem:[%s5816_s7] sm:$0xff] }
 0x11a   : > { %587 = vst [vmem:[#allocation2 + $0xe8] sm:$0xff] %v579_v16  ;;  %v591_v19 = vld [vmem:[%s5816_s7 + $0x8] sm:$0xff]  ;;  %588 = vst [vmem:[#allocation2 + $0x108] sm:$0xff] %v580_v17  ;;  %v592_v20 = vld [vmem:[%s5816_s7 + $0x10] sm:$0xff] }
 0x11b   : > { %598 = vst [vmem:[#allocation2 + $0x30] sm:$0xff] %v590_v18  ;;  %599 = vst [vmem:[#allocation2 + $0x50] sm:$0xff] %v591_v19  ;;  %v593_v21 = vld [vmem:[%s5816_s7 + $0x18] sm:$0xff]  ;;  %v594_v22 = vld [vmem:[%s5816_s7 + $0x20] sm:$0xff] }
 0x11c   : > { %600 = vst [vmem:[#allocation2 + $0x70] sm:$0xff] %v592_v20  ;;  %601 = vst [vmem:[#allocation2 + $0x90] sm:$0xff] %v593_v21  ;;  %v595_v23 = vld [vmem:[%s5816_s7 + $0x28] sm:$0xff]  ;;  %v596_v24 = vld [vmem:[%s5816_s7 + $0x30] sm:$0xff]  ;;  %636 = sbr.rel (%p3956_p6) target bundleno = 294 (0x126), region = 92 }
 0x11d   : > { %602 = vst [vmem:[#allocation2 + $0xb0] sm:$0xff] %v594_v22  ;;  %v597_v25 = vld [vmem:[%s5816_s7 + $0x38] sm:$0xff]  ;;  %603 = vst [vmem:[#allocation2 + $0xd0] sm:$0xff] %v595_v23  ;;  %v607_v26 = vld [vmem:[%s5830_s13] sm:$0xff] }
 0x11e   : > { %604 = vst [vmem:[#allocation2 + $0xf0] sm:$0xff] %v596_v24  ;;  %605 = vst [vmem:[#allocation2 + $0x110] sm:$0xff] %v597_v25  ;;  %v608_v27 = vld [vmem:[%s5830_s13 + $0x8] sm:$0xff]  ;;  %v609_v28 = vld [vmem:[%s5830_s13 + $0x10] sm:$0xff] }
 0x11f   : > { %615 = vst [vmem:[#allocation2 + $0x38] sm:$0xff] %v607_v26  ;;  %616 = vst [vmem:[#allocation2 + $0x58] sm:$0xff] %v608_v27  ;;  %v610_v29 = vld [vmem:[%s5830_s13 + $0x18] sm:$0xff]  ;;  %v611_v30 = vld [vmem:[%s5830_s13 + $0x20] sm:$0xff] }
 0x120   : > { %617 = vst [vmem:[#allocation2 + $0x78] sm:$0xff] %v609_v28  ;;  %v612_v31 = vld [vmem:[%s5830_s13 + $0x28] sm:$0xff]  ;;  %618 = vst [vmem:[#allocation2 + $0x98] sm:$0xff] %v610_v29  ;;  %v613_v32 = vld [vmem:[%s5830_s13 + $0x30] sm:$0xff] }
 0x121   : > { %619 = vst [vmem:[#allocation2 + $0xb8] sm:$0xff] %v611_v30  ;;  %620 = vst [vmem:[#allocation2 + $0xd8] sm:$0xff] %v612_v31  ;;  %v614_v33 = vld [vmem:[%s5830_s13 + $0x38] sm:$0xff]  ;;  %v639_v34 = vld [vmem:[%s638_s10] sm:$0x1] (!%p3956_p6) }
 0x122   : > { %621 = vst [vmem:[#allocation2 + $0xf8] sm:$0xff] %v613_v32  ;;  %622 = vst [vmem:[#allocation2 + $0x118] sm:$0xff] %v614_v33  ;;  %v642_v35 = vld [vmem:[%s641_s11] sm:$0x1] (!%p3956_p6) }
 0x123   : > { %640 = vst [vmem:[#allocation2 + $0x7] sm:$0x1] %v639_v34  ;;  %643 = vst [vmem:[#allocation2 + $0xf] sm:$0x1] %v642_v35  ;;  %v645_v36 = vld [vmem:[%s644_s0] sm:$0x1] }
 0x124   : > { %v648_v37 = vld [vmem:[%s647_s26] sm:$0x1]  ;;  %646 = vst [vmem:[#allocation2 + $0x17] sm:$0x1] %v645_v36 }
 0x125   : > { %649 = vst [vmem:[#allocation2 + $0x1f] sm:$0x1] %v648_v37 }
 0x126 PF: > { %s6647_s24 = sld [smem:[#allocation24_spill]] }
 0x12c   : > { %p3958_p10 = scmp.ge.s32.totalorder %s6647_s24, 1 }
 0x12d   : > { %v3960_v38 = vld [vmem:[%s5797_s4 + $0x40] sm:$0x1] (!%p3958_p10) }
 0x12e   : > { %653 = sbr.rel (%p3958_p10) target bundleno = 309 (0x135), region = 96  ;;  %v3962_v39 = vld [vmem:[%s5802_s30 + $0x40] sm:$0x1] (!%p3958_p10)  ;;  %657 = vst [vmem:[#allocation2 + $0x120] sm:$0x1] (!%p3958_p10), %v3960_v38 }
 0x12f   : > { %v3964_v40 = vld [vmem:[%s5816_s7 + $0x40] sm:$0x1] (!%p3958_p10)  ;;  %660 = vst [vmem:[#allocation2 + $0x128] sm:$0x1] (!%p3958_p10), %v3962_v39 }
 0x130   : > { %663 = vst [vmem:[#allocation2 + $0x130] sm:$0x1] (!%p3958_p10), %v3964_v40  ;;  %v3966_v41 = vld [vmem:[%s5830_s13 + $0x40] sm:$0x1] (!%p3958_p10) }
 0x131   : > { %666 = vst [vmem:[#allocation2 + $0x138] sm:$0x1] (!%p3958_p10), %v3966_v41 }
 0x135 PF: > { %v4493_v42 = vld [vmem:[#allocation11 + $0x4] ss:$8 sps:$4 sm:$0xff]   ;;  %v4495_v43 = vld [vmem:[#allocation11] ss:$8 sps:$4 sm:$0xff]   ;;  %v4496_v44 = vld [vmem:[#allocation11 + $0x14] ss:$8 sps:$4 sm:$0xff]  }
 0x136   : > { %1907 = vmatprep.subr.bf16.mxu0 %v4493_v42  ;;  %v4498_v45 = vld [vmem:[#allocation11 + $0x10] ss:$8 sps:$4 sm:$0xff]   ;;  %v4499_v46 = vld [vmem:[#allocation11 + $0x24] ss:$8 sps:$4 sm:$0xff]   ;;  %v4501_v47 = vld [vmem:[#allocation11 + $0x20] ss:$8 sps:$4 sm:$0xff]  }
 0x137   : > { %1908 = vmatpush1.bf16.msra.mxu0 %v4495_v43  ;;  %v4502_v48 = vld [vmem:[#allocation11 + $0x34] ss:$8 sps:$4 sm:$0xff]   ;;  %v4504_v49 = vld [vmem:[#allocation11 + $0x30] ss:$8 sps:$4 sm:$0xff]   ;;  %v4505_v50 = vld [vmem:[#allocation11 + $0x44] ss:$8 sps:$4 sm:$0xff]  }
 0x138   : > { %1909 = vmatprep.subr.bf16.mxu0 %v4496_v44  ;;  %v4507_v51 = vld [vmem:[#allocation11 + $0x40] ss:$8 sps:$4 sm:$0xff]   ;;  %v4508_v52 = vld [vmem:[#allocation11 + $0x54] ss:$8 sps:$4 sm:$0xff]   ;;  %v4510_v53 = vld [vmem:[#allocation11 + $0x50] ss:$8 sps:$4 sm:$0xff]  }
 0x139   : > { %v4511_v54 = vld [vmem:[#allocation11 + $0x64] ss:$8 sps:$4 sm:$0xff]   ;;  %v4513_v55 = vld [vmem:[#allocation11 + $0x60] ss:$8 sps:$4 sm:$0xff]   ;;  %v4514_v62 = vld [vmem:[#allocation11 + $0x74] ss:$8 sps:$4 sm:$0xff]  }
 0x13a   : > { %v4541_v56 = vld [vmem:[#allocation11 + $0x204] ss:$8 sps:$4 sm:$0xff]   ;;  %v4543_v57 = vld [vmem:[#allocation11 + $0x200] ss:$8 sps:$4 sm:$0xff]   ;;  %v4516_v3 = vld [vmem:[#allocation11 + $0x70] ss:$8 sps:$4 sm:$0xff]  }
 0x13b   : > { %1910 = vmatpush1.bf16.msra.mxu0 %v4498_v45  ;;  %v668_v58 = vld [vmem:[#allocation2 + $0x8] sm:$0x80]  ;;  %1248 = vmatprep.subr.bf16.mxu1 %v4541_v56  ;;  %v4547_v9 = vld [vmem:[#allocation11 + $0x214] ss:$8 sps:$4 sm:$0xff]   ;;  %v4549_v14 = vld [vmem:[#allocation11 + $0x210] ss:$8 sps:$4 sm:$0xff]  }
 0x13c   : > { %1911 = vmatprep.subr.bf16.mxu0 %v4499_v46  ;;  %v672_v59 = vld [vmem:[#allocation2 + $0x28] sm:$0xff]  ;;  %1249 = vmatpush1.bf16.msra.mxu1 %v4543_v57  ;;  %vm1394_vm1 = vsmask.f32 4352  ;;  %v4520_v18 = vld [vmem:[#allocation11 + $0x94] ss:$8 sps:$4 sm:$0xff]   ;;  %v5871_v33 = vld [vmem:[#allocation2 + $0x20] sm:$0xff] }
 0x13d   : > { %v676_v60 = vld [vmem:[#allocation2 + $0x48] sm:$0xff]  ;;  %v704_v63 = vpack.c.bf16 %v672_v59, %v668_v58  ;;  %1250 = vmatprep.subr.bf16.mxu1 %v4547_v9  ;;  %v4522_v22 = vld [vmem:[#allocation11 + $0x90] ss:$8 sps:$4 sm:$0xff]   ;;  %v4559_v23 = vld [vmem:[#allocation11 + $0x234] ss:$8 sps:$4 sm:$0xff]   ;;  %s6648_s6 = sld [smem:[#allocation37_spill]] }
 0x13e   : > { %v5864_v61 = vld [vmem:[#allocation2 + $0x68] sm:$0xff]  ;;  %v728_v2 = vpack.c.bf16 %v676_v60, %v672_v59  ;;  %v4561_v24 = vld [vmem:[#allocation11 + $0x230] ss:$8 sps:$4 sm:$0xff]   ;;  %v4526_v28 = vld [vmem:[#allocation11 + $0xb4] ss:$8 sps:$4 sm:$0xff]   ;;  %s6649_s16 = sld [smem:[#allocation39_spill]] }
 0x13f   : > { %1912 = vmatpush1.bf16.msra.mxu0 %v4501_v47  ;;  %v708_v1 = vpack.c.bf16 %v5864_v61, %v676_v60  ;;  %v4517_v4 = vld [vmem:[#allocation11 + $0x84] ss:$8 sps:$4 sm:$0xff]   ;;  %v1413_v5 = vshrl.u32 %v704_v63, 16  ;;  %v1416_v6 = vshll.u32 %v704_v63, 16  ;;  %v4519_v15 = vld [vmem:[#allocation11 + $0x80] ss:$8 sps:$4 sm:$0xff]  }
 0x140   : > { %1913 = vmatprep.subr.bf16.mxu0 %v4502_v48  ;;  %1280 = vmatprep.mubr.bf16.mxu1 %v728_v2  ;;  %v4553_v20 = vld [vmem:[#allocation11 + $0x224] ss:$8 sps:$4 sm:$0xff]   ;;  %v4555_v21 = vld [vmem:[#allocation11 + $0x220] ss:$8 sps:$4 sm:$0xff]   ;;  %v4571_v30 = vld [vmem:[#allocation11 + $0x254] ss:$8 sps:$4 sm:$0xff]  }
 0x141   : > { %v1421_v7 = vshrl.u32 %v708_v1, 16  ;;  %v1424_v8 = vshll.u32 %v708_v1, 16  ;;  %v1415_v10 = vrot.slane %v1413_v5, 3  ;;  %v1418_v11 = vrot.slane %v1416_v6, 4  ;;  %1251 = vmatpush1.bf16.msra.mxu1 %v4549_v14  ;;  %v4523_v25 = vld [vmem:[#allocation11 + $0xa4] ss:$8 sps:$4 sm:$0xff]  }
 0x142   : > { %1252 = vmatprep.subr.bf16.mxu1 %v4553_v20  ;;  %v4565_v26 = vld [vmem:[#allocation11 + $0x244] ss:$8 sps:$4 sm:$0xff]   ;;  %v4525_v27 = vld [vmem:[#allocation11 + $0xa0] ss:$8 sps:$4 sm:$0xff]   ;;  %v4528_v31 = vld [vmem:[#allocation11 + $0xb0] ss:$8 sps:$4 sm:$0xff]  }
 0x143   : > { %1914 = vmatpush1.bf16.msra.mxu0 %v4504_v49  ;;  %v1423_v12 = vrot.slane %v1421_v7, 3  ;;  %v1426_v13 = vrot.slane %v1424_v8, 4  ;;  %v1419_v16 = vor.u32 %v1418_v11, %v1415_v10  ;;  %v4567_v29 = vld [vmem:[#allocation11 + $0x240] ss:$8 sps:$4 sm:$0xff]   ;;  %v667_v32 = vld [vmem:[#allocation2] sm:$0x80] }
 0x144   : > { %1915 = vmatprep.subr.bf16.mxu0 %v4505_v50  ;;  %v4529_v34 = vld [vmem:[#allocation11 + $0xc4] ss:$8 sps:$4 sm:$0xff]   ;;  %v4573_v37 = vld [vmem:[#allocation11 + $0x250] ss:$8 sps:$4 sm:$0xff]   ;;  %v703_v39 = vpack.c.bf16 %v5871_v33, %v667_v32  ;;  %v4531_v40 = vld [vmem:[#allocation11 + $0xc0] ss:$8 sps:$4 sm:$0xff]  }
 0x145   : > { %v5867_v17 = vor.u32 %v1426_v13, %v1423_v12  ;;  %1253 = vmatpush1.bf16.msra.mxu1 %v4555_v21  ;;  %v5873_v35 = vld [vmem:[#allocation2 + $0x40] sm:$0xff]  ;;  %v4532_v41 = vld [vmem:[#allocation11 + $0xd4] ss:$8 sps:$4 sm:$0xff]   ;;  %v4534_v45 = vld [vmem:[#allocation11 + $0xd0] ss:$8 sps:$4 sm:$0xff]   ;;  %s6666_s9 = sld [smem:[#allocation40_spill]] }
 0x146   : > { %1254 = vmatprep.subr.bf16.mxu1 %v4559_v23  ;;  %v5875_v36 = vld [vmem:[#allocation2 + $0x60] sm:$0xff]  ;;  %v4583_v44 = vld [vmem:[#allocation11 + $0x274] ss:$8 sps:$4 sm:$0xff]   ;;  %v1396_v46 = vshrl.u32 %v703_v39, 16  ;;  %v1399_v48 = vshll.u32 %v703_v39, 16  ;;  %v5882_v60 = vld [vmem:[#allocation2 + $0xa8] sm:$0xff] }
 0x147   : > { %1916 = vmatpush1.bf16.msra.mxu0 %v4507_v51  ;;  %v1428_v19 = vsel %vm1394_vm1, %v1419_v16, %v5867_v17  ;;  %v4577_v38 = vld [vmem:[#allocation11 + $0x264] ss:$8 sps:$4 sm:$0xff]   ;;  %v707_v42 = vpack.c.bf16 %v5875_v36, %v5873_v35  ;;  %v4579_v43 = vld [vmem:[#allocation11 + $0x260] ss:$8 sps:$4 sm:$0xff]   ;;  %v4585_v51 = vld [vmem:[#allocation11 + $0x270] ss:$8 sps:$4 sm:$0xff]  }
 0x148   : > { %1917 = vmatprep.subr.bf16.mxu0 %v4508_v52  ;;  %1939 = vmatprep.mubr.bf16.mxu0 %v1428_v19  ;;  %v4535_v47 = vld [vmem:[#allocation11 + $0xe4] ss:$8 sps:$4 sm:$0xff]   ;;  %v4538_v56 = vld [vmem:[#allocation11 + $0xf4] ss:$8 sps:$4 sm:$0xff]   ;;  %v1401_v57 = vrot.slane %v1399_v48, 4  ;;  %s6667_s29 = sld [smem:[#allocation24_spill]] }
 0x149   : > { %1255 = vmatpush1.bf16.msra.mxu1 %v4561_v24  ;;  %v1404_v49 = vshrl.u32 %v707_v42, 16  ;;  %v1407_v50 = vshll.u32 %v707_v42, 16  ;;  %v4589_v52 = vld [vmem:[#allocation11 + $0x284] ss:$8 sps:$4 sm:$0xff]   ;;  %v4595_v63 = vld [vmem:[#allocation11 + $0x294] ss:$8 sps:$4 sm:$0xff]  }
 0x14a   : > { %1256 = vmatprep.subr.bf16.mxu1 %v4565_v26  ;;  %v5886_v2 = vld [vmem:[#allocation2 + $0x80] sm:$0xff]  ;;  %v4597_v11 = vld [vmem:[#allocation11 + $0x290] ss:$8 sps:$4 sm:$0xff]   ;;  %v5892_v19 = vld [vmem:[#allocation2 + $0xc8] sm:$0xff]  ;;  %vm2118_vm2 = vsmask.f32 7424 }
 0x14b   : > { %1918 = vmatpush1.bf16.msra.mxu0 %v4510_v53  ;;  %v4537_v53 = vld [vmem:[#allocation11 + $0xe0] ss:$8 sps:$4 sm:$0xff]   ;;  %v1406_v58 = vrot.slane %v1404_v49, 3  ;;  %v1409_v59 = vrot.slane %v1407_v50, 4  ;;  %v4546_v8 = vld [vmem:[#allocation11 + $0x104] ss:$8 sps:$4 sm:$0xff]  }
 0x14c   : > { %1919 = vmatprep.subr.bf16.mxu0 %v4511_v54  ;;  %v1398_v54 = vrot.slane %v1396_v46, 3  ;;  %v4601_v16 = vld [vmem:[#allocation11 + $0x2a4] ss:$8 sps:$4 sm:$0xff]   ;;  %v4544_v21 = vld [vmem:[#allocation11 + $0x100] ss:$8 sps:$4 sm:$0xff]   ;;  %s6668_s21 = sld [smem:[#allocation25_spill]] }
 0x14d   : > { %1257 = vmatpush1.bf16.msra.mxu1 %v4567_v29  ;;  %v1410_v10 = vor.u32 %v1409_v59, %v1406_v58  ;;  %v5894_v20 = vld [vmem:[#allocation2 + $0xe8] sm:$0xff]  ;;  %v4552_v29 = vld [vmem:[#allocation11 + $0x114] ss:$8 sps:$4 sm:$0xff]   ;;  %s6670_s25 = sld [smem:[#allocation29_spill]]  ;;  %s3722_s11 = sshll.u32 %s5847_s14, 4  ;;  %s6487_s11 = int_to_ptr.vmem [resolvable:$true] %s3722_s11 }
 0x14e   : > { %1258 = vmatprep.subr.bf16.mxu1 %v4571_v30  ;;  %v1402_v9 = vor.u32 %v1401_v57, %v1398_v54  ;;  %v4603_v24 = vld [vmem:[#allocation11 + $0x2a0] ss:$8 sps:$4 sm:$0xff]   ;;  %v4613_v46 = vld [vmem:[#allocation11 + $0x2c4] ss:$8 sps:$4 sm:$0xff]   ;;  %v4564_v57 = vld [vmem:[#allocation11 + $0x134] ss:$8 sps:$4 sm:$0xff]  }
 0x14f   : > { %1920 = vmatpush1.bf16.msra.mxu0 %v4513_v55  ;;  %v5880_v55 = vld [vmem:[#allocation2 + $0x88] sm:$0xff]  ;;  %s4209_s4 = sshll.u32 %s6667_s29, 3  ;;  %s6671_s24 = sld [smem:[#allocation41_spill]] }
 0x150   : > { %1921 = vmatprep.subr.bf16.mxu0 %v4514_v62  ;;  %v4591_v62 = vld [vmem:[#allocation11 + $0x280] ss:$8 sps:$4 sm:$0xff]   ;;  %v712_v1 = vpack.c.bf16 %v5882_v60, %v5880_v55  ;;  %v1411_v23 = vsel %vm1394_vm1, %v1402_v9, %v1410_v10  ;;  %s6494_s22 = scalar_lea.sflag [#allocation5], %s549_s20  ;;  %s5332_s12 = smov [#allocation15]  }
 0x151   : > { %1259 = vmatpush1.bf16.msra.mxu1 %v4573_v37  ;;  %v4607_v37 = vld [vmem:[#allocation11 + $0x2b4] ss:$8 sps:$4 sm:$0xff]   ;;  %v700_v48 = vld [vmem:[#allocation2 + $0x108] sm:$0x7f]  ;;  %s5184_s5 = sshll.u32 %s5332_s12, 4  ;;  %s5185_s5 = int_to_ptr.vmem [resolvable:$false] %s5184_s5 }
 0x152   : > { %1260 = vmatprep.subr.bf16.mxu1 %v4577_v38  ;;  %v1473_v5 = vshrl.u32 %v712_v1, 16  ;;  %v1476_v6 = vshll.u32 %v712_v1, 16  ;;  %v4550_v38 = vld [vmem:[#allocation11 + $0x110] ss:$8 sps:$4 sm:$0xff]   ;;  %v4556_v49 = vld [vmem:[#allocation11 + $0x120] ss:$8 sps:$4 sm:$0xff]   ;;  %p5187_p3 = scmp.lt.s32.totalorder %s6487_s11, %s5185_s5 }
 0x153   : > { %1922 = vmatpush1.bf16.msra.mxu0 %v4516_v3  ;;  %v5888_v3 = vld [vmem:[#allocation2 + $0xa0] sm:$0xff]  ;;  %v4619_v1 = vld [vmem:[#allocation11 + $0x2d4] ss:$8 sps:$4 sm:$0xff]   ;;  %s4210_s7 = sshll.u32 %s6668_s21, 4  ;;  %p6672_p8 = scmp.ne.s32.totalorder %s6670_s25, 0 }
 0x154   : > { %1923 = vmatprep.subr.bf16.mxu0 %v4517_v4  ;;  %v4540_v4 = vld [vmem:[#allocation11 + $0xf0] ss:$8 sps:$4 sm:$0xff]   ;;  %v711_v7 = vpack.c.bf16 %v5888_v3, %v5886_v2  ;;  %v1475_v12 = vrot.slane %v1473_v5, 3  ;;  %v1478_v13 = vrot.slane %v1476_v6, 4  ;;  %v4615_v54 = vld [vmem:[#allocation11 + $0x2c0] ss:$8 sps:$4 sm:$0xff]   ;;  %s3719_s13 = sadd.s32 %s4210_s7, %s4209_s4 }
 0x155   : > { %1261 = vmatpush1.bf16.msra.mxu1 %v4579_v43  ;;  %v4570_v5 = vld [vmem:[#allocation11 + $0x144] ss:$8 sps:$4 sm:$0xff]   ;;  %s4211_s10 = sshll.u32 %s3719_s13, 7 }
 0x156   : > { %1262 = vmatprep.subr.bf16.mxu1 %v4583_v44  ;;  %v1464_v14 = vshrl.u32 %v711_v7, 16  ;;  %v4609_v44 = vld [vmem:[#allocation11 + $0x2b0] ss:$8 sps:$4 sm:$0xff]   ;;  %s6485_s1 = scalar_lea.hbm %s6671_s24, %s4211_s10 }
 0x157   : > { %1924 = vmatpush1.bf16.msra.mxu0 %v4519_v15  ;;  %v1467_v15 = vshll.u32 %v711_v7, 16 }
 0x158   : > { %1925 = vmatprep.subr.bf16.mxu0 %v4520_v18  ;;  %v1479_v18 = vor.u32 %v1478_v13, %v1475_v12  ;;  %v670_v12 = vld [vmem:[#allocation2 + $0x18] sm:$0x80] }
 0x159   : > { %1263 = vmatpush1.bf16.msra.mxu1 %v4585_v51  ;;  %v1469_v26 = vrot.slane %v1467_v15, 4  ;;  %v720_v51 = vpack.c.bf16 %v700_v48, %v700_v48  ;;  %v5909_v13 = vld [vmem:[#allocation2 + $0x38] sm:$0xff]  ;;  %v4639_v48 = vld [vmem:[#allocation11 + $0x304] ss:$8 sps:$4 sm:$0xff]  }
 0x15a   : > { %1264 = vmatprep.subr.bf16.mxu1 %v4589_v52  ;;  %v699_v52 = vld [vmem:[#allocation2 + $0x100] sm:$0x7f]  ;;  %v5913_v15 = vld [vmem:[#allocation2 + $0x78] sm:$0xff] }
 0x15b   : > { %1926 = vmatpush1.bf16.msra.mxu0 %v4522_v22  ;;  %v716_v22 = vpack.c.bf16 %v5894_v20, %v5892_v19  ;;  %v1545_v58 = vshrl.u32 %v720_v51, 16  ;;  %v1548_v59 = vshll.u32 %v720_v51, 16 }
 0x15c   : > { %1927 = vmatprep.subr.bf16.mxu0 %v4523_v25  ;;  %v1466_v25 = vrot.slane %v1464_v14, 3  ;;  %v5911_v14 = vld [vmem:[#allocation2 + $0x58] sm:$0xff] }
 0x15d   : > { %1265 = vmatpush1.bf16.msra.mxu1 %v4591_v62  ;;  %v1509_v30 = vshrl.u32 %v716_v22, 16  ;;  %v4562_v62 = vld [vmem:[#allocation11 + $0x130] ss:$8 sps:$4 sm:$0xff]   ;;  %v1547_v7 = vrot.slane %v1545_v58, 3 }
 0x15e   : > { %1266 = vmatprep.subr.bf16.mxu1 %v4595_v63  ;;  %v1470_v43 = vor.u32 %v1469_v26, %v1466_v25  ;;  %v4586_v58 = vld [vmem:[#allocation11 + $0x170] ss:$8 sps:$4 sm:$0xff]  }
 0x15f   : > { %1928 = vmatpush1.bf16.msra.mxu0 %v4525_v27  ;;  %v5899_v27 = vld [vmem:[#allocation2 + $0xc0] sm:$0xff]  ;;  %v1511_v39 = vrot.slane %v1509_v30, 3 }
 0x160   : > { %1929 = vmatprep.subr.bf16.mxu0 %v4526_v28  ;;  %v5901_v28 = vld [vmem:[#allocation2 + $0xe0] sm:$0xff] }
 0x161   : > { %1267 = vmatpush1.bf16.msra.mxu1 %v4597_v11  ;;  %v715_v32 = vpack.c.bf16 %v5901_v28, %v5899_v27 }
 0x162   : > { %1268 = vmatprep.subr.bf16.mxu1 %v4601_v16 }
 0x163   : > { %1930 = vmatpush1.bf16.msra.mxu0 %v4528_v31  ;;  %v1512_v31 = vshll.u32 %v716_v22, 16  ;;  %v1503_v42 = vshll.u32 %v715_v32, 16  ;;  %v4568_v22 = vld [vmem:[#allocation11 + $0x140] ss:$8 sps:$4 sm:$0xff]  }
 0x164   : > { %1931 = vmatprep.subr.bf16.mxu0 %v4529_v34  ;;  %v1480_v34 = vsel %vm1394_vm1, %v5867_v17, %v1479_v18 }
 0x165   : > { %1269 = vmatpush1.bf16.msra.mxu1 %v4603_v24  ;;  %v1505_v50 = vrot.slane %v1503_v42, 4  ;;  %v4627_v24 = vld [vmem:[#allocation11 + $0x2e0] ss:$8 sps:$4 sm:$0xff]  }
 0x166   : > { %1270 = vmatprep.subr.bf16.mxu1 %v4607_v37 }
 0x167   : > { %1932 = vmatpush1.bf16.msra.mxu0 %v4531_v40  ;;  %v1514_v40 = vrot.slane %v1512_v31, 4 }
 0x168   : > { %1933 = vmatprep.subr.bf16.mxu0 %v4532_v41  ;;  %v1500_v41 = vshrl.u32 %v715_v32, 16  ;;  %v4576_v32 = vld [vmem:[#allocation11 + $0x154] ss:$8 sps:$4 sm:$0xff]  }
 0x169   : > { %1271 = vmatpush1.bf16.msra.mxu1 %v4609_v44 }
 0x16a   : > { %v1502_v17 = vrot.slane %v1500_v41, 3  ;;  %1272 = vmatprep.subr.bf16.mxu1 %v4613_v46  ;;  %v4582_v46 = vld [vmem:[#allocation11 + $0x164] ss:$8 sps:$4 sm:$0xff]  }
 0x16b   : > { %1934 = vmatpush1.bf16.msra.mxu0 %v4534_v45  ;;  %v4558_v45 = vld [vmem:[#allocation11 + $0x124] ss:$8 sps:$4 sm:$0xff]  }
 0x16c   : > { %1935 = vmatprep.subr.bf16.mxu0 %v4535_v47  ;;  %v1515_v47 = vor.u32 %v1514_v40, %v1511_v39  ;;  %v1506_v6 = vor.u32 %v1505_v50, %v1502_v17  ;;  %v4580_v50 = vld [vmem:[#allocation11 + $0x160] ss:$8 sps:$4 sm:$0xff]  }
 0x16d   : > { %1273 = vmatpush1.bf16.msra.mxu1 %v4615_v54 }
 0x16e   : > { %v1516_v63 = vsel %vm1394_vm1, %v1479_v18, %v1515_v47  ;;  %1274 = vmatprep.subr.bf16.mxu1 %v4619_v1  ;;  %v706_v18 = vpack.c.bf16 %v5909_v13, %v670_v12  ;;  %v4649_v1 = vld [vmem:[#allocation11 + $0x320] ss:$8 sps:$4 sm:$0xff]   ;;  %v669_v12 = vld [vmem:[#allocation2 + $0x10] sm:$0x80] }
 0x16f   : > { %1936 = vmatpush1.bf16.msra.mxu0 %v4537_v53  ;;  %v1471_v53 = vsel %vm1394_vm1, %v1410_v10, %v1470_v43  ;;  %v4625_v10 = vld [vmem:[#allocation11 + $0x2e4] ss:$8 sps:$4 sm:$0xff]  }
 0x170   : > { %1937 = vmatprep.subr.bf16.mxu0 %v4538_v56  ;;  %v719_v56 = vpack.c.bf16 %v699_v52, %v699_v52  ;;  %v1450_v30 = vshll.u32 %v706_v18, 16  ;;  %v4637_v52 = vld [vmem:[#allocation11 + $0x300] ss:$8 sps:$4 sm:$0xff]  }
 0x172   : > { %v1536_v9 = vshrl.u32 %v719_v56, 16  ;;  %v1539_v11 = vshll.u32 %v719_v56, 16  ;;  %v1452_v40 = vrot.slane %v1450_v30, 4  ;;  %v4645_v56 = vld [vmem:[#allocation11 + $0x314] ss:$8 sps:$4 sm:$0xff]  }
 0x173   : > { %1938 = vmatpush1.bf16.msra.mxu0 %v4540_v4  ;;  %v4621_v4 = vld [vmem:[#allocation11 + $0x2d0] ss:$8 sps:$4 sm:$0xff]   ;;  %v4624_v30 = vld [vmem:[#allocation11 + $0x1d4] ss:$8 sps:$4 sm:$0xff]  }
 0x174   : > { %1980 = vmatprep.subr.bf16.mxu0 %v4546_v8  ;;  %v1550_v8 = vrot.slane %v1548_v59, 4  ;;  %v1538_v25 = vrot.slane %v1536_v9, 3  ;;  %1275 = vmatpush1.bf16.msra.mxu1 %v4621_v4  ;;  %v1541_v26 = vrot.slane %v1539_v11, 4  ;;  %v4651_v59 = vld [vmem:[#allocation11 + $0x324] ss:$8 sps:$4 sm:$0xff]  }
 0x175   : > { %1276 = vmatprep.subr.bf16.mxu1 %v4625_v10  ;;  %v4657_v4 = vld [vmem:[#allocation11 + $0x334] ss:$8 sps:$4 sm:$0xff]   ;;  %v4663_v9 = vld [vmem:[#allocation11 + $0x344] ss:$8 sps:$4 sm:$0xff]   ;;  %v4661_v10 = vld [vmem:[#allocation11 + $0x340] ss:$8 sps:$4 sm:$0xff]  }
 0x176   : > { %1940 = vmatmul.mubr.bf16.vlgmr.msra.gmra.mrb[0].mxu0 %v1411_v23  ;;  %v1551_v16 = vor.u32 %v1550_v8, %v1547_v7  ;;  %v1507_v23 = vsel %vm1394_vm1, %v1470_v43, %v1506_v6  ;;  %v4574_v43 = vld [vmem:[#allocation11 + $0x150] ss:$8 sps:$4 sm:$0xff]   ;;  %v1542_v44 = vor.u32 %v1541_v26, %v1538_v25  ;;  %v4606_v8 = vld [vmem:[#allocation11 + $0x1a4] ss:$8 sps:$4 sm:$0xff]   ;;  %v4612_v11 = vld [vmem:[#allocation11 + $0x1b4] ss:$8 sps:$4 sm:$0xff]  }
 0x177   : > { %1981 = vmatpush1.bf16.msra.mxu0 %v4544_v21  ;;  %1949 = vmatprep.mubr.bf16.mxu0 %v1480_v34  ;;  %v710_v21 = vpack.c.bf16 %v5913_v15, %v5911_v14  ;;  %v4631_v34 = vld [vmem:[#allocation11 + $0x2f4] ss:$8 sps:$4 sm:$0xff]   ;;  %v4655_v7 = vld [vmem:[#allocation11 + $0x330] ss:$8 sps:$4 sm:$0xff]  }
 0x178   : > { %1982 = vmatprep.subr.bf16.mxu0 %v4552_v29  ;;  %v1447_v29 = vshrl.u32 %v706_v18, 16  ;;  %1277 = vmatpush1.bf16.msra.mxu1 %v4627_v24  ;;  %v1543_v51 = vsel %vm1394_vm1, %v1506_v6, %v1542_v44  ;;  %v4598_v6 = vld [vmem:[#allocation11 + $0x190] ss:$8 sps:$4 sm:$0xff]   ;;  %v4687_v44 = vld [vmem:[#allocation11 + $0x384] ss:$8 sps:$4 sm:$0xff]  }
 0x179   : > { %v1455_v31 = vshrl.u32 %v710_v21, 16  ;;  %v1458_v37 = vshll.u32 %v710_v21, 16  ;;  %1278 = vmatprep.subr.bf16.mxu1 %v4631_v34  ;;  %v5937_v18 = vld [vmem:[#allocation2 + $0x50] sm:$0xff]  ;;  %v5944_v25 = vld [vmem:[#allocation2 + $0x98] sm:$0xff] }
 0x17a   : > { %v1449_v39 = vrot.slane %v1447_v29, 3  ;;  %v5939_v21 = vld [vmem:[#allocation2 + $0x70] sm:$0xff]  ;;  %v5946_v26 = vld [vmem:[#allocation2 + $0xb8] sm:$0xff]  ;;  %v4616_v29 = vld [vmem:[#allocation11 + $0x1c0] ss:$8 sps:$4 sm:$0xff]  }
 0x17b   : > { %1983 = vmatpush1.bf16.msra.mxu0 %v4550_v38  ;;  %v1552_v38 = vsel %vm1394_vm1, %v1515_v47, %v1551_v16  ;;  %v1457_v41 = vrot.slane %v1455_v31, 3  ;;  %v1460_v42 = vrot.slane %v1458_v37, 4  ;;  %v727_v47 = vpack.c.bf16 %v5873_v35, %v5871_v33  ;;  %v4643_v33 = vld [vmem:[#allocation11 + $0x310] ss:$8 sps:$4 sm:$0xff]   ;;  %v4594_v35 = vld [vmem:[#allocation11 + $0x184] ss:$8 sps:$4 sm:$0xff]  }
 0x17c   : > { %1984 = vmatprep.subr.bf16.mxu0 %v4558_v45  ;;  %v4633_v45 = vld [vmem:[#allocation11 + $0x2f0] ss:$8 sps:$4 sm:$0xff]   ;;  %v709_v24 = vpack.c.bf16 %v5939_v21, %v5937_v18  ;;  %v4673_v31 = vld [vmem:[#allocation11 + $0x360] ss:$8 sps:$4 sm:$0xff]   ;;  %v714_v37 = vpack.c.bf16 %v5946_v26, %v5944_v25 }
 0x17d   : > { %v5920_v17 = vor.u32 %v1460_v42, %v1457_v41  ;;  %1279 = vmatpush1.bf16.msra.mxu1 %v4633_v45  ;;  %v5935_v16 = vld [vmem:[#allocation2 + $0x30] sm:$0xff] }
 0x17e   : > { %1950 = vmatmul.mubr.bf16.gmra.mrb[4].mxu0 %v1471_v53  ;;  %v4588_v53 = vld [vmem:[#allocation11 + $0x174] ss:$8 sps:$4 sm:$0xff]   ;;  %1321 = vmatprep.subr.bf16.mxu1 %v4639_v48  ;;  %v4622_v34 = vld [vmem:[#allocation11 + $0x1d0] ss:$8 sps:$4 sm:$0xff]   ;;  %v1438_v41 = vshrl.u32 %v709_v24, 16  ;;  %v1441_v42 = vshll.u32 %v709_v24, 16 }
 0x17f   : > { %1985 = vmatpush1.bf16.msra.mxu0 %v4556_v49  ;;  %1959 = vmatprep.mubr.bf16.mxu0 %v1516_v63  ;;  %v1453_v49 = vor.u32 %v1452_v40, %v1449_v39  ;;  %v731_v63 = vpack.c.bf16 %v5886_v2, %v5875_v36  ;;  %v4604_v36 = vld [vmem:[#allocation11 + $0x1a0] ss:$8 sps:$4 sm:$0xff]   ;;  %v735_v2 = vpack.c.bf16 %v5899_v27, %v5888_v3  ;;  %v4618_v3 = vld [vmem:[#allocation11 + $0x1c4] ss:$8 sps:$4 sm:$0xff]   ;;  %v5950_v45 = vld [vmem:[#allocation2 + $0x90] sm:$0xff] }
 0x180   : > { %1986 = vmatprep.subr.bf16.mxu0 %v4564_v57  ;;  %v732_v57 = vpack.c.bf16 %v5880_v55, %v5864_v61  ;;  %1281 = vmatmul.mubr.bf16.vlgmr.msra.gmra.mrb[0].mxu1 %v727_v47  ;;  %v4600_v61 = vld [vmem:[#allocation11 + $0x194] ss:$8 sps:$4 sm:$0xff]   ;;  %v4675_v27 = vld [vmem:[#allocation11 + $0x364] ss:$8 sps:$4 sm:$0xff]   ;;  %v4628_v48 = vld [vmem:[#allocation11 + $0x1e0] ss:$8 sps:$4 sm:$0xff]  }
 0x181   : > { %v1462_v54 = vsel %vm1394_vm1, %v1453_v49, %v5920_v17  ;;  %1322 = vmatpush1.bf16.msra.mxu1 %v4637_v52  ;;  %v1491_v49 = vshrl.u32 %v714_v37, 16  ;;  %v4636_v47 = vld [vmem:[#allocation11 + $0x1f4] ss:$8 sps:$4 sm:$0xff]   ;;  %v4697_v24 = vld [vmem:[#allocation11 + $0x3a0] ss:$8 sps:$4 sm:$0xff]  }
 0x182   : > { %1323 = vmatprep.subr.bf16.mxu1 %v4645_v56  ;;  %1290 = vmatprep.mubr.bf16.mxu1 %v732_v57  ;;  %v1440_v56 = vrot.slane %v1438_v41, 3  ;;  %v1443_v57 = vrot.slane %v1441_v42, 4  ;;  %v4654_v41 = vld [vmem:[#allocation11 + $0x424] ss:$8 sps:$4 sm:$0xff]   ;;  %v4703_v42 = vld [vmem:[#allocation11 + $0x3b0] ss:$8 sps:$4 sm:$0xff]  }
 0x183   : > { %1987 = vmatpush1.bf16.msra.mxu0 %v4562_v62  ;;  %v4592_v62 = vld [vmem:[#allocation11 + $0x180] ss:$8 sps:$4 sm:$0xff]  }
 0x184   : > { %1988 = vmatprep.subr.bf16.mxu0 %v4570_v5  ;;  %v736_v5 = vpack.c.bf16 %v5892_v19, %v5882_v60  ;;  %v4669_v60 = vld [vmem:[#allocation11 + $0x354] ss:$8 sps:$4 sm:$0xff]   ;;  %v4610_v19 = vld [vmem:[#allocation11 + $0x1b0] ss:$8 sps:$4 sm:$0xff]  }
 0x185   : > { %1324 = vmatpush1.bf16.msra.mxu1 %v4643_v33 }
 0x186   : > { %1960 = vmatmul.mubr.bf16.gmra.mrb[8].mxu0 %v1507_v23  ;;  %1325 = vmatprep.subr.bf16.mxu1 %v4651_v59  ;;  %v705_v23 = vpack.c.bf16 %v5935_v16, %v669_v12  ;;  %v723_v59 = vld [vmem:[#allocation2 + $0x100] sm:$0xff] }
 0x187   : > { %1989 = vmatpush1.bf16.msra.mxu0 %v4568_v22  ;;  %1969 = vmatprep.mubr.bf16.mxu0 %v1552_v38  ;;  %v4667_v22 = vld [vmem:[#allocation11 + $0x350] ss:$8 sps:$4 sm:$0xff]   ;;  %v4630_v38 = vld [vmem:[#allocation11 + $0x1e4] ss:$8 sps:$4 sm:$0xff]  }
 0x188   : > { %1990 = vmatprep.subr.bf16.mxu0 %v4576_v32  ;;  %1291 = vmatmul.mubr.bf16.gmra.mrb[4].mxu1 %v731_v63  ;;  %v4681_v32 = vld [vmem:[#allocation11 + $0x374] ss:$8 sps:$4 sm:$0xff]   ;;  %v1430_v39 = vshrl.u32 %v705_v23, 16  ;;  %v1433_v40 = vshll.u32 %v705_v23, 16 }
 0x189   : > { %1326 = vmatpush1.bf16.msra.mxu1 %v4649_v1  ;;  %1300 = vmatprep.mubr.bf16.mxu1 %v736_v5  ;;  %v4634_v1 = vld [vmem:[#allocation11 + $0x1f0] ss:$8 sps:$4 sm:$0xff]  }
 0x18a   : > { %1327 = vmatprep.subr.bf16.mxu1 %v4657_v4  ;;  %v1435_v52 = vrot.slane %v1433_v40, 4 }
 0x18b   : > { %1991 = vmatpush1.bf16.msra.mxu0 %v4574_v43  ;;  %v4679_v43 = vld [vmem:[#allocation11 + $0x370] ss:$8 sps:$4 sm:$0xff]  }
 0x18c   : > { %1992 = vmatprep.subr.bf16.mxu0 %v4582_v46  ;;  %v5952_v46 = vld [vmem:[#allocation2 + $0xb0] sm:$0xff] }
 0x18d   : > { %1328 = vmatpush1.bf16.msra.mxu1 %v4655_v7  ;;  %v713_v33 = vpack.c.bf16 %v5952_v46, %v5950_v45  ;;  %v4691_v7 = vld [vmem:[#allocation11 + $0x390] ss:$8 sps:$4 sm:$0xff]  }
 0x18e   : > { %1970 = vmatmul.mubr.bf16.gmra.mrb[12].mxu0 %v1543_v51  ;;  %1329 = vmatprep.subr.bf16.mxu1 %v4663_v9  ;;  %v1432_v51 = vrot.slane %v1430_v39, 3  ;;  %v730_v9 = vpack.c.bf16 %v5911_v14, %v5909_v13 }
 0x18f   : > { %1993 = vmatpush1.bf16.msra.mxu0 %v4580_v50  ;;  %2012 = vmatprep.mubr.bf16.mxu0 %v1462_v54  ;;  %v1494_v50 = vshll.u32 %v714_v37, 16  ;;  %v5956_v54 = vld [vmem:[#allocation2 + $0xf8] sm:$0xff] }
 0x190   : > { %1994 = vmatprep.subr.bf16.mxu0 %v4588_v53  ;;  %1301 = vmatmul.mubr.bf16.gmra.mrb[8].mxu1 %v735_v2  ;;  %v5954_v53 = vld [vmem:[#allocation2 + $0xd8] sm:$0xff]  ;;  %v1444_v2 = vor.u32 %v1443_v57, %v1440_v56  ;;  %v5992_v56 = vpack.c.bf16 %v5950_v45, %v5939_v21  ;;  %v4652_v57 = vld [vmem:[#allocation11 + $0x420] ss:$8 sps:$4 sm:$0xff]  }
 0x191   : > { %1330 = vmatpush1.bf16.msra.mxu1 %v4661_v10  ;;  %v1496_v4 = vrot.slane %v1494_v50, 4  ;;  %v718_v5 = vpack.c.bf16 %v5956_v54, %v5954_v53  ;;  %v1485_v10 = vshll.u32 %v713_v33, 16  ;;  %v701_v50 = vld [vmem:[#allocation2 + $0x110] sm:$0x7f]  ;;  %v6002_v45 = vpack.c.bf16 %v5954_v53, %v5946_v26  ;;  %v4666_v26 = vld [vmem:[#allocation11 + $0x444] ss:$8 sps:$4 sm:$0xff]  }
 0x192   : > { %1331 = vmatprep.subr.bf16.mxu1 %v4669_v60  ;;  %v4642_v60 = vld [vmem:[#allocation11 + $0x404] ss:$8 sps:$4 sm:$0xff]   ;;  %v721_v21 = vpack.c.bf16 %v701_v50, %v701_v50 }
 0x193   : > { %1995 = vmatpush1.bf16.msra.mxu0 %v4586_v58  ;;  %v4685_v58 = vld [vmem:[#allocation11 + $0x380] ss:$8 sps:$4 sm:$0xff]   ;;  %v1527_v12 = vshrl.u32 %v718_v5, 16 }
 0x194   : > { %1996 = vmatprep.subr.bf16.mxu0 %v4594_v35  ;;  %v5960_v35 = vld [vmem:[#allocation2 + $0x108] sm:$0xff] }
 0x195   : > { %1332 = vmatpush1.bf16.msra.mxu1 %v4667_v22  ;;  %v740_v63 = vpack.c.bf16 %v5960_v35, %v5894_v20  ;;  %v1482_v20 = vshrl.u32 %v713_v33, 16  ;;  %v1530_v22 = vshll.u32 %v718_v5, 16  ;;  %v1529_v39 = vrot.slane %v1527_v12, 3  ;;  %v748_v33 = vld [vmem:[#allocation2 + $0x48] sm:$0xff] }
 0x196   : > { %1333 = vmatprep.subr.bf16.mxu1 %v4675_v27  ;;  %v4640_v27 = vld [vmem:[#allocation11 + $0x400] ss:$8 sps:$4 sm:$0xff]  }
 0x197   : > { %1997 = vmatpush1.bf16.msra.mxu0 %v4592_v62  ;;  %v4693_v62 = vld [vmem:[#allocation11 + $0x394] ss:$8 sps:$4 sm:$0xff]   ;;  %1310 = vmatprep.mubr.bf16.mxu1 %v740_v63  ;;  %v1532_v40 = vrot.slane %v1530_v22, 4 }
 0x198   : > { %1998 = vmatprep.subr.bf16.mxu0 %v4600_v61  ;;  %v1493_v61 = vrot.slane %v1491_v49, 3  ;;  %v4711_v49 = vld [vmem:[#allocation11 + $0x3c4] ss:$8 sps:$4 sm:$0xff]  }
 0x199   : > { %1334 = vmatpush1.bf16.msra.mxu1 %v4673_v31  ;;  %v4648_v31 = vld [vmem:[#allocation11 + $0x414] ss:$8 sps:$4 sm:$0xff]  }
 0x19a   : > { %1335 = vmatprep.subr.bf16.mxu1 %v4681_v32 }
 0x19b   : > { %1999 = vmatpush1.bf16.msra.mxu0 %v4598_v6  ;;  %v5967_v6 = vpack.c.bf16 %v723_v59, %v5901_v28  ;;  %v4699_v28 = vld [vmem:[#allocation11 + $0x3a4] ss:$8 sps:$4 sm:$0xff]  }
 0x19c   : > { %2000 = vmatprep.subr.bf16.mxu0 %v4606_v8  ;;  %v5969_v8 = vld [vmem:[#allocation2 + $0xd0] sm:$0xff] }
 0x19d   : > { %1336 = vmatpush1.bf16.msra.mxu1 %v4679_v43  ;;  %v6013_v12 = vpack.c.bf16 %v5969_v8, %v5952_v46 }
 0x19e   : > { %1337 = vmatprep.subr.bf16.mxu1 %v4687_v44  ;;  %1311 = vmatmul.mubr.bf16.gmra.mrb[12].mxu1 %v5967_v6 }
 0x19f   : > { %2001 = vmatpush1.bf16.msra.mxu0 %v4604_v36  ;;  %v1436_v36 = vor.u32 %v1435_v52, %v1432_v51  ;;  %1353 = vmatprep.mubr.bf16.mxu1 %v730_v9  ;;  %v744_v52 = vld [vmem:[#allocation2 + $0x28] sm:$0xfe] }
 0x1a0   : > { %2002 = vmatprep.subr.bf16.mxu0 %v4612_v11  ;;  %v5973_v11 = vld [vmem:[#allocation2 + $0xf0] sm:$0xff]  ;;  %v780_v9 = vpack.c.bf16 %v748_v33, %v744_v52  ;;  %v726_v33 = vld [vmem:[#allocation2 + $0x118] sm:$0xff] }
 0x1a1   : > { %1338 = vmatpush1.bf16.msra.mxu1 %v4685_v58  ;;  %v717_v13 = vpack.c.bf16 %v5973_v11, %v5969_v8  ;;  %v1445_v23 = vsel %vm1394_vm1, %v1436_v36, %v1444_v2  ;;  %v5994_v58 = vor.u32 %v1532_v40, %v1529_v39  ;;  %v4658_v36 = vld [vmem:[#allocation11 + $0x430] ss:$8 sps:$4 sm:$0xff]   ;;  %v4721_v40 = vld [vmem:[#allocation11 + $0x3e0] ss:$8 sps:$4 sm:$0xff]  }
 0x1a2   : > { %1339 = vmatprep.subr.bf16.mxu1 %v4693_v62  ;;  %v4660_v62 = vld [vmem:[#allocation11 + $0x434] ss:$8 sps:$4 sm:$0xff]   ;;  %v2134_v46 = vshll.u32 %v780_v9, 16 }
 0x1a3   : > { %2003 = vmatpush1.bf16.msra.mxu0 %v4610_v19  ;;  %v5975_v19 = vor.u32 %v1496_v4, %v1493_v61  ;;  %v1518_v43 = vshrl.u32 %v717_v13, 16  ;;  %v1521_v44 = vshll.u32 %v717_v13, 16  ;;  %v4709_v61 = vld [vmem:[#allocation11 + $0x3c0] ss:$8 sps:$4 sm:$0xff]   ;;  %v4717_v4 = vld [vmem:[#allocation11 + $0x3d4] ss:$8 sps:$4 sm:$0xff]  }
 0x1a4   : > { %2004 = vmatprep.subr.bf16.mxu0 %v4618_v3  ;;  %v702_v3 = vld [vmem:[#allocation2 + $0x118] sm:$0x7f]  ;;  %v1554_v13 = vshrl.u32 %v721_v21, 16 }
 0x1a5   : > { %1340 = vmatpush1.bf16.msra.mxu1 %v4691_v7  ;;  %v722_v32 = vpack.c.bf16 %v702_v3, %v702_v3  ;;  %v1498_v37 = vsel %vm1394_vm1, %v5920_v17, %v5975_v19  ;;  %v1520_v63 = vrot.slane %v1518_v43, 3  ;;  %v2183_v3 = vshrl.u32 %v5992_v56, 16 }
 0x1a6   : > { %1341 = vmatprep.subr.bf16.mxu1 %v4699_v28  ;;  %v2195_v28 = vshll.u32 %v6002_v45, 16  ;;  %v2132_v43 = vshrl.u32 %v780_v9, 16 }
 0x1a7   : > { %2005 = vmatpush1.bf16.msra.mxu0 %v4616_v29  ;;  %v1484_v29 = vrot.slane %v1482_v20, 3  ;;  %v1563_v17 = vshrl.u32 %v722_v32, 16  ;;  %v1566_v51 = vshll.u32 %v722_v32, 16  ;;  %v1534_v20 = vsel %vm1394_vm1, %v5975_v19, %v5994_v58  ;;  %v4715_v19 = vld [vmem:[#allocation11 + $0x3d0] ss:$8 sps:$4 sm:$0xff]  }
 0x1a8   : > { %2006 = vmatprep.subr.bf16.mxu0 %v4624_v30  ;;  %v1487_v30 = vrot.slane %v1485_v10, 4 }
 0x1a9   : > { %1342 = vmatpush1.bf16.msra.mxu1 %v4697_v24  ;;  %v1565_v5 = vrot.slane %v1563_v17, 3  ;;  %v1568_v7 = vrot.slane %v1566_v51, 4  ;;  %v2197_v24 = vrot.slane %v2195_v28, 1  ;;  %v4729_v51 = vld [vmem:[#allocation11 + $0x3f4] ss:$8 sps:$4 sm:$0xff]  }
 0x1aa   : > { %v4690_v28 = vld [vmem:[#allocation11 + $0x484] ss:$8 sps:$4 sm:$0xff]  }
 0x1ab   : > { %2007 = vmatpush1.bf16.msra.mxu0 %v4622_v34  ;;  %v4646_v34 = vld [vmem:[#allocation11 + $0x410] ss:$8 sps:$4 sm:$0xff]   ;;  %v1569_v32 = vor.u32 %v1568_v7, %v1565_v5  ;;  %v4684_v7 = vld [vmem:[#allocation11 + $0x474] ss:$8 sps:$4 sm:$0xff]  }
 0x1ac   : > { %2008 = vmatprep.subr.bf16.mxu0 %v4630_v38  ;;  %v4705_v38 = vld [vmem:[#allocation11 + $0x3b4] ss:$8 sps:$4 sm:$0xff]  }
 0x1ad   : > { %1343 = vmatprep.subr.bf16.mxu1 %v4705_v38  ;;  %v1570_v17 = vsel %vm1394_vm1, %v5994_v58, %v1569_v32  ;;  %v2215_v58 = vshrl.u32 %v6013_v12, 16 }
 0x1ae   : > { %1344 = vmatpush1.bf16.msra.mxu1 %v4703_v42  ;;  %v4672_v42 = vld [vmem:[#allocation11 + $0x454] ss:$8 sps:$4 sm:$0xff]  }
 0x1af   : > { %2009 = vmatpush1.bf16.msra.mxu0 %v4628_v48  ;;  %v5984_v48 = vor.u32 %v1487_v30, %v1484_v29  ;;  %1345 = vmatprep.subr.bf16.mxu1 %v4711_v49  ;;  %v4723_v29 = vld [vmem:[#allocation11 + $0x3e4] ss:$8 sps:$4 sm:$0xff]  }
 0x1b0   : > { %2010 = vmatprep.subr.bf16.mxu0 %v4636_v47  ;;  %v5988_v47 = vpack.c.bf16 %v5944_v25, %v5913_v15  ;;  %v1523_v15 = vrot.slane %v1521_v44, 4  ;;  %v2151_v25 = vshll.u32 %v5992_v56, 16  ;;  %v2136_v44 = vrot.slane %v2134_v46, 1 }
 0x1b2   : > { %v2163_v59 = vshll.u32 %v5988_v47, 16  ;;  %v1524_v53 = vor.u32 %v1523_v15, %v1520_v63  ;;  %v6015_v22 = vrot.slane %v2151_v25, 1  ;;  %1346 = vmatpush1.bf16.msra.mxu1 %v4709_v61  ;;  %v2223_v15 = vshrl.u32 %v6002_v45, 16  ;;  %v725_v25 = vld [vmem:[#allocation2 + $0x110] sm:$0xff] }
 0x1b3   : > { %2011 = vmatpush1.bf16.msra.mxu0 %v4634_v1  ;;  %v1489_v1 = vsel %vm1394_vm1, %v1444_v2, %v5984_v48  ;;  %v752_v2 = vld [vmem:[#allocation2 + $0x68] sm:$0xff]  ;;  %1347 = vmatprep.subr.bf16.mxu1 %v4717_v4  ;;  %v6042_v61 = vpack.c.bf16 %v726_v33, %v5956_v54  ;;  %v6046_v5 = vpack.c.bf16 %v725_v25, %v5973_v11  ;;  %v745_v11 = vld [vmem:[#allocation2 + $0x30] sm:$0xfe] }
 0x1b4   : > { %2599 = vmatprep.subr.bf16.mxu0 %v4642_v60  ;;  %v6007_v10 = vrot.slane %v2163_v59, 1  ;;  %v2191_v60 = vshrl.u32 %v5988_v47, 16  ;;  %v6020_v30 = vpack.c.bf16 %v5880_v55, %v752_v2  ;;  %v2185_v8 = vor.u32 %v2183_v3, %v6015_v22  ;;  %v4678_v59 = vld [vmem:[#allocation11 + $0x464] ss:$8 sps:$4 sm:$0xff]   ;;  %v746_v2 = vld [vmem:[#allocation2 + $0x38] sm:$0xfe] }
 0x1b5   : > { %v1525_v39 = vsel %vm1394_vm1, %v5984_v48, %v1524_v53  ;;  %v1556_v55 = vrot.slane %v1554_v13, 3  ;;  %v4670_v48 = vld [vmem:[#allocation11 + $0x450] ss:$8 sps:$4 sm:$0xff]   ;;  %v4714_v25 = vld [vmem:[#allocation11 + $0x4c4] ss:$8 sps:$4 sm:$0xff]  }
 0x1b6   : > { %2013 = vmatmul.mubr.bf16.vlgmr.msra.gmra.mrb[0].mxu0 %v1445_v23  ;;  %v2193_v23 = vor.u32 %v2191_v60, %v6007_v10  ;;  %1348 = vmatpush1.bf16.msra.mxu1 %v4715_v19  ;;  %v2139_v49 = vshll.u32 %v6020_v30, 16  ;;  %v2219_v60 = vshll.u32 %v6046_v5, 16  ;;  %v778_v3 = vld [vmem:[#allocation2 + $0x138] sm:$0x1]  ;;  %v781_v19 = vpack.c.bf16 %v5937_v18, %v745_v11  ;;  %v4732_v11 = vld [vmem:[#allocation11 + $0x4f4] ss:$8 sps:$4 sm:$0xff]  }
 0x1b7   : > { %2600 = vmatpush1.bf16.msra.mxu0 %v4640_v27  ;;  %2022 = vmatprep.mubr.bf16.mxu0 %v1498_v37  ;;  %v1557_v27 = vshll.u32 %v721_v21, 16  ;;  %v4664_v37 = vld [vmem:[#allocation11 + $0x440] ss:$8 sps:$4 sm:$0xff]  }
 0x1b8   : > { %2601 = vmatprep.subr.bf16.mxu0 %v4648_v31  ;;  %v2187_v31 = vshll.u32 %v6013_v12, 16  ;;  %1349 = vmatprep.subr.bf16.mxu1 %v4723_v29  ;;  %v6035_v63 = vrot.slane %v2139_v49, 1  ;;  %v4676_v21 = vld [vmem:[#allocation11 + $0x460] ss:$8 sps:$4 sm:$0xff]   ;;  %v2221_v13 = vrot.slane %v2219_v60, 1 }
 0x1b9   : > { %v4694_v49 = vld [vmem:[#allocation11 + $0x490] ss:$8 sps:$4 sm:$0xff]  }
 0x1ba   : > { %v2189_v38 = vrot.slane %v2187_v31, 1  ;;  %1350 = vmatpush1.bf16.msra.mxu1 %v4721_v40  ;;  %v2146_v31 = vshll.u32 %v781_v19, 16 }
 0x1bb   : > { %2602 = vmatpush1.bf16.msra.mxu0 %v4646_v34  ;;  %v6025_v34 = vsel %vm2118_vm2, %v2193_v23, %v2197_v24  ;;  %1351 = vmatprep.subr.bf16.mxu1 %v4729_v51  ;;  %v777_v23 = vld [vmem:[#allocation2 + $0x130] sm:$0x1] }
 0x1bc   : > { %2603 = vmatprep.subr.bf16.mxu0 %v4654_v41  ;;  %v1559_v41 = vrot.slane %v1557_v27, 4  ;;  %v6031_v50 = vsel %vm2118_vm2, %v2185_v8, %v2189_v38  ;;  %v2217_v54 = vor.u32 %v2215_v58, %v2189_v38  ;;  %v798_v27 = vpack.c.bf16 %v778_v3, %v778_v3  ;;  %v4688_v8 = vld [vmem:[#allocation11 + $0x480] ss:$8 sps:$4 sm:$0xff]  }
 0x1bd   : > { %v797_v40 = vpack.c.bf16 %v777_v23, %v777_v23  ;;  %v743_v58 = vld [vmem:[#allocation2 + $0x20] sm:$0xfe] }
 0x1be   : > { %2023 = vmatmul.mubr.bf16.gmra.mrb[4].mxu0 %v1489_v1  ;;  %v1560_v52 = vor.u32 %v1559_v41, %v1556_v55  ;;  %v729_v1 = vpack.c.bf16 %v5937_v18, %v5935_v16  ;;  %v4682_v16 = vld [vmem:[#allocation11 + $0x470] ss:$8 sps:$4 sm:$0xff]   ;;  %v6059_v32 = vsel %vm2118_vm2, %v2217_v54, %v2221_v13  ;;  %v2255_v18 = vshrl.u32 %v6042_v61, 16 }
 0x1bf   : > { %2604 = vmatpush1.bf16.msra.mxu0 %v4652_v57  ;;  %2032 = vmatprep.mubr.bf16.mxu0 %v1534_v20  ;;  %v4727_v57 = vld [vmem:[#allocation11 + $0x3f0] ss:$8 sps:$4 sm:$0xff]   ;;  %v2227_v20 = vshll.u32 %v6042_v61, 16  ;;  %v2148_v55 = vrot.slane %v2146_v31, 1 }
 0x1c0   : > { %2605 = vmatprep.subr.bf16.mxu0 %v4660_v62  ;;  %v2137_v62 = vor.u32 %v2136_v44, %v2132_v43  ;;  %v1561_v4 = vsel %vm1394_vm1, %v1524_v53, %v1560_v52  ;;  %1352 = vmatpush1.bf16.msra.mxu1 %v4727_v57  ;;  %v2251_v44 = vshll.u32 %v797_v40, 16  ;;  %v4738_v40 = vld [vmem:[#allocation11 + $0x514] ss:$8 sps:$4 sm:$0xff]  }
 0x1c1   : > { %v2229_v53 = vrot.slane %v2227_v20, 1 }
 0x1c2   : > { %v2142_v9 = vsel %vm2118_vm2, %v2137_v62, %v6035_v63  ;;  %v2253_v33 = vrot.slane %v2251_v44, 1 }
 0x1c3   : > { %2606 = vmatpush1.bf16.msra.mxu0 %v4658_v36  ;;  %v2225_v36 = vor.u32 %v2223_v15, %v2197_v24  ;;  %1354 = vmatmul.mubr.bf16.vlgmr.msra.gmra.mrb[0].mxu1 %v729_v1  ;;  %v4708_v15 = vld [vmem:[#allocation11 + $0x4b4] ss:$8 sps:$4 sm:$0xff]   ;;  %v747_v1 = vld [vmem:[#allocation2 + $0x40] sm:$0xff] }
 0x1c4   : > { %2607 = vmatprep.subr.bf16.mxu0 %v4666_v26  ;;  %v782_v26 = vpack.c.bf16 %v5911_v14, %v746_v2  ;;  %1363 = vmatprep.mubr.bf16.mxu1 %v5988_v47  ;;  %v2144_v14 = vshrl.u32 %v781_v19, 16  ;;  %v2247_v47 = vshrl.u32 %v6046_v5, 16  ;;  %v4974_v2 = vld [vmem:[#allocation2 + $0xc8] sm:$0xff] }
 0x1c5   : > { %v6056_v46 = vsel %vm2118_vm2, %v2225_v36, %v2229_v53  ;;  %v4973_v36 = vld [vmem:[#allocation2 + $0x80] sm:$0xff]  ;;  %v768_v19 = vld [vmem:[#allocation2 + $0xe8] sm:$0xff] }
 0x1c6   : > { %2033 = vmatmul.mubr.bf16.gmra.mrb[8].mxu0 %v1525_v39  ;;  %v2156_v24 = vshrl.u32 %v782_v26, 16  ;;  %v2158_v29 = vshll.u32 %v782_v26, 16  ;;  %v2259_v39 = vshll.u32 %v798_v27, 16  ;;  %v2249_v51 = vor.u32 %v2247_v47, %v2221_v13  ;;  %v4730_v13 = vld [vmem:[#allocation11 + $0x4f0] ss:$8 sps:$4 sm:$0xff]  }
 0x1c7   : > { %2608 = vmatpush1.bf16.msra.mxu0 %v4664_v37  ;;  %2042 = vmatprep.mubr.bf16.mxu0 %v1570_v17  ;;  %v4696_v37 = vld [vmem:[#allocation11 + $0x494] ss:$8 sps:$4 sm:$0xff]   ;;  %v2149_v17 = vor.u32 %v2148_v55, %v2144_v14 }
 0x1c8   : > { %2609 = vmatprep.subr.bf16.mxu0 %v4672_v42  ;;  %v2160_v38 = vrot.slane %v2158_v29, 1  ;;  %v2257_v42 = vor.u32 %v2255_v18, %v2229_v53  ;;  %v2261_v43 = vrot.slane %v2259_v39, 1  ;;  %v6077_v62 = vsel %vm2118_vm2, %v2249_v51, %v2253_v33 }
 0x1c9   : > { %v2175_v53 = vshrl.u32 %v6020_v30, 16 }
 0x1ca   : > { %v2161_v41 = vor.u32 %v2160_v38, %v2156_v24  ;;  %v6069_v57 = vsel %vm2118_vm2, %v2257_v42, %v2261_v43  ;;  %v4975_v24 = vld [vmem:[#allocation2 + $0xc0] sm:$0xff]  ;;  %v776_v42 = vld [vmem:[#allocation2 + $0x128] sm:$0x1]  ;;  %v4736_v43 = vld [vmem:[#allocation11 + $0x510] ss:$8 sps:$4 sm:$0xff]  }
 0x1cb   : > { %2610 = vmatpush1.bf16.msra.mxu0 %v4670_v48  ;;  %v4702_v48 = vld [vmem:[#allocation11 + $0x4a4] ss:$8 sps:$4 sm:$0xff]   ;;  %1364 = vmatmul.mubr.bf16.gmra.mrb[4].mxu1 %v5992_v56  ;;  %v4700_v56 = vld [vmem:[#allocation11 + $0x4a0] ss:$8 sps:$4 sm:$0xff]   ;;  %v2177_v14 = vor.u32 %v2175_v53, %v6035_v63  ;;  %v796_v51 = vpack.c.bf16 %v776_v42, %v776_v42 }
 0x1cc   : > { %2611 = vmatprep.subr.bf16.mxu0 %v4678_v59  ;;  %v6066_v52 = vsel %vm2118_vm2, %v2161_v41, %v6007_v10  ;;  %1373 = vmatprep.mubr.bf16.mxu1 %v6002_v45  ;;  %v6074_v59 = vsel %vm2118_vm2, %v2149_v17, %v6015_v22  ;;  %v4706_v10 = vld [vmem:[#allocation11 + $0x4b0] ss:$8 sps:$4 sm:$0xff]   ;;  %v4712_v45 = vld [vmem:[#allocation11 + $0x4c0] ss:$8 sps:$4 sm:$0xff]   ;;  %v4720_v22 = vld [vmem:[#allocation11 + $0x4d4] ss:$8 sps:$4 sm:$0xff]  }
 0x1cd   : > { %v4733_v38 = vld [vmem:[#allocation11 + $0x500] ss:$8 sps:$4 sm:$0xff]   ;;  %v4753_v53 = vld [vmem:[#allocation11 + $0x564] ss:$8 sps:$4 sm:$0xff]  }
 0x1ce   : > { %2043 = vmatmul.mubr.bf16.gmra.mrb[12].mxu0 %v1561_v4  ;;  %v751_v4 = vld [vmem:[#allocation2 + $0x60] sm:$0xff] }
 0x1cf   : > { %2612 = vmatpush1.bf16.msra.mxu0 %v4676_v21  ;;  %2631 = vmatprep.mubr.bf16.mxu0 %v2142_v9  ;;  %v779_v21 = vpack.c.bf16 %v747_v1, %v743_v58  ;;  %v4718_v9 = vld [vmem:[#allocation11 + $0x4d0] ss:$8 sps:$4 sm:$0xff]   ;;  %v783_v20 = vpack.c.bf16 %v4973_v36, %v751_v4  ;;  %v2243_v1 = vshll.u32 %v796_v51, 16  ;;  %v4775_v42 = vld [vmem:[#allocation11 + $0x5e0] ss:$8 sps:$4 sm:$0xff]  }
 0x1d0   : > { %2613 = vmatprep.subr.bf16.mxu0 %v4684_v7  ;;  %v760_v7 = vld [vmem:[#allocation2 + $0xa8] sm:$0xff] }
 0x1d1   : > { %v788_v54 = vpack.c.bf16 %v4974_v2, %v760_v7  ;;  %v2120_v60 = vshrl.u32 %v779_v21, 16  ;;  %v2127_v26 = vshll.u32 %v783_v20, 16  ;;  %v2167_v18 = vshrl.u32 %v783_v20, 16  ;;  %v4793_v51 = vld [vmem:[#allocation12 + $0x40] ss:$8 sps:$4 sm:$0xff]  }
 0x1d2   : > { %v2245_v20 = vrot.slane %v2243_v1, 1  ;;  %v2231_v2 = vshrl.u32 %v5967_v6, 16  ;;  %v4808_v1 = vld [vmem:[#allocation12 + $0x90] ss:$8 sps:$4 sm:$0xff]  }
 0x1d3   : > { %2614 = vmatpush1.bf16.msra.mxu0 %v4682_v16  ;;  %1374 = vmatmul.mubr.bf16.gmra.mrb[8].mxu1 %v6013_v12  ;;  %v2122_v16 = vshll.u32 %v779_v21, 16  ;;  %v4726_v12 = vld [vmem:[#allocation11 + $0x4e4] ss:$8 sps:$4 sm:$0xff]   ;;  %v2179_v3 = vshll.u32 %v788_v54, 16  ;;  %v2129_v23 = vrot.slane %v2127_v26, 1  ;;  %v2207_v47 = vshrl.u32 %v788_v54, 16 }
 0x1d4   : > { %2615 = vmatprep.subr.bf16.mxu0 %v4690_v28  ;;  %1383 = vmatprep.mubr.bf16.mxu1 %v6042_v61  ;;  %v4724_v61 = vld [vmem:[#allocation11 + $0x4e0] ss:$8 sps:$4 sm:$0xff]  }
 0x1d5   : > { %v2124_v28 = vrot.slane %v2122_v16, 1  ;;  %v2181_v31 = vrot.slane %v2179_v3, 1  ;;  %v2169_v63 = vor.u32 %v2167_v18, %v2129_v23  ;;  %v4745_v16 = vld [vmem:[#allocation11 + $0x540] ss:$8 sps:$4 sm:$0xff]   ;;  %v4783_v18 = vld [vmem:[#allocation12 + $0x4] ss:$8 sps:$4 sm:$0xff]  }
 0x1d6   : > { %v4751_v3 = vld [vmem:[#allocation11 + $0x560] ss:$8 sps:$4 sm:$0xff]   ;;  %3017 = vmatprep.subr.bf16.mxu1 %v4783_v18 }
 0x1d7   : > { %2616 = vmatpush1.bf16.msra.mxu0 %v4688_v8  ;;  %v2125_v27 = vor.u32 %v2124_v28, %v2120_v60  ;;  %v4735_v8 = vld [vmem:[#allocation11 + $0x504] ss:$8 sps:$4 sm:$0xff]   ;;  %v2182_v55 = vsel %vm2118_vm2, %v2177_v14, %v2181_v31  ;;  %v4748_v28 = vld [vmem:[#allocation11 + $0x550] ss:$8 sps:$4 sm:$0xff]   ;;  %v4768_v14 = vld [vmem:[#allocation11 + $0x5b4] ss:$8 sps:$4 sm:$0xff]  }
 0x1d8   : > { %2617 = vmatprep.subr.bf16.mxu0 %v4696_v37  ;;  %v792_v37 = vpack.c.bf16 %v5960_v35, %v768_v19  ;;  %v4741_v35 = vld [vmem:[#allocation11 + $0x524] ss:$8 sps:$4 sm:$0xff]   ;;  %v4756_v19 = vld [vmem:[#allocation11 + $0x574] ss:$8 sps:$4 sm:$0xff]  }
 0x1d9   : > { %v2130_v30 = vsel %vm2118_vm2, %v2125_v27, %v2129_v23  ;;  %v4757_v27 = vld [vmem:[#allocation11 + $0x580] ss:$8 sps:$4 sm:$0xff]   ;;  %v4762_v23 = vld [vmem:[#allocation11 + $0x594] ss:$8 sps:$4 sm:$0xff]  }
 0x1da   : > { %v2211_v41 = vshll.u32 %v792_v37, 16  ;;  %v2239_v58 = vshrl.u32 %v792_v37, 16  ;;  %v4771_v37 = vld [vmem:[#allocation11 + $0x5c4] ss:$8 sps:$4 sm:$0xff]  }
 0x1db   : > { %2618 = vmatpush1.bf16.msra.mxu0 %v4694_v49  ;;  %1384 = vmatmul.mubr.bf16.gmra.mrb[12].mxu1 %v6046_v5  ;;  %v759_v5 = vld [vmem:[#allocation2 + $0xa0] sm:$0xff]  ;;  %v2209_v49 = vor.u32 %v2207_v47, %v2181_v31  ;;  %v4766_v31 = vld [vmem:[#allocation11 + $0x5b0] ss:$8 sps:$4 sm:$0xff]  }
 0x1dc   : > { %2619 = vmatprep.subr.bf16.mxu0 %v4702_v48  ;;  %v787_v29 = vpack.c.bf16 %v4975_v24, %v759_v5  ;;  %v2213_v17 = vrot.slane %v2211_v41, 1  ;;  %v4739_v48 = vld [vmem:[#allocation11 + $0x520] ss:$8 sps:$4 sm:$0xff]   ;;  %v4760_v24 = vld [vmem:[#allocation11 + $0x590] ss:$8 sps:$4 sm:$0xff]  }
 0x1dd   : > { %v4777_v47 = vld [vmem:[#allocation11 + $0x5e4] ss:$8 sps:$4 sm:$0xff]  }
 0x1de   : > { %v2171_v39 = vshll.u32 %v787_v29, 16  ;;  %v2241_v36 = vor.u32 %v2239_v58, %v2213_v17  ;;  %v4789_v41 = vld [vmem:[#allocation12 + $0x24] ss:$8 sps:$4 sm:$0xff]  }
 0x1df   : > { %2620 = vmatpush1.bf16.msra.mxu0 %v4700_v56  ;;  %v2199_v56 = vshrl.u32 %v787_v29, 16  ;;  %v4765_v29 = vld [vmem:[#allocation11 + $0x5a4] ss:$8 sps:$4 sm:$0xff]  }
 0x1e0   : > { %2621 = vmatprep.subr.bf16.mxu0 %v4708_v15  ;;  %v2173_v44 = vrot.slane %v2171_v39, 1  ;;  %v2203_v15 = vshll.u32 %v5967_v6, 16  ;;  %v2246_v60 = vsel %vm2118_vm2, %v2241_v36, %v2245_v20  ;;  %v4754_v6 = vld [vmem:[#allocation11 + $0x570] ss:$8 sps:$4 sm:$0xff]   ;;  %v4786_v39 = vld [vmem:[#allocation12 + $0x14] ss:$8 sps:$4 sm:$0xff]  }
 0x1e1   : > { %v4807_v58 = vld [vmem:[#allocation12 + $0x84] ss:$8 sps:$4 sm:$0xff]   ;;  %v4828_v36 = vld [vmem:[#allocation12 + $0xf4] ss:$8 sps:$4 sm:$0xff]   ;;  %v4826_v20 = vld [vmem:[#allocation12 + $0xf0] ss:$8 sps:$4 sm:$0xff]  }
 0x1e2   : > { %v2174_v33 = vsel %vm2118_vm2, %v2169_v63, %v2173_v44  ;;  %v2201_v21 = vor.u32 %v2199_v56, %v2173_v44  ;;  %v2205_v4 = vrot.slane %v2203_v15, 1  ;;  %v4780_v63 = vld [vmem:[#allocation11 + $0x5f4] ss:$8 sps:$4 sm:$0xff]   ;;  %v4801_v56 = vld [vmem:[#allocation12 + $0x64] ss:$8 sps:$4 sm:$0xff]  }
 0x1e3   : > { %2622 = vmatpush1.bf16.msra.mxu0 %v4706_v10  ;;  %v4744_v10 = vld [vmem:[#allocation11 + $0x534] ss:$8 sps:$4 sm:$0xff]   ;;  %v4799_v15 = vld [vmem:[#allocation12 + $0x60] ss:$8 sps:$4 sm:$0xff]  }
 0x1e4   : > { %2623 = vmatprep.subr.bf16.mxu0 %v4714_v25  ;;  %v2214_v25 = vsel %vm2118_vm2, %v2209_v49, %v2213_v17  ;;  %v2233_v26 = vor.u32 %v2231_v2, %v2205_v4  ;;  %v4792_v44 = vld [vmem:[#allocation12 + $0x34] ss:$8 sps:$4 sm:$0xff]   ;;  %v4790_v49 = vld [vmem:[#allocation12 + $0x30] ss:$8 sps:$4 sm:$0xff]   ;;  %v4795_v17 = vld [vmem:[#allocation12 + $0x44] ss:$8 sps:$4 sm:$0xff]  }
 0x1e7   : > { %2624 = vmatpush1.bf16.msra.mxu0 %v4712_v45  ;;  %v775_v45 = vld [vmem:[#allocation2 + $0x120] sm:$0x1] }
 0x1e8   : > { %2625 = vmatprep.subr.bf16.mxu0 %v4720_v22  ;;  %v4742_v22 = vld [vmem:[#allocation11 + $0x530] ss:$8 sps:$4 sm:$0xff]   ;;  %v795_v7 = vpack.c.bf16 %v775_v45, %v775_v45  ;;  %v4813_v45 = vld [vmem:[#allocation12 + $0xa4] ss:$8 sps:$4 sm:$0xff]  }
 0x1ea   : > { %v2235_v54 = vshll.u32 %v795_v7, 16  ;;  %v4825_v7 = vld [vmem:[#allocation12 + $0xe4] ss:$8 sps:$4 sm:$0xff]  }
 0x1eb   : > { %2626 = vmatpush1.bf16.msra.mxu0 %v4718_v9  ;;  %v4747_v9 = vld [vmem:[#allocation11 + $0x544] ss:$8 sps:$4 sm:$0xff]  }
 0x1ec   : > { %2627 = vmatprep.subr.bf16.mxu0 %v4726_v12  ;;  %v2206_v12 = vsel %vm2118_vm2, %v2201_v21, %v2205_v4  ;;  %v4819_v21 = vld [vmem:[#allocation12 + $0xc4] ss:$8 sps:$4 sm:$0xff]   ;;  %v4817_v4 = vld [vmem:[#allocation12 + $0xc0] ss:$8 sps:$4 sm:$0xff]  }
 0x1ef   : > { %2628 = vmatpush1.bf16.msra.mxu0 %v4724_v61  ;;  %v4750_v61 = vld [vmem:[#allocation11 + $0x554] ss:$8 sps:$4 sm:$0xff]  }
 0x1f0   : > { %2629 = vmatprep.subr.bf16.mxu0 %v4732_v11  ;;  %v2237_v11 = vrot.slane %v2235_v54, 1 }
 0x1f2   : > { %v2238_v5 = vsel %vm2118_vm2, %v2233_v26, %v2237_v11 }
 0x1f3   : > { %2630 = vmatpush1.bf16.msra.mxu0 %v4730_v13  ;;  %v4759_v13 = vld [vmem:[#allocation11 + $0x584] ss:$8 sps:$4 sm:$0xff]  }
 0x1f4   : > { %2672 = vmatprep.subr.bf16.mxu0 %v4735_v8  ;;  %v4763_v8 = vld [vmem:[#allocation11 + $0x5a0] ss:$8 sps:$4 sm:$0xff]  }
 0x1f6   : > { %2632 = vmatmul.mubr.bf16.vlgmr.msra.gmra.mrb[0].mxu0 %v2130_v30  ;;  %v4781_v30 = vld [vmem:[#allocation12] ss:$8 sps:$4 sm:$0xff]  }
 0x1f7   : > { %2673 = vmatpush1.bf16.msra.mxu0 %v4733_v38  ;;  %2641 = vmatprep.mubr.bf16.mxu0 %v2182_v55  ;;  %v4774_v38 = vld [vmem:[#allocation11 + $0x5d4] ss:$8 sps:$4 sm:$0xff]   ;;  %v4784_v55 = vld [vmem:[#allocation12 + $0x10] ss:$8 sps:$4 sm:$0xff]  }
 0x1f8   : > { %2674 = vmatprep.subr.bf16.mxu0 %v4738_v40  ;;  %v4772_v40 = vld [vmem:[#allocation11 + $0x5d0] ss:$8 sps:$4 sm:$0xff]   ;;  %3018 = vmatpush1.bf16.msra.mxu1 %v4781_v30 }
 0x1f9   : > { %3019 = vmatprep.subr.bf16.mxu1 %v4786_v39 }
 0x1fb   : > { %2675 = vmatpush1.bf16.msra.mxu0 %v4736_v43  ;;  %v4787_v43 = vld [vmem:[#allocation12 + $0x20] ss:$8 sps:$4 sm:$0xff]  }
 0x1fc   : > { %2676 = vmatprep.subr.bf16.mxu0 %v4741_v35  ;;  %3020 = vmatpush1.bf16.msra.mxu1 %v4784_v55  ;;  %v4778_v35 = vld [vmem:[#allocation11 + $0x5f0] ss:$8 sps:$4 sm:$0xff]  }
 0x1fd   : > { %3021 = vmatprep.subr.bf16.mxu1 %v4789_v41 }
 0x1fe   : > { %2642 = vmatmul.mubr.bf16.gmra.mrb[4].mxu0 %v2174_v33  ;;  %v4796_v33 = vld [vmem:[#allocation12 + $0x50] ss:$8 sps:$4 sm:$0xff]  }
 0x1ff   : > { %2677 = vmatpush1.bf16.msra.mxu0 %v4739_v48  ;;  %2651 = vmatprep.mubr.bf16.mxu0 %v2214_v25  ;;  %v4798_v48 = vld [vmem:[#allocation12 + $0x54] ss:$8 sps:$4 sm:$0xff]   ;;  %v4802_v25 = vld [vmem:[#allocation12 + $0x70] ss:$8 sps:$4 sm:$0xff]  }
 0x200   : > { %2678 = vmatprep.subr.bf16.mxu0 %v4744_v10  ;;  %3022 = vmatpush1.bf16.msra.mxu1 %v4787_v43  ;;  %v4804_v10 = vld [vmem:[#allocation12 + $0x74] ss:$8 sps:$4 sm:$0xff]  }
 0x201   : > { %3023 = vmatprep.subr.bf16.mxu1 %v4792_v44 }
 0x203   : > { %2679 = vmatpush1.bf16.msra.mxu0 %v4742_v22  ;;  %v4814_v22 = vld [vmem:[#allocation12 + $0xb0] ss:$8 sps:$4 sm:$0xff]  }
 0x204   : > { %2680 = vmatprep.subr.bf16.mxu0 %v4747_v9  ;;  %3024 = vmatpush1.bf16.msra.mxu1 %v4790_v49  ;;  %v4823_v9 = vld [vmem:[#allocation12 + $0xe0] ss:$8 sps:$4 sm:$0xff]  }
 0x205   : > { %3025 = vmatprep.subr.bf16.mxu1 %v4795_v17 }
 0x206   : > { %2652 = vmatmul.mubr.bf16.gmra.mrb[8].mxu0 %v2206_v12 }
 0x207   : > { %2681 = vmatpush1.bf16.msra.mxu0 %v4745_v16  ;;  %2661 = vmatprep.mubr.bf16.mxu0 %v2246_v60 }
 0x208   : > { %2682 = vmatprep.subr.bf16.mxu0 %v4750_v61  ;;  %3026 = vmatpush1.bf16.msra.mxu1 %v4793_v51 }
 0x209   : > { %3027 = vmatprep.subr.bf16.mxu1 %v4798_v48 }
 0x20b   : > { %2683 = vmatpush1.bf16.msra.mxu0 %v4748_v28 }
 0x20c   : > { %2684 = vmatprep.subr.bf16.mxu0 %v4753_v53  ;;  %3028 = vmatpush1.bf16.msra.mxu1 %v4796_v33 }
 0x20d   : > { %3029 = vmatprep.subr.bf16.mxu1 %v4801_v56 }
 0x20e   : > { %2662 = vmatmul.mubr.bf16.gmra.mrb[12].mxu0 %v2238_v5 }
 0x20f   : > { %2685 = vmatpush1.bf16.msra.mxu0 %v4751_v3  ;;  %2704 = vmatprep.mubr.bf16.mxu0 %v6066_v52  ;;  %v4769_v52 = vld [vmem:[#allocation11 + $0x5c0] ss:$8 sps:$4 sm:$0xff]  }
 0x210   : > { %2686 = vmatprep.subr.bf16.mxu0 %v4756_v19  ;;  %3030 = vmatpush1.bf16.msra.mxu1 %v4799_v15 }
 0x211   : > { %3031 = vmatprep.subr.bf16.mxu1 %v4804_v10 }
 0x213   : > { %2687 = vmatpush1.bf16.msra.mxu0 %v4754_v6 }
 0x214   : > { %2688 = vmatprep.subr.bf16.mxu0 %v4759_v13  ;;  %3032 = vmatpush1.bf16.msra.mxu1 %v4802_v25 }
 0x215   : > { %3033 = vmatprep.subr.bf16.mxu1 %v4807_v58 }
 0x217   : > { %2689 = vmatpush1.bf16.msra.mxu0 %v4757_v27  ;;  %v6111_v27 = vshrl.u32 %v623_v0, 7 }
 0x218   : > { %2690 = vmatprep.subr.bf16.mxu0 %v4762_v23 }
 0x219   : > { %v2765_v23 = vsub.s32 0, %v6111_v27 }
 0x21b   : > { %2691 = vmatpush1.bf16.msra.mxu0 %v4760_v24  ;;  %v2761_v24 = vld [vmem:[%s6648_s6] sm:$0x3]  ;;  %s5180_s6 = scalar_lea.vmem %s6487_s11, 1024 }
 0x21c   : > { %2692 = vmatprep.subr.bf16.mxu0 %v4765_v29  ;;  %v2769_v29 = vsub.s32 1, %v6111_v27  ;;  %p5181_p5 = scmp.ne.s32.totalorder %s6487_s11, %s5180_s6 }
 0x21e   : > { %p5182_p0 = pnand %p5181_p5, %p6672_p8 }
 0x21f   : > { %2693 = vmatpush1.bf16.msra.mxu0 %v4763_v8  ;;  %v6120_v8 = vrot.slane %v2761_v24, %v2765_v23 }
 0x220   : > { %2694 = vmatprep.subr.bf16.mxu0 %v4768_v14  ;;  %p5183_p11 = pneg %p5182_p0 }
 0x223   : > { %2695 = vmatpush1.bf16.msra.mxu0 %v4766_v31  ;;  %v6124_v31 = vrot.slane %v2761_v24, %v2769_v29 }
 0x224   : > { %2696 = vmatprep.subr.bf16.mxu0 %v4771_v37 }
 0x227   : > { %2697 = vmatpush1.bf16.msra.mxu0 %v4769_v52 }
 0x228   : > { %2698 = vmatprep.subr.bf16.mxu0 %v4774_v38 }
 0x22b   : > { %2699 = vmatpush1.bf16.msra.mxu0 %v4772_v40 }
 0x22c   : > { %2700 = vmatprep.subr.bf16.mxu0 %v4777_v47 }
 0x22f   : > { %2701 = vmatpush1.bf16.msra.mxu0 %v4775_v42 }
 0x230   : > { %2702 = vmatprep.subr.bf16.mxu0 %v4780_v63 }
 0x233   : > { %2703 = vmatpush1.bf16.msra.mxu0 %v4778_v35 }
 0x236   : > { %2705 = vmatmul.mubr.bf16.vlgmr.msra.gmra.mrb[0].mxu0 %v6074_v59  ;;  %v4805_v59 = vld [vmem:[#allocation12 + $0x80] ss:$8 sps:$4 sm:$0xff]  }
 0x237   : > { %2714 = vmatprep.mubr.bf16.mxu0 %v6025_v34  ;;  %v4810_v34 = vld [vmem:[#allocation12 + $0x94] ss:$8 sps:$4 sm:$0xff]   ;;  %3034 = vmatpush1.bf16.msra.mxu1 %v4805_v59 }
 0x238   : > { %3035 = vmatprep.subr.bf16.mxu1 %v4810_v34 }
 0x23b   : > { %3036 = vmatpush1.bf16.msra.mxu1 %v4808_v1 }
 0x23c   : > { %3037 = vmatprep.subr.bf16.mxu1 %v4813_v45 }
 0x23e   : > { %2715 = vmatmul.mubr.bf16.gmra.mrb[4].mxu0 %v6031_v50  ;;  %v4811_v50 = vld [vmem:[#allocation12 + $0xa0] ss:$8 sps:$4 sm:$0xff]  }
 0x23f   : > { %2724 = vmatprep.mubr.bf16.mxu0 %v6056_v46  ;;  %v4816_v46 = vld [vmem:[#allocation12 + $0xb4] ss:$8 sps:$4 sm:$0xff]   ;;  %3038 = vmatpush1.bf16.msra.mxu1 %v4811_v50 }
 0x240   : > { %3039 = vmatprep.subr.bf16.mxu1 %v4816_v46 }
 0x243   : > { %3040 = vmatpush1.bf16.msra.mxu1 %v4814_v22 }
 0x244   : > { %3041 = vmatprep.subr.bf16.mxu1 %v4819_v21 }
 0x246   : > { %2725 = vmatmul.mubr.bf16.gmra.mrb[8].mxu0 %v6059_v32  ;;  %v4822_v32 = vld [vmem:[#allocation12 + $0xd4] ss:$8 sps:$4 sm:$0xff]  }
 0x247   : > { %2734 = vmatprep.mubr.bf16.mxu0 %v6069_v57  ;;  %3042 = vmatpush1.bf16.msra.mxu1 %v4817_v4  ;;  %v4820_v57 = vld [vmem:[#allocation12 + $0xd0] ss:$8 sps:$4 sm:$0xff]  }
 0x248   : > { %3043 = vmatprep.subr.bf16.mxu1 %v4822_v32 }
 0x24b   : > { %3044 = vmatpush1.bf16.msra.mxu1 %v4820_v57 }
 0x24c   : > { %3045 = vmatprep.subr.bf16.mxu1 %v4825_v7 }
 0x24e   : > { %2735 = vmatmul.mubr.bf16.gmra.mrb[12].mxu0 %v6077_v62 }
 0x24f   : > { %3046 = vmatpush1.bf16.msra.mxu1 %v4823_v9 }
 0x250   : > { %3047 = vmatprep.subr.bf16.mxu1 %v4828_v36 }
 0x253   : > { %3048 = vmatpush1.bf16.msra.mxu1 %v4826_v20 }
 0x296   : > { %v1355_v62 = vpop.f32.mrb[0].mxu1 }
 0x297   : > { %v1357_v16 = vpop.f32.mrb[1].mxu1 }
 0x298   : > { %v1359_v12 = vpop.f32.mrb[2].mxu1 }
 0x299   : > { %v1361_v2 = vpop.f32.mrb[3].mxu1 }
 0x29e   : > { %v1365_v54 = vpop.f32.mrb[4].mxu1 }
 0x29f   : > { %v1367_v61 = vpop.f32.mrb[5].mxu1 }
 0x2a0   : > { %v1369_v60 = vpop.f32.mrb[6].mxu1 }
 0x2a1   : > { %v1371_v28 = vpop.f32.mrb[7].mxu1 }
 0x2a6   : > { %v1375_v26 = vpop.f32.mrb[8].mxu1 }
 0x2a7   : > { %v1377_v11 = vpop.f32.mrb[9].mxu1 }
 0x2a8   : > { %v1379_v53 = vpop.f32.mrb[10].mxu1 }
 0x2a9   : > { %v1381_v3 = vpop.f32.mrb[11].mxu1 }
 0x2ae   : > { %v6102_v5 = vpop.f32.mrb[12].mxu1 }
 0x2af   : > { %v6104_v19 = vpop.f32.mrb[13].mxu1 }
 0x2b0   : > { %v6106_v6 = vpop.f32.mrb[14].mxu1 }
 0x2b1   : > { %v6108_v13 = vpop.f32.mrb[15].mxu1 }
 0x309   : > { %v2706_v14 = vpop.f32.mrb[0].mxu0 }
 0x30a   : > { %v4258_v37 = vadd.f32 %v2706_v14, %v1355_v62  ;;  %v2708_v0 = vpop.f32.mrb[1].mxu0 }
 0x30b   : > { %v4259_v52 = vadd.f32 %v2708_v0, %v1357_v16  ;;  %v2710_v38 = vpop.f32.mrb[2].mxu0 }
 0x30c   : > { %v2773_v30 = vadd.f32 %v4258_v37, %v6120_v8  ;;  %v4260_v18 = vadd.f32 %v2710_v38, %v1359_v12  ;;  %v2712_v39 = vpop.f32.mrb[3].mxu0 }
 0x30d   : > { %v2774_v40 = vadd.f32 %v4259_v52, %v6124_v31  ;;  %v4261_v55 = vadd.f32 %v2712_v39, %v1361_v2 }
 0x30e   : > { %v2775_v47 = vadd.f32 %v4260_v18, %v6120_v8  ;;  %v2789_v42 = vmax.f32 %v2773_v30, 0.0 }
 0x30f   : > { %v2776_v41 = vadd.f32 %v4261_v55, %v6124_v31  ;;  %v2790_v63 = vmax.f32 %v2774_v40, 0.0 }
 0x310   : > { %v2791_v43 = vmax.f32 %v2775_v47, 0.0 }
 0x311   : > { %v2792_v44 = vmax.f32 %v2776_v41, 0.0  ;;  %v2716_v35 = vpop.f32.mrb[4].mxu0 }
 0x312   : > { %v2805_v49 = vpack.c.bf16 %v2791_v43, %v2789_v42  ;;  %v4262_v17 = vadd.f32 %v2716_v35, %v1365_v54  ;;  %v2718_v51 = vpop.f32.mrb[5].mxu0  ;;  %v4831_v35 = vld [vmem:[#allocation14 + $0x48] sm:$0xff]  }
 0x313   : > { %v4263_v48 = vadd.f32 %v2718_v51, %v1367_v61  ;;  %v2720_v33 = vpop.f32.mrb[6].mxu0  ;;  %v2806_v56 = vpack.c.bf16 %v2792_v44, %v2790_v63  ;;  %v4830_v44 = vld [vmem:[#allocation14] sm:$0xff]  }
 0x314   : > { %v2777_v15 = vadd.f32 %v4262_v17, %v6120_v8  ;;  %v4264_v10 = vadd.f32 %v2720_v33, %v1369_v60  ;;  %v2722_v25 = vpop.f32.mrb[7].mxu0  ;;  %v4836_v17 = vld [vmem:[#allocation14 + $0x18] sm:$0xff]   ;;  %v4837_v51 = vld [vmem:[#allocation14 + $0x60] sm:$0xff]   ;;  %v4839_v33 = vld [vmem:[#allocation14 + $0x68] sm:$0xff]  }
 0x315   : > { %v2778_v58 = vadd.f32 %v4263_v48, %v6124_v31  ;;  %v4265_v59 = vadd.f32 %v2722_v25, %v1371_v28  ;;  %3049 = vmatprep.mubr.bf16.mxu1 %v2806_v56  ;;  %v4838_v48 = vld [vmem:[#allocation14 + $0x20] sm:$0xff]   ;;  %v4840_v56 = vld [vmem:[#allocation14 + $0x28] sm:$0xff]   ;;  %v4843_v25 = vld [vmem:[#allocation14 + $0x78] sm:$0xff]  }
 0x316   : > { %v2779_v34 = vadd.f32 %v4264_v10, %v6120_v8  ;;  %3050 = vmatmul.mubr.bf16.vlgmr.msra.gmra.mrb[16].mxu1 %v2805_v49  ;;  %v2793_v45 = vmax.f32 %v2777_v15, 0.0  ;;  %v4834_v49 = vld [vmem:[#allocation14 + $0x10] sm:$0xff]  }
 0x317   : > { %v2780_v1 = vadd.f32 %v4265_v59, %v6124_v31  ;;  %v2794_v46 = vmax.f32 %v2778_v58, 0.0  ;;  %v4841_v15 = vld [vmem:[#allocation14 + $0x70] sm:$0xff]   ;;  %v4844_v58 = vld [vmem:[#allocation14 + $0x38] sm:$0xff]   ;;  %v2845_v59 = vld [vmem:[%s6649_s16] sm:$0x3]  ;;  %s5186_s16 = scalar_lea.vmem %s5185_s5, 2048 }
 0x318   : > { %v2795_v50 = vmax.f32 %v2779_v34, 0.0  ;;  %v4842_v10 = vld [vmem:[#allocation14 + $0x30] sm:$0xff]   ;;  %v6151_v34 = vrot.slane %v2845_v59, %v2765_v23  ;;  %p5188_p2 = scmp.lt.s32.totalorder %s5186_s16, %s5180_s6 }
 0x319   : > { %v2796_v22 = vmax.f32 %v2780_v1, 0.0  ;;  %v2726_v21 = vpop.f32.mrb[8].mxu0  ;;  %v6155_v1 = vrot.slane %v2845_v59, %v2769_v29 }
 0x31a   : > { %v4266_v4 = vadd.f32 %v2726_v21, %v1375_v26  ;;  %v2728_v32 = vpop.f32.mrb[9].mxu0  ;;  %v2807_v57 = vpack.c.bf16 %v2795_v50, %v2793_v45  ;;  %p5189_p9 = por %p5188_p2, %p5187_p3 }
 0x31b   : > { %v4267_v7 = vadd.f32 %v2728_v32, %v1377_v11  ;;  %v2730_v9 = vpop.f32.mrb[10].mxu0  ;;  %v2808_v36 = vpack.c.bf16 %v2796_v22, %v2794_v46 }
 0x31c   : > { %v2781_v20 = vadd.f32 %v4266_v4, %v6120_v8  ;;  %v4268_v62 = vadd.f32 %v2730_v9, %v1379_v53  ;;  %v2732_v16 = vpop.f32.mrb[11].mxu0  ;;  %p5190_p1 = pnand %p5189_p9, %p5183_p11 }
 0x31d   : > { %v2782_v12 = vadd.f32 %v4267_v7, %v6124_v31  ;;  %v4269_v2 = vadd.f32 %v2732_v16, %v1381_v3  ;;  %3059 = vmatprep.mubr.bf16.mxu1 %v2808_v36 }
 0x31e   : > { %v2783_v54 = vadd.f32 %v4268_v62, %v6120_v8  ;;  %3060 = vmatmul.mubr.bf16.gmra.mrb[20].mxu1 %v2807_v57  ;;  %v2797_v60 = vmax.f32 %v2781_v20, 0.0 }
 0x31f   : > { %v2784_v61 = vadd.f32 %v4269_v2, %v6124_v31  ;;  %v2798_v26 = vmax.f32 %v2782_v12, 0.0 }
 0x320   : > { %v2799_v28 = vmax.f32 %v2783_v54, 0.0 }
 0x321   : > { %v2800_v24 = vmax.f32 %v2784_v61, 0.0  ;;  %v2736_v11 = vpop.f32.mrb[12].mxu0 }
 0x322   : > { %v4270_v14 = vadd.f32 %v2736_v11, %v6102_v5  ;;  %v2738_v37 = vpop.f32.mrb[13].mxu0  ;;  %v2809_v0 = vpack.c.bf16 %v2799_v28, %v2797_v60 }
 0x323   : > { %v4271_v53 = vadd.f32 %v2738_v37, %v6104_v19  ;;  %v2740_v52 = vpop.f32.mrb[14].mxu0  ;;  %v2810_v38 = vpack.c.bf16 %v2800_v24, %v2798_v26 }
 0x324   : > { %v2785_v3 = vadd.f32 %v4270_v14, %v6120_v8  ;;  %v4272_v30 = vadd.f32 %v2740_v52, %v6106_v6  ;;  %v2742_v18 = vpop.f32.mrb[15].mxu0  ;;  %v4829_v6 = vld [vmem:[#allocation14 + $0x40] sm:$0xff]  }
 0x325   : > { %v2786_v39 = vadd.f32 %v4271_v53, %v6124_v31  ;;  %v4273_v40 = vadd.f32 %v2742_v18, %v6108_v13  ;;  %3069 = vmatprep.mubr.bf16.mxu1 %v2810_v38  ;;  %4218 = vmatprep.subr.bf16.mxu1 %v4829_v6  ;;  %v4832_v13 = vld [vmem:[#allocation14 + $0x8] sm:$0xff]  }
 0x326   : > { %v2787_v55 = vadd.f32 %v4272_v30, %v6120_v8  ;;  %3070 = vmatmul.mubr.bf16.gmra.mrb[24].mxu1 %v2809_v0  ;;  %v2801_v47 = vmax.f32 %v2785_v3, 0.0  ;;  %v4833_v8 = vld [vmem:[#allocation14 + $0x50] sm:$0xff]  }
 0x327   : > { %v2788_v5 = vadd.f32 %v4273_v40, %v6124_v31  ;;  %v2802_v19 = vmax.f32 %v2786_v39, 0.0  ;;  %4219 = vmatpush3.bf16.msra.mxu1 %v4830_v44  ;;  %v4835_v31 = vld [vmem:[#allocation14 + $0x58] sm:$0xff]  }
 0x328   : > { %v2803_v41 = vmax.f32 %v2787_v55, 0.0  ;;  %4220 = vmatprep.subr.bf16.mxu1 %v4831_v35 }
 0x329   : > { %v2804_v42 = vmax.f32 %v2788_v5, 0.0 }
 0x32a   : > { %v2811_v43 = vpack.c.bf16 %v2803_v41, %v2801_v47 }
 0x32b   : > { %v2812_v63 = vpack.c.bf16 %v2804_v42, %v2802_v19  ;;  %4221 = vmatpush3.bf16.msra.mxu1 %v4832_v13 }
 0x32c   : > { %4222 = vmatprep.subr.bf16.mxu1 %v4833_v8 }
 0x32d   : > { %3079 = vmatprep.mubr.bf16.mxu1 %v2812_v63 }
 0x32e   : > { %3080 = vmatmul.mubr.bf16.gmra.mrb[28].mxu1 %v2811_v43 }
 0x32f   : > { %4223 = vmatpush3.bf16.msra.mxu1 %v4834_v49 }
 0x330   : > { %4224 = vmatprep.subr.bf16.mxu1 %v4835_v31 }
 0x333   : > { %4225 = vmatpush3.bf16.msra.mxu1 %v4836_v17 }
 0x334   : > { %4226 = vmatprep.subr.bf16.mxu1 %v4837_v51 }
 0x337   : > { %4227 = vmatpush3.bf16.msra.mxu1 %v4838_v48 }
 0x338   : > { %4228 = vmatprep.subr.bf16.mxu1 %v4839_v33 }
 0x33b   : > { %4229 = vmatpush3.bf16.msra.mxu1 %v4840_v56 }
 0x33c   : > { %4230 = vmatprep.subr.bf16.mxu1 %v4841_v15 }
 0x33f   : > { %4231 = vmatpush3.bf16.msra.mxu1 %v4842_v10 }
 0x340   : > { %4232 = vmatprep.subr.bf16.mxu1 %v4843_v25 }
 0x343   : > { %4233 = vmatpush3.bf16.msra.mxu1 %v4844_v58 }
 0x3e9   : > { %v3051_v45 = vpop.f32.mrb[16].mxu1 }
 0x3ea   : > { %v6158_v50 = vadd.f32 %v3051_v45, %v6151_v34  ;;  %v3053_v46 = vpop.f32.mrb[17].mxu1 }
 0x3eb   : > { %v6161_v22 = vadd.f32 %v3053_v46, %v6155_v1  ;;  %v3055_v21 = vpop.f32.mrb[18].mxu1 }
 0x3ec   : > { %v3138_v4 = vand.u32 2147483647, %v6158_v50  ;;  %v6165_v32 = vadd.f32 %v3055_v21, %v6151_v34  ;;  %v3057_v23 = vpop.f32.mrb[19].mxu1  ;;  %v3090_v15 = vmax.f32 %v6158_v50, 0.0  ;;  %vm3106_vm7 = vcmp.ne.f32.partialorder %v6158_v50, %v6158_v50 }
 0x3ed   : > { %v3139_v57 = vand.u32 2147483647, %v6161_v22  ;;  %v6169_v27 = vadd.f32 %v3057_v23, %v6155_v1  ;;  %v3091_v25 = vmax.f32 %v6161_v22, 0.0  ;;  %vm3107_vm9 = vcmp.ne.f32.partialorder %v6161_v22, %v6161_v22 }
 0x3ee   : > { %v3154_v29 = vsub.f32 0.0, %v3138_v4  ;;  %v3140_v7 = vand.u32 2147483647, %v6165_v32  ;;  %vm3108_vm5 = vcmp.ne.f32.partialorder %v6165_v32, %v6165_v32 }
 0x3ef   : > { %v3155_v9 = vsub.f32 0.0, %v3139_v57  ;;  %v3141_v36 = vand.u32 2147483647, %v6169_v27  ;;  %vm3109_vm8 = vcmp.ne.f32.partialorder %v6169_v27, %v6169_v27 }
 0x3f0   : > { %v3170_v20 = vmul.f32 1.442695, %v3154_v29  ;;  %v3156_v62 = vsub.f32 0.0, %v3140_v7 }
 0x3f1   : > { %v3172_v16 = vmul.f32 1.442695, %v3155_v9  ;;  %v3157_v12 = vsub.f32 0.0, %v3141_v36  ;;  %v3061_v2 = vpop.f32.mrb[20].mxu1  ;;  %v3092_v36 = vmax.f32 %v6165_v32, 0.0 }
 0x3f2   : > { %4845 = vpow2.f32 %v3170_v20  ;;  %v3174_v54 = vmul.f32 1.442695, %v3156_v62  ;;  %v6174_v61 = vadd.f32 %v3061_v2, %v6151_v34  ;;  %v3063_v60 = vpop.f32.mrb[21].mxu1 }
 0x3f3   : > { %4847 = vpow2.f32 %v3172_v16  ;;  %v3176_v28 = vmul.f32 1.442695, %v3157_v12  ;;  %v6177_v26 = vadd.f32 %v3063_v60, %v6155_v1  ;;  %v3065_v24 = vpop.f32.mrb[22].mxu1  ;;  %v3093_v12 = vmax.f32 %v6169_v27, 0.0 }
 0x3f4   : > { %4849 = vpow2.f32 %v3174_v54  ;;  %v3142_v11 = vand.u32 2147483647, %v6174_v61  ;;  %v3067_v14 = vpop.f32.mrb[23].mxu1  ;;  %v6182_v53 = vadd.f32 %v3065_v24, %v6151_v34  ;;  %v3094_v2 = vmax.f32 %v6174_v61, 0.0 }
 0x3f5   : > { %4851 = vpow2.f32 %v3176_v28  ;;  %v3143_v37 = vand.u32 2147483647, %v6177_v26  ;;  %v6185_v52 = vadd.f32 %v3067_v14, %v6155_v1  ;;  %vm3110_vm14 = vcmp.ne.f32.partialorder %v6174_v61, %v6174_v61 }
 0x3f6   : > { %v3158_v0 = vsub.f32 0.0, %v3142_v11  ;;  %v3144_v30 = vand.u32 2147483647, %v6182_v53  ;;  %vm3112_vm15 = vcmp.ne.f32.partialorder %v6182_v53, %v6182_v53  ;;  %vm3111_vm0 = vcmp.ne.f32.partialorder %v6177_v26, %v6177_v26 }
 0x3f7   : > { %v3159_v38 = vsub.f32 0.0, %v3143_v37  ;;  %v3145_v39 = vand.u32 2147483647, %v6185_v52  ;;  %vm3113_vm2 = vcmp.ne.f32.partialorder %v6185_v52, %v6185_v52 }
 0x3f8   : > { %v3178_v3 = vmul.f32 1.442695, %v3158_v0  ;;  %v3160_v55 = vsub.f32 0.0, %v3144_v30 }
 0x3f9   : > { %v3180_v18 = vmul.f32 1.442695, %v3159_v38  ;;  %v3071_v40 = vpop.f32.mrb[24].mxu1  ;;  %v3161_v43 = vsub.f32 0.0, %v3145_v39 }
 0x3fa   : > { %4853 = vpow2.f32 %v3178_v3  ;;  %v6190_v5 = vadd.f32 %v3071_v40, %v6151_v34  ;;  %v3073_v47 = vpop.f32.mrb[25].mxu1  ;;  %v3182_v42 = vmul.f32 1.442695, %v3160_v55 }
 0x3fb   : > { %4855 = vpow2.f32 %v3180_v18  ;;  %v6192_v41 = vpop.f32.mrb[26].mxu1  ;;  %v3184_v48 = vmul.f32 1.442695, %v3161_v43  ;;  %v6211_v29 = vadd.f32 %v3073_v47, %v6155_v1 }
 0x3fc   : > { %v4846_v19 = vpop.eup %4845  ;;  %v6194_v63 = vpop.f32.mrb[27].mxu1  ;;  %4857 = vpow2.f32 %v3182_v42  ;;  %v3146_v31 = vand.u32 2147483647, %v6190_v5 }
 0x3fd   : > { %v4848_v6 = vpop.eup %4847  ;;  %v3202_v44 = vadd.f32 1.0, %v4846_v19  ;;  %v3205_v17 = vmul.f32 -0.5, %v4846_v19  ;;  %v3208_v10 = vand.u32 2147483647, %v4846_v19  ;;  %v3147_v38 = vand.u32 2147483647, %v6211_v29 }
 0x3fe   : > { %v4850_v35 = vpop.eup %4849  ;;  %v3211_v13 = vadd.f32 1.0, %v4848_v6  ;;  %v3214_v51 = vmul.f32 -0.5, %v4848_v6  ;;  %v3217_v59 = vand.u32 2147483647, %v4848_v6  ;;  %v3162_v46 = vsub.f32 0.0, %v3146_v31 }
 0x3ff   : > { %v6196_v8 = vpop.eup %4851  ;;  %4859 = vlog2.f32 %v3202_v44  ;;  %v3220_v49 = vadd.f32 1.0, %v4850_v35  ;;  %v3223_v45 = vmul.f32 -0.5, %v4850_v35  ;;  %v3206_v23 = vadd.f32 1.0, %v3205_v17 }
 0x400   : > { %4861 = vlog2.f32 %v3211_v13  ;;  %v3229_v33 = vadd.f32 1.0, %v6196_v8  ;;  %v3215_v57 = vadd.f32 1.0, %v3214_v51  ;;  %v3226_v20 = vand.u32 2147483647, %v4850_v35 }
 0x401   : > { %4863 = vlog2.f32 %v3220_v49  ;;  %v6200_v56 = vpop.f32.mrb[28].mxu1  ;;  %v3232_v62 = vmul.f32 -0.5, %v6196_v8  ;;  %v3186_v60 = vmul.f32 1.442695, %v3162_v46  ;;  %vm6223_vm3 = vcmp.lt.f32.partialorder %v3208_v10, 0.0004427343 }
 0x402   : > { %v6204_v58 = vpop.f32.mrb[29].mxu1  ;;  %4865 = vlog2.f32 %v3229_v33  ;;  %vm6227_vm4 = vcmp.lt.f32.partialorder %v3217_v59, 0.0004427343  ;;  %v3224_v11 = vadd.f32 1.0, %v3223_v45  ;;  %v3207_v37 = vmul.f32 %v4846_v19, %v3206_v23 }
 0x403   : > { %v6206_v21 = vpop.f32.mrb[30].mxu1  ;;  %4867 = vpow2.f32 %v3184_v48  ;;  %v3216_v0 = vmul.f32 %v4848_v6, %v3215_v57  ;;  %vm6236_vm6 = vcmp.lt.f32.partialorder %v3226_v20, 0.0004427343  ;;  %v3233_v18 = vadd.f32 1.0, %v3232_v62 }
 0x404   : > { %v6208_v4 = vpop.eup %4853  ;;  %v6213_v7 = vpop.f32.mrb[31].mxu1  ;;  %v3235_v39 = vand.u32 2147483647, %v6196_v8  ;;  %v3163_v42 = vsub.f32 0.0, %v3147_v38  ;;  %v3225_v6 = vmul.f32 %v4850_v35, %v3224_v11  ;;  %v6249_v51 = vadd.f32 %v6192_v41, %v6151_v34 }
 0x405   : > { %v6215_v9 = vpop.eup %4855  ;;  %v3238_v16 = vadd.f32 1.0, %v6208_v4  ;;  %v3241_v19 = vmul.f32 -0.5, %v6208_v4  ;;  %v3244_v44 = vand.u32 2147483647, %v6208_v4  ;;  %v3234_v35 = vmul.f32 %v6196_v8, %v3233_v18 }
 0x406   : > { %v3247_v54 = vadd.f32 1.0, %v6215_v9  ;;  %v6231_v14 = vpop.eup %4857  ;;  %v3250_v13 = vmul.f32 -0.5, %v6215_v9  ;;  %v3188_v17 = vmul.f32 1.442695, %v3163_v42  ;;  %v3253_v10 = vand.u32 2147483647, %v6215_v9 }
 0x407   : > { %4869 = vlog2.f32 %v3238_v16  ;;  %v3256_v40 = vadd.f32 1.0, %v6231_v14  ;;  %v3259_v59 = vmul.f32 -0.5, %v6231_v14  ;;  %v3242_v23 = vadd.f32 1.0, %v3241_v19 }
 0x408   : > { %4871 = vlog2.f32 %v3247_v54  ;;  %vm3236_vm10 = vcmp.lt.f32.partialorder %v3235_v39, 0.0004427343  ;;  %v3251_v20 = vadd.f32 1.0, %v3250_v13  ;;  %vm6270_vm11 = vcmp.lt.f32.partialorder %v3244_v44, 0.0004427343 }
 0x409   : > { %v4860_v3 = vpop.eup %4859  ;;  %4873 = vpow2.f32 %v3186_v60  ;;  %v3262_v60 = vand.u32 2147483647, %v6231_v14  ;;  %vm6274_vm12 = vcmp.lt.f32.partialorder %v3253_v10, 0.0004427343  ;;  %v3260_v38 = vadd.f32 1.0, %v3259_v59 }
 0x40a   : > { %v4862_v55 = vpop.eup %4861  ;;  %v3204_v47 = vmul.f32 0.6931472, %v4860_v3  ;;  %4875 = vlog2.f32 %v3256_v40  ;;  %v3243_v30 = vmul.f32 %v6208_v4, %v3242_v23  ;;  %v3252_v40 = vmul.f32 %v6215_v9, %v3251_v20 }
 0x40b   : > { %v4864_v43 = vpop.eup %4863  ;;  %v3213_v49 = vmul.f32 0.6931472, %v4862_v55  ;;  %4877 = vpow2.f32 %v3188_v17  ;;  %vm6295_vm13 = vcmp.lt.f32.partialorder %v3262_v60, 0.0004427343  ;;  %v3261_v42 = vmul.f32 %v6231_v14, %v3260_v38 }
 0x40c   : > { %v3222_v31 = vmul.f32 0.6931472, %v4864_v43  ;;  %v4866_v48 = vpop.eup %4865  ;;  %v3210_v33 = vsel %vm6223_vm3, %v3207_v37, %v3204_v47  ;;  %v3096_v37 = vmax.f32 %v6182_v53, 0.0  ;;  %v6305_v43 = vadd.f32 %v6194_v63, %v6155_v1 }
 0x40d   : > { %v6258_v45 = vpop.eup %4867  ;;  %v3231_v46 = vmul.f32 0.6931472, %v4866_v48  ;;  %v3346_v62 = vadd.f32 %v3210_v33, %v3090_v15  ;;  %v3219_v16 = vsel %vm6227_vm4, %v3216_v0, %v3213_v49  ;;  %v3095_v17 = vmax.f32 %v6177_v26, 0.0 }
 0x40e   : > { %v3228_v41 = vsel %vm6236_vm6, %v3225_v6, %v3222_v31  ;;  %v3265_v8 = vadd.f32 1.0, %v6258_v45  ;;  %v3347_v18 = vadd.f32 %v3219_v16, %v3091_v25  ;;  %v3148_v25 = vand.u32 2147483647, %v6249_v51 }
 0x40f   : > { %v3348_v57 = vadd.f32 %v3228_v41, %v3092_v36  ;;  %v3237_v54 = vsel %vm3236_vm10, %v3234_v35, %v3231_v46  ;;  %v3362_v47 = vsel %vm3106_vm7, %v6158_v50, %v3346_v62  ;;  %v3268_v13 = vmul.f32 -0.5, %v6258_v45 }
 0x410   : > { %v3349_v24 = vadd.f32 %v3237_v54, %v3093_v12  ;;  %4879 = vlog2.f32 %v3265_v8  ;;  %v3164_v49 = vsub.f32 0.0, %v3148_v25  ;;  %v3271_v10 = vand.u32 2147483647, %v6258_v45 }
 0x411   : > { %v4870_v28 = vpop.eup %4869  ;;  %v3364_v15 = vsel %vm3108_vm5, %v6165_v32, %v3348_v57  ;;  %v3269_v41 = vadd.f32 1.0, %v3268_v13  ;;  %v3149_v20 = vand.u32 2147483647, %v6305_v43  ;;  %v6337_v8 = vadd.f32 %v6200_v56, %v6151_v34 }
 0x412   : > { %v4872_v3 = vpop.eup %4871  ;;  %v3240_v0 = vmul.f32 0.6931472, %v4870_v28  ;;  %4881 = vtanh.f32 %v3364_v15  ;;  %v3365_v6 = vsel %vm3109_vm8, %v6169_v27, %v3349_v24  ;;  %v3190_v46 = vmul.f32 1.442695, %v3164_v49 }
 0x413   : > { %v3249_v39 = vmul.f32 0.6931472, %v4872_v3  ;;  %v6287_v55 = vpop.eup %4873  ;;  %4883 = vtanh.f32 %v3362_v47  ;;  %v3097_v16 = vmax.f32 %v6185_v52, 0.0  ;;  %v3165_v54 = vsub.f32 0.0, %v3149_v20 }
 0x414   : > { %v3246_v12 = vsel %vm6270_vm11, %v3243_v30, %v3240_v0  ;;  %v4876_v4 = vpop.eup %4875  ;;  %v3274_v63 = vadd.f32 1.0, %v6287_v55  ;;  %4885 = vtanh.f32 %v3365_v6  ;;  %v6342_v60 = vadd.f32 %v6204_v58, %v6155_v1 }
 0x415   : > { %v3350_v9 = vadd.f32 %v3246_v12, %v3094_v2  ;;  %v3258_v44 = vmul.f32 0.6931472, %v4876_v4  ;;  %v3363_v2 = vsel %vm3107_vm9, %v6161_v22, %v3347_v18  ;;  %v3255_v14 = vsel %vm6274_vm12, %v3252_v40, %v3249_v39  ;;  %v6319_v31 = vpop.eup %4877 }
 0x416   : > { %4887 = vtanh.f32 %v3363_v2  ;;  %v3351_v59 = vadd.f32 %v3255_v14, %v3095_v17  ;;  %v3283_v57 = vadd.f32 1.0, %v6319_v31  ;;  %v3270_v11 = vmul.f32 %v6258_v45, %v3269_v41 }
 0x417   : > { %v3264_v48 = vsel %vm6295_vm13, %v3261_v42, %v3258_v44  ;;  %v3366_v33 = vsel %vm3110_vm14, %v6174_v61, %v3350_v9  ;;  %4889 = vlog2.f32 %v3274_v63  ;;  %vm3272_vm1 = vcmp.lt.f32.partialorder %v3271_v10, 0.0004427343 }
 0x418   : > { %v3352_v35 = vadd.f32 %v3264_v48, %v3096_v37  ;;  %4891 = vtanh.f32 %v3366_v33  ;;  %v3367_v37 = vsel %vm3111_vm0, %v6177_v26, %v3351_v59  ;;  %v3192_v56 = vmul.f32 1.442695, %v3165_v54 }
 0x419   : > { %4893 = vpow2.f32 %v3190_v46  ;;  %v3150_v38 = vand.u32 2147483647, %v6337_v8  ;;  %v3277_v15 = vmul.f32 -0.5, %v6287_v55  ;;  %v3151_v24 = vand.u32 2147483647, %v6342_v60 }
 0x41a   : > { %v3368_v23 = vsel %vm3112_vm15, %v6182_v53, %v3352_v35  ;;  %v4880_v62 = vpop.eup %4879  ;;  %v6351_v58 = vadd.f32 %v6206_v21, %v6151_v34  ;;  %v6355_v18 = vadd.f32 %v6213_v7, %v6155_v1  ;;  %v3286_v6 = vmul.f32 -0.5, %v6319_v31 }
 0x41b   : > { %4895 = vtanh.f32 %v3368_v23  ;;  %v3267_v28 = vmul.f32 0.6931472, %v4880_v62  ;;  %v3166_v45 = vsub.f32 0.0, %v3150_v38  ;;  %v3167_v40 = vsub.f32 0.0, %v3151_v24 }
 0x41c   : > { %v4882_v36 = vpop.eup %4881  ;;  %4897 = vlog2.f32 %v3283_v57  ;;  %v3152_v21 = vand.u32 2147483647, %v6351_v58  ;;  %v3278_v7 = vadd.f32 1.0, %v3277_v15  ;;  %v3153_v9 = vand.u32 2147483647, %v6355_v18 }
 0x41d   : > { %v3273_v3 = vsel %vm3272_vm1, %v3270_v11, %v3267_v28  ;;  %v4884_v0 = vpop.eup %4883  ;;  %4899 = vpow2.f32 %v3192_v56  ;;  %v3396_v39 = vmul.f32 %v4882_v36, %v6165_v32  ;;  %v3194_v34 = vmul.f32 1.442695, %v3166_v45 }
 0x41e   : > { %v3353_v30 = vadd.f32 %v3273_v3, %v3097_v16  ;;  %4901 = vtanh.f32 %v3367_v37  ;;  %v4886_v47 = vpop.eup %4885  ;;  %v3394_v25 = vmul.f32 %v4884_v0, %v6158_v50  ;;  %v3196_v4 = vmul.f32 1.442695, %v3167_v40 }
 0x41f   : > { %v3168_v32 = vsub.f32 0.0, %v3152_v21  ;;  %v3397_v44 = vmul.f32 %v4886_v47, %v6169_v27  ;;  %v3169_v14 = vsub.f32 0.0, %v3153_v9  ;;  %v3280_v50 = vand.u32 2147483647, %v6287_v55 }
 0x420   : > { %v3369_v12 = vsel %vm3113_vm2, %v6185_v52, %v3353_v30  ;;  %v4888_v19 = vpop.eup %4887  ;;  %v3410_v13 = vpack.c.bf16 %v3396_v39, %v3394_v25  ;;  %v3279_v59 = vmul.f32 %v6287_v55, %v3278_v7  ;;  %v3287_v41 = vadd.f32 1.0, %v3286_v6 }
 0x421   : > { %4903 = vtanh.f32 %v3369_v12  ;;  %v4890_v1 = vpop.eup %4889  ;;  %v3198_v2 = vmul.f32 1.442695, %v3168_v32  ;;  %v3395_v48 = vmul.f32 %v4888_v19, %v6161_v22  ;;  %v3200_v10 = vmul.f32 1.442695, %v3169_v14 }
 0x422   : > { %4905 = vpow2.f32 %v3194_v34  ;;  %v4892_v42 = vpop.eup %4891  ;;  %v3276_v35 = vmul.f32 0.6931472, %v4890_v1  ;;  %v3289_v23 = vand.u32 2147483647, %v6319_v31  ;;  %vm6374_vm3 = vcmp.lt.f32.partialorder %v3280_v50, 0.0004427343 }
 0x423   : > { %4907 = vpow2.f32 %v3196_v4  ;;  %v4894_v49 = vpop.eup %4893  ;;  %v3411_v46 = vpack.c.bf16 %v3397_v44, %v3395_v48  ;;  %v3398_v57 = vmul.f32 %v4892_v42, %v6174_v61  ;;  %v3098_v61 = vmax.f32 %v6190_v5, 0.0 }
 0x424   : > { %v3292_v17 = vadd.f32 1.0, %v4894_v49  ;;  %4909 = vpow2.f32 %v3198_v2  ;;  %v3282_v54 = vsel %vm6374_vm3, %v3279_v59, %v3276_v35  ;;  %v3295_v28 = vmul.f32 -0.5, %v4894_v49 }
 0x425   : > { %v4896_v63 = vpop.eup %4895  ;;  %3585 = vmatprep.mubr.bf16.mxu1 %v3411_v46  ;;  %vm6385_vm4 = vcmp.lt.f32.partialorder %v3289_v23, 0.0004427343  ;;  %v3354_v24 = vadd.f32 %v3282_v54, %v3098_v61  ;;  %v3298_v39 = vand.u32 2147483647, %v4894_v49  ;;  %v3099_v12 = vmax.f32 %v6211_v29, 0.0 }
 0x426   : > { %v4898_v33 = vpop.eup %4897  ;;  %4911 = vlog2.f32 %v3292_v17  ;;  %v3400_v20 = vmul.f32 %v4896_v63, %v6182_v53  ;;  %3586 = vmatmul.mubr.bf16.vlgmr.msra.gmra.mrb[32].mxu1 %v3410_v13  ;;  %v3288_v53 = vmul.f32 %v6319_v31, %v3287_v41  ;;  %v3296_v45 = vadd.f32 1.0, %v3295_v28 }
 0x427   : > { %v6369_v27 = vpop.eup %4899  ;;  %4913 = vpow2.f32 %v3200_v10  ;;  %v3285_v16 = vmul.f32 0.6931472, %v4898_v33  ;;  %vm3114_vm5 = vcmp.ne.f32.partialorder %v6190_v5, %v6190_v5  ;;  %vm3115_vm6 = vcmp.ne.f32.partialorder %v6211_v29, %v6211_v29 }
 0x428   : > { %v4902_v62 = vpop.eup %4901  ;;  %v3301_v55 = vadd.f32 1.0, %v6369_v27  ;;  %v3412_v11 = vpack.c.bf16 %v3400_v20, %v3398_v57  ;;  %v3304_v30 = vmul.f32 -0.5, %v6369_v27  ;;  %v3370_v21 = vsel %vm3114_vm5, %v6190_v5, %v3354_v24 }
 0x429   : > { %v3399_v38 = vmul.f32 %v4902_v62, %v6177_v26  ;;  %v3291_v0 = vsel %vm6385_vm4, %v3288_v53, %v3285_v16  ;;  %v3297_v32 = vmul.f32 %v4894_v49, %v3296_v45  ;;  %vm3299_vm7 = vcmp.lt.f32.partialorder %v3298_v39, 0.0004427343 }
 0x42a   : > { %4915 = vlog2.f32 %v3301_v55  ;;  %v3355_v19 = vadd.f32 %v3291_v0, %v3099_v12  ;;  %v3305_v25 = vadd.f32 1.0, %v3304_v30  ;;  %v3307_v42 = vand.u32 2147483647, %v6369_v27 }
 0x42b   : > { %v4904_v36 = vpop.eup %4903  ;;  %vm3116_vm8 = vcmp.ne.f32.partialorder %v6249_v51, %v6249_v51  ;;  %v3101_v2 = vmax.f32 %v6305_v43, 0.0  ;;  %vm3117_vm9 = vcmp.ne.f32.partialorder %v6305_v43, %v6305_v43  ;;  %v3102_v20 = vmax.f32 %v6337_v8, 0.0 }
 0x42c   : > { %v6383_v37 = vpop.eup %4905  ;;  %v3401_v3 = vmul.f32 %v4904_v36, %v6185_v52  ;;  %v3100_v52 = vmax.f32 %v6249_v51, 0.0  ;;  %v3371_v49 = vsel %vm3115_vm6, %v6211_v29, %v3355_v19  ;;  %v3306_v50 = vmul.f32 %v6369_v27, %v3305_v25 }
 0x42d   : > { %v6391_v15 = vpop.eup %4907  ;;  %v3310_v31 = vadd.f32 1.0, %v6383_v37  ;;  %v3313_v9 = vmul.f32 -0.5, %v6383_v37  ;;  %v3316_v33 = vand.u32 2147483647, %v6383_v37  ;;  %vm3308_vm10 = vcmp.lt.f32.partialorder %v3307_v42, 0.0004427343 }
 0x42e   : > { %v3319_v40 = vadd.f32 1.0, %v6391_v15  ;;  %v3413_v47 = vpack.c.bf16 %v3401_v3, %v3399_v38  ;;  %v6399_v26 = vpop.eup %4909  ;;  %v3322_v6 = vmul.f32 -0.5, %v6391_v15  ;;  %v3325_v46 = vand.u32 2147483647, %v6391_v15 }
 0x42f   : > { %4917 = vlog2.f32 %v3310_v31  ;;  %v3328_v4 = vadd.f32 1.0, %v6399_v26  ;;  %v3314_v48 = vadd.f32 1.0, %v3313_v9  ;;  %v3331_v35 = vmul.f32 -0.5, %v6399_v26 }
 0x430   : > { %4919 = vlog2.f32 %v3319_v40  ;;  %3593 = vmatprep.mubr.bf16.mxu1 %v3413_v47  ;;  %v4912_v34 = vpop.eup %4911  ;;  %v3323_v59 = vadd.f32 1.0, %v3322_v6  ;;  %v3103_v62 = vmax.f32 %v6342_v60, 0.0  ;;  %vm3317_vm11 = vcmp.lt.f32.partialorder %v3316_v33, 0.0004427343 }
 0x431   : > { %v6408_v1 = vpop.eup %4913  ;;  %v3294_v7 = vmul.f32 0.6931472, %v4912_v34  ;;  %3594 = vmatmul.mubr.bf16.gmra.mrb[36].mxu1 %v3412_v11  ;;  %4921 = vlog2.f32 %v3328_v4  ;;  %v3315_v55 = vmul.f32 %v6383_v37, %v3314_v48  ;;  %v3332_v54 = vadd.f32 1.0, %v3331_v35 }
 0x432   : > { %v3337_v44 = vadd.f32 1.0, %v6408_v1  ;;  %4923 = vtanh.f32 %v3370_v21  ;;  %v3340_v27 = vmul.f32 -0.5, %v6408_v1  ;;  %v3324_v36 = vmul.f32 %v6391_v15, %v3323_v59  ;;  %v4191_v59 = vld [vmem:[%s6666_s9] ss:$0 sm:$0xff] }
 0x433   : > { %v3300_v13 = vsel %vm3299_vm7, %v3297_v32, %v3294_v7  ;;  %v3334_v61 = vand.u32 2147483647, %v6399_v26  ;;  %vm3326_vm12 = vcmp.lt.f32.partialorder %v3325_v46, 0.0004427343  ;;  %v3343_v37 = vand.u32 2147483647, %v6408_v1 }
 0x434   : > { %v4916_v14 = vpop.eup %4915  ;;  %v3356_v63 = vadd.f32 %v3300_v13, %v3100_v52  ;;  %4925 = vlog2.f32 %v3337_v44  ;;  %v3341_v56 = vadd.f32 1.0, %v3340_v27  ;;  %vm3118_vm13 = vcmp.ne.f32.partialorder %v6337_v8, %v6337_v8 }
 0x435   : > { %v3303_v17 = vmul.f32 0.6931472, %v4916_v14  ;;  %v3333_v45 = vmul.f32 %v6399_v26, %v3332_v54  ;;  %vm3119_vm14 = vcmp.ne.f32.partialorder %v6342_v60, %v6342_v60  ;;  %v3104_v40 = vmax.f32 %v6351_v58, 0.0 }
 0x436   : > { %v3372_v10 = vsel %vm3116_vm8, %v6249_v51, %v3356_v63  ;;  %vm3335_vm15 = vcmp.lt.f32.partialorder %v3334_v61, 0.0004427343  ;;  %v3342_v34 = vmul.f32 %v6408_v1, %v3341_v56  ;;  %v3105_v19 = vmax.f32 %v6355_v18, 0.0 }
 0x437   : > { %4927 = vtanh.f32 %v3372_v10  ;;  %v3309_v41 = vsel %vm3308_vm10, %v3306_v50, %v3303_v17  ;;  %vm3344_vm0 = vcmp.lt.f32.partialorder %v3343_v37, 0.0004427343  ;;  %vm3120_vm1 = vcmp.ne.f32.partialorder %v6351_v58, %v6351_v58 }
 0x438   : > { %4929 = vtanh.f32 %v3371_v49  ;;  %v3357_v57 = vadd.f32 %v3309_v41, %v3101_v2  ;;  %vm3121_vm2 = vcmp.ne.f32.partialorder %v6355_v18, %v6355_v18 }
 0x439   : > { %v4918_v23 = vpop.eup %4917 }
 0x43a   : > { %v4920_v22 = vpop.eup %4919  ;;  %v3312_v16 = vmul.f32 0.6931472, %v4918_v23  ;;  %v3373_v28 = vsel %vm3117_vm9, %v6305_v43, %v3357_v57 }
 0x43b   : > { %v3321_v11 = vmul.f32 0.6931472, %v4920_v22  ;;  %4931 = vtanh.f32 %v3373_v28  ;;  %v4922_v38 = vpop.eup %4921 }
 0x43c   : > { %v3318_v53 = vsel %vm3317_vm11, %v3315_v55, %v3312_v16  ;;  %v4924_v0 = vpop.eup %4923  ;;  %v3330_v31 = vmul.f32 0.6931472, %v4922_v38 }
 0x43d   : > { %v3358_v3 = vadd.f32 %v3318_v53, %v3102_v20  ;;  %v3327_v24 = vsel %vm3326_vm12, %v3324_v36, %v3321_v11  ;;  %v3402_v4 = vmul.f32 %v4924_v0, %v6190_v5 }
 0x43e   : > { %v3359_v30 = vadd.f32 %v3327_v24, %v3103_v62  ;;  %v4926_v15 = vpop.eup %4925  ;;  %v3336_v12 = vsel %vm3335_vm15, %v3333_v45, %v3330_v31 }
 0x43f   : > { %v3374_v39 = vsel %vm3118_vm13, %v6337_v8, %v3358_v3  ;;  %v3339_v52 = vmul.f32 0.6931472, %v4926_v15  ;;  %v3360_v21 = vadd.f32 %v3336_v12, %v3104_v40 }
 0x440   : > { %v3375_v47 = vsel %vm3119_vm14, %v6342_v60, %v3359_v30  ;;  %4933 = vtanh.f32 %v3374_v39 }
 0x441   : > { %v4928_v26 = vpop.eup %4927  ;;  %v3345_v25 = vsel %vm3344_vm0, %v3342_v34, %v3339_v52  ;;  %4935 = vtanh.f32 %v3375_v47  ;;  %v3376_v32 = vsel %vm3120_vm1, %v6351_v58, %v3360_v21 }
 0x442   : > { %v4930_v7 = vpop.eup %4929  ;;  %v3361_v9 = vadd.f32 %v3345_v25, %v3105_v19  ;;  %v3404_v42 = vmul.f32 %v4928_v26, %v6249_v51  ;;  %4937 = vtanh.f32 %v3376_v32 }
 0x443   : > { %v3403_v13 = vmul.f32 %v4930_v7, %v6211_v29 }
 0x444   : > { %v3377_v1 = vsel %vm3121_vm2, %v6355_v18, %v3361_v9  ;;  %v3414_v6 = vpack.c.bf16 %v3404_v42, %v3402_v4 }
 0x445   : > { %v4932_v44 = vpop.eup %4931  ;;  %4939 = vtanh.f32 %v3377_v1 }
 0x446   : > { %v3405_v5 = vmul.f32 %v4932_v44, %v6305_v43 }
 0x448   : > { %v3415_v2 = vpack.c.bf16 %v3405_v5, %v3403_v13 }
 0x44a   : > { %3601 = vmatprep.mubr.bf16.mxu1 %v3415_v2  ;;  %v4934_v14 = vpop.eup %4933 }
 0x44b   : > { %3602 = vmatmul.mubr.bf16.gmra.mrb[40].mxu1 %v3414_v6  ;;  %v4936_v49 = vpop.eup %4935  ;;  %v3406_v51 = vmul.f32 %v4934_v14, %v6337_v8 }
 0x44c   : > { %v4938_v63 = vpop.eup %4937  ;;  %v3407_v48 = vmul.f32 %v4936_v49, %v6342_v60 }
 0x44d   : > { %v3408_v50 = vmul.f32 %v4938_v63, %v6351_v58 }
 0x44f   : > { %v4940_v17 = vpop.eup %4939  ;;  %v3416_v35 = vpack.c.bf16 %v3408_v50, %v3406_v51 }
 0x450   : > { %v3409_v33 = vmul.f32 %v4940_v17, %v6355_v18 }
 0x452   : > { %v3417_v10 = vpack.c.bf16 %v3409_v33, %v3407_v48 }
 0x454   : > { %3609 = vmatprep.mubr.bf16.mxu1 %v3417_v10 }
 0x455   : > { %3610 = vmatmul.mubr.bf16.gmra.mrb[44].mxu1 %v3416_v35 }
 0x4f9   : > { %v4234_v29 = vpop.f32.mrb[32].mxu1 }
 0x4fa   : > { %v4235_v43 = vpop.f32.mrb[33].mxu1 }
 0x4fb   : > { %v4236_v41 = vadd.f32 %v4235_v43, %v4234_v29  ;;  %v4237_v46 = vpop.f32.mrb[34].mxu1 }
 0x4fc   : > { %v4238_v8 = vpop.f32.mrb[35].mxu1 }
 0x4fd   : > { %v4239_v27 = vadd.f32 %v4238_v8, %v4237_v46  ;;  %v3588_v58 = vadd.f32 %v4236_v41, %v4191_v59 }
 0x4ff   : > { %3618 = vmax.xlane.f32.xlu0 %v3588_v58  ;;  %v3591_v60 = vadd.f32 %v4239_v27, %v4191_v59 }
 0x503   : > { %3620 = vmax.xlane.f32.xlu0 %v3591_v60 }
 0x504   : > { %v4240_v23 = vpop.f32.mrb[36].mxu1 }
 0x505   : > { %v4241_v57 = vpop.f32.mrb[37].mxu1 }
 0x506   : > { %v4242_v18 = vadd.f32 %v4241_v57, %v4240_v23  ;;  %v4243_v20 = vpop.f32.mrb[38].mxu1 }
 0x507   : > { %v4244_v62 = vpop.f32.mrb[39].mxu1 }
 0x508   : > { %v4245_v22 = vadd.f32 %v4244_v62, %v4243_v20  ;;  %v3596_v16 = vadd.f32 %v4242_v18, %v4191_v59 }
 0x50a   : > { %3622 = vmax.xlane.f32.xlu1 %v3596_v16  ;;  %v3599_v55 = vadd.f32 %v4245_v22, %v4191_v59 }
 0x50e   : > { %3624 = vmax.xlane.f32.xlu1 %v3599_v55 }
 0x51e   : > { %v4246_v54 = vpop.f32.mrb[40].mxu1 }
 0x51f   : > { %v4247_v28 = vpop.f32.mrb[41].mxu1 }
 0x520   : > { %v4248_v11 = vadd.f32 %v4247_v28, %v4246_v54  ;;  %v4249_v36 = vpop.f32.mrb[42].mxu1 }
 0x521   : > { %v4250_v61 = vpop.f32.mrb[43].mxu1 }
 0x522   : > { %v4251_v53 = vadd.f32 %v4250_v61, %v4249_v36  ;;  %v3604_v56 = vadd.f32 %v4248_v11, %v4191_v59 }
 0x524   : > { %3626 = vmax.xlane.f32.xlu0 %v3604_v56  ;;  %v3607_v38 = vadd.f32 %v4251_v53, %v4191_v59 }
 0x526   : > { %3628 = vmax.xlane.f32.xlu1 %v3607_v38 }
 0x528   : > { %v4252_v3 = vpop.f32.mrb[44].mxu1 }
 0x529   : > { %v4253_v24 = vpop.f32.mrb[45].mxu1 }
 0x52a   : > { %v4254_v37 = vadd.f32 %v4253_v24, %v4252_v3  ;;  %v4255_v0 = vpop.f32.mrb[46].mxu1 }
 0x52b   : > { %v4256_v30 = vpop.f32.mrb[47].mxu1 }
 0x52c   : > { %v4257_v31 = vadd.f32 %v4256_v30, %v4255_v0  ;;  %v3612_v45 = vadd.f32 %v4254_v37, %v4191_v59 }
 0x52e   : > { %3630 = vmax.xlane.f32.xlu0 %v3612_v45  ;;  %v3615_v15 = vadd.f32 %v4257_v31, %v4191_v59 }
 0x530   : > { %3632 = vmax.xlane.f32.xlu1 %v3615_v15 }
 0x58c   : > { %v3619_v39 = vpop.xlane.xlu0 %3618 }
 0x58d   : > { %v3634_v40 = vsub.f32 %v3588_v58, %v3619_v39 }
 0x58f   : > { %v3642_v47 = vmul.f32 1.442695, %v3634_v40 }
 0x590   : > { %v3621_v12 = vpop.xlane.xlu0 %3620 }
 0x591   : > { %4941 = vpow2.f32 %v3642_v47  ;;  %v3635_v52 = vsub.f32 %v3591_v60, %v3621_v12 }
 0x593   : > { %v3644_v34 = vmul.f32 1.442695, %v3635_v52 }
 0x595   : > { %4943 = vpow2.f32 %v3644_v34 }
 0x597   : > { %v3623_v21 = vpop.xlane.xlu1 %3622 }
 0x598   : > { %v3636_v19 = vsub.f32 %v3596_v16, %v3623_v21 }
 0x59a   : > { %v3646_v26 = vmul.f32 1.442695, %v3636_v19 }
 0x59b   : > { %v3625_v25 = vpop.xlane.xlu1 %3624  ;;  %v4942_v7 = vpop.eup %4941 }
 0x59c   : > { %4945 = vpow2.f32 %v3646_v26  ;;  %v3637_v4 = vsub.f32 %v3599_v55, %v3625_v25  ;;  %3658 = vadd.xlane.f32.xlu0 %v4942_v7 }
 0x59e   : > { %v3648_v32 = vmul.f32 1.442695, %v3637_v4 }
 0x59f   : > { %v4944_v9 = vpop.eup %4943 }
 0x5a0   : > { %4947 = vpow2.f32 %v3648_v32  ;;  %3660 = vadd.xlane.f32.xlu1 %v4944_v9 }
 0x5a6   : > { %v4946_v42 = vpop.eup %4945 }
 0x5a7   : > { %3662 = vadd.xlane.f32.xlu0 %v4946_v42 }
 0x5aa   : > { %v4948_v1 = vpop.eup %4947 }
 0x5ab   : > { %3664 = vadd.xlane.f32.xlu1 %v4948_v1 }
 0x5b1   : > { %v3627_v6 = vpop.xlane.xlu0 %3626 }
 0x5b2   : > { %v3638_v44 = vsub.f32 %v3604_v56, %v3627_v6 }
 0x5b3   : > { %v3629_v13 = vpop.xlane.xlu1 %3628 }
 0x5b4   : > { %v3650_v5 = vmul.f32 1.442695, %v3638_v44  ;;  %v3639_v2 = vsub.f32 %v3607_v38, %v3629_v13 }
 0x5b6   : > { %4949 = vpow2.f32 %v3650_v5  ;;  %v3652_v14 = vmul.f32 1.442695, %v3639_v2 }
 0x5b8   : > { %4951 = vpow2.f32 %v3652_v14 }
 0x5bb   : > { %v3631_v49 = vpop.xlane.xlu0 %3630 }
 0x5bc   : > { %v6466_v63 = vsub.f32 %v3612_v45, %v3631_v49 }
 0x5bd   : > { %v3633_v51 = vpop.xlane.xlu1 %3632 }
 0x5be   : > { %v3654_v50 = vmul.f32 1.442695, %v6466_v63  ;;  %v6469_v17 = vsub.f32 %v3615_v15, %v3633_v51 }
 0x5c0   : > { %v4950_v48 = vpop.eup %4949  ;;  %4953 = vpow2.f32 %v3654_v50  ;;  %v3656_v33 = vmul.f32 1.442695, %v6469_v17 }
 0x5c1   : > { %3666 = vadd.xlane.f32.xlu0 %v4950_v48 }
 0x5c2   : > { %v4952_v35 = vpop.eup %4951  ;;  %4955 = vpow2.f32 %v3656_v33 }
 0x5c3   : > { %3668 = vadd.xlane.f32.xlu1 %v4952_v35 }
 0x5ca   : > { %v4954_v10 = vpop.eup %4953 }
 0x5cb   : > { %3670 = vadd.xlane.f32.xlu0 %v4954_v10 }
 0x5cc   : > { %v4956_v29 = vpop.eup %4955 }
 0x5cd   : > { %3672 = vadd.xlane.f32.xlu1 %v4956_v29 }
 0x629   : > { %v3659_v43 = vpop.xlane.xlu0 %3658 }
 0x62a   : > { %4957 = vlog2.f32 %v3659_v43 }
 0x62d   : > { %v3661_v59 = vpop.xlane.xlu1 %3660 }
 0x62e   : > { %4959 = vlog2.f32 %v3661_v59 }
 0x634   : > { %v3663_v41 = vpop.xlane.xlu0 %3662  ;;  %v4958_v46 = vpop.eup %4957 }
 0x635   : > { %4961 = vlog2.f32 %v3663_v41  ;;  %v3675_v8 = vmul.f32 0.6931472, %v4958_v46 }
 0x637   : > { %v3690_v58 = vsub.f32 %v3634_v40, %v3675_v8 }
 0x638   : > { %v3665_v27 = vpop.xlane.xlu1 %3664  ;;  %v4960_v23 = vpop.eup %4959 }
 0x639   : > { %4963 = vlog2.f32 %v3665_v27  ;;  %3698 = vst [vmem:[%s5847_s14] sm:$0xff] %v3690_v58  ;;  %v3677_v60 = vmul.f32 0.6931472, %v4960_v23 }
 0x63b   : > { %v3691_v57 = vsub.f32 %v3635_v52, %v3677_v60 }
 0x63d   : > { %3699 = vst [vmem:[%s5847_s14 + $0x8] sm:$0xff] %v3691_v57 }
 0x63f   : > { %v4962_v18 = vpop.eup %4961 }
 0x640   : > { %v3679_v20 = vmul.f32 0.6931472, %v4962_v18 }
 0x642   : > { %v3692_v62 = vsub.f32 %v3636_v19, %v3679_v20 }
 0x643   : > { %v4964_v22 = vpop.eup %4963 }
 0x644   : > { %3700 = vst [vmem:[%s5847_s14 + $0x10] sm:$0xff] %v3692_v62  ;;  %v3681_v16 = vmul.f32 0.6931472, %v4964_v22 }
 0x646   : > { %v3693_v55 = vsub.f32 %v3637_v4, %v3681_v16 }
 0x648   : > { %3701 = vst [vmem:[%s5847_s14 + $0x18] sm:$0xff] %v3693_v55 }
 0x64e   : > { %v3667_v54 = vpop.xlane.xlu0 %3666 }
 0x64f   : > { %4965 = vlog2.f32 %v3667_v54 }
 0x650   : > { %v3669_v28 = vpop.xlane.xlu1 %3668 }
 0x651   : > { %4967 = vlog2.f32 %v3669_v28 }
 0x658   : > { %v3671_v11 = vpop.xlane.xlu0 %3670 }
 0x659   : > { %v4966_v36 = vpop.eup %4965  ;;  %4969 = vlog2.f32 %v3671_v11 }
 0x65a   : > { %v3683_v61 = vmul.f32 0.6931472, %v4966_v36  ;;  %v3673_v53 = vpop.xlane.xlu1 %3672 }
 0x65b   : > { %v4968_v56 = vpop.eup %4967  ;;  %4971 = vlog2.f32 %v3673_v53 }
 0x65c   : > { %v3694_v38 = vsub.f32 %v3638_v44, %v3683_v61  ;;  %v3685_v3 = vmul.f32 0.6931472, %v4968_v56 }
 0x65e   : > { %3702 = vst [vmem:[%s5847_s14 + $0x20] sm:$0xff] %v3694_v38  ;;  %v3695_v24 = vsub.f32 %v3639_v2, %v3685_v3 }
 0x660   : > { %3703 = vst [vmem:[%s5847_s14 + $0x28] sm:$0xff] %v3695_v24 }
 0x663   : > { %v4970_v37 = vpop.eup %4969 }
 0x664   : > { %v3687_v0 = vmul.f32 0.6931472, %v4970_v37 }
 0x665   : > { %v4972_v30 = vpop.eup %4971 }
 0x666   : > { %v3696_v31 = vsub.f32 %v6466_v63, %v3687_v0  ;;  %v3689_v45 = vmul.f32 0.6931472, %v4972_v30 }
 0x668   : > { %3704 = vst [vmem:[%s5847_s14 + $0x30] sm:$0xff] %v3696_v31  ;;  %v3697_v15 = vsub.f32 %v6469_v17, %v3689_v45 }
 0x66a   : > { %3705 = vst [vmem:[%s5847_s14 + $0x38] sm:$0xff] %v3697_v15 }
 0x66b   : > { %5193 = shalt.err (!%p5190_p1)
}
 0x66c   : > { %s5194_s20 = scalar_lea.hbm %s6485_s1, 1024  ;;  %s5198_s27 = scalar_lea.hbm %s6671_s24, 4096 }
 0x66d   : > { %p5195_p13 = scmp.ne.s32.totalorder %s6485_s1, %s5194_s20  ;;  %p5199_p4 = scmp.lt.u32.totalorder %s6485_s1, %s6671_s24 }
 0x66e   : > { %p5200_p6 = scmp.lt.u32.totalorder %s5198_s27, %s5194_s20  ;;  %p5202_p5 = scmp.lt.u32.totalorder %s5194_s20, %s6485_s1 }
 0x66f   : > { %p5196_p12 = pnand %p5195_p13, %p6672_p8 }
 0x670   : > { %p5201_p10 = por %p5200_p6, %p5199_p4 }
 0x671   : > { %p5197_p7 = pneg %p5196_p12 }
 0x672   : > { %p5203_p0 = por %p5202_p5, %p5201_p10 }
 0x674   : > { %p5204_p11 = pnand %p5203_p0, %p5197_p7 }
 0x676   : > { %5207 = shalt.err (!%p5204_p11)
}
 0x677   : > { %s5333_s21 = smov 128   ;;  %s5334_s4 = smov 8  }
 0x678   : > { %4358 = dma.vmem_to_hbm [thread:$0]  (%p6672_p8), %s6487_s11, 1024, %s6485_s1, %s6494_s22, %s5333_s21, %s5333_s21, %s5334_s4  }
 0x679 PF: > { %s6673_s30 = sld [smem:[#allocation22_spill]]  ;;  %s6674_s7 = sld [smem:[#allocation30_spill]] }
 0x67a   : > { %p4394_p3 = scmp.ge.s32.totalorder %s5318_s23, 2 }
 0x67f   : > { %s3737_s13 = sand.u32 1, %s6673_s30   ;;  %p6675_p2 = scmp.ne.s32.totalorder %s6674_s7, 0 }
 0x680   : > { %s3738_s10 = scalar_lea.sflag [#allocation5], %s3737_s13 }
 0x681   : > { %p4384_p9 = pnand %p4394_p3, %p6675_p2 }
 0x683   : > { %5273 = dma.done.wait (!%p4384_p9), %s3738_s10, 1024  }
 0x684   : > { %5275 = vsyncadd (!%p4384_p9), %s3738_s10, 4294966272  ;;  %s33_s23 = sadd.s32 1, %s5318_s23   ;;  %s6676_s13 = sld [smem:[#allocation23_spill]] }
 0x685   : > { %p30_p1 = scmp.ge.s32.totalorder %s33_s23, 6   ;;  %s6677_s25 = sld [smem:[#allocation33_spill]] }
 0x686   : > { %s6678_s11 = sld [smem:[#allocation26_spill]]  ;;  %s6679_s20 = sld [smem:[#allocation27_spill]] }
 0x687   : > { %s6680_s21 = sld [smem:[#allocation31_spill]]  ;;  %s6681_s22 = sld [smem:[#allocation32_spill]] }
 0x688   : > { %s6682_s14 = smov %s5286_s15  ;;  %s6683_s15 = smov %s5588_s19 }
 0x689   : > { %s6684_s16 = smov %s5294_s17  ;;  %s6685_s17 = smov %s5298_s18 }
 0x68a   :  { %32 = sbr.rel (!%p30_p1) target bundleno = 23 (0x17), region = 178 }
 0x68b   : > { %s6686_s18 = smov %s6677_s25 }
 0x68c   : > { %s6687_s19 = smov %s6678_s11 }
 0x691   :  { %3743 = vsyncpa [#allocation4], 1 }
 0x692   :  { %3745 = vsyncpa [#allocation4 + $0x1], 1 }
 0x693   :  { %3746 = vsyncpa [#allocation7], 1 }
 0x694   :  { %3748 = vsyncpa [#allocation7 + $0x1], 1 }
 0x695   :  { %3749 = vsyncpa [#allocation10], 1 }
 0x696   :  { %3751 = vsyncpa [#allocation10 + $0x1], 1 }
 0x697   :  { %3752 = vsyncpa [#allocation13], 1 }
 0x698   :  { %3753 = vsyncpa [#allocation5], 1 }
 0x699   :  { %3755 = vsyncpa [#allocation5 + $0x1], 1 }

// kernel: tpu_custom_call.1
= control target key start
LH: loop header
LB: loop body
LE: loop exit
PB: predicated region body
PF: predicated region fallthrough
CT: control target
= control target key end

     0   :  { %s6555_s0 = inlined_call_operand.hbm [shape: f32[2,128,128], index: 0, kind: input, shape index: {}]   ;;  %s6556_s1 = inlined_call_operand.hbm [shape: f32[2,128,128], index: 1, kind: input, shape index: {}]   ;;  %s6557_s2 = inlined_call_operand.hbm [shape: f32[2,128,128], index: 2, kind: input, shape index: {}]   ;;  %s6558_s3 = inlined_call_operand.hbm [shape: f32[2,128,128], index: 3, kind: input, shape index: {}]   ;;  %s6559_s4 = inlined_call_operand.hbm [shape: bf16[3,512,256], index: 4, kind: input, shape index: {}]   ;;  %s6560_s5 = inlined_call_operand.vmem [shape: f32[1,256], index: 5, kind: input, shape index: {}]   ;;  %s6561_s6 = inlined_call_operand.hbm [shape: bf16[256,256], index: 6, kind: input, shape index: {}]   ;;  %s6562_s7 = inlined_call_operand.vmem [shape: f32[1,256], index: 7, kind: input, shape index: {}]   ;;  %s6563_s8 = inlined_call_operand.hbm [shape: bf16[256,128], index: 8, kind: input, shape index: {}]   ;;  %s6564_s9 = inlined_call_operand.vmem [shape: f32[1,128], index: 9, kind: input, shape index: {}]   ;;  %s6565_s10 = inlined_call_operand.hbm [shape: f32[2,128,128], index: 10, kind: output, shape index: {}]  }
   0x1   :  { %6594 = sst [smem:[#allocation34_spill]] %s6555_s0 }
   0x2   :  { %6595 = sst [smem:[#allocation35_spill]] %s6556_s1 }
   0x3   :  { %6596 = sst [smem:[#allocation36_spill]] %s6559_s4 }
   0x4   :  { %6597 = sst [smem:[#allocation37_spill]] %s6560_s5 }
   0x5   :  { %6598 = sst [smem:[#allocation38_spill]] %s6561_s6 }
   0x6   :  { %6599 = sst [smem:[#allocation39_spill]] %s6562_s7 }
   0x7   :  { %6600 = sst [smem:[#allocation40_spill]] %s6564_s9 }
   0x8   :  { %6601 = sst [smem:[#allocation41_spill]] %s6565_s10 }
   0x9   :  { %15 = vsyncpa [#allocation4], 0 }
   0xa   :  { %17 = vsyncpa [#allocation4 + $0x1], 0 }
   0xb   :  { %18 = vsyncpa [#allocation7], 0 }
   0xc   :  { %20 = vsyncpa [#allocation7 + $0x1], 0 }
   0xd   :  { %21 = vsyncpa [#allocation10], 0 }
   0xe   :  { %23 = vsyncpa [#allocation10 + $0x1], 0 }
   0xf   :  { %24 = vsyncpa [#allocation13], 0 }
  0x10   :  { %25 = vsyncpa [#allocation5], 0 }
  0x11   :  { %27 = vsyncpa [#allocation5 + $0x1], 0  ;;  %s5390_s13 = smov 0   ;;  %s5392_s14 = smov 0  }
  0x12   :  { %s5394_s15 = smov 0   ;;  %s5396_s16 = smov 0  }
  0x13   :  { %s5398_s17 = smov 0   ;;  %s5400_s18 = smov 0  }
  0x14   :  { %s5402_s19 = smov 0   ;;  %s5404_s20 = smov 0  }
  0x15   :  { %s5406_s21 = smov 0   ;;  %s5408_s22 = smov 0  }
  0x16   :  { %s5410_s23 = smov 0  }
  0x17 LB: > { %6602 = sst [smem:[#allocation22_spill]] %s5278_s13  ;;  %s5444_s24 = sadd.s32 4294967295, %s5318_s23   ;;  %s5318_s23 = sphi %s5410_s23, %s33_s23   ;;  %s5314_s22 = sphi %s5408_s22, %s6681_s22   ;;  %s5310_s21 = sphi %s5406_s21, %s6680_s21   ;;  %s5306_s20 = sphi %s5404_s20, %s6679_s20   ;;  %s5302_s19 = sphi %s5402_s19, %s6687_s19   ;;  %s5298_s18 = sphi %s5400_s18, %s6686_s18   ;;  %s5294_s17 = sphi %s5398_s17, %s6685_s17   ;;  %s5290_s16 = sphi %s5396_s16, %s6684_s16   ;;  %s5286_s15 = sphi %s5394_s15, %s6683_s15   ;;  %s5282_s14 = sphi %s5392_s14, %s6682_s14   ;;  %s5278_s13 = sphi %s5390_s13, %s6676_s13  }
  0x18   : > { %6603 = sst [smem:[#allocation23_spill]] %s5282_s14  ;;  %s3928_s25 = sadd.s32 4294967294, %s5318_s23  }
  0x19   : > { %6604 = sst [smem:[#allocation24_spill]] %s5302_s19  ;;  %p59_p0 = scmp.ne.s32.totalorder %s5298_s18, %s5294_s17 }
  0x1a   : > { %6605 = sst [smem:[#allocation25_spill]] %s5306_s20  ;;  %p60_p1 = scmp.eq.s32.totalorder %s5318_s23, 0 }
  0x1b   : > { %6606 = sst [smem:[#allocation26_spill]] %s5310_s21  ;;  %p65_p2 = scmp.ne.s32.totalorder %s5294_s17, %s5290_s16 }
  0x1c   : > { %6607 = sst [smem:[#allocation27_spill]] %s5314_s22  ;;  %p6571_p3 = scmp.eq.s32.totalorder %s5444_s24, 0 }
  0x1d   : > { %6608 = sst [smem:[#allocation28_spill]] %s5444_s24  ;;  %p5454_p4 = por %p60_p1, %p59_p0 }
  0x1e   : > { %p294_p5 = scmp.ne.s32.totalorder %s5286_s15, %s5282_s14  ;;  %p5462_p6 = por %p6571_p3, %p65_p2 }
  0x1f   : > { %s6609_s28 = scalar_select %p5454_p4, 1, 0 }
  0x20   : > { %s6610_s29 = scalar_select %p5462_p6, 1, 0 }
  0x21   : > { %p295_p7 = scmp.eq.s32.totalorder %s5444_s24, 3  ;;  %p300_p8 = scmp.ne.s32.totalorder %s5282_s14, %s5278_s13 }
  0x22   : > { %p301_p9 = scmp.eq.s32.totalorder %s3928_s25, 3  ;;  %p3929_p11 = scmp.ge.s32.totalorder %s5318_s23, 1 }
  0x23   : > { %p5469_p10 = por %p295_p7, %p294_p5  ;;  %p308_p13 = scmp.lt.s32.totalorder %s5318_s23, 5 }
  0x24   : > { %p5474_p12 = por %p301_p9, %p300_p8  ;;  %s5320_s16 = smov [#allocation11]  }
  0x25   : > { %s6611_s30 = scalar_select %p5469_p10, 1, 0 }
  0x26   : > { %s6613_s11 = scalar_select %p5474_p12, 1, 0 }
  0x27   : > { %6612 = sst [smem:[#allocation29_spill]] %s6611_s30  ;;  %p5479_p0 = pnand %p3929_p11, %p308_p13 }
  0x28   : > { %6614 = sst [smem:[#allocation30_spill]] %s6613_s11  ;;  %s320_s27 = sshll.u32 %s5320_s16, 4  ;;  %s321_s27 = int_to_ptr.vmem [resolvable:$true] %s320_s27 }
  0x29   : > { %s6615_s12 = scalar_select %p5479_p0, 1, 0 }
  0x2a   : > { %p4360_p1 = pneg %p5479_p0  ;;  %s5321_s26 = smov [#allocation12]  }
  0x2b   : > { %s336_s13 = sshll.u32 %s5321_s26, 4  ;;  %s6617_s4 = sld [smem:[#allocation36_spill]]  ;;  %s5491_s13 = int_to_ptr.vmem [resolvable:$true] %s336_s13 }
  0x2c   : > { %p5487_p2 = pnand %p4360_p1, %p6571_p3 }
  0x2e   : > { %s6616_s25 = scalar_select %p5487_p2, 1, 0 }
  0x2f   : > { %p5501_p7 = pneg %p5487_p2 }
  0x31   : > { %s4976_s30 = scalar_lea.hbm %s6617_s4, 24576 }
  0x32   : > { %p4977_p5 = scmp.ne.s32.totalorder %s6617_s4, %s4976_s30  ;;  %p4983_p11 = scmp.lt.u32.totalorder %s4976_s30, %s6617_s4 }
  0x33   : > { %s6618_s16 = scalar_select %p5501_p7, 1, 0 }
  0x34   : > { %p4979_p8 = pnand %p5501_p7, %p4977_p5 }
  0x36   : > { %p4980_p9 = pneg %p4979_p8 }
  0x38   : > { %p4985_p13 = pnand %p4983_p11, %p4980_p9 }
  0x3a   : > { %4988 = shalt.err (!%p4985_p13)
}
  0x3b   : > { %s4989_s10 = scalar_lea.vmem %s321_s27, 24576  ;;  %p4997_p10 = scmp.lt.s32.totalorder %s321_s27, %s321_s27 }
  0x3c   : > { %p4990_p1 = scmp.ne.s32.totalorder %s321_s27, %s4989_s10  ;;  %p4998_p6 = scmp.lt.s32.totalorder %s4989_s10, %s4989_s10 }
  0x3e   : > { %p4992_p3 = pnand %p4990_p1, %p5501_p7  ;;  %p4999_p0 = por %p4998_p6, %p4997_p10 }
  0x40   : > { %p4993_p12 = pneg %p4992_p3 }
  0x42   : > { %p5000_p4 = pnand %p4999_p0, %p4993_p12 }
  0x44   : > { %5003 = shalt.err (!%p5000_p4)
}
  0x45   : > { %s6580_s9 = smov 128   ;;  %s6583_s20 = smov 8  }
  0x46   : > { %4363 = dma.hbm_to_vmem [thread:$0]  (!%p5487_p2), %s6617_s4, 24576, %s321_s27, [#allocation10], %s6580_s9, %s6580_s9, %s6583_s20  }
  0x47   : > { %s6619_s6 = sld [smem:[#allocation38_spill]] }
  0x4d   : > { %s5004_s5 = scalar_lea.hbm %s6619_s6, 4096 }
  0x4e   : > { %p5005_p3 = scmp.ne.s32.totalorder %s6619_s6, %s5004_s5  ;;  %p5011_p10 = scmp.lt.u32.totalorder %s5004_s5, %s6619_s6 }
  0x50   : > { %p5007_p4 = pnand %p5005_p3, %p5501_p7 }
  0x52   : > { %p5008_p6 = pneg %p5007_p4 }
  0x54   : > { %p5013_p12 = pnand %p5011_p10, %p5008_p6 }
  0x56   : > { %5016 = shalt.err (!%p5013_p12)
}
  0x57   : > { %s5017_s27 = scalar_lea.vmem %s5491_s13, 4096  ;;  %p5025_p9 = scmp.lt.s32.totalorder %s5491_s13, %s5491_s13 }
  0x58   : > { %p5018_p0 = scmp.ne.s32.totalorder %s5491_s13, %s5017_s27  ;;  %p5026_p11 = scmp.lt.s32.totalorder %s5017_s27, %s5017_s27 }
  0x5a   : > { %p5020_p5 = pnand %p5018_p0, %p5501_p7  ;;  %p5027_p13 = por %p5026_p11, %p5025_p9 }
  0x5c   : > { %p5021_p8 = pneg %p5020_p5 }
  0x5e   : > { %p5028_p1 = pnand %p5027_p13, %p5021_p8 }
  0x60   : > { %5031 = shalt.err (!%p5028_p1)
}
  0x61   : > { %4366 = dma.hbm_to_vmem [thread:$0]  (!%p5487_p2), %s6619_s6, 4096, %s5491_s13, [#allocation13], %s6580_s9, %s6580_s9, %s6583_s20  }
  0x62   : > { %s42_s19 = sadd.s32 1, %s5310_s21  ;;  %s45_s24 = sadd.s32 1, %s5314_s22 }
  0x63   : > { %p43_p3 = scmp.ge.s32.totalorder %s42_s19, 2  ;;  %p4390_p4 = scmp.lt.s32.totalorder %s5318_s23, 4 }
  0x64   : > { %s6582_s7 = sand.u32 1, %s5298_s18   ;;  %s5551_s30 = sshll.u32 %s5314_s22, 11 }
  0x65   : > { %s6689_s19 = smov (%p43_p3, %s42_s19), 0  ;;  %s6691_s24 = smov (!%p43_p3, %s45_s24), %s5314_s22 }
  0x66   : > { %6620 = sst [smem:[#allocation31_spill]] %s6689_s19  ;;  %s280_s11 = ssub.s32 %s5310_s21, %s6689_s19 }
  0x67   : > { %s5560_s13 = sshll.u32 %s6582_s7, 7  ;;  %p47_p6 = scmp.ge.s32.totalorder %s6691_s24, 2 }
  0x68   : > { %p6621_p10 = scmp.ne.s32.totalorder %s6609_s28, 0  ;;  %s6624_s1 = sld [smem:[#allocation35_spill]] }
  0x69   : > { %s6693_s24 = smov (%p47_p6, %s6691_s24), 0  ;;  %s394_s7 = scalar_lea.vmem [#allocation6], %s5560_s13 }
  0x6a   : > { %p5564_p12 = pnand %p4390_p4, %p6621_p10  ;;  %6623 = sst [smem:[#allocation32_spill]] %s6693_s24 }
  0x6b   : > { %s49_s27 = ssub.s32 %s5314_s22, %s6693_s24  ;;  %s401_s20 = sshll.u32 %s394_s7, 4  ;;  %s5590_s20 = int_to_ptr.vmem [resolvable:$true] %s401_s20 }
  0x6c   : > { %s6622_s26 = scalar_select %p5564_p12, 1, 0 }
  0x6d   : > { %p50_p0 = scmp.eq.s32.totalorder %s49_s27, 0  ;;  %s281_s28 = sor.u32 %s280_s11, %s49_s27 }
  0x6e   : > { %s5577_s9 = scalar_lea.hbm %s6624_s1, %s5551_s30  ;;  %p282_p5 = scmp.eq.s32.totalorder %s281_s28, 0 }
  0x6f   : > { %s6625_s4 = sadd.s32 1, %s5298_s18  ;;  %s6627_s6 = sadd.s32 1, %s5286_s15 }
  0x70   : > { %s5583_s10 = scalar_select %p50_p0, %s5298_s18, %s6625_s4  }
  0x71   : > { %s5588_s19 = scalar_select %p282_p5, %s5286_s15, %s6627_s6  }
  0x72   : > { %6626 = sst [smem:[#allocation33_spill]] %s5583_s10  ;;  %s6628_s5 = sand.u32 1, %s5318_s23  }
  0x73   : > { %s5594_s14 = scalar_lea.sflag [#allocation7], %s6628_s5  ;;  %s5032_s24 = scalar_lea.hbm %s5577_s9, 2048 }
  0x74   : > { %p5033_p8 = scmp.ne.s32.totalorder %s5577_s9, %s5032_s24  ;;  %p5600_p9 = pneg %p5564_p12 }
  0x75   : > { %s5037_s6 = scalar_lea.hbm %s6624_s1, 4096  ;;  %p5038_p1 = scmp.lt.u32.totalorder %s5577_s9, %s6624_s1 }
  0x76   : > { %p5035_p11 = pnand %p5600_p9, %p5033_p8  ;;  %p5039_p3 = scmp.lt.u32.totalorder %s5037_s6, %s5032_s24 }
  0x77   : > { %p5041_p6 = scmp.lt.u32.totalorder %s5032_s24, %s5577_s9 }
  0x78   : > { %p5036_p13 = pneg %p5035_p11  ;;  %p5040_p4 = por %p5039_p3, %p5038_p1 }
  0x7a   : > { %p5042_p10 = por %p5041_p6, %p5040_p4 }
  0x7c   : > { %p5043_p0 = pnand %p5042_p10, %p5036_p13 }
  0x7e   : > { %5046 = shalt.err (!%p5043_p0)
}
  0x7f   : > { %s5047_s5 = scalar_lea.vmem %s5590_s20, 2048  ;;  %s5324_s4 = smov [#allocation6]  }
  0x80   : > { %p5048_p5 = scmp.ne.s32.totalorder %s5590_s20, %s5047_s5  ;;  %s5052_s7 = sshll.u32 %s5324_s4, 4  ;;  %s5053_s7 = int_to_ptr.vmem [resolvable:$false] %s5052_s7 }
  0x81   : > { %s5054_s27 = scalar_lea.vmem %s5053_s7, 4096  ;;  %p5055_p2 = scmp.lt.s32.totalorder %s5590_s20, %s5053_s7 }
  0x82   : > { %p5050_p8 = pnand %p5048_p5, %p5600_p9  ;;  %p5056_p7 = scmp.lt.s32.totalorder %s5054_s27, %s5047_s5 }
  0x84   : > { %p5051_p11 = pneg %p5050_p8  ;;  %p5057_p1 = por %p5056_p7, %p5055_p2 }
  0x86   : > { %p5058_p3 = pnand %p5057_p1, %p5051_p11 }
  0x88   : > { %5061 = shalt.err (!%p5058_p3)
}
  0x89   : > { %s6630_s24 = smov 8   ;;  %s6631_s6 = smov 128  }
  0x8a   : > { %4376 = dma.hbm_to_vmem [thread:$0]  (!%p5564_p12), %s5577_s9, 2048, %s5590_s20, %s5594_s14, %s6631_s6, %s6631_s6, %s6630_s24  }
  0x8b   : > { %s5325_s28 = smov [#allocation14]   ;;  %s5062_s5 = scalar_lea.hbm %s6563_s8, 2048 }
  0x8c   : > { %s352_s1 = sshll.u32 %s5325_s28, 4  ;;  %p5063_p2 = scmp.ne.s32.totalorder %s6563_s8, %s5062_s5  ;;  %s353_s1 = int_to_ptr.vmem [resolvable:$true] %s352_s1 }
  0x8d   : > { %p6632_p7 = scmp.ne.s32.totalorder %s6618_s16, 0  ;;  %p5069_p6 = scmp.lt.u32.totalorder %s5062_s5, %s6563_s8 }
  0x8f   : > { %p5065_p13 = pnand %p5063_p2, %p6632_p7 }
  0x91   : > { %p5066_p4 = pneg %p5065_p13 }
  0x93   : > { %p5071_p10 = pnand %p5069_p6, %p5066_p4 }
  0x95   : > { %5074 = shalt.err (!%p5071_p10)
}
  0x96   : > { %s5075_s9 = scalar_lea.vmem %s353_s1, 2048  ;;  %p5083_p11 = scmp.lt.s32.totalorder %s353_s1, %s353_s1 }
  0x97   : > { %p5076_p0 = scmp.ne.s32.totalorder %s353_s1, %s5075_s9  ;;  %p5084_p1 = scmp.lt.s32.totalorder %s5075_s9, %s5075_s9 }
  0x99   : > { %p5078_p5 = pnand %p5076_p0, %p6632_p7  ;;  %p5085_p3 = por %p5084_p1, %p5083_p11 }
  0x9b   : > { %p5079_p8 = pneg %p5078_p5 }
  0x9d   : > { %p5086_p12 = pnand %p5085_p3, %p5079_p8 }
  0x9f   : > { %5089 = shalt.err (!%p5086_p12)
}
  0xa0   : > { %s5326_s22 = smov 64   ;;  %s5327_s21 = smov 4  }
  0xa1   : > { %p6633_p2 = scmp.ne.s32.totalorder %s6616_s25, 0  ;;  %s6634_s0 = sld [smem:[#allocation34_spill]] }
  0xa2   : > { %s373_s5 = scalar_lea.vmem [#allocation3], %s5560_s13  ;;  %s5658_s25 = scalar_lea.hbm %s6557_s2, %s5551_s30 }
  0xa3   : > { %4369 = dma.hbm_to_vmem [thread:$0]  (!%p6633_p2), %s6563_s8, 2048, %s353_s1, [#allocation13], %s5326_s22, %s5326_s22, %s5327_s21  }
  0xa4   : > { %s380_s7 = sshll.u32 %s373_s5, 4  ;;  %s6635_s20 = sand.u32 1, %s5298_s18   ;;  %s5652_s7 = int_to_ptr.vmem [resolvable:$true] %s380_s7 }
  0xa5   : > { %s5662_s1 = scalar_lea.sflag [#allocation4], %s6635_s20 }
  0xa7   : > { %s5649_s4 = scalar_lea.hbm %s6634_s0, %s5551_s30  ;;  %s5095_s16 = scalar_lea.hbm %s6634_s0, 4096 }
  0xa8   : > { %s5090_s22 = scalar_lea.hbm %s5649_s4, 2048  ;;  %p5096_p4 = scmp.lt.u32.totalorder %s5649_s4, %s6634_s0 }
  0xa9   : > { %p5091_p12 = scmp.ne.s32.totalorder %s5649_s4, %s5090_s22  ;;  %p5097_p6 = scmp.lt.u32.totalorder %s5095_s16, %s5090_s22 }
  0xaa   : > { %p5099_p0 = scmp.lt.u32.totalorder %s5090_s22, %s5649_s4 }
  0xab   : > { %p5093_p7 = pnand %p5091_p12, %p5600_p9  ;;  %p5098_p10 = por %p5097_p6, %p5096_p4 }
  0xad   : > { %p5094_p13 = pneg %p5093_p7  ;;  %p5100_p5 = por %p5099_p0, %p5098_p10 }
  0xaf   : > { %p5101_p8 = pnand %p5100_p5, %p5094_p13 }
  0xb1   : > { %5104 = shalt.err (!%p5101_p8)
}
  0xb2   : > { %s5105_s27 = scalar_lea.vmem %s5652_s7, 2048  ;;  %s5328_s9 = smov [#allocation3]  }
  0xb3   : > { %p5106_p11 = scmp.ne.s32.totalorder %s5652_s7, %s5105_s27  ;;  %s5110_s20 = sshll.u32 %s5328_s9, 4  ;;  %s5111_s20 = int_to_ptr.vmem [resolvable:$false] %s5110_s20 }
  0xb4   : > { %s5112_s21 = scalar_lea.vmem %s5111_s20, 4096  ;;  %p5113_p2 = scmp.lt.s32.totalorder %s5652_s7, %s5111_s20 }
  0xb5   : > { %p5108_p1 = pnand %p5106_p11, %p5600_p9  ;;  %p5114_p12 = scmp.lt.s32.totalorder %s5112_s21, %s5105_s27 }
  0xb7   : > { %p5109_p3 = pneg %p5108_p1  ;;  %p5115_p7 = por %p5114_p12, %p5113_p2 }
  0xb9   : > { %p5116_p4 = pnand %p5115_p7, %p5109_p3 }
  0xbb   : > { %5119 = shalt.err (!%p5116_p4)
}
  0xbc   : > { %p6636_p13 = scmp.ne.s32.totalorder %s6622_s26, 0  ;;  %s415_s22 = scalar_lea.vmem [#allocation8], %s5560_s13 }
  0xbd   : > { %s422_s10 = sshll.u32 %s415_s22, 4  ;;  %s5696_s5 = scalar_lea.hbm %s6558_s3, %s5551_s30  ;;  %s5690_s10 = int_to_ptr.vmem [resolvable:$true] %s422_s10 }
  0xbe   : > { %4373 = dma.hbm_to_vmem [thread:$0]  (!%p6636_p13), %s5649_s4, 2048, %s5652_s7, %s5662_s1, %s6631_s6, %s6631_s6, %s6630_s24  }
  0xbf   : > { %s5120_s27 = scalar_lea.hbm %s5658_s25, 2048  ;;  %s5125_s21 = scalar_lea.hbm %s6557_s2, 4096 }
  0xc0   : > { %p5121_p6 = scmp.ne.s32.totalorder %s5658_s25, %s5120_s27  ;;  %p5126_p5 = scmp.lt.u32.totalorder %s5658_s25, %s6557_s2 }
  0xc1   : > { %p5127_p8 = scmp.lt.u32.totalorder %s5125_s21, %s5120_s27  ;;  %p5129_p1 = scmp.lt.u32.totalorder %s5120_s27, %s5658_s25 }
  0xc2   : > { %p5123_p10 = pnand %p5121_p6, %p5600_p9 }
  0xc3   : > { %p5128_p11 = por %p5127_p8, %p5126_p5 }
  0xc4   : > { %p5124_p0 = pneg %p5123_p10 }
  0xc5   : > { %p5130_p3 = por %p5129_p1, %p5128_p11 }
  0xc7   : > { %p5131_p2 = pnand %p5130_p3, %p5124_p0 }
  0xc9   : > { %5134 = shalt.err (!%p5131_p2)
}
  0xca   : > { %s5135_s30 = scalar_lea.vmem %s5690_s10, 2048  ;;  %s5329_s7 = smov [#allocation8]  }
  0xcb   : > { %p5136_p12 = scmp.ne.s32.totalorder %s5690_s10, %s5135_s30  ;;  %s5140_s1 = sshll.u32 %s5329_s7, 4  ;;  %s5141_s1 = int_to_ptr.vmem [resolvable:$false] %s5140_s1 }
  0xcc   : > { %s5142_s0 = scalar_lea.vmem %s5141_s1, 4096  ;;  %p5143_p6 = scmp.lt.s32.totalorder %s5690_s10, %s5141_s1 }
  0xcd   : > { %p5138_p7 = pnand %p5136_p12, %p5600_p9  ;;  %p5144_p10 = scmp.lt.s32.totalorder %s5142_s0, %s5135_s30 }
  0xcf   : > { %p5139_p4 = pneg %p5138_p7  ;;  %p5145_p5 = por %p5144_p10, %p5143_p6 }
  0xd1   : > { %p5146_p8 = pnand %p5145_p5, %p5139_p4 }
  0xd3   : > { %5149 = shalt.err (!%p5146_p8)
}
  0xd4   : > { %4379 = dma.hbm_to_vmem [thread:$0]  (!%p6636_p13), %s5658_s25, 2048, %s5690_s10, %s5594_s14, %s6631_s6, %s6631_s6, %s6630_s24  }
  0xd5   : > { %s436_s22 = scalar_lea.vmem [#allocation9], %s5560_s13  ;;  %s6637_s28 = sand.u32 1, %s5318_s23  }
  0xd6   : > { %s443_s16 = sshll.u32 %s436_s22, 4  ;;  %s5728_s27 = scalar_lea.sflag [#allocation10], %s6637_s28  ;;  %s5724_s16 = int_to_ptr.vmem [resolvable:$true] %s443_s16 }
  0xd7   : > { %s5150_s9 = scalar_lea.hbm %s5696_s5, 2048  ;;  %s5155_s4 = scalar_lea.hbm %s6558_s3, 4096 }
  0xd8   : > { %p5151_p0 = scmp.ne.s32.totalorder %s5696_s5, %s5150_s9  ;;  %p5156_p3 = scmp.lt.u32.totalorder %s5696_s5, %s6558_s3 }
  0xd9   : > { %p5157_p2 = scmp.lt.u32.totalorder %s5155_s4, %s5150_s9  ;;  %p5159_p7 = scmp.lt.u32.totalorder %s5150_s9, %s5696_s5 }
  0xda   : > { %p5153_p11 = pnand %p5151_p0, %p5600_p9 }
  0xdb   : > { %p5158_p12 = por %p5157_p2, %p5156_p3 }
  0xdc   : > { %p5154_p1 = pneg %p5153_p11 }
  0xdd   : > { %p5160_p4 = por %p5159_p7, %p5158_p12 }
  0xdf   : > { %p5161_p6 = pnand %p5160_p4, %p5154_p1 }
  0xe1   : > { %5164 = shalt.err (!%p5161_p6)
}
  0xe2   : > { %s5165_s13 = scalar_lea.vmem %s5724_s16, 2048  ;;  %s5330_s14 = smov [#allocation9]  }
  0xe3   : > { %p5166_p10 = scmp.ne.s32.totalorder %s5724_s16, %s5165_s13  ;;  %s5170_s25 = sshll.u32 %s5330_s14, 4  ;;  %s5171_s25 = int_to_ptr.vmem [resolvable:$false] %s5170_s25 }
  0xe4   : > { %s5172_s10 = scalar_lea.vmem %s5171_s25, 4096  ;;  %p5173_p0 = scmp.lt.s32.totalorder %s5724_s16, %s5171_s25 }
  0xe5   : > { %p5168_p5 = pnand %p5166_p10, %p5600_p9  ;;  %p5174_p11 = scmp.lt.s32.totalorder %s5172_s10, %s5165_s13 }
  0xe7   : > { %p5169_p8 = pneg %p5168_p5  ;;  %p5175_p3 = por %p5174_p11, %p5173_p0 }
  0xe9   : > { %p5176_p2 = pnand %p5175_p3, %p5169_p8 }
  0xeb   : > { %5179 = shalt.err (!%p5176_p2)
}
  0xec   : > { %4382 = dma.hbm_to_vmem [thread:$0]  (!%p6636_p13), %s5696_s5, 2048, %s5724_s16, %s5728_s27, %s6631_s6, %s6631_s6, %s6630_s24  }
  0xed   : > { %p6638_p9 = scmp.ne.s32.totalorder %s6615_s12, 0 }
  0xee   : > { %s457_s11 = sand.u32 (!%p6638_p9), 1, %s5294_s17   ;;  %p6639_p1 = scmp.ne.s32.totalorder (!%p6638_p9), %s6610_s29, 0 }
  0xef   : > { %455 = sbr.rel (%p6638_p9) target bundleno = 1657 (0x679), region = 60  ;;  %s5758_s1 = sshll.u32 (!%p6638_p9), %s457_s11, 7 }
  0xf0   : > { %s458_s0 = scalar_lea.sflag (!%p6638_p9), [#allocation4], %s457_s11  ;;  %s461_s22 = scalar_lea.vmem (!%p6638_p9), [#allocation3], %s5758_s1 }
  0xf6   : > { %5253 = dma.done.wait (%p6639_p1), %s458_s0, 2048  }
  0xf7   : > { %5255 = vsyncadd (%p6639_p1), %s458_s0, 4294965248  ;;  %s6640_s26 = sld [smem:[#allocation28_spill]]  ;;  %s470_s12 = scalar_lea.vmem [#allocation6], %s5758_s1 }
  0xfd   : > { %s466_s24 = sand.u32 1, %s6640_s26  }
  0xfe   : > { %s467_s6 = scalar_lea.sflag [#allocation7], %s466_s24 }
  0xff   : > { %5257 = dma.done.wait (%p6639_p1), %s467_s6, 4096  }
 0x100   : > { %5259 = vsyncadd (%p6639_p1), %s467_s6, 4294963200  ;;  %s479_s5 = scalar_lea.vmem [#allocation8], %s5758_s1  ;;  %s485_s16 = scalar_lea.sflag [#allocation10], %s466_s24 }
 0x101   : > { %s488_s28 = scalar_lea.vmem [#allocation9], %s5758_s1 }
 0x102   : > { %5261 = dma.done.wait (%p6639_p1), %s485_s16, 2048  }
 0x103   : > { %5263 = vsyncadd (%p6639_p1), %s485_s16, 4294965248  ;;  %p6641_p13 = scmp.eq.s32.totalorder %s6640_s26, 0 }
 0x105   : > { %5265 = dma.done.wait (%p6641_p13), [#allocation10], 24576   ;;  %p6642_p12 = pmov %p6641_p13 }
 0x107   : > { %5267 = vsyncadd (%p6642_p12), [#allocation10], 4294942720  ;;  %p6643_p7 = pmov %p6642_p12 }
 0x109   : > { %5269 = dma.done.wait (%p6643_p7), [#allocation13], 6144   ;;  %p6644_p4 = pmov %p6643_p7 }
 0x10a   : > { %s6645_s27 = sld [smem:[#allocation23_spill]]  ;;  %s6646_s9 = sld [smem:[#allocation24_spill]]  ;;  %v623_v0 = vlaneseq  ;;  %v5331_v1 = vmov 0.0  }
 0x10b   : > { %5271 = vsyncadd (%p6644_p4), [#allocation13], 4294961152 }
 0x10c   : > { %vm625_vm0 = vcmp.lt.s32.totalorder %v623_v0, 512 }
 0x10d   : > { %628 = vst.msk [vmem:[#allocation2 + $0x7] ss:$8 sm:$0xf] %vm625_vm0, %v5331_v1  ;;  %631 = vst.msk [vmem:[#allocation2 + $0x120] ss:$8 sm:$0xf] %vm625_vm0, %v5331_v1 }
 0x110   : > { %s549_s20 = sand.u32 1, %s6645_s27   ;;  %s5791_s21 = sshll.u32 %s6646_s9, 6 }
 0x111   : > { %s5788_s29 = sshll.u32 %s549_s20, 6  ;;  %s5797_s4 = scalar_lea.vmem %s461_s22, %s5791_s21 [#allocation3] }
 0x112   : > { %s5802_s30 = scalar_lea.vmem %s470_s12, %s5791_s21 [#allocation6]  ;;  %v556_v2 = vld [vmem:[%s5797_s4] sm:$0xff]  ;;  %v557_v3 = vld [vmem:[%s5797_s4 + $0x8] sm:$0xff]  ;;  %v558_v4 = vld [vmem:[%s5797_s4 + $0x10] sm:$0xff]  ;;  %s5816_s7 = scalar_lea.vmem %s479_s5, %s5791_s21 [#allocation8] }
 0x113   : > { %564 = vst [vmem:[#allocation2 + $0x20] sm:$0xff] %v556_v2  ;;  %565 = vst [vmem:[#allocation2 + $0x40] sm:$0xff] %v557_v3  ;;  %v559_v5 = vld [vmem:[%s5797_s4 + $0x18] sm:$0xff]  ;;  %v560_v6 = vld [vmem:[%s5797_s4 + $0x20] sm:$0xff]  ;;  %s5830_s13 = scalar_lea.vmem %s488_s28, %s5791_s21 [#allocation9]  ;;  %s5847_s14 = scalar_lea.vmem [#allocation15], %s5788_s29 }
 0x114   : > { %566 = vst [vmem:[#allocation2 + $0x60] sm:$0xff] %v558_v4  ;;  %v561_v7 = vld [vmem:[%s5797_s4 + $0x28] sm:$0xff]  ;;  %567 = vst [vmem:[#allocation2 + $0x80] sm:$0xff] %v559_v5  ;;  %v562_v8 = vld [vmem:[%s5797_s4 + $0x30] sm:$0xff]  ;;  %p3956_p6 = scmp.le.s32.totalorder %s6646_s9, 0 }
 0x115   : > { %568 = vst [vmem:[#allocation2 + $0xa0] sm:$0xff] %v560_v6  ;;  %569 = vst [vmem:[#allocation2 + $0xc0] sm:$0xff] %v561_v7  ;;  %v563_v9 = vld [vmem:[%s5797_s4 + $0x38] sm:$0xff]  ;;  %v573_v10 = vld [vmem:[%s5802_s30] sm:$0xff]  ;;  %s3957_s25 = sadd.s32 (!%p3956_p6), 4294967295, %s5791_s21 }
 0x116   : > { %570 = vst [vmem:[#allocation2 + $0xe0] sm:$0xff] %v562_v8  ;;  %571 = vst [vmem:[#allocation2 + $0x100] sm:$0xff] %v563_v9  ;;  %v574_v11 = vld [vmem:[%s5802_s30 + $0x8] sm:$0xff]  ;;  %v575_v12 = vld [vmem:[%s5802_s30 + $0x10] sm:$0xff]  ;;  %s638_s10 = scalar_lea.vmem (!%p3956_p6), %s461_s22, %s3957_s25 [#allocation3]  ;;  %s641_s11 = scalar_lea.vmem (!%p3956_p6), %s470_s12, %s3957_s25 [#allocation6] }
 0x117   : > { %581 = vst [vmem:[#allocation2 + $0x28] sm:$0xff] %v573_v10  ;;  %v576_v13 = vld [vmem:[%s5802_s30 + $0x18] sm:$0xff]  ;;  %582 = vst [vmem:[#allocation2 + $0x48] sm:$0xff] %v574_v11  ;;  %v577_v14 = vld [vmem:[%s5802_s30 + $0x20] sm:$0xff]  ;;  %s644_s0 = scalar_lea.vmem (!%p3956_p6), %s479_s5, %s3957_s25 [#allocation8]  ;;  %s647_s26 = scalar_lea.vmem (!%p3956_p6), %s488_s28, %s3957_s25 [#allocation9] }
 0x118   : > { %583 = vst [vmem:[#allocation2 + $0x68] sm:$0xff] %v575_v12  ;;  %584 = vst [vmem:[#allocation2 + $0x88] sm:$0xff] %v576_v13  ;;  %v578_v15 = vld [vmem:[%s5802_s30 + $0x28] sm:$0xff]  ;;  %v579_v16 = vld [vmem:[%s5802_s30 + $0x30] sm:$0xff] }
 0x119   : > { %585 = vst [vmem:[#allocation2 + $0xa8] sm:$0xff] %v577_v14  ;;  %586 = vst [vmem:[#allocation2 + $0xc8] sm:$0xff] %v578_v15  ;;  %v580_v17 = vld [vmem:[%s5802_s30 + $0x38] sm:$0xff]  ;;  %v590_v18 = vld [vmem:[%s5816_s7] sm:$0xff] }
 0x11a   : > { %587 = vst [vmem:[#allocation2 + $0xe8] sm:$0xff] %v579_v16  ;;  %v591_v19 = vld [vmem:[%s5816_s7 + $0x8] sm:$0xff]  ;;  %588 = vst [vmem:[#allocation2 + $0x108] sm:$0xff] %v580_v17  ;;  %v592_v20 = vld [vmem:[%s5816_s7 + $0x10] sm:$0xff] }
 0x11b   : > { %598 = vst [vmem:[#allocation2 + $0x30] sm:$0xff] %v590_v18  ;;  %599 = vst [vmem:[#allocation2 + $0x50] sm:$0xff] %v591_v19  ;;  %v593_v21 = vld [vmem:[%s5816_s7 + $0x18] sm:$0xff]  ;;  %v594_v22 = vld [vmem:[%s5816_s7 + $0x20] sm:$0xff] }
 0x11c   : > { %600 = vst [vmem:[#allocation2 + $0x70] sm:$0xff] %v592_v20  ;;  %601 = vst [vmem:[#allocation2 + $0x90] sm:$0xff] %v593_v21  ;;  %v595_v23 = vld [vmem:[%s5816_s7 + $0x28] sm:$0xff]  ;;  %v596_v24 = vld [vmem:[%s5816_s7 + $0x30] sm:$0xff]  ;;  %636 = sbr.rel (%p3956_p6) target bundleno = 294 (0x126), region = 92 }
 0x11d   : > { %602 = vst [vmem:[#allocation2 + $0xb0] sm:$0xff] %v594_v22  ;;  %v597_v25 = vld [vmem:[%s5816_s7 + $0x38] sm:$0xff]  ;;  %603 = vst [vmem:[#allocation2 + $0xd0] sm:$0xff] %v595_v23  ;;  %v607_v26 = vld [vmem:[%s5830_s13] sm:$0xff] }
 0x11e   : > { %604 = vst [vmem:[#allocation2 + $0xf0] sm:$0xff] %v596_v24  ;;  %605 = vst [vmem:[#allocation2 + $0x110] sm:$0xff] %v597_v25  ;;  %v608_v27 = vld [vmem:[%s5830_s13 + $0x8] sm:$0xff]  ;;  %v609_v28 = vld [vmem:[%s5830_s13 + $0x10] sm:$0xff] }
 0x11f   : > { %615 = vst [vmem:[#allocation2 + $0x38] sm:$0xff] %v607_v26  ;;  %616 = vst [vmem:[#allocation2 + $0x58] sm:$0xff] %v608_v27  ;;  %v610_v29 = vld [vmem:[%s5830_s13 + $0x18] sm:$0xff]  ;;  %v611_v30 = vld [vmem:[%s5830_s13 + $0x20] sm:$0xff] }
 0x120   : > { %617 = vst [vmem:[#allocation2 + $0x78] sm:$0xff] %v609_v28  ;;  %v612_v31 = vld [vmem:[%s5830_s13 + $0x28] sm:$0xff]  ;;  %618 = vst [vmem:[#allocation2 + $0x98] sm:$0xff] %v610_v29  ;;  %v613_v32 = vld [vmem:[%s5830_s13 + $0x30] sm:$0xff] }
 0x121   : > { %619 = vst [vmem:[#allocation2 + $0xb8] sm:$0xff] %v611_v30  ;;  %620 = vst [vmem:[#allocation2 + $0xd8] sm:$0xff] %v612_v31  ;;  %v614_v33 = vld [vmem:[%s5830_s13 + $0x38] sm:$0xff]  ;;  %v639_v34 = vld [vmem:[%s638_s10] sm:$0x1] (!%p3956_p6) }
 0x122   : > { %621 = vst [vmem:[#allocation2 + $0xf8] sm:$0xff] %v613_v32  ;;  %622 = vst [vmem:[#allocation2 + $0x118] sm:$0xff] %v614_v33  ;;  %v642_v35 = vld [vmem:[%s641_s11] sm:$0x1] (!%p3956_p6) }
 0x123   : > { %640 = vst [vmem:[#allocation2 + $0x7] sm:$0x1] %v639_v34  ;;  %643 = vst [vmem:[#allocation2 + $0xf] sm:$0x1] %v642_v35  ;;  %v645_v36 = vld [vmem:[%s644_s0] sm:$0x1] }
 0x124   : > { %v648_v37 = vld [vmem:[%s647_s26] sm:$0x1]  ;;  %646 = vst [vmem:[#allocation2 + $0x17] sm:$0x1] %v645_v36 }
 0x125   : > { %649 = vst [vmem:[#allocation2 + $0x1f] sm:$0x1] %v648_v37 }
 0x126 PF: > { %s6647_s24 = sld [smem:[#allocation24_spill]] }
 0x12c   : > { %p3958_p10 = scmp.ge.s32.totalorder %s6647_s24, 1 }
 0x12d   : > { %v3960_v38 = vld [vmem:[%s5797_s4 + $0x40] sm:$0x1] (!%p3958_p10) }
 0x12e   : > { %653 = sbr.rel (%p3958_p10) target bundleno = 309 (0x135), region = 96  ;;  %v3962_v39 = vld [vmem:[%s5802_s30 + $0x40] sm:$0x1] (!%p3958_p10)  ;;  %657 = vst [vmem:[#allocation2 + $0x120] sm:$0x1] (!%p3958_p10), %v3960_v38 }
 0x12f   : > { %v3964_v40 = vld [vmem:[%s5816_s7 + $0x40] sm:$0x1] (!%p3958_p10)  ;;  %660 = vst [vmem:[#allocation2 + $0x128] sm:$0x1] (!%p3958_p10), %v3962_v39 }
 0x130   : > { %663 = vst [vmem:[#allocation2 + $0x130] sm:$0x1] (!%p3958_p10), %v3964_v40  ;;  %v3966_v41 = vld [vmem:[%s5830_s13 + $0x40] sm:$0x1] (!%p3958_p10) }
 0x131   : > { %666 = vst [vmem:[#allocation2 + $0x138] sm:$0x1] (!%p3958_p10), %v3966_v41 }
 0x135 PF: > { %v4493_v42 = vld [vmem:[#allocation11 + $0x4] ss:$8 sps:$4 sm:$0xff]   ;;  %v4495_v43 = vld [vmem:[#allocation11] ss:$8 sps:$4 sm:$0xff]   ;;  %v4496_v44 = vld [vmem:[#allocation11 + $0x14] ss:$8 sps:$4 sm:$0xff]  }
 0x136   : > { %1907 = vmatprep.subr.bf16.mxu0 %v4493_v42  ;;  %v4498_v45 = vld [vmem:[#allocation11 + $0x10] ss:$8 sps:$4 sm:$0xff]   ;;  %v4499_v46 = vld [vmem:[#allocation11 + $0x24] ss:$8 sps:$4 sm:$0xff]   ;;  %v4501_v47 = vld [vmem:[#allocation11 + $0x20] ss:$8 sps:$4 sm:$0xff]  }
 0x137   : > { %1908 = vmatpush1.bf16.msra.mxu0 %v4495_v43  ;;  %v4502_v48 = vld [vmem:[#allocation11 + $0x34] ss:$8 sps:$4 sm:$0xff]   ;;  %v4504_v49 = vld [vmem:[#allocation11 + $0x30] ss:$8 sps:$4 sm:$0xff]   ;;  %v4505_v50 = vld [vmem:[#allocation11 + $0x44] ss:$8 sps:$4 sm:$0xff]  }
 0x138   : > { %1909 = vmatprep.subr.bf16.mxu0 %v4496_v44  ;;  %v4507_v51 = vld [vmem:[#allocation11 + $0x40] ss:$8 sps:$4 sm:$0xff]   ;;  %v4508_v52 = vld [vmem:[#allocation11 + $0x54] ss:$8 sps:$4 sm:$0xff]   ;;  %v4510_v53 = vld [vmem:[#allocation11 + $0x50] ss:$8 sps:$4 sm:$0xff]  }
 0x139   : > { %v4511_v54 = vld [vmem:[#allocation11 + $0x64] ss:$8 sps:$4 sm:$0xff]   ;;  %v4513_v55 = vld [vmem:[#allocation11 + $0x60] ss:$8 sps:$4 sm:$0xff]   ;;  %v4514_v62 = vld [vmem:[#allocation11 + $0x74] ss:$8 sps:$4 sm:$0xff]  }
 0x13a   : > { %v4541_v56 = vld [vmem:[#allocation11 + $0x204] ss:$8 sps:$4 sm:$0xff]   ;;  %v4543_v57 = vld [vmem:[#allocation11 + $0x200] ss:$8 sps:$4 sm:$0xff]   ;;  %v4516_v3 = vld [vmem:[#allocation11 + $0x70] ss:$8 sps:$4 sm:$0xff]  }
 0x13b   : > { %1910 = vmatpush1.bf16.msra.mxu0 %v4498_v45  ;;  %v668_v58 = vld [vmem:[#allocation2 + $0x8] sm:$0x80]  ;;  %1248 = vmatprep.subr.bf16.mxu1 %v4541_v56  ;;  %v4547_v9 = vld [vmem:[#allocation11 + $0x214] ss:$8 sps:$4 sm:$0xff]   ;;  %v4549_v14 = vld [vmem:[#allocation11 + $0x210] ss:$8 sps:$4 sm:$0xff]  }
 0x13c   : > { %1911 = vmatprep.subr.bf16.mxu0 %v4499_v46  ;;  %v672_v59 = vld [vmem:[#allocation2 + $0x28] sm:$0xff]  ;;  %1249 = vmatpush1.bf16.msra.mxu1 %v4543_v57  ;;  %vm1394_vm1 = vsmask.f32 4352  ;;  %v4520_v18 = vld [vmem:[#allocation11 + $0x94] ss:$8 sps:$4 sm:$0xff]   ;;  %v5871_v33 = vld [vmem:[#allocation2 + $0x20] sm:$0xff] }
 0x13d   : > { %v676_v60 = vld [vmem:[#allocation2 + $0x48] sm:$0xff]  ;;  %v704_v63 = vpack.c.bf16 %v672_v59, %v668_v58  ;;  %1250 = vmatprep.subr.bf16.mxu1 %v4547_v9  ;;  %v4522_v22 = vld [vmem:[#allocation11 + $0x90] ss:$8 sps:$4 sm:$0xff]   ;;  %v4559_v23 = vld [vmem:[#allocation11 + $0x234] ss:$8 sps:$4 sm:$0xff]   ;;  %s6648_s6 = sld [smem:[#allocation37_spill]] }
 0x13e   : > { %v5864_v61 = vld [vmem:[#allocation2 + $0x68] sm:$0xff]  ;;  %v728_v2 = vpack.c.bf16 %v676_v60, %v672_v59  ;;  %v4561_v24 = vld [vmem:[#allocation11 + $0x230] ss:$8 sps:$4 sm:$0xff]   ;;  %v4526_v28 = vld [vmem:[#allocation11 + $0xb4] ss:$8 sps:$4 sm:$0xff]   ;;  %s6649_s16 = sld [smem:[#allocation39_spill]] }
 0x13f   : > { %1912 = vmatpush1.bf16.msra.mxu0 %v4501_v47  ;;  %v708_v1 = vpack.c.bf16 %v5864_v61, %v676_v60  ;;  %v4517_v4 = vld [vmem:[#allocation11 + $0x84] ss:$8 sps:$4 sm:$0xff]   ;;  %v1413_v5 = vshrl.u32 %v704_v63, 16  ;;  %v1416_v6 = vshll.u32 %v704_v63, 16  ;;  %v4519_v15 = vld [vmem:[#allocation11 + $0x80] ss:$8 sps:$4 sm:$0xff]  }
 0x140   : > { %1913 = vmatprep.subr.bf16.mxu0 %v4502_v48  ;;  %1280 = vmatprep.mubr.bf16.mxu1 %v728_v2  ;;  %v4553_v20 = vld [vmem:[#allocation11 + $0x224] ss:$8 sps:$4 sm:$0xff]   ;;  %v4555_v21 = vld [vmem:[#allocation11 + $0x220] ss:$8 sps:$4 sm:$0xff]   ;;  %v4571_v30 = vld [vmem:[#allocation11 + $0x254] ss:$8 sps:$4 sm:$0xff]  }
 0x141   : > { %v1421_v7 = vshrl.u32 %v708_v1, 16  ;;  %v1424_v8 = vshll.u32 %v708_v1, 16  ;;  %v1415_v10 = vrot.slane %v1413_v5, 3  ;;  %v1418_v11 = vrot.slane %v1416_v6, 4  ;;  %1251 = vmatpush1.bf16.msra.mxu1 %v4549_v14  ;;  %v4523_v25 = vld [vmem:[#allocation11 + $0xa4] ss:$8 sps:$4 sm:$0xff]  }
 0x142   : > { %1252 = vmatprep.subr.bf16.mxu1 %v4553_v20  ;;  %v4565_v26 = vld [vmem:[#allocation11 + $0x244] ss:$8 sps:$4 sm:$0xff]   ;;  %v4525_v27 = vld [vmem:[#allocation11 + $0xa0] ss:$8 sps:$4 sm:$0xff]   ;;  %v4528_v31 = vld [vmem:[#allocation11 + $0xb0] ss:$8 sps:$4 sm:$0xff]  }
 0x143   : > { %1914 = vmatpush1.bf16.msra.mxu0 %v4504_v49  ;;  %v1423_v12 = vrot.slane %v1421_v7, 3  ;;  %v1426_v13 = vrot.slane %v1424_v8, 4  ;;  %v1419_v16 = vor.u32 %v1418_v11, %v1415_v10  ;;  %v4567_v29 = vld [vmem:[#allocation11 + $0x240] ss:$8 sps:$4 sm:$0xff]   ;;  %v667_v32 = vld [vmem:[#allocation2] sm:$0x80] }
 0x144   : > { %1915 = vmatprep.subr.bf16.mxu0 %v4505_v50  ;;  %v4529_v34 = vld [vmem:[#allocation11 + $0xc4] ss:$8 sps:$4 sm:$0xff]   ;;  %v4573_v37 = vld [vmem:[#allocation11 + $0x250] ss:$8 sps:$4 sm:$0xff]   ;;  %v703_v39 = vpack.c.bf16 %v5871_v33, %v667_v32  ;;  %v4531_v40 = vld [vmem:[#allocation11 + $0xc0] ss:$8 sps:$4 sm:$0xff]  }
 0x145   : > { %v5867_v17 = vor.u32 %v1426_v13, %v1423_v12  ;;  %1253 = vmatpush1.bf16.msra.mxu1 %v4555_v21  ;;  %v5873_v35 = vld [vmem:[#allocation2 + $0x40] sm:$0xff]  ;;  %v4532_v41 = vld [vmem:[#allocation11 + $0xd4] ss:$8 sps:$4 sm:$0xff]   ;;  %v4534_v45 = vld [vmem:[#allocation11 + $0xd0] ss:$8 sps:$4 sm:$0xff]   ;;  %s6666_s9 = sld [smem:[#allocation40_spill]] }
 0x146   : > { %1254 = vmatprep.subr.bf16.mxu1 %v4559_v23  ;;  %v5875_v36 = vld [vmem:[#allocation2 + $0x60] sm:$0xff]  ;;  %v4583_v44 = vld [vmem:[#allocation11 + $0x274] ss:$8 sps:$4 sm:$0xff]   ;;  %v1396_v46 = vshrl.u32 %v703_v39, 16  ;;  %v1399_v48 = vshll.u32 %v703_v39, 16  ;;  %v5882_v60 = vld [vmem:[#allocation2 + $0xa8] sm:$0xff] }
 0x147   : > { %1916 = vmatpush1.bf16.msra.mxu0 %v4507_v51  ;;  %v1428_v19 = vsel %vm1394_vm1, %v1419_v16, %v5867_v17  ;;  %v4577_v38 = vld [vmem:[#allocation11 + $0x264] ss:$8 sps:$4 sm:$0xff]   ;;  %v707_v42 = vpack.c.bf16 %v5875_v36, %v5873_v35  ;;  %v4579_v43 = vld [vmem:[#allocation11 + $0x260] ss:$8 sps:$4 sm:$0xff]   ;;  %v4585_v51 = vld [vmem:[#allocation11 + $0x270] ss:$8 sps:$4 sm:$0xff]  }
 0x148   : > { %1917 = vmatprep.subr.bf16.mxu0 %v4508_v52  ;;  %1939 = vmatprep.mubr.bf16.mxu0 %v1428_v19  ;;  %v4535_v47 = vld [vmem:[#allocation11 + $0xe4] ss:$8 sps:$4 sm:$0xff]   ;;  %v4538_v56 = vld [vmem:[#allocation11 + $0xf4] ss:$8 sps:$4 sm:$0xff]   ;;  %v1401_v57 = vrot.slane %v1399_v48, 4  ;;  %s6667_s29 = sld [smem:[#allocation24_spill]] }
 0x149   : > { %1255 = vmatpush1.bf16.msra.mxu1 %v4561_v24  ;;  %v1404_v49 = vshrl.u32 %v707_v42, 16  ;;  %v1407_v50 = vshll.u32 %v707_v42, 16  ;;  %v4589_v52 = vld [vmem:[#allocation11 + $0x284] ss:$8 sps:$4 sm:$0xff]   ;;  %v4595_v63 = vld [vmem:[#allocation11 + $0x294] ss:$8 sps:$4 sm:$0xff]  }
 0x14a   : > { %1256 = vmatprep.subr.bf16.mxu1 %v4565_v26  ;;  %v5886_v2 = vld [vmem:[#allocation2 + $0x80] sm:$0xff]  ;;  %v4597_v11 = vld [vmem:[#allocation11 + $0x290] ss:$8 sps:$4 sm:$0xff]   ;;  %v5892_v19 = vld [vmem:[#allocation2 + $0xc8] sm:$0xff]  ;;  %vm2118_vm2 = vsmask.f32 7424 }
 0x14b   : > { %1918 = vmatpush1.bf16.msra.mxu0 %v4510_v53  ;;  %v4537_v53 = vld [vmem:[#allocation11 + $0xe0] ss:$8 sps:$4 sm:$0xff]   ;;  %v1406_v58 = vrot.slane %v1404_v49, 3  ;;  %v1409_v59 = vrot.slane %v1407_v50, 4  ;;  %v4546_v8 = vld [vmem:[#allocation11 + $0x104] ss:$8 sps:$4 sm:$0xff]  }
 0x14c   : > { %1919 = vmatprep.subr.bf16.mxu0 %v4511_v54  ;;  %v1398_v54 = vrot.slane %v1396_v46, 3  ;;  %v4601_v16 = vld [vmem:[#allocation11 + $0x2a4] ss:$8 sps:$4 sm:$0xff]   ;;  %v4544_v21 = vld [vmem:[#allocation11 + $0x100] ss:$8 sps:$4 sm:$0xff]   ;;  %s6668_s21 = sld [smem:[#allocation25_spill]] }
 0x14d   : > { %1257 = vmatpush1.bf16.msra.mxu1 %v4567_v29  ;;  %v1410_v10 = vor.u32 %v1409_v59, %v1406_v58  ;;  %v5894_v20 = vld [vmem:[#allocation2 + $0xe8] sm:$0xff]  ;;  %v4552_v29 = vld [vmem:[#allocation11 + $0x114] ss:$8 sps:$4 sm:$0xff]   ;;  %s6670_s25 = sld [smem:[#allocation29_spill]]  ;;  %s3722_s11 = sshll.u32 %s5847_s14, 4  ;;  %s6487_s11 = int_to_ptr.vmem [resolvable:$true] %s3722_s11 }
 0x14e   : > { %1258 = vmatprep.subr.bf16.mxu1 %v4571_v30  ;;  %v1402_v9 = vor.u32 %v1401_v57, %v1398_v54  ;;  %v4603_v24 = vld [vmem:[#allocation11 + $0x2a0] ss:$8 sps:$4 sm:$0xff]   ;;  %v4613_v46 = vld [vmem:[#allocation11 + $0x2c4] ss:$8 sps:$4 sm:$0xff]   ;;  %v4564_v57 = vld [vmem:[#allocation11 + $0x134] ss:$8 sps:$4 sm:$0xff]  }
 0x14f   : > { %1920 = vmatpush1.bf16.msra.mxu0 %v4513_v55  ;;  %v5880_v55 = vld [vmem:[#allocation2 + $0x88] sm:$0xff]  ;;  %s4209_s4 = sshll.u32 %s6667_s29, 3  ;;  %s6671_s24 = sld [smem:[#allocation41_spill]] }
 0x150   : > { %1921 = vmatprep.subr.bf16.mxu0 %v4514_v62  ;;  %v4591_v62 = vld [vmem:[#allocation11 + $0x280] ss:$8 sps:$4 sm:$0xff]   ;;  %v712_v1 = vpack.c.bf16 %v5882_v60, %v5880_v55  ;;  %v1411_v23 = vsel %vm1394_vm1, %v1402_v9, %v1410_v10  ;;  %s6494_s22 = scalar_lea.sflag [#allocation5], %s549_s20  ;;  %s5332_s12 = smov [#allocation15]  }
 0x151   : > { %1259 = vmatpush1.bf16.msra.mxu1 %v4573_v37  ;;  %v4607_v37 = vld [vmem:[#allocation11 + $0x2b4] ss:$8 sps:$4 sm:$0xff]   ;;  %v700_v48 = vld [vmem:[#allocation2 + $0x108] sm:$0x7f]  ;;  %s5184_s5 = sshll.u32 %s5332_s12, 4  ;;  %s5185_s5 = int_to_ptr.vmem [resolvable:$false] %s5184_s5 }
 0x152   : > { %1260 = vmatprep.subr.bf16.mxu1 %v4577_v38  ;;  %v1473_v5 = vshrl.u32 %v712_v1, 16  ;;  %v1476_v6 = vshll.u32 %v712_v1, 16  ;;  %v4550_v38 = vld [vmem:[#allocation11 + $0x110] ss:$8 sps:$4 sm:$0xff]   ;;  %v4556_v49 = vld [vmem:[#allocation11 + $0x120] ss:$8 sps:$4 sm:$0xff]   ;;  %p5187_p3 = scmp.lt.s32.totalorder %s6487_s11, %s5185_s5 }
 0x153   : > { %1922 = vmatpush1.bf16.msra.mxu0 %v4516_v3  ;;  %v5888_v3 = vld [vmem:[#allocation2 + $0xa0] sm:$0xff]  ;;  %v4619_v1 = vld [vmem:[#allocation11 + $0x2d4] ss:$8 sps:$4 sm:$0xff]   ;;  %s4210_s7 = sshll.u32 %s6668_s21, 4  ;;  %p6672_p8 = scmp.ne.s32.totalorder %s6670_s25, 0 }
 0x154   : > { %1923 = vmatprep.subr.bf16.mxu0 %v4517_v4  ;;  %v4540_v4 = vld [vmem:[#allocation11 + $0xf0] ss:$8 sps:$4 sm:$0xff]   ;;  %v711_v7 = vpack.c.bf16 %v5888_v3, %v5886_v2  ;;  %v1475_v12 = vrot.slane %v1473_v5, 3  ;;  %v1478_v13 = vrot.slane %v1476_v6, 4  ;;  %v4615_v54 = vld [vmem:[#allocation11 + $0x2c0] ss:$8 sps:$4 sm:$0xff]   ;;  %s3719_s13 = sadd.s32 %s4210_s7, %s4209_s4 }
 0x155   : > { %1261 = vmatpush1.bf16.msra.mxu1 %v4579_v43  ;;  %v4570_v5 = vld [vmem:[#allocation11 + $0x144] ss:$8 sps:$4 sm:$0xff]   ;;  %s4211_s10 = sshll.u32 %s3719_s13, 7 }
 0x156   : > { %1262 = vmatprep.subr.bf16.mxu1 %v4583_v44  ;;  %v1464_v14 = vshrl.u32 %v711_v7, 16  ;;  %v4609_v44 = vld [vmem:[#allocation11 + $0x2b0] ss:$8 sps:$4 sm:$0xff]   ;;  %s6485_s1 = scalar_lea.hbm %s6671_s24, %s4211_s10 }
 0x157   : > { %1924 = vmatpush1.bf16.msra.mxu0 %v4519_v15  ;;  %v1467_v15 = vshll.u32 %v711_v7, 16 }
 0x158   : > { %1925 = vmatprep.subr.bf16.mxu0 %v4520_v18  ;;  %v1479_v18 = vor.u32 %v1478_v13, %v1475_v12  ;;  %v670_v12 = vld [vmem:[#allocation2 + $0x18] sm:$0x80] }
 0x159   : > { %1263 = vmatpush1.bf16.msra.mxu1 %v4585_v51  ;;  %v1469_v26 = vrot.slane %v1467_v15, 4  ;;  %v720_v51 = vpack.c.bf16 %v700_v48, %v700_v48  ;;  %v5909_v13 = vld [vmem:[#allocation2 + $0x38] sm:$0xff]  ;;  %v4639_v48 = vld [vmem:[#allocation11 + $0x304] ss:$8 sps:$4 sm:$0xff]  }
 0x15a   : > { %1264 = vmatprep.subr.bf16.mxu1 %v4589_v52  ;;  %v699_v52 = vld [vmem:[#allocation2 + $0x100] sm:$0x7f]  ;;  %v5913_v15 = vld [vmem:[#allocation2 + $0x78] sm:$0xff] }
 0x15b   : > { %1926 = vmatpush1.bf16.msra.mxu0 %v4522_v22  ;;  %v716_v22 = vpack.c.bf16 %v5894_v20, %v5892_v19  ;;  %v1545_v58 = vshrl.u32 %v720_v51, 16  ;;  %v1548_v59 = vshll.u32 %v720_v51, 16 }
 0x15c   : > { %1927 = vmatprep.subr.bf16.mxu0 %v4523_v25  ;;  %v1466_v25 = vrot.slane %v1464_v14, 3  ;;  %v5911_v14 = vld [vmem:[#allocation2 + $0x58] sm:$0xff] }
 0x15d   : > { %1265 = vmatpush1.bf16.msra.mxu1 %v4591_v62  ;;  %v1509_v30 = vshrl.u32 %v716_v22, 16  ;;  %v4562_v62 = vld [vmem:[#allocation11 + $0x130] ss:$8 sps:$4 sm:$0xff]   ;;  %v1547_v7 = vrot.slane %v1545_v58, 3 }
 0x15e   : > { %1266 = vmatprep.subr.bf16.mxu1 %v4595_v63  ;;  %v1470_v43 = vor.u32 %v1469_v26, %v1466_v25  ;;  %v4586_v58 = vld [vmem:[#allocation11 + $0x170] ss:$8 sps:$4 sm:$0xff]  }
 0x15f   : > { %1928 = vmatpush1.bf16.msra.mxu0 %v4525_v27  ;;  %v5899_v27 = vld [vmem:[#allocation2 + $0xc0] sm:$0xff]  ;;  %v1511_v39 = vrot.slane %v1509_v30, 3 }
 0x160   : > { %1929 = vmatprep.subr.bf16.mxu0 %v4526_v28  ;;  %v5901_v28 = vld [vmem:[#allocation2 + $0xe0] sm:$0xff] }
 0x161   : > { %1267 = vmatpush1.bf16.msra.mxu1 %v4597_v11  ;;  %v715_v32 = vpack.c.bf16 %v5901_v28, %v5899_v27 }
 0x162   : > { %1268 = vmatprep.subr.bf16.mxu1 %v4601_v16 }
 0x163   : > { %1930 = vmatpush1.bf16.msra.mxu0 %v4528_v31  ;;  %v1512_v31 = vshll.u32 %v716_v22, 16  ;;  %v1503_v42 = vshll.u32 %v715_v32, 16  ;;  %v4568_v22 = vld [vmem:[#allocation11 + $0x140] ss:$8 sps:$4 sm:$0xff]  }
 0x164   : > { %1931 = vmatprep.subr.bf16.mxu0 %v4529_v34  ;;  %v1480_v34 = vsel %vm1394_vm1, %v5867_v17, %v1479_v18 }
 0x165   : > { %1269 = vmatpush1.bf16.msra.mxu1 %v4603_v24  ;;  %v1505_v50 = vrot.slane %v1503_v42, 4  ;;  %v4627_v24 = vld [vmem:[#allocation11 + $0x2e0] ss:$8 sps:$4 sm:$0xff]  }
 0x166   : > { %1270 = vmatprep.subr.bf16.mxu1 %v4607_v37 }
 0x167   : > { %1932 = vmatpush1.bf16.msra.mxu0 %v4531_v40  ;;  %v1514_v40 = vrot.slane %v1512_v31, 4 }
 0x168   : > { %1933 = vmatprep.subr.bf16.mxu0 %v4532_v41  ;;  %v1500_v41 = vshrl.u32 %v715_v32, 16  ;;  %v4576_v32 = vld [vmem:[#allocation11 + $0x154] ss:$8 sps:$4 sm:$0xff]  }
 0x169   : > { %1271 = vmatpush1.bf16.msra.mxu1 %v4609_v44 }
 0x16a   : > { %v1502_v17 = vrot.slane %v1500_v41, 3  ;;  %1272 = vmatprep.subr.bf16.mxu1 %v4613_v46  ;;  %v4582_v46 = vld [vmem:[#allocation11 + $0x164] ss:$8 sps:$4 sm:$0xff]  }
 0x16b   : > { %1934 = vmatpush1.bf16.msra.mxu0 %v4534_v45  ;;  %v4558_v45 = vld [vmem:[#allocation11 + $0x124] ss:$8 sps:$4 sm:$0xff]  }
 0x16c   : > { %1935 = vmatprep.subr.bf16.mxu0 %v4535_v47  ;;  %v1515_v47 = vor.u32 %v1514_v40, %v1511_v39  ;;  %v1506_v6 = vor.u32 %v1505_v50, %v1502_v17  ;;  %v4580_v50 = vld [vmem:[#allocation11 + $0x160] ss:$8 sps:$4 sm:$0xff]  }
 0x16d   : > { %1273 = vmatpush1.bf16.msra.mxu1 %v4615_v54 }
 0x16e   : > { %v1516_v63 = vsel %vm1394_vm1, %v1479_v18, %v1515_v47  ;;  %1274 = vmatprep.subr.bf16.mxu1 %v4619_v1  ;;  %v706_v18 = vpack.c.bf16 %v5909_v13, %v670_v12  ;;  %v4649_v1 = vld [vmem:[#allocation11 + $0x320] ss:$8 sps:$4 sm:$0xff]   ;;  %v669_v12 = vld [vmem:[#allocation2 + $0x10] sm:$0x80] }
 0x16f   : > { %1936 = vmatpush1.bf16.msra.mxu0 %v4537_v53  ;;  %v1471_v53 = vsel %vm1394_vm1, %v1410_v10, %v1470_v43  ;;  %v4625_v10 = vld [vmem:[#allocation11 + $0x2e4] ss:$8 sps:$4 sm:$0xff]  }
 0x170   : > { %1937 = vmatprep.subr.bf16.mxu0 %v4538_v56  ;;  %v719_v56 = vpack.c.bf16 %v699_v52, %v699_v52  ;;  %v1450_v30 = vshll.u32 %v706_v18, 16  ;;  %v4637_v52 = vld [vmem:[#allocation11 + $0x300] ss:$8 sps:$4 sm:$0xff]  }
 0x172   : > { %v1536_v9 = vshrl.u32 %v719_v56, 16  ;;  %v1539_v11 = vshll.u32 %v719_v56, 16  ;;  %v1452_v40 = vrot.slane %v1450_v30, 4  ;;  %v4645_v56 = vld [vmem:[#allocation11 + $0x314] ss:$8 sps:$4 sm:$0xff]  }
 0x173   : > { %1938 = vmatpush1.bf16.msra.mxu0 %v4540_v4  ;;  %v4621_v4 = vld [vmem:[#allocation11 + $0x2d0] ss:$8 sps:$4 sm:$0xff]   ;;  %v4624_v30 = vld [vmem:[#allocation11 + $0x1d4] ss:$8 sps:$4 sm:$0xff]  }
 0x174   : > { %1980 = vmatprep.subr.bf16.mxu0 %v4546_v8  ;;  %v1550_v8 = vrot.slane %v1548_v59, 4  ;;  %v1538_v25 = vrot.slane %v1536_v9, 3  ;;  %1275 = vmatpush1.bf16.msra.mxu1 %v4621_v4  ;;  %v1541_v26 = vrot.slane %v1539_v11, 4  ;;  %v4651_v59 = vld [vmem:[#allocation11 + $0x324] ss:$8 sps:$4 sm:$0xff]  }
 0x175   : > { %1276 = vmatprep.subr.bf16.mxu1 %v4625_v10  ;;  %v4657_v4 = vld [vmem:[#allocation11 + $0x334] ss:$8 sps:$4 sm:$0xff]   ;;  %v4663_v9 = vld [vmem:[#allocation11 + $0x344] ss:$8 sps:$4 sm:$0xff]   ;;  %v4661_v10 = vld [vmem:[#allocation11 + $0x340] ss:$8 sps:$4 sm:$0xff]  }
 0x176   : > { %1940 = vmatmul.mubr.bf16.vlgmr.msra.gmra.mrb[0].mxu0 %v1411_v23  ;;  %v1551_v16 = vor.u32 %v1550_v8, %v1547_v7  ;;  %v1507_v23 = vsel %vm1394_vm1, %v1470_v43, %v1506_v6  ;;  %v4574_v43 = vld [vmem:[#allocation11 + $0x150] ss:$8 sps:$4 sm:$0xff]   ;;  %v1542_v44 = vor.u32 %v1541_v26, %v1538_v25  ;;  %v4606_v8 = vld [vmem:[#allocation11 + $0x1a4] ss:$8 sps:$4 sm:$0xff]   ;;  %v4612_v11 = vld [vmem:[#allocation11 + $0x1b4] ss:$8 sps:$4 sm:$0xff]  }
 0x177   : > { %1981 = vmatpush1.bf16.msra.mxu0 %v4544_v21  ;;  %1949 = vmatprep.mubr.bf16.mxu0 %v1480_v34  ;;  %v710_v21 = vpack.c.bf16 %v5913_v15, %v5911_v14  ;;  %v4631_v34 = vld [vmem:[#allocation11 + $0x2f4] ss:$8 sps:$4 sm:$0xff]   ;;  %v4655_v7 = vld [vmem:[#allocation11 + $0x330] ss:$8 sps:$4 sm:$0xff]  }
 0x178   : > { %1982 = vmatprep.subr.bf16.mxu0 %v4552_v29  ;;  %v1447_v29 = vshrl.u32 %v706_v18, 16  ;;  %1277 = vmatpush1.bf16.msra.mxu1 %v4627_v24  ;;  %v1543_v51 = vsel %vm1394_vm1, %v1506_v6, %v1542_v44  ;;  %v4598_v6 = vld [vmem:[#allocation11 + $0x190] ss:$8 sps:$4 sm:$0xff]   ;;  %v4687_v44 = vld [vmem:[#allocation11 + $0x384] ss:$8 sps:$4 sm:$0xff]  }
 0x179   : > { %v1455_v31 = vshrl.u32 %v710_v21, 16  ;;  %v1458_v37 = vshll.u32 %v710_v21, 16  ;;  %1278 = vmatprep.subr.bf16.mxu1 %v4631_v34  ;;  %v5937_v18 = vld [vmem:[#allocation2 + $0x50] sm:$0xff]  ;;  %v5944_v25 = vld [vmem:[#allocation2 + $0x98] sm:$0xff] }
 0x17a   : > { %v1449_v39 = vrot.slane %v1447_v29, 3  ;;  %v5939_v21 = vld [vmem:[#allocation2 + $0x70] sm:$0xff]  ;;  %v5946_v26 = vld [vmem:[#allocation2 + $0xb8] sm:$0xff]  ;;  %v4616_v29 = vld [vmem:[#allocation11 + $0x1c0] ss:$8 sps:$4 sm:$0xff]  }
 0x17b   : > { %1983 = vmatpush1.bf16.msra.mxu0 %v4550_v38  ;;  %v1552_v38 = vsel %vm1394_vm1, %v1515_v47, %v1551_v16  ;;  %v1457_v41 = vrot.slane %v1455_v31, 3  ;;  %v1460_v42 = vrot.slane %v1458_v37, 4  ;;  %v727_v47 = vpack.c.bf16 %v5873_v35, %v5871_v33  ;;  %v4643_v33 = vld [vmem:[#allocation11 + $0x310] ss:$8 sps:$4 sm:$0xff]   ;;  %v4594_v35 = vld [vmem:[#allocation11 + $0x184] ss:$8 sps:$4 sm:$0xff]  }
 0x17c   : > { %1984 = vmatprep.subr.bf16.mxu0 %v4558_v45  ;;  %v4633_v45 = vld [vmem:[#allocation11 + $0x2f0] ss:$8 sps:$4 sm:$0xff]   ;;  %v709_v24 = vpack.c.bf16 %v5939_v21, %v5937_v18  ;;  %v4673_v31 = vld [vmem:[#allocation11 + $0x360] ss:$8 sps:$4 sm:$0xff]   ;;  %v714_v37 = vpack.c.bf16 %v5946_v26, %v5944_v25 }
 0x17d   : > { %v5920_v17 = vor.u32 %v1460_v42, %v1457_v41  ;;  %1279 = vmatpush1.bf16.msra.mxu1 %v4633_v45  ;;  %v5935_v16 = vld [vmem:[#allocation2 + $0x30] sm:$0xff] }
 0x17e   : > { %1950 = vmatmul.mubr.bf16.gmra.mrb[4].mxu0 %v1471_v53  ;;  %v4588_v53 = vld [vmem:[#allocation11 + $0x174] ss:$8 sps:$4 sm:$0xff]   ;;  %1321 = vmatprep.subr.bf16.mxu1 %v4639_v48  ;;  %v4622_v34 = vld [vmem:[#allocation11 + $0x1d0] ss:$8 sps:$4 sm:$0xff]   ;;  %v1438_v41 = vshrl.u32 %v709_v24, 16  ;;  %v1441_v42 = vshll.u32 %v709_v24, 16 }
 0x17f   : > { %1985 = vmatpush1.bf16.msra.mxu0 %v4556_v49  ;;  %1959 = vmatprep.mubr.bf16.mxu0 %v1516_v63  ;;  %v1453_v49 = vor.u32 %v1452_v40, %v1449_v39  ;;  %v731_v63 = vpack.c.bf16 %v5886_v2, %v5875_v36  ;;  %v4604_v36 = vld [vmem:[#allocation11 + $0x1a0] ss:$8 sps:$4 sm:$0xff]   ;;  %v735_v2 = vpack.c.bf16 %v5899_v27, %v5888_v3  ;;  %v4618_v3 = vld [vmem:[#allocation11 + $0x1c4] ss:$8 sps:$4 sm:$0xff]   ;;  %v5950_v45 = vld [vmem:[#allocation2 + $0x90] sm:$0xff] }
 0x180   : > { %1986 = vmatprep.subr.bf16.mxu0 %v4564_v57  ;;  %v732_v57 = vpack.c.bf16 %v5880_v55, %v5864_v61  ;;  %1281 = vmatmul.mubr.bf16.vlgmr.msra.gmra.mrb[0].mxu1 %v727_v47  ;;  %v4600_v61 = vld [vmem:[#allocation11 + $0x194] ss:$8 sps:$4 sm:$0xff]   ;;  %v4675_v27 = vld [vmem:[#allocation11 + $0x364] ss:$8 sps:$4 sm:$0xff]   ;;  %v4628_v48 = vld [vmem:[#allocation11 + $0x1e0] ss:$8 sps:$4 sm:$0xff]  }
 0x181   : > { %v1462_v54 = vsel %vm1394_vm1, %v1453_v49, %v5920_v17  ;;  %1322 = vmatpush1.bf16.msra.mxu1 %v4637_v52  ;;  %v1491_v49 = vshrl.u32 %v714_v37, 16  ;;  %v4636_v47 = vld [vmem:[#allocation11 + $0x1f4] ss:$8 sps:$4 sm:$0xff]   ;;  %v4697_v24 = vld [vmem:[#allocation11 + $0x3a0] ss:$8 sps:$4 sm:$0xff]  }
 0x182   : > { %1323 = vmatprep.subr.bf16.mxu1 %v4645_v56  ;;  %1290 = vmatprep.mubr.bf16.mxu1 %v732_v57  ;;  %v1440_v56 = vrot.slane %v1438_v41, 3  ;;  %v1443_v57 = vrot.slane %v1441_v42, 4  ;;  %v4654_v41 = vld [vmem:[#allocation11 + $0x424] ss:$8 sps:$4 sm:$0xff]   ;;  %v4703_v42 = vld [vmem:[#allocation11 + $0x3b0] ss:$8 sps:$4 sm:$0xff]  }
 0x183   : > { %1987 = vmatpush1.bf16.msra.mxu0 %v4562_v62  ;;  %v4592_v62 = vld [vmem:[#allocation11 + $0x180] ss:$8 sps:$4 sm:$0xff]  }
 0x184   : > { %1988 = vmatprep.subr.bf16.mxu0 %v4570_v5  ;;  %v736_v5 = vpack.c.bf16 %v5892_v19, %v5882_v60  ;;  %v4669_v60 = vld [vmem:[#allocation11 + $0x354] ss:$8 sps:$4 sm:$0xff]   ;;  %v4610_v19 = vld [vmem:[#allocation11 + $0x1b0] ss:$8 sps:$4 sm:$0xff]  }
 0x185   : > { %1324 = vmatpush1.bf16.msra.mxu1 %v4643_v33 }
 0x186   : > { %1960 = vmatmul.mubr.bf16.gmra.mrb[8].mxu0 %v1507_v23  ;;  %1325 = vmatprep.subr.bf16.mxu1 %v4651_v59  ;;  %v705_v23 = vpack.c.bf16 %v5935_v16, %v669_v12  ;;  %v723_v59 = vld [vmem:[#allocation2 + $0x100] sm:$0xff] }
 0x187   : > { %1989 = vmatpush1.bf16.msra.mxu0 %v4568_v22  ;;  %1969 = vmatprep.mubr.bf16.mxu0 %v1552_v38  ;;  %v4667_v22 = vld [vmem:[#allocation11 + $0x350] ss:$8 sps:$4 sm:$0xff]   ;;  %v4630_v38 = vld [vmem:[#allocation11 + $0x1e4] ss:$8 sps:$4 sm:$0xff]  }
 0x188   : > { %1990 = vmatprep.subr.bf16.mxu0 %v4576_v32  ;;  %1291 = vmatmul.mubr.bf16.gmra.mrb[4].mxu1 %v731_v63  ;;  %v4681_v32 = vld [vmem:[#allocation11 + $0x374] ss:$8 sps:$4 sm:$0xff]   ;;  %v1430_v39 = vshrl.u32 %v705_v23, 16  ;;  %v1433_v40 = vshll.u32 %v705_v23, 16 }
 0x189   : > { %1326 = vmatpush1.bf16.msra.mxu1 %v4649_v1  ;;  %1300 = vmatprep.mubr.bf16.mxu1 %v736_v5  ;;  %v4634_v1 = vld [vmem:[#allocation11 + $0x1f0] ss:$8 sps:$4 sm:$0xff]  }
 0x18a   : > { %1327 = vmatprep.subr.bf16.mxu1 %v4657_v4  ;;  %v1435_v52 = vrot.slane %v1433_v40, 4 }
 0x18b   : > { %1991 = vmatpush1.bf16.msra.mxu0 %v4574_v43  ;;  %v4679_v43 = vld [vmem:[#allocation11 + $0x370] ss:$8 sps:$4 sm:$0xff]  }
 0x18c   : > { %1992 = vmatprep.subr.bf16.mxu0 %v4582_v46  ;;  %v5952_v46 = vld [vmem:[#allocation2 + $0xb0] sm:$0xff] }
 0x18d   : > { %1328 = vmatpush1.bf16.msra.mxu1 %v4655_v7  ;;  %v713_v33 = vpack.c.bf16 %v5952_v46, %v5950_v45  ;;  %v4691_v7 = vld [vmem:[#allocation11 + $0x390] ss:$8 sps:$4 sm:$0xff]  }
 0x18e   : > { %1970 = vmatmul.mubr.bf16.gmra.mrb[12].mxu0 %v1543_v51  ;;  %1329 = vmatprep.subr.bf16.mxu1 %v4663_v9  ;;  %v1432_v51 = vrot.slane %v1430_v39, 3  ;;  %v730_v9 = vpack.c.bf16 %v5911_v14, %v5909_v13 }
 0x18f   : > { %1993 = vmatpush1.bf16.msra.mxu0 %v4580_v50  ;;  %2012 = vmatprep.mubr.bf16.mxu0 %v1462_v54  ;;  %v1494_v50 = vshll.u32 %v714_v37, 16  ;;  %v5956_v54 = vld [vmem:[#allocation2 + $0xf8] sm:$0xff] }
 0x190   : > { %1994 = vmatprep.subr.bf16.mxu0 %v4588_v53  ;;  %1301 = vmatmul.mubr.bf16.gmra.mrb[8].mxu1 %v735_v2  ;;  %v5954_v53 = vld [vmem:[#allocation2 + $0xd8] sm:$0xff]  ;;  %v1444_v2 = vor.u32 %v1443_v57, %v1440_v56  ;;  %v5992_v56 = vpack.c.bf16 %v5950_v45, %v5939_v21  ;;  %v4652_v57 = vld [vmem:[#allocation11 + $0x420] ss:$8 sps:$4 sm:$0xff]  }
 0x191   : > { %1330 = vmatpush1.bf16.msra.mxu1 %v4661_v10  ;;  %v1496_v4 = vrot.slane %v1494_v50, 4  ;;  %v718_v5 = vpack.c.bf16 %v5956_v54, %v5954_v53  ;;  %v1485_v10 = vshll.u32 %v713_v33, 16  ;;  %v701_v50 = vld [vmem:[#allocation2 + $0x110] sm:$0x7f]  ;;  %v6002_v45 = vpack.c.bf16 %v5954_v53, %v5946_v26  ;;  %v4666_v26 = vld [vmem:[#allocation11 + $0x444] ss:$8 sps:$4 sm:$0xff]  }
 0x192   : > { %1331 = vmatprep.subr.bf16.mxu1 %v4669_v60  ;;  %v4642_v60 = vld [vmem:[#allocation11 + $0x404] ss:$8 sps:$4 sm:$0xff]   ;;  %v721_v21 = vpack.c.bf16 %v701_v50, %v701_v50 }
 0x193   : > { %1995 = vmatpush1.bf16.msra.mxu0 %v4586_v58  ;;  %v4685_v58 = vld [vmem:[#allocation11 + $0x380] ss:$8 sps:$4 sm:$0xff]   ;;  %v1527_v12 = vshrl.u32 %v718_v5, 16 }
 0x194   : > { %1996 = vmatprep.subr.bf16.mxu0 %v4594_v35  ;;  %v5960_v35 = vld [vmem:[#allocation2 + $0x108] sm:$0xff] }
 0x195   : > { %1332 = vmatpush1.bf16.msra.mxu1 %v4667_v22  ;;  %v740_v63 = vpack.c.bf16 %v5960_v35, %v5894_v20  ;;  %v1482_v20 = vshrl.u32 %v713_v33, 16  ;;  %v1530_v22 = vshll.u32 %v718_v5, 16  ;;  %v1529_v39 = vrot.slane %v1527_v12, 3  ;;  %v748_v33 = vld [vmem:[#allocation2 + $0x48] sm:$0xff] }
 0x196   : > { %1333 = vmatprep.subr.bf16.mxu1 %v4675_v27  ;;  %v4640_v27 = vld [vmem:[#allocation11 + $0x400] ss:$8 sps:$4 sm:$0xff]  }
 0x197   : > { %1997 = vmatpush1.bf16.msra.mxu0 %v4592_v62  ;;  %v4693_v62 = vld [vmem:[#allocation11 + $0x394] ss:$8 sps:$4 sm:$0xff]   ;;  %1310 = vmatprep.mubr.bf16.mxu1 %v740_v63  ;;  %v1532_v40 = vrot.slane %v1530_v22, 4 }
 0x198   : > { %1998 = vmatprep.subr.bf16.mxu0 %v4600_v61  ;;  %v1493_v61 = vrot.slane %v1491_v49, 3  ;;  %v4711_v49 = vld [vmem:[#allocation11 + $0x3c4] ss:$8 sps:$4 sm:$0xff]  }
 0x199   : > { %1334 = vmatpush1.bf16.msra.mxu1 %v4673_v31  ;;  %v4648_v31 = vld [vmem:[#allocation11 + $0x414] ss:$8 sps:$4 sm:$0xff]  }
 0x19a   : > { %1335 = vmatprep.subr.bf16.mxu1 %v4681_v32 }
 0x19b   : > { %1999 = vmatpush1.bf16.msra.mxu0 %v4598_v6  ;;  %v5967_v6 = vpack.c.bf16 %v723_v59, %v5901_v28  ;;  %v4699_v28 = vld [vmem:[#allocation11 + $0x3a4] ss:$8 sps:$4 sm:$0xff]  }
 0x19c   : > { %2000 = vmatprep.subr.bf16.mxu0 %v4606_v8  ;;  %v5969_v8 = vld [vmem:[#allocation2 + $0xd0] sm:$0xff] }
 0x19d   : > { %1336 = vmatpush1.bf16.msra.mxu1 %v4679_v43  ;;  %v6013_v12 = vpack.c.bf16 %v5969_v8, %v5952_v46 }
 0x19e   : > { %1337 = vmatprep.subr.bf16.mxu1 %v4687_v44  ;;  %1311 = vmatmul.mubr.bf16.gmra.mrb[12].mxu1 %v5967_v6 }
 0x19f   : > { %2001 = vmatpush1.bf16.msra.mxu0 %v4604_v36  ;;  %v1436_v36 = vor.u32 %v1435_v52, %v1432_v51  ;;  %1353 = vmatprep.mubr.bf16.mxu1 %v730_v9  ;;  %v744_v52 = vld [vmem:[#allocation2 + $0x28] sm:$0xfe] }
 0x1a0   : > { %2002 = vmatprep.subr.bf16.mxu0 %v4612_v11  ;;  %v5973_v11 = vld [vmem:[#allocation2 + $0xf0] sm:$0xff]  ;;  %v780_v9 = vpack.c.bf16 %v748_v33, %v744_v52  ;;  %v726_v33 = vld [vmem:[#allocation2 + $0x118] sm:$0xff] }
 0x1a1   : > { %1338 = vmatpush1.bf16.msra.mxu1 %v4685_v58  ;;  %v717_v13 = vpack.c.bf16 %v5973_v11, %v5969_v8  ;;  %v1445_v23 = vsel %vm1394_vm1, %v1436_v36, %v1444_v2  ;;  %v5994_v58 = vor.u32 %v1532_v40, %v1529_v39  ;;  %v4658_v36 = vld [vmem:[#allocation11 + $0x430] ss:$8 sps:$4 sm:$0xff]   ;;  %v4721_v40 = vld [vmem:[#allocation11 + $0x3e0] ss:$8 sps:$4 sm:$0xff]  }
 0x1a2   : > { %1339 = vmatprep.subr.bf16.mxu1 %v4693_v62  ;;  %v4660_v62 = vld [vmem:[#allocation11 + $0x434] ss:$8 sps:$4 sm:$0xff]   ;;  %v2134_v46 = vshll.u32 %v780_v9, 16 }
 0x1a3   : > { %2003 = vmatpush1.bf16.msra.mxu0 %v4610_v19  ;;  %v5975_v19 = vor.u32 %v1496_v4, %v1493_v61  ;;  %v1518_v43 = vshrl.u32 %v717_v13, 16  ;;  %v1521_v44 = vshll.u32 %v717_v13, 16  ;;  %v4709_v61 = vld [vmem:[#allocation11 + $0x3c0] ss:$8 sps:$4 sm:$0xff]   ;;  %v4717_v4 = vld [vmem:[#allocation11 + $0x3d4] ss:$8 sps:$4 sm:$0xff]  }
 0x1a4   : > { %2004 = vmatprep.subr.bf16.mxu0 %v4618_v3  ;;  %v702_v3 = vld [vmem:[#allocation2 + $0x118] sm:$0x7f]  ;;  %v1554_v13 = vshrl.u32 %v721_v21, 16 }
 0x1a5   : > { %1340 = vmatpush1.bf16.msra.mxu1 %v4691_v7  ;;  %v722_v32 = vpack.c.bf16 %v702_v3, %v702_v3  ;;  %v1498_v37 = vsel %vm1394_vm1, %v5920_v17, %v5975_v19  ;;  %v1520_v63 = vrot.slane %v1518_v43, 3  ;;  %v2183_v3 = vshrl.u32 %v5992_v56, 16 }
 0x1a6   : > { %1341 = vmatprep.subr.bf16.mxu1 %v4699_v28  ;;  %v2195_v28 = vshll.u32 %v6002_v45, 16  ;;  %v2132_v43 = vshrl.u32 %v780_v9, 16 }
 0x1a7   : > { %2005 = vmatpush1.bf16.msra.mxu0 %v4616_v29  ;;  %v1484_v29 = vrot.slane %v1482_v20, 3  ;;  %v1563_v17 = vshrl.u32 %v722_v32, 16  ;;  %v1566_v51 = vshll.u32 %v722_v32, 16  ;;  %v1534_v20 = vsel %vm1394_vm1, %v5975_v19, %v5994_v58  ;;  %v4715_v19 = vld [vmem:[#allocation11 + $0x3d0] ss:$8 sps:$4 sm:$0xff]  }
 0x1a8   : > { %2006 = vmatprep.subr.bf16.mxu0 %v4624_v30  ;;  %v1487_v30 = vrot.slane %v1485_v10, 4 }
 0x1a9   : > { %1342 = vmatpush1.bf16.msra.mxu1 %v4697_v24  ;;  %v1565_v5 = vrot.slane %v1563_v17, 3  ;;  %v1568_v7 = vrot.slane %v1566_v51, 4  ;;  %v2197_v24 = vrot.slane %v2195_v28, 1  ;;  %v4729_v51 = vld [vmem:[#allocation11 + $0x3f4] ss:$8 sps:$4 sm:$0xff]  }
 0x1aa   : > { %v4690_v28 = vld [vmem:[#allocation11 + $0x484] ss:$8 sps:$4 sm:$0xff]  }
 0x1ab   : > { %2007 = vmatpush1.bf16.msra.mxu0 %v4622_v34  ;;  %v4646_v34 = vld [vmem:[#allocation11 + $0x410] ss:$8 sps:$4 sm:$0xff]   ;;  %v1569_v32 = vor.u32 %v1568_v7, %v1565_v5  ;;  %v4684_v7 = vld [vmem:[#allocation11 + $0x474] ss:$8 sps:$4 sm:$0xff]  }
 0x1ac   : > { %2008 = vmatprep.subr.bf16.mxu0 %v4630_v38  ;;  %v4705_v38 = vld [vmem:[#allocation11 + $0x3b4] ss:$8 sps:$4 sm:$0xff]  }
 0x1ad   : > { %1343 = vmatprep.subr.bf16.mxu1 %v4705_v38  ;;  %v1570_v17 = vsel %vm1394_vm1, %v5994_v58, %v1569_v32  ;;  %v2215_v58 = vshrl.u32 %v6013_v12, 16 }
 0x1ae   : > { %1344 = vmatpush1.bf16.msra.mxu1 %v4703_v42  ;;  %v4672_v42 = vld [vmem:[#allocation11 + $0x454] ss:$8 sps:$4 sm:$0xff]  }
 0x1af   : > { %2009 = vmatpush1.bf16.msra.mxu0 %v4628_v48  ;;  %v5984_v48 = vor.u32 %v1487_v30, %v1484_v29  ;;  %1345 = vmatprep.subr.bf16.mxu1 %v4711_v49  ;;  %v4723_v29 = vld [vmem:[#allocation11 + $0x3e4] ss:$8 sps:$4 sm:$0xff]  }
 0x1b0   : > { %2010 = vmatprep.subr.bf16.mxu0 %v4636_v47  ;;  %v5988_v47 = vpack.c.bf16 %v5944_v25, %v5913_v15  ;;  %v1523_v15 = vrot.slane %v1521_v44, 4  ;;  %v2151_v25 = vshll.u32 %v5992_v56, 16  ;;  %v2136_v44 = vrot.slane %v2134_v46, 1 }
 0x1b2   : > { %v2163_v59 = vshll.u32 %v5988_v47, 16  ;;  %v1524_v53 = vor.u32 %v1523_v15, %v1520_v63  ;;  %v6015_v22 = vrot.slane %v2151_v25, 1  ;;  %1346 = vmatpush1.bf16.msra.mxu1 %v4709_v61  ;;  %v2223_v15 = vshrl.u32 %v6002_v45, 16  ;;  %v725_v25 = vld [vmem:[#allocation2 + $0x110] sm:$0xff] }
 0x1b3   : > { %2011 = vmatpush1.bf16.msra.mxu0 %v4634_v1  ;;  %v1489_v1 = vsel %vm1394_vm1, %v1444_v2, %v5984_v48  ;;  %v752_v2 = vld [vmem:[#allocation2 + $0x68] sm:$0xff]  ;;  %1347 = vmatprep.subr.bf16.mxu1 %v4717_v4  ;;  %v6042_v61 = vpack.c.bf16 %v726_v33, %v5956_v54  ;;  %v6046_v5 = vpack.c.bf16 %v725_v25, %v5973_v11  ;;  %v745_v11 = vld [vmem:[#allocation2 + $0x30] sm:$0xfe] }
 0x1b4   : > { %2599 = vmatprep.subr.bf16.mxu0 %v4642_v60  ;;  %v6007_v10 = vrot.slane %v2163_v59, 1  ;;  %v2191_v60 = vshrl.u32 %v5988_v47, 16  ;;  %v6020_v30 = vpack.c.bf16 %v5880_v55, %v752_v2  ;;  %v2185_v8 = vor.u32 %v2183_v3, %v6015_v22  ;;  %v4678_v59 = vld [vmem:[#allocation11 + $0x464] ss:$8 sps:$4 sm:$0xff]   ;;  %v746_v2 = vld [vmem:[#allocation2 + $0x38] sm:$0xfe] }
 0x1b5   : > { %v1525_v39 = vsel %vm1394_vm1, %v5984_v48, %v1524_v53  ;;  %v1556_v55 = vrot.slane %v1554_v13, 3  ;;  %v4670_v48 = vld [vmem:[#allocation11 + $0x450] ss:$8 sps:$4 sm:$0xff]   ;;  %v4714_v25 = vld [vmem:[#allocation11 + $0x4c4] ss:$8 sps:$4 sm:$0xff]  }
 0x1b6   : > { %2013 = vmatmul.mubr.bf16.vlgmr.msra.gmra.mrb[0].mxu0 %v1445_v23  ;;  %v2193_v23 = vor.u32 %v2191_v60, %v6007_v10  ;;  %1348 = vmatpush1.bf16.msra.mxu1 %v4715_v19  ;;  %v2139_v49 = vshll.u32 %v6020_v30, 16  ;;  %v2219_v60 = vshll.u32 %v6046_v5, 16  ;;  %v778_v3 = vld [vmem:[#allocation2 + $0x138] sm:$0x1]  ;;  %v781_v19 = vpack.c.bf16 %v5937_v18, %v745_v11  ;;  %v4732_v11 = vld [vmem:[#allocation11 + $0x4f4] ss:$8 sps:$4 sm:$0xff]  }
 0x1b7   : > { %2600 = vmatpush1.bf16.msra.mxu0 %v4640_v27  ;;  %2022 = vmatprep.mubr.bf16.mxu0 %v1498_v37  ;;  %v1557_v27 = vshll.u32 %v721_v21, 16  ;;  %v4664_v37 = vld [vmem:[#allocation11 + $0x440] ss:$8 sps:$4 sm:$0xff]  }
 0x1b8   : > { %2601 = vmatprep.subr.bf16.mxu0 %v4648_v31  ;;  %v2187_v31 = vshll.u32 %v6013_v12, 16  ;;  %1349 = vmatprep.subr.bf16.mxu1 %v4723_v29  ;;  %v6035_v63 = vrot.slane %v2139_v49, 1  ;;  %v4676_v21 = vld [vmem:[#allocation11 + $0x460] ss:$8 sps:$4 sm:$0xff]   ;;  %v2221_v13 = vrot.slane %v2219_v60, 1 }
 0x1b9   : > { %v4694_v49 = vld [vmem:[#allocation11 + $0x490] ss:$8 sps:$4 sm:$0xff]  }
 0x1ba   : > { %v2189_v38 = vrot.slane %v2187_v31, 1  ;;  %1350 = vmatpush1.bf16.msra.mxu1 %v4721_v40  ;;  %v2146_v31 = vshll.u32 %v781_v19, 16 }
 0x1bb   : > { %2602 = vmatpush1.bf16.msra.mxu0 %v4646_v34  ;;  %v6025_v34 = vsel %vm2118_vm2, %v2193_v23, %v2197_v24  ;;  %1351 = vmatprep.subr.bf16.mxu1 %v4729_v51  ;;  %v777_v23 = vld [vmem:[#allocation2 + $0x130] sm:$0x1] }
 0x1bc   : > { %2603 = vmatprep.subr.bf16.mxu0 %v4654_v41  ;;  %v1559_v41 = vrot.slane %v1557_v27, 4  ;;  %v6031_v50 = vsel %vm2118_vm2, %v2185_v8, %v2189_v38  ;;  %v2217_v54 = vor.u32 %v2215_v58, %v2189_v38  ;;  %v798_v27 = vpack.c.bf16 %v778_v3, %v778_v3  ;;  %v4688_v8 = vld [vmem:[#allocation11 + $0x480] ss:$8 sps:$4 sm:$0xff]  }
 0x1bd   : > { %v797_v40 = vpack.c.bf16 %v777_v23, %v777_v23  ;;  %v743_v58 = vld [vmem:[#allocation2 + $0x20] sm:$0xfe] }
 0x1be   : > { %2023 = vmatmul.mubr.bf16.gmra.mrb[4].mxu0 %v1489_v1  ;;  %v1560_v52 = vor.u32 %v1559_v41, %v1556_v55  ;;  %v729_v1 = vpack.c.bf16 %v5937_v18, %v5935_v16  ;;  %v4682_v16 = vld [vmem:[#allocation11 + $0x470] ss:$8 sps:$4 sm:$0xff]   ;;  %v6059_v32 = vsel %vm2118_vm2, %v2217_v54, %v2221_v13  ;;  %v2255_v18 = vshrl.u32 %v6042_v61, 16 }
 0x1bf   : > { %2604 = vmatpush1.bf16.msra.mxu0 %v4652_v57  ;;  %2032 = vmatprep.mubr.bf16.mxu0 %v1534_v20  ;;  %v4727_v57 = vld [vmem:[#allocation11 + $0x3f0] ss:$8 sps:$4 sm:$0xff]   ;;  %v2227_v20 = vshll.u32 %v6042_v61, 16  ;;  %v2148_v55 = vrot.slane %v2146_v31, 1 }
 0x1c0   : > { %2605 = vmatprep.subr.bf16.mxu0 %v4660_v62  ;;  %v2137_v62 = vor.u32 %v2136_v44, %v2132_v43  ;;  %v1561_v4 = vsel %vm1394_vm1, %v1524_v53, %v1560_v52  ;;  %1352 = vmatpush1.bf16.msra.mxu1 %v4727_v57  ;;  %v2251_v44 = vshll.u32 %v797_v40, 16  ;;  %v4738_v40 = vld [vmem:[#allocation11 + $0x514] ss:$8 sps:$4 sm:$0xff]  }
 0x1c1   : > { %v2229_v53 = vrot.slane %v2227_v20, 1 }
 0x1c2   : > { %v2142_v9 = vsel %vm2118_vm2, %v2137_v62, %v6035_v63  ;;  %v2253_v33 = vrot.slane %v2251_v44, 1 }
 0x1c3   : > { %2606 = vmatpush1.bf16.msra.mxu0 %v4658_v36  ;;  %v2225_v36 = vor.u32 %v2223_v15, %v2197_v24  ;;  %1354 = vmatmul.mubr.bf16.vlgmr.msra.gmra.mrb[0].mxu1 %v729_v1  ;;  %v4708_v15 = vld [vmem:[#allocation11 + $0x4b4] ss:$8 sps:$4 sm:$0xff]   ;;  %v747_v1 = vld [vmem:[#allocation2 + $0x40] sm:$0xff] }
 0x1c4   : > { %2607 = vmatprep.subr.bf16.mxu0 %v4666_v26  ;;  %v782_v26 = vpack.c.bf16 %v5911_v14, %v746_v2  ;;  %1363 = vmatprep.mubr.bf16.mxu1 %v5988_v47  ;;  %v2144_v14 = vshrl.u32 %v781_v19, 16  ;;  %v2247_v47 = vshrl.u32 %v6046_v5, 16  ;;  %v4974_v2 = vld [vmem:[#allocation2 + $0xc8] sm:$0xff] }
 0x1c5   : > { %v6056_v46 = vsel %vm2118_vm2, %v2225_v36, %v2229_v53  ;;  %v4973_v36 = vld [vmem:[#allocation2 + $0x80] sm:$0xff]  ;;  %v768_v19 = vld [vmem:[#allocation2 + $0xe8] sm:$0xff] }
 0x1c6   : > { %2033 = vmatmul.mubr.bf16.gmra.mrb[8].mxu0 %v1525_v39  ;;  %v2156_v24 = vshrl.u32 %v782_v26, 16  ;;  %v2158_v29 = vshll.u32 %v782_v26, 16  ;;  %v2259_v39 = vshll.u32 %v798_v27, 16  ;;  %v2249_v51 = vor.u32 %v2247_v47, %v2221_v13  ;;  %v4730_v13 = vld [vmem:[#allocation11 + $0x4f0] ss:$8 sps:$4 sm:$0xff]  }
 0x1c7   : > { %2608 = vmatpush1.bf16.msra.mxu0 %v4664_v37  ;;  %2042 = vmatprep.mubr.bf16.mxu0 %v1570_v17  ;;  %v4696_v37 = vld [vmem:[#allocation11 + $0x494] ss:$8 sps:$4 sm:$0xff]   ;;  %v2149_v17 = vor.u32 %v2148_v55, %v2144_v14 }
 0x1c8   : > { %2609 = vmatprep.subr.bf16.mxu0 %v4672_v42  ;;  %v2160_v38 = vrot.slane %v2158_v29, 1  ;;  %v2257_v42 = vor.u32 %v2255_v18, %v2229_v53  ;;  %v2261_v43 = vrot.slane %v2259_v39, 1  ;;  %v6077_v62 = vsel %vm2118_vm2, %v2249_v51, %v2253_v33 }
 0x1c9   : > { %v2175_v53 = vshrl.u32 %v6020_v30, 16 }
 0x1ca   : > { %v2161_v41 = vor.u32 %v2160_v38, %v2156_v24  ;;  %v6069_v57 = vsel %vm2118_vm2, %v2257_v42, %v2261_v43  ;;  %v4975_v24 = vld [vmem:[#allocation2 + $0xc0] sm:$0xff]  ;;  %v776_v42 = vld [vmem:[#allocation2 + $0x128] sm:$0x1]  ;;  %v4736_v43 = vld [vmem:[#allocation11 + $0x510] ss:$8 sps:$4 sm:$0xff]  }
 0x1cb   : > { %2610 = vmatpush1.bf16.msra.mxu0 %v4670_v48  ;;  %v4702_v48 = vld [vmem:[#allocation11 + $0x4a4] ss:$8 sps:$4 sm:$0xff]   ;;  %1364 = vmatmul.mubr.bf16.gmra.mrb[4].mxu1 %v5992_v56  ;;  %v4700_v56 = vld [vmem:[#allocation11 + $0x4a0] ss:$8 sps:$4 sm:$0xff]   ;;  %v2177_v14 = vor.u32 %v2175_v53, %v6035_v63  ;;  %v796_v51 = vpack.c.bf16 %v776_v42, %v776_v42 }
 0x1cc   : > { %2611 = vmatprep.subr.bf16.mxu0 %v4678_v59  ;;  %v6066_v52 = vsel %vm2118_vm2, %v2161_v41, %v6007_v10  ;;  %1373 = vmatprep.mubr.bf16.mxu1 %v6002_v45  ;;  %v6074_v59 = vsel %vm2118_vm2, %v2149_v17, %v6015_v22  ;;  %v4706_v10 = vld [vmem:[#allocation11 + $0x4b0] ss:$8 sps:$4 sm:$0xff]   ;;  %v4712_v45 = vld [vmem:[#allocation11 + $0x4c0] ss:$8 sps:$4 sm:$0xff]   ;;  %v4720_v22 = vld [vmem:[#allocation11 + $0x4d4] ss:$8 sps:$4 sm:$0xff]  }
 0x1cd   : > { %v4733_v38 = vld [vmem:[#allocation11 + $0x500] ss:$8 sps:$4 sm:$0xff]   ;;  %v4753_v53 = vld [vmem:[#allocation11 + $0x564] ss:$8 sps:$4 sm:$0xff]  }
 0x1ce   : > { %2043 = vmatmul.mubr.bf16.gmra.mrb[12].mxu0 %v1561_v4  ;;  %v751_v4 = vld [vmem:[#allocation2 + $0x60] sm:$0xff] }
 0x1cf   : > { %2612 = vmatpush1.bf16.msra.mxu0 %v4676_v21  ;;  %2631 = vmatprep.mubr.bf16.mxu0 %v2142_v9  ;;  %v779_v21 = vpack.c.bf16 %v747_v1, %v743_v58  ;;  %v4718_v9 = vld [vmem:[#allocation11 + $0x4d0] ss:$8 sps:$4 sm:$0xff]   ;;  %v783_v20 = vpack.c.bf16 %v4973_v36, %v751_v4  ;;  %v2243_v1 = vshll.u32 %v796_v51, 16  ;;  %v4775_v42 = vld [vmem:[#allocation11 + $0x5e0] ss:$8 sps:$4 sm:$0xff]  }
 0x1d0   : > { %2613 = vmatprep.subr.bf16.mxu0 %v4684_v7  ;;  %v760_v7 = vld [vmem:[#allocation2 + $0xa8] sm:$0xff] }
 0x1d1   : > { %v788_v54 = vpack.c.bf16 %v4974_v2, %v760_v7  ;;  %v2120_v60 = vshrl.u32 %v779_v21, 16  ;;  %v2127_v26 = vshll.u32 %v783_v20, 16  ;;  %v2167_v18 = vshrl.u32 %v783_v20, 16  ;;  %v4793_v51 = vld [vmem:[#allocation12 + $0x40] ss:$8 sps:$4 sm:$0xff]  }
 0x1d2   : > { %v2245_v20 = vrot.slane %v2243_v1, 1  ;;  %v2231_v2 = vshrl.u32 %v5967_v6, 16  ;;  %v4808_v1 = vld [vmem:[#allocation12 + $0x90] ss:$8 sps:$4 sm:$0xff]  }
 0x1d3   : > { %2614 = vmatpush1.bf16.msra.mxu0 %v4682_v16  ;;  %1374 = vmatmul.mubr.bf16.gmra.mrb[8].mxu1 %v6013_v12  ;;  %v2122_v16 = vshll.u32 %v779_v21, 16  ;;  %v4726_v12 = vld [vmem:[#allocation11 + $0x4e4] ss:$8 sps:$4 sm:$0xff]   ;;  %v2179_v3 = vshll.u32 %v788_v54, 16  ;;  %v2129_v23 = vrot.slane %v2127_v26, 1  ;;  %v2207_v47 = vshrl.u32 %v788_v54, 16 }
 0x1d4   : > { %2615 = vmatprep.subr.bf16.mxu0 %v4690_v28  ;;  %1383 = vmatprep.mubr.bf16.mxu1 %v6042_v61  ;;  %v4724_v61 = vld [vmem:[#allocation11 + $0x4e0] ss:$8 sps:$4 sm:$0xff]  }
 0x1d5   : > { %v2124_v28 = vrot.slane %v2122_v16, 1  ;;  %v2181_v31 = vrot.slane %v2179_v3, 1  ;;  %v2169_v63 = vor.u32 %v2167_v18, %v2129_v23  ;;  %v4745_v16 = vld [vmem:[#allocation11 + $0x540] ss:$8 sps:$4 sm:$0xff]   ;;  %v4783_v18 = vld [vmem:[#allocation12 + $0x4] ss:$8 sps:$4 sm:$0xff]  }
 0x1d6   : > { %v4751_v3 = vld [vmem:[#allocation11 + $0x560] ss:$8 sps:$4 sm:$0xff]   ;;  %3017 = vmatprep.subr.bf16.mxu1 %v4783_v18 }
 0x1d7   : > { %2616 = vmatpush1.bf16.msra.mxu0 %v4688_v8  ;;  %v2125_v27 = vor.u32 %v2124_v28, %v2120_v60  ;;  %v4735_v8 = vld [vmem:[#allocation11 + $0x504] ss:$8 sps:$4 sm:$0xff]   ;;  %v2182_v55 = vsel %vm2118_vm2, %v2177_v14, %v2181_v31  ;;  %v4748_v28 = vld [vmem:[#allocation11 + $0x550] ss:$8 sps:$4 sm:$0xff]   ;;  %v4768_v14 = vld [vmem:[#allocation11 + $0x5b4] ss:$8 sps:$4 sm:$0xff]  }
 0x1d8   : > { %2617 = vmatprep.subr.bf16.mxu0 %v4696_v37  ;;  %v792_v37 = vpack.c.bf16 %v5960_v35, %v768_v19  ;;  %v4741_v35 = vld [vmem:[#allocation11 + $0x524] ss:$8 sps:$4 sm:$0xff]   ;;  %v4756_v19 = vld [vmem:[#allocation11 + $0x574] ss:$8 sps:$4 sm:$0xff]  }
 0x1d9   : > { %v2130_v30 = vsel %vm2118_vm2, %v2125_v27, %v2129_v23  ;;  %v4757_v27 = vld [vmem:[#allocation11 + $0x580] ss:$8 sps:$4 sm:$0xff]   ;;  %v4762_v23 = vld [vmem:[#allocation11 + $0x594] ss:$8 sps:$4 sm:$0xff]  }
 0x1da   : > { %v2211_v41 = vshll.u32 %v792_v37, 16  ;;  %v2239_v58 = vshrl.u32 %v792_v37, 16  ;;  %v4771_v37 = vld [vmem:[#allocation11 + $0x5c4] ss:$8 sps:$4 sm:$0xff]  }
 0x1db   : > { %2618 = vmatpush1.bf16.msra.mxu0 %v4694_v49  ;;  %1384 = vmatmul.mubr.bf16.gmra.mrb[12].mxu1 %v6046_v5  ;;  %v759_v5 = vld [vmem:[#allocation2 + $0xa0] sm:$0xff]  ;;  %v2209_v49 = vor.u32 %v2207_v47, %v2181_v31  ;;  %v4766_v31 = vld [vmem:[#allocation11 + $0x5b0] ss:$8 sps:$4 sm:$0xff]  }
 0x1dc   : > { %2619 = vmatprep.subr.bf16.mxu0 %v4702_v48  ;;  %v787_v29 = vpack.c.bf16 %v4975_v24, %v759_v5  ;;  %v2213_v17 = vrot.slane %v2211_v41, 1  ;;  %v4739_v48 = vld [vmem:[#allocation11 + $0x520] ss:$8 sps:$4 sm:$0xff]   ;;  %v4760_v24 = vld [vmem:[#allocation11 + $0x590] ss:$8 sps:$4 sm:$0xff]  }
 0x1dd   : > { %v4777_v47 = vld [vmem:[#allocation11 + $0x5e4] ss:$8 sps:$4 sm:$0xff]  }
 0x1de   : > { %v2171_v39 = vshll.u32 %v787_v29, 16  ;;  %v2241_v36 = vor.u32 %v2239_v58, %v2213_v17  ;;  %v4789_v41 = vld [vmem:[#allocation12 + $0x24] ss:$8 sps:$4 sm:$0xff]  }
 0x1df   : > { %2620 = vmatpush1.bf16.msra.mxu0 %v4700_v56  ;;  %v2199_v56 = vshrl.u32 %v787_v29, 16  ;;  %v4765_v29 = vld [vmem:[#allocation11 + $0x5a4] ss:$8 sps:$4 sm:$0xff]  }
 0x1e0   : > { %2621 = vmatprep.subr.bf16.mxu0 %v4708_v15  ;;  %v2173_v44 = vrot.slane %v2171_v39, 1  ;;  %v2203_v15 = vshll.u32 %v5967_v6, 16  ;;  %v2246_v60 = vsel %vm2118_vm2, %v2241_v36, %v2245_v20  ;;  %v4754_v6 = vld [vmem:[#allocation11 + $0x570] ss:$8 sps:$4 sm:$0xff]   ;;  %v4786_v39 = vld [vmem:[#allocation12 + $0x14] ss:$8 sps:$4 sm:$0xff]  }
 0x1e1   : > { %v4807_v58 = vld [vmem:[#allocation12 + $0x84] ss:$8 sps:$4 sm:$0xff]   ;;  %v4828_v36 = vld [vmem:[#allocation12 + $0xf4] ss:$8 sps:$4 sm:$0xff]   ;;  %v4826_v20 = vld [vmem:[#allocation12 + $0xf0] ss:$8 sps:$4 sm:$0xff]  }
 0x1e2   : > { %v2174_v33 = vsel %vm2118_vm2, %v2169_v63, %v2173_v44  ;;  %v2201_v21 = vor.u32 %v2199_v56, %v2173_v44  ;;  %v2205_v4 = vrot.slane %v2203_v15, 1  ;;  %v4780_v63 = vld [vmem:[#allocation11 + $0x5f4] ss:$8 sps:$4 sm:$0xff]   ;;  %v4801_v56 = vld [vmem:[#allocation12 + $0x64] ss:$8 sps:$4 sm:$0xff]  }
 0x1e3   : > { %2622 = vmatpush1.bf16.msra.mxu0 %v4706_v10  ;;  %v4744_v10 = vld [vmem:[#allocation11 + $0x534] ss:$8 sps:$4 sm:$0xff]   ;;  %v4799_v15 = vld [vmem:[#allocation12 + $0x60] ss:$8 sps:$4 sm:$0xff]  }
 0x1e4   : > { %2623 = vmatprep.subr.bf16.mxu0 %v4714_v25  ;;  %v2214_v25 = vsel %vm2118_vm2, %v2209_v49, %v2213_v17  ;;  %v2233_v26 = vor.u32 %v2231_v2, %v2205_v4  ;;  %v4792_v44 = vld [vmem:[#allocation12 + $0x34] ss:$8 sps:$4 sm:$0xff]   ;;  %v4790_v49 = vld [vmem:[#allocation12 + $0x30] ss:$8 sps:$4 sm:$0xff]   ;;  %v4795_v17 = vld [vmem:[#allocation12 + $0x44] ss:$8 sps:$4 sm:$0xff]  }
 0x1e7   : > { %2624 = vmatpush1.bf16.msra.mxu0 %v4712_v45  ;;  %v775_v45 = vld [vmem:[#allocation2 + $0x120] sm:$0x1] }
 0x1e8   : > { %2625 = vmatprep.subr.bf16.mxu0 %v4720_v22  ;;  %v4742_v22 = vld [vmem:[#allocation11 + $0x530] ss:$8 sps:$4 sm:$0xff]   ;;  %v795_v7 = vpack.c.bf16 %v775_v45, %v775_v45  ;;  %v4813_v45 = vld [vmem:[#allocation12 + $0xa4] ss:$8 sps:$4 sm:$0xff]  }
 0x1ea   : > { %v2235_v54 = vshll.u32 %v795_v7, 16  ;;  %v4825_v7 = vld [vmem:[#allocation12 + $0xe4] ss:$8 sps:$4 sm:$0xff]  }
 0x1eb   : > { %2626 = vmatpush1.bf16.msra.mxu0 %v4718_v9  ;;  %v4747_v9 = vld [vmem:[#allocation11 + $0x544] ss:$8 sps:$4 sm:$0xff]  }
 0x1ec   : > { %2627 = vmatprep.subr.bf16.mxu0 %v4726_v12  ;;  %v2206_v12 = vsel %vm2118_vm2, %v2201_v21, %v2205_v4  ;;  %v4819_v21 = vld [vmem:[#allocation12 + $0xc4] ss:$8 sps:$4 sm:$0xff]   ;;  %v4817_v4 = vld [vmem:[#allocation12 + $0xc0] ss:$8 sps:$4 sm:$0xff]  }
 0x1ef   : > { %2628 = vmatpush1.bf16.msra.mxu0 %v4724_v61  ;;  %v4750_v61 = vld [vmem:[#allocation11 + $0x554] ss:$8 sps:$4 sm:$0xff]  }
 0x1f0   : > { %2629 = vmatprep.subr.bf16.mxu0 %v4732_v11  ;;  %v2237_v11 = vrot.slane %v2235_v54, 1 }
 0x1f2   : > { %v2238_v5 = vsel %vm2118_vm2, %v2233_v26, %v2237_v11 }
 0x1f3   : > { %2630 = vmatpush1.bf16.msra.mxu0 %v4730_v13  ;;  %v4759_v13 = vld [vmem:[#allocation11 + $0x584] ss:$8 sps:$4 sm:$0xff]  }
 0x1f4   : > { %2672 = vmatprep.subr.bf16.mxu0 %v4735_v8  ;;  %v4763_v8 = vld [vmem:[#allocation11 + $0x5a0] ss:$8 sps:$4 sm:$0xff]  }
 0x1f6   : > { %2632 = vmatmul.mubr.bf16.vlgmr.msra.gmra.mrb[0].mxu0 %v2130_v30  ;;  %v4781_v30 = vld [vmem:[#allocation12] ss:$8 sps:$4 sm:$0xff]  }
 0x1f7   : > { %2673 = vmatpush1.bf16.msra.mxu0 %v4733_v38  ;;  %2641 = vmatprep.mubr.bf16.mxu0 %v2182_v55  ;;  %v4774_v38 = vld [vmem:[#allocation11 + $0x5d4] ss:$8 sps:$4 sm:$0xff]   ;;  %v4784_v55 = vld [vmem:[#allocation12 + $0x10] ss:$8 sps:$4 sm:$0xff]  }
 0x1f8   : > { %2674 = vmatprep.subr.bf16.mxu0 %v4738_v40  ;;  %v4772_v40 = vld [vmem:[#allocation11 + $0x5d0] ss:$8 sps:$4 sm:$0xff]   ;;  %3018 = vmatpush1.bf16.msra.mxu1 %v4781_v30 }
 0x1f9   : > { %3019 = vmatprep.subr.bf16.mxu1 %v4786_v39 }
 0x1fb   : > { %2675 = vmatpush1.bf16.msra.mxu0 %v4736_v43  ;;  %v4787_v43 = vld [vmem:[#allocation12 + $0x20] ss:$8 sps:$4 sm:$0xff]  }
 0x1fc   : > { %2676 = vmatprep.subr.bf16.mxu0 %v4741_v35  ;;  %3020 = vmatpush1.bf16.msra.mxu1 %v4784_v55  ;;  %v4778_v35 = vld [vmem:[#allocation11 + $0x5f0] ss:$8 sps:$4 sm:$0xff]  }
 0x1fd   : > { %3021 = vmatprep.subr.bf16.mxu1 %v4789_v41 }
 0x1fe   : > { %2642 = vmatmul.mubr.bf16.gmra.mrb[4].mxu0 %v2174_v33  ;;  %v4796_v33 = vld [vmem:[#allocation12 + $0x50] ss:$8 sps:$4 sm:$0xff]  }
 0x1ff   : > { %2677 = vmatpush1.bf16.msra.mxu0 %v4739_v48  ;;  %2651 = vmatprep.mubr.bf16.mxu0 %v2214_v25  ;;  %v4798_v48 = vld [vmem:[#allocation12 + $0x54] ss:$8 sps:$4 sm:$0xff]   ;;  %v4802_v25 = vld [vmem:[#allocation12 + $0x70] ss:$8 sps:$4 sm:$0xff]  }
 0x200   : > { %2678 = vmatprep.subr.bf16.mxu0 %v4744_v10  ;;  %3022 = vmatpush1.bf16.msra.mxu1 %v4787_v43  ;;  %v4804_v10 = vld [vmem:[#allocation12 + $0x74] ss:$8 sps:$4 sm:$0xff]  }
 0x201   : > { %3023 = vmatprep.subr.bf16.mxu1 %v4792_v44 }
 0x203   : > { %2679 = vmatpush1.bf16.msra.mxu0 %v4742_v22  ;;  %v4814_v22 = vld [vmem:[#allocation12 + $0xb0] ss:$8 sps:$4 sm:$0xff]  }
 0x204   : > { %2680 = vmatprep.subr.bf16.mxu0 %v4747_v9  ;;  %3024 = vmatpush1.bf16.msra.mxu1 %v4790_v49  ;;  %v4823_v9 = vld [vmem:[#allocation12 + $0xe0] ss:$8 sps:$4 sm:$0xff]  }
 0x205   : > { %3025 = vmatprep.subr.bf16.mxu1 %v4795_v17 }
 0x206   : > { %2652 = vmatmul.mubr.bf16.gmra.mrb[8].mxu0 %v2206_v12 }
 0x207   : > { %2681 = vmatpush1.bf16.msra.mxu0 %v4745_v16  ;;  %2661 = vmatprep.mubr.bf16.mxu0 %v2246_v60 }
 0x208   : > { %2682 = vmatprep.subr.bf16.mxu0 %v4750_v61  ;;  %3026 = vmatpush1.bf16.msra.mxu1 %v4793_v51 }
 0x209   : > { %3027 = vmatprep.subr.bf16.mxu1 %v4798_v48 }
 0x20b   : > { %2683 = vmatpush1.bf16.msra.mxu0 %v4748_v28 }
 0x20c   : > { %2684 = vmatprep.subr.bf16.mxu0 %v4753_v53  ;;  %3028 = vmatpush1.bf16.msra.mxu1 %v4796_v33 }
 0x20d   : > { %3029 = vmatprep.subr.bf16.mxu1 %v4801_v56 }
 0x20e   : > { %2662 = vmatmul.mubr.bf16.gmra.mrb[12].mxu0 %v2238_v5 }
 0x20f   : > { %2685 = vmatpush1.bf16.msra.mxu0 %v4751_v3  ;;  %2704 = vmatprep.mubr.bf16.mxu0 %v6066_v52  ;;  %v4769_v52 = vld [vmem:[#allocation11 + $0x5c0] ss:$8 sps:$4 sm:$0xff]  }
 0x210   : > { %2686 = vmatprep.subr.bf16.mxu0 %v4756_v19  ;;  %3030 = vmatpush1.bf16.msra.mxu1 %v4799_v15 }
 0x211   : > { %3031 = vmatprep.subr.bf16.mxu1 %v4804_v10 }
 0x213   : > { %2687 = vmatpush1.bf16.msra.mxu0 %v4754_v6 }
 0x214   : > { %2688 = vmatprep.subr.bf16.mxu0 %v4759_v13  ;;  %3032 = vmatpush1.bf16.msra.mxu1 %v4802_v25 }
 0x215   : > { %3033 = vmatprep.subr.bf16.mxu1 %v4807_v58 }
 0x217   : > { %2689 = vmatpush1.bf16.msra.mxu0 %v4757_v27  ;;  %v6111_v27 = vshrl.u32 %v623_v0, 7 }
 0x218   : > { %2690 = vmatprep.subr.bf16.mxu0 %v4762_v23 }
 0x219   : > { %v2765_v23 = vsub.s32 0, %v6111_v27 }
 0x21b   : > { %2691 = vmatpush1.bf16.msra.mxu0 %v4760_v24  ;;  %v2761_v24 = vld [vmem:[%s6648_s6] sm:$0x3]  ;;  %s5180_s6 = scalar_lea.vmem %s6487_s11, 1024 }
 0x21c   : > { %2692 = vmatprep.subr.bf16.mxu0 %v4765_v29  ;;  %v2769_v29 = vsub.s32 1, %v6111_v27  ;;  %p5181_p5 = scmp.ne.s32.totalorder %s6487_s11, %s5180_s6 }
 0x21e   : > { %p5182_p0 = pnand %p5181_p5, %p6672_p8 }
 0x21f   : > { %2693 = vmatpush1.bf16.msra.mxu0 %v4763_v8  ;;  %v6120_v8 = vrot.slane %v2761_v24, %v2765_v23 }
 0x220   : > { %2694 = vmatprep.subr.bf16.mxu0 %v4768_v14  ;;  %p5183_p11 = pneg %p5182_p0 }
 0x223   : > { %2695 = vmatpush1.bf16.msra.mxu0 %v4766_v31  ;;  %v6124_v31 = vrot.slane %v2761_v24, %v2769_v29 }
 0x224   : > { %2696 = vmatprep.subr.bf16.mxu0 %v4771_v37 }
 0x227   : > { %2697 = vmatpush1.bf16.msra.mxu0 %v4769_v52 }
 0x228   : > { %2698 = vmatprep.subr.bf16.mxu0 %v4774_v38 }
 0x22b   : > { %2699 = vmatpush1.bf16.msra.mxu0 %v4772_v40 }
 0x22c   : > { %2700 = vmatprep.subr.bf16.mxu0 %v4777_v47 }
 0x22f   : > { %2701 = vmatpush1.bf16.msra.mxu0 %v4775_v42 }
 0x230   : > { %2702 = vmatprep.subr.bf16.mxu0 %v4780_v63 }
 0x233   : > { %2703 = vmatpush1.bf16.msra.mxu0 %v4778_v35 }
 0x236   : > { %2705 = vmatmul.mubr.bf16.vlgmr.msra.gmra.mrb[0].mxu0 %v6074_v59  ;;  %v4805_v59 = vld [vmem:[#allocation12 + $0x80] ss:$8 sps:$4 sm:$0xff]  }
 0x237   : > { %2714 = vmatprep.mubr.bf16.mxu0 %v6025_v34  ;;  %v4810_v34 = vld [vmem:[#allocation12 + $0x94] ss:$8 sps:$4 sm:$0xff]   ;;  %3034 = vmatpush1.bf16.msra.mxu1 %v4805_v59 }
 0x238   : > { %3035 = vmatprep.subr.bf16.mxu1 %v4810_v34 }
 0x23b   : > { %3036 = vmatpush1.bf16.msra.mxu1 %v4808_v1 }
 0x23c   : > { %3037 = vmatprep.subr.bf16.mxu1 %v4813_v45 }
 0x23e   : > { %2715 = vmatmul.mubr.bf16.gmra.mrb[4].mxu0 %v6031_v50  ;;  %v4811_v50 = vld [vmem:[#allocation12 + $0xa0] ss:$8 sps:$4 sm:$0xff]  }
 0x23f   : > { %2724 = vmatprep.mubr.bf16.mxu0 %v6056_v46  ;;  %v4816_v46 = vld [vmem:[#allocation12 + $0xb4] ss:$8 sps:$4 sm:$0xff]   ;;  %3038 = vmatpush1.bf16.msra.mxu1 %v4811_v50 }
 0x240   : > { %3039 = vmatprep.subr.bf16.mxu1 %v4816_v46 }
 0x243   : > { %3040 = vmatpush1.bf16.msra.mxu1 %v4814_v22 }
 0x244   : > { %3041 = vmatprep.subr.bf16.mxu1 %v4819_v21 }
 0x246   : > { %2725 = vmatmul.mubr.bf16.gmra.mrb[8].mxu0 %v6059_v32  ;;  %v4822_v32 = vld [vmem:[#allocation12 + $0xd4] ss:$8 sps:$4 sm:$0xff]  }
 0x247   : > { %2734 = vmatprep.mubr.bf16.mxu0 %v6069_v57  ;;  %3042 = vmatpush1.bf16.msra.mxu1 %v4817_v4  ;;  %v4820_v57 = vld [vmem:[#allocation12 + $0xd0] ss:$8 sps:$4 sm:$0xff]  }
 0x248   : > { %3043 = vmatprep.subr.bf16.mxu1 %v4822_v32 }
 0x24b   : > { %3044 = vmatpush1.bf16.msra.mxu1 %v4820_v57 }
 0x24c   : > { %3045 = vmatprep.subr.bf16.mxu1 %v4825_v7 }
 0x24e   : > { %2735 = vmatmul.mubr.bf16.gmra.mrb[12].mxu0 %v6077_v62 }
 0x24f   : > { %3046 = vmatpush1.bf16.msra.mxu1 %v4823_v9 }
 0x250   : > { %3047 = vmatprep.subr.bf16.mxu1 %v4828_v36 }
 0x253   : > { %3048 = vmatpush1.bf16.msra.mxu1 %v4826_v20 }
 0x296   : > { %v1355_v62 = vpop.f32.mrb[0].mxu1 }
 0x297   : > { %v1357_v16 = vpop.f32.mrb[1].mxu1 }
 0x298   : > { %v1359_v12 = vpop.f32.mrb[2].mxu1 }
 0x299   : > { %v1361_v2 = vpop.f32.mrb[3].mxu1 }
 0x29e   : > { %v1365_v54 = vpop.f32.mrb[4].mxu1 }
 0x29f   : > { %v1367_v61 = vpop.f32.mrb[5].mxu1 }
 0x2a0   : > { %v1369_v60 = vpop.f32.mrb[6].mxu1 }
 0x2a1   : > { %v1371_v28 = vpop.f32.mrb[7].mxu1 }
 0x2a6   : > { %v1375_v26 = vpop.f32.mrb[8].mxu1 }
 0x2a7   : > { %v1377_v11 = vpop.f32.mrb[9].mxu1 }
 0x2a8   : > { %v1379_v53 = vpop.f32.mrb[10].mxu1 }
 0x2a9   : > { %v1381_v3 = vpop.f32.mrb[11].mxu1 }
 0x2ae   : > { %v6102_v5 = vpop.f32.mrb[12].mxu1 }
 0x2af   : > { %v6104_v19 = vpop.f32.mrb[13].mxu1 }
 0x2b0   : > { %v6106_v6 = vpop.f32.mrb[14].mxu1 }
 0x2b1   : > { %v6108_v13 = vpop.f32.mrb[15].mxu1 }
 0x309   : > { %v2706_v14 = vpop.f32.mrb[0].mxu0 }
 0x30a   : > { %v4258_v37 = vadd.f32 %v2706_v14, %v1355_v62  ;;  %v2708_v0 = vpop.f32.mrb[1].mxu0 }
 0x30b   : > { %v4259_v52 = vadd.f32 %v2708_v0, %v1357_v16  ;;  %v2710_v38 = vpop.f32.mrb[2].mxu0 }
 0x30c   : > { %v2773_v30 = vadd.f32 %v4258_v37, %v6120_v8  ;;  %v4260_v18 = vadd.f32 %v2710_v38, %v1359_v12  ;;  %v2712_v39 = vpop.f32.mrb[3].mxu0 }
 0x30d   : > { %v2774_v40 = vadd.f32 %v4259_v52, %v6124_v31  ;;  %v4261_v55 = vadd.f32 %v2712_v39, %v1361_v2 }
 0x30e   : > { %v2775_v47 = vadd.f32 %v4260_v18, %v6120_v8  ;;  %v2789_v42 = vmax.f32 %v2773_v30, 0.0 }
 0x30f   : > { %v2776_v41 = vadd.f32 %v4261_v55, %v6124_v31  ;;  %v2790_v63 = vmax.f32 %v2774_v40, 0.0 }
 0x310   : > { %v2791_v43 = vmax.f32 %v2775_v47, 0.0 }
 0x311   : > { %v2792_v44 = vmax.f32 %v2776_v41, 0.0  ;;  %v2716_v35 = vpop.f32.mrb[4].mxu0 }
 0x312   : > { %v2805_v49 = vpack.c.bf16 %v2791_v43, %v2789_v42  ;;  %v4262_v17 = vadd.f32 %v2716_v35, %v1365_v54  ;;  %v2718_v51 = vpop.f32.mrb[5].mxu0  ;;  %v4831_v35 = vld [vmem:[#allocation14 + $0x48] sm:$0xff]  }
 0x313   : > { %v4263_v48 = vadd.f32 %v2718_v51, %v1367_v61  ;;  %v2720_v33 = vpop.f32.mrb[6].mxu0  ;;  %v2806_v56 = vpack.c.bf16 %v2792_v44, %v2790_v63  ;;  %v4830_v44 = vld [vmem:[#allocation14] sm:$0xff]  }
 0x314   : > { %v2777_v15 = vadd.f32 %v4262_v17, %v6120_v8  ;;  %v4264_v10 = vadd.f32 %v2720_v33, %v1369_v60  ;;  %v2722_v25 = vpop.f32.mrb[7].mxu0  ;;  %v4836_v17 = vld [vmem:[#allocation14 + $0x18] sm:$0xff]   ;;  %v4837_v51 = vld [vmem:[#allocation14 + $0x60] sm:$0xff]   ;;  %v4839_v33 = vld [vmem:[#allocation14 + $0x68] sm:$0xff]  }
 0x315   : > { %v2778_v58 = vadd.f32 %v4263_v48, %v6124_v31  ;;  %v4265_v59 = vadd.f32 %v2722_v25, %v1371_v28  ;;  %3049 = vmatprep.mubr.bf16.mxu1 %v2806_v56  ;;  %v4838_v48 = vld [vmem:[#allocation14 + $0x20] sm:$0xff]   ;;  %v4840_v56 = vld [vmem:[#allocation14 + $0x28] sm:$0xff]   ;;  %v4843_v25 = vld [vmem:[#allocation14 + $0x78] sm:$0xff]  }
 0x316   : > { %v2779_v34 = vadd.f32 %v4264_v10, %v6120_v8  ;;  %3050 = vmatmul.mubr.bf16.vlgmr.msra.gmra.mrb[16].mxu1 %v2805_v49  ;;  %v2793_v45 = vmax.f32 %v2777_v15, 0.0  ;;  %v4834_v49 = vld [vmem:[#allocation14 + $0x10] sm:$0xff]  }
 0x317   : > { %v2780_v1 = vadd.f32 %v4265_v59, %v6124_v31  ;;  %v2794_v46 = vmax.f32 %v2778_v58, 0.0  ;;  %v4841_v15 = vld [vmem:[#allocation14 + $0x70] sm:$0xff]   ;;  %v4844_v58 = vld [vmem:[#allocation14 + $0x38] sm:$0xff]   ;;  %v2845_v59 = vld [vmem:[%s6649_s16] sm:$0x3]  ;;  %s5186_s16 = scalar_lea.vmem %s5185_s5, 2048 }
 0x318   : > { %v2795_v50 = vmax.f32 %v2779_v34, 0.0  ;;  %v4842_v10 = vld [vmem:[#allocation14 + $0x30] sm:$0xff]   ;;  %v6151_v34 = vrot.slane %v2845_v59, %v2765_v23  ;;  %p5188_p2 = scmp.lt.s32.totalorder %s5186_s16, %s5180_s6 }
 0x319   : > { %v2796_v22 = vmax.f32 %v2780_v1, 0.0  ;;  %v2726_v21 = vpop.f32.mrb[8].mxu0  ;;  %v6155_v1 = vrot.slane %v2845_v59, %v2769_v29 }
 0x31a   : > { %v4266_v4 = vadd.f32 %v2726_v21, %v1375_v26  ;;  %v2728_v32 = vpop.f32.mrb[9].mxu0  ;;  %v2807_v57 = vpack.c.bf16 %v2795_v50, %v2793_v45  ;;  %p5189_p9 = por %p5188_p2, %p5187_p3 }
 0x31b   : > { %v4267_v7 = vadd.f32 %v2728_v32, %v1377_v11  ;;  %v2730_v9 = vpop.f32.mrb[10].mxu0  ;;  %v2808_v36 = vpack.c.bf16 %v2796_v22, %v2794_v46 }
 0x31c   : > { %v2781_v20 = vadd.f32 %v4266_v4, %v6120_v8  ;;  %v4268_v62 = vadd.f32 %v2730_v9, %v1379_v53  ;;  %v2732_v16 = vpop.f32.mrb[11].mxu0  ;;  %p5190_p1 = pnand %p5189_p9, %p5183_p11 }
 0x31d   : > { %v2782_v12 = vadd.f32 %v4267_v7, %v6124_v31  ;;  %v4269_v2 = vadd.f32 %v2732_v16, %v1381_v3  ;;  %3059 = vmatprep.mubr.bf16.mxu1 %v2808_v36 }
 0x31e   : > { %v2783_v54 = vadd.f32 %v4268_v62, %v6120_v8  ;;  %3060 = vmatmul.mubr.bf16.gmra.mrb[20].mxu1 %v2807_v57  ;;  %v2797_v60 = vmax.f32 %v2781_v20, 0.0 }
 0x31f   : > { %v2784_v61 = vadd.f32 %v4269_v2, %v6124_v31  ;;  %v2798_v26 = vmax.f32 %v2782_v12, 0.0 }
 0x320   : > { %v2799_v28 = vmax.f32 %v2783_v54, 0.0 }
 0x321   : > { %v2800_v24 = vmax.f32 %v2784_v61, 0.0  ;;  %v2736_v11 = vpop.f32.mrb[12].mxu0 }
 0x322   : > { %v4270_v14 = vadd.f32 %v2736_v11, %v6102_v5  ;;  %v2738_v37 = vpop.f32.mrb[13].mxu0  ;;  %v2809_v0 = vpack.c.bf16 %v2799_v28, %v2797_v60 }
 0x323   : > { %v4271_v53 = vadd.f32 %v2738_v37, %v6104_v19  ;;  %v2740_v52 = vpop.f32.mrb[14].mxu0  ;;  %v2810_v38 = vpack.c.bf16 %v2800_v24, %v2798_v26 }
 0x324   : > { %v2785_v3 = vadd.f32 %v4270_v14, %v6120_v8  ;;  %v4272_v30 = vadd.f32 %v2740_v52, %v6106_v6  ;;  %v2742_v18 = vpop.f32.mrb[15].mxu0  ;;  %v4829_v6 = vld [vmem:[#allocation14 + $0x40] sm:$0xff]  }
 0x325   : > { %v2786_v39 = vadd.f32 %v4271_v53, %v6124_v31  ;;  %v4273_v40 = vadd.f32 %v2742_v18, %v6108_v13  ;;  %3069 = vmatprep.mubr.bf16.mxu1 %v2810_v38  ;;  %4218 = vmatprep.subr.bf16.mxu1 %v4829_v6  ;;  %v4832_v13 = vld [vmem:[#allocation14 + $0x8] sm:$0xff]  }
 0x326   : > { %v2787_v55 = vadd.f32 %v4272_v30, %v6120_v8  ;;  %3070 = vmatmul.mubr.bf16.gmra.mrb[24].mxu1 %v2809_v0  ;;  %v2801_v47 = vmax.f32 %v2785_v3, 0.0  ;;  %v4833_v8 = vld [vmem:[#allocation14 + $0x50] sm:$0xff]  }
 0x327   : > { %v2788_v5 = vadd.f32 %v4273_v40, %v6124_v31  ;;  %v2802_v19 = vmax.f32 %v2786_v39, 0.0  ;;  %4219 = vmatpush3.bf16.msra.mxu1 %v4830_v44  ;;  %v4835_v31 = vld [vmem:[#allocation14 + $0x58] sm:$0xff]  }
 0x328   : > { %v2803_v41 = vmax.f32 %v2787_v55, 0.0  ;;  %4220 = vmatprep.subr.bf16.mxu1 %v4831_v35 }
 0x329   : > { %v2804_v42 = vmax.f32 %v2788_v5, 0.0 }
 0x32a   : > { %v2811_v43 = vpack.c.bf16 %v2803_v41, %v2801_v47 }
 0x32b   : > { %v2812_v63 = vpack.c.bf16 %v2804_v42, %v2802_v19  ;;  %4221 = vmatpush3.bf16.msra.mxu1 %v4832_v13 }
 0x32c   : > { %4222 = vmatprep.subr.bf16.mxu1 %v4833_v8 }
 0x32d   : > { %3079 = vmatprep.mubr.bf16.mxu1 %v2812_v63 }
 0x32e   : > { %3080 = vmatmul.mubr.bf16.gmra.mrb[28].mxu1 %v2811_v43 }
 0x32f   : > { %4223 = vmatpush3.bf16.msra.mxu1 %v4834_v49 }
 0x330   : > { %4224 = vmatprep.subr.bf16.mxu1 %v4835_v31 }
 0x333   : > { %4225 = vmatpush3.bf16.msra.mxu1 %v4836_v17 }
 0x334   : > { %4226 = vmatprep.subr.bf16.mxu1 %v4837_v51 }
 0x337   : > { %4227 = vmatpush3.bf16.msra.mxu1 %v4838_v48 }
 0x338   : > { %4228 = vmatprep.subr.bf16.mxu1 %v4839_v33 }
 0x33b   : > { %4229 = vmatpush3.bf16.msra.mxu1 %v4840_v56 }
 0x33c   : > { %4230 = vmatprep.subr.bf16.mxu1 %v4841_v15 }
 0x33f   : > { %4231 = vmatpush3.bf16.msra.mxu1 %v4842_v10 }
 0x340   : > { %4232 = vmatprep.subr.bf16.mxu1 %v4843_v25 }
 0x343   : > { %4233 = vmatpush3.bf16.msra.mxu1 %v4844_v58 }
 0x3e9   : > { %v3051_v45 = vpop.f32.mrb[16].mxu1 }
 0x3ea   : > { %v6158_v50 = vadd.f32 %v3051_v45, %v6151_v34  ;;  %v3053_v46 = vpop.f32.mrb[17].mxu1 }
 0x3eb   : > { %v6161_v22 = vadd.f32 %v3053_v46, %v6155_v1  ;;  %v3055_v21 = vpop.f32.mrb[18].mxu1 }
 0x3ec   : > { %v3138_v4 = vand.u32 2147483647, %v6158_v50  ;;  %v6165_v32 = vadd.f32 %v3055_v21, %v6151_v34  ;;  %v3057_v23 = vpop.f32.mrb[19].mxu1  ;;  %v3090_v15 = vmax.f32 %v6158_v50, 0.0  ;;  %vm3106_vm7 = vcmp.ne.f32.partialorder %v6158_v50, %v6158_v50 }
 0x3ed   : > { %v3139_v57 = vand.u32 2147483647, %v6161_v22  ;;  %v6169_v27 = vadd.f32 %v3057_v23, %v6155_v1  ;;  %v3091_v25 = vmax.f32 %v6161_v22, 0.0  ;;  %vm3107_vm9 = vcmp.ne.f32.partialorder %v6161_v22, %v6161_v22 }
 0x3ee   : > { %v3154_v29 = vsub.f32 0.0, %v3138_v4  ;;  %v3140_v7 = vand.u32 2147483647, %v6165_v32  ;;  %vm3108_vm5 = vcmp.ne.f32.partialorder %v6165_v32, %v6165_v32 }
 0x3ef   : > { %v3155_v9 = vsub.f32 0.0, %v3139_v57  ;;  %v3141_v36 = vand.u32 2147483647, %v6169_v27  ;;  %vm3109_vm8 = vcmp.ne.f32.partialorder %v6169_v27, %v6169_v27 }
 0x3f0   : > { %v3170_v20 = vmul.f32 1.442695, %v3154_v29  ;;  %v3156_v62 = vsub.f32 0.0, %v3140_v7 }
 0x3f1   : > { %v3172_v16 = vmul.f32 1.442695, %v3155_v9  ;;  %v3157_v12 = vsub.f32 0.0, %v3141_v36  ;;  %v3061_v2 = vpop.f32.mrb[20].mxu1  ;;  %v3092_v36 = vmax.f32 %v6165_v32, 0.0 }
 0x3f2   : > { %4845 = vpow2.f32 %v3170_v20  ;;  %v3174_v54 = vmul.f32 1.442695, %v3156_v62  ;;  %v6174_v61 = vadd.f32 %v3061_v2, %v6151_v34  ;;  %v3063_v60 = vpop.f32.mrb[21].mxu1 }
 0x3f3   : > { %4847 = vpow2.f32 %v3172_v16  ;;  %v3176_v28 = vmul.f32 1.442695, %v3157_v12  ;;  %v6177_v26 = vadd.f32 %v3063_v60, %v6155_v1  ;;  %v3065_v24 = vpop.f32.mrb[22].mxu1  ;;  %v3093_v12 = vmax.f32 %v6169_v27, 0.0 }
 0x3f4   : > { %4849 = vpow2.f32 %v3174_v54  ;;  %v3142_v11 = vand.u32 2147483647, %v6174_v61  ;;  %v3067_v14 = vpop.f32.mrb[23].mxu1  ;;  %v6182_v53 = vadd.f32 %v3065_v24, %v6151_v34  ;;  %v3094_v2 = vmax.f32 %v6174_v61, 0.0 }
 0x3f5   : > { %4851 = vpow2.f32 %v3176_v28  ;;  %v3143_v37 = vand.u32 2147483647, %v6177_v26  ;;  %v6185_v52 = vadd.f32 %v3067_v14, %v6155_v1  ;;  %vm3110_vm14 = vcmp.ne.f32.partialorder %v6174_v61, %v6174_v61 }
 0x3f6   : > { %v3158_v0 = vsub.f32 0.0, %v3142_v11  ;;  %v3144_v30 = vand.u32 2147483647, %v6182_v53  ;;  %vm3112_vm15 = vcmp.ne.f32.partialorder %v6182_v53, %v6182_v53  ;;  %vm3111_vm0 = vcmp.ne.f32.partialorder %v6177_v26, %v6177_v26 }
 0x3f7   : > { %v3159_v38 = vsub.f32 0.0, %v3143_v37  ;;  %v3145_v39 = vand.u32 2147483647, %v6185_v52  ;;  %vm3113_vm2 = vcmp.ne.f32.partialorder %v6185_v52, %v6185_v52 }
 0x3f8   : > { %v3178_v3 = vmul.f32 1.442695, %v3158_v0  ;;  %v3160_v55 = vsub.f32 0.0, %v3144_v30 }
 0x3f9   : > { %v3180_v18 = vmul.f32 1.442695, %v3159_v38  ;;  %v3071_v40 = vpop.f32.mrb[24].mxu1  ;;  %v3161_v43 = vsub.f32 0.0, %v3145_v39 }
 0x3fa   : > { %4853 = vpow2.f32 %v3178_v3  ;;  %v6190_v5 = vadd.f32 %v3071_v40, %v6151_v34  ;;  %v3073_v47 = vpop.f32.mrb[25].mxu1  ;;  %v3182_v42 = vmul.f32 1.442695, %v3160_v55 }
 0x3fb   : > { %4855 = vpow2.f32 %v3180_v18  ;;  %v6192_v41 = vpop.f32.mrb[26].mxu1  ;;  %v3184_v48 = vmul.f32 1.442695, %v3161_v43  ;;  %v6211_v29 = vadd.f32 %v3073_v47, %v6155_v1 }
 0x3fc   : > { %v4846_v19 = vpop.eup %4845  ;;  %v6194_v63 = vpop.f32.mrb[27].mxu1  ;;  %4857 = vpow2.f32 %v3182_v42  ;;  %v3146_v31 = vand.u32 2147483647, %v6190_v5 }
 0x3fd   : > { %v4848_v6 = vpop.eup %4847  ;;  %v3202_v44 = vadd.f32 1.0, %v4846_v19  ;;  %v3205_v17 = vmul.f32 -0.5, %v4846_v19  ;;  %v3208_v10 = vand.u32 2147483647, %v4846_v19  ;;  %v3147_v38 = vand.u32 2147483647, %v6211_v29 }
 0x3fe   : > { %v4850_v35 = vpop.eup %4849  ;;  %v3211_v13 = vadd.f32 1.0, %v4848_v6  ;;  %v3214_v51 = vmul.f32 -0.5, %v4848_v6  ;;  %v3217_v59 = vand.u32 2147483647, %v4848_v6  ;;  %v3162_v46 = vsub.f32 0.0, %v3146_v31 }
 0x3ff   : > { %v6196_v8 = vpop.eup %4851  ;;  %4859 = vlog2.f32 %v3202_v44  ;;  %v3220_v49 = vadd.f32 1.0, %v4850_v35  ;;  %v3223_v45 = vmul.f32 -0.5, %v4850_v35  ;;  %v3206_v23 = vadd.f32 1.0, %v3205_v17 }
 0x400   : > { %4861 = vlog2.f32 %v3211_v13  ;;  %v3229_v33 = vadd.f32 1.0, %v6196_v8  ;;  %v3215_v57 = vadd.f32 1.0, %v3214_v51  ;;  %v3226_v20 = vand.u32 2147483647, %v4850_v35 }
 0x401   : > { %4863 = vlog2.f32 %v3220_v49  ;;  %v6200_v56 = vpop.f32.mrb[28].mxu1  ;;  %v3232_v62 = vmul.f32 -0.5, %v6196_v8  ;;  %v3186_v60 = vmul.f32 1.442695, %v3162_v46  ;;  %vm6223_vm3 = vcmp.lt.f32.partialorder %v3208_v10, 0.0004427343 }
 0x402   : > { %v6204_v58 = vpop.f32.mrb[29].mxu1  ;;  %4865 = vlog2.f32 %v3229_v33  ;;  %vm6227_vm4 = vcmp.lt.f32.partialorder %v3217_v59, 0.0004427343  ;;  %v3224_v11 = vadd.f32 1.0, %v3223_v45  ;;  %v3207_v37 = vmul.f32 %v4846_v19, %v3206_v23 }
 0x403   : > { %v6206_v21 = vpop.f32.mrb[30].mxu1  ;;  %4867 = vpow2.f32 %v3184_v48  ;;  %v3216_v0 = vmul.f32 %v4848_v6, %v3215_v57  ;;  %vm6236_vm6 = vcmp.lt.f32.partialorder %v3226_v20, 0.0004427343  ;;  %v3233_v18 = vadd.f32 1.0, %v3232_v62 }
 0x404   : > { %v6208_v4 = vpop.eup %4853  ;;  %v6213_v7 = vpop.f32.mrb[31].mxu1  ;;  %v3235_v39 = vand.u32 2147483647, %v6196_v8  ;;  %v3163_v42 = vsub.f32 0.0, %v3147_v38  ;;  %v3225_v6 = vmul.f32 %v4850_v35, %v3224_v11  ;;  %v6249_v51 = vadd.f32 %v6192_v41, %v6151_v34 }
 0x405   : > { %v6215_v9 = vpop.eup %4855  ;;  %v3238_v16 = vadd.f32 1.0, %v6208_v4  ;;  %v3241_v19 = vmul.f32 -0.5, %v6208_v4  ;;  %v3244_v44 = vand.u32 2147483647, %v6208_v4  ;;  %v3234_v35 = vmul.f32 %v6196_v8, %v3233_v18 }
 0x406   : > { %v3247_v54 = vadd.f32 1.0, %v6215_v9  ;;  %v6231_v14 = vpop.eup %4857  ;;  %v3250_v13 = vmul.f32 -0.5, %v6215_v9  ;;  %v3188_v17 = vmul.f32 1.442695, %v3163_v42  ;;  %v3253_v10 = vand.u32 2147483647, %v6215_v9 }
 0x407   : > { %4869 = vlog2.f32 %v3238_v16  ;;  %v3256_v40 = vadd.f32 1.0, %v6231_v14  ;;  %v3259_v59 = vmul.f32 -0.5, %v6231_v14  ;;  %v3242_v23 = vadd.f32 1.0, %v3241_v19 }
 0x408   : > { %4871 = vlog2.f32 %v3247_v54  ;;  %vm3236_vm10 = vcmp.lt.f32.partialorder %v3235_v39, 0.0004427343  ;;  %v3251_v20 = vadd.f32 1.0, %v3250_v13  ;;  %vm6270_vm11 = vcmp.lt.f32.partialorder %v3244_v44, 0.0004427343 }
 0x409   : > { %v4860_v3 = vpop.eup %4859  ;;  %4873 = vpow2.f32 %v3186_v60  ;;  %v3262_v60 = vand.u32 2147483647, %v6231_v14  ;;  %vm6274_vm12 = vcmp.lt.f32.partialorder %v3253_v10, 0.0004427343  ;;  %v3260_v38 = vadd.f32 1.0, %v3259_v59 }
 0x40a   : > { %v4862_v55 = vpop.eup %4861  ;;  %v3204_v47 = vmul.f32 0.6931472, %v4860_v3  ;;  %4875 = vlog2.f32 %v3256_v40  ;;  %v3243_v30 = vmul.f32 %v6208_v4, %v3242_v23  ;;  %v3252_v40 = vmul.f32 %v6215_v9, %v3251_v20 }
 0x40b   : > { %v4864_v43 = vpop.eup %4863  ;;  %v3213_v49 = vmul.f32 0.6931472, %v4862_v55  ;;  %4877 = vpow2.f32 %v3188_v17  ;;  %vm6295_vm13 = vcmp.lt.f32.partialorder %v3262_v60, 0.0004427343  ;;  %v3261_v42 = vmul.f32 %v6231_v14, %v3260_v38 }
 0x40c   : > { %v3222_v31 = vmul.f32 0.6931472, %v4864_v43  ;;  %v4866_v48 = vpop.eup %4865  ;;  %v3210_v33 = vsel %vm6223_vm3, %v3207_v37, %v3204_v47  ;;  %v3096_v37 = vmax.f32 %v6182_v53, 0.0  ;;  %v6305_v43 = vadd.f32 %v6194_v63, %v6155_v1 }
 0x40d   : > { %v6258_v45 = vpop.eup %4867  ;;  %v3231_v46 = vmul.f32 0.6931472, %v4866_v48  ;;  %v3346_v62 = vadd.f32 %v3210_v33, %v3090_v15  ;;  %v3219_v16 = vsel %vm6227_vm4, %v3216_v0, %v3213_v49  ;;  %v3095_v17 = vmax.f32 %v6177_v26, 0.0 }
 0x40e   : > { %v3228_v41 = vsel %vm6236_vm6, %v3225_v6, %v3222_v31  ;;  %v3265_v8 = vadd.f32 1.0, %v6258_v45  ;;  %v3347_v18 = vadd.f32 %v3219_v16, %v3091_v25  ;;  %v3148_v25 = vand.u32 2147483647, %v6249_v51 }
 0x40f   : > { %v3348_v57 = vadd.f32 %v3228_v41, %v3092_v36  ;;  %v3237_v54 = vsel %vm3236_vm10, %v3234_v35, %v3231_v46  ;;  %v3362_v47 = vsel %vm3106_vm7, %v6158_v50, %v3346_v62  ;;  %v3268_v13 = vmul.f32 -0.5, %v6258_v45 }
 0x410   : > { %v3349_v24 = vadd.f32 %v3237_v54, %v3093_v12  ;;  %4879 = vlog2.f32 %v3265_v8  ;;  %v3164_v49 = vsub.f32 0.0, %v3148_v25  ;;  %v3271_v10 = vand.u32 2147483647, %v6258_v45 }
 0x411   : > { %v4870_v28 = vpop.eup %4869  ;;  %v3364_v15 = vsel %vm3108_vm5, %v6165_v32, %v3348_v57  ;;  %v3269_v41 = vadd.f32 1.0, %v3268_v13  ;;  %v3149_v20 = vand.u32 2147483647, %v6305_v43  ;;  %v6337_v8 = vadd.f32 %v6200_v56, %v6151_v34 }
 0x412   : > { %v4872_v3 = vpop.eup %4871  ;;  %v3240_v0 = vmul.f32 0.6931472, %v4870_v28  ;;  %4881 = vtanh.f32 %v3364_v15  ;;  %v3365_v6 = vsel %vm3109_vm8, %v6169_v27, %v3349_v24  ;;  %v3190_v46 = vmul.f32 1.442695, %v3164_v49 }
 0x413   : > { %v3249_v39 = vmul.f32 0.6931472, %v4872_v3  ;;  %v6287_v55 = vpop.eup %4873  ;;  %4883 = vtanh.f32 %v3362_v47  ;;  %v3097_v16 = vmax.f32 %v6185_v52, 0.0  ;;  %v3165_v54 = vsub.f32 0.0, %v3149_v20 }
 0x414   : > { %v3246_v12 = vsel %vm6270_vm11, %v3243_v30, %v3240_v0  ;;  %v4876_v4 = vpop.eup %4875  ;;  %v3274_v63 = vadd.f32 1.0, %v6287_v55  ;;  %4885 = vtanh.f32 %v3365_v6  ;;  %v6342_v60 = vadd.f32 %v6204_v58, %v6155_v1 }
 0x415   : > { %v3350_v9 = vadd.f32 %v3246_v12, %v3094_v2  ;;  %v3258_v44 = vmul.f32 0.6931472, %v4876_v4  ;;  %v3363_v2 = vsel %vm3107_vm9, %v6161_v22, %v3347_v18  ;;  %v3255_v14 = vsel %vm6274_vm12, %v3252_v40, %v3249_v39  ;;  %v6319_v31 = vpop.eup %4877 }
 0x416   : > { %4887 = vtanh.f32 %v3363_v2  ;;  %v3351_v59 = vadd.f32 %v3255_v14, %v3095_v17  ;;  %v3283_v57 = vadd.f32 1.0, %v6319_v31  ;;  %v3270_v11 = vmul.f32 %v6258_v45, %v3269_v41 }
 0x417   : > { %v3264_v48 = vsel %vm6295_vm13, %v3261_v42, %v3258_v44  ;;  %v3366_v33 = vsel %vm3110_vm14, %v6174_v61, %v3350_v9  ;;  %4889 = vlog2.f32 %v3274_v63  ;;  %vm3272_vm1 = vcmp.lt.f32.partialorder %v3271_v10, 0.0004427343 }
 0x418   : > { %v3352_v35 = vadd.f32 %v3264_v48, %v3096_v37  ;;  %4891 = vtanh.f32 %v3366_v33  ;;  %v3367_v37 = vsel %vm3111_vm0, %v6177_v26, %v3351_v59  ;;  %v3192_v56 = vmul.f32 1.442695, %v3165_v54 }
 0x419   : > { %4893 = vpow2.f32 %v3190_v46  ;;  %v3150_v38 = vand.u32 2147483647, %v6337_v8  ;;  %v3277_v15 = vmul.f32 -0.5, %v6287_v55  ;;  %v3151_v24 = vand.u32 2147483647, %v6342_v60 }
 0x41a   : > { %v3368_v23 = vsel %vm3112_vm15, %v6182_v53, %v3352_v35  ;;  %v4880_v62 = vpop.eup %4879  ;;  %v6351_v58 = vadd.f32 %v6206_v21, %v6151_v34  ;;  %v6355_v18 = vadd.f32 %v6213_v7, %v6155_v1  ;;  %v3286_v6 = vmul.f32 -0.5, %v6319_v31 }
 0x41b   : > { %4895 = vtanh.f32 %v3368_v23  ;;  %v3267_v28 = vmul.f32 0.6931472, %v4880_v62  ;;  %v3166_v45 = vsub.f32 0.0, %v3150_v38  ;;  %v3167_v40 = vsub.f32 0.0, %v3151_v24 }
 0x41c   : > { %v4882_v36 = vpop.eup %4881  ;;  %4897 = vlog2.f32 %v3283_v57  ;;  %v3152_v21 = vand.u32 2147483647, %v6351_v58  ;;  %v3278_v7 = vadd.f32 1.0, %v3277_v15  ;;  %v3153_v9 = vand.u32 2147483647, %v6355_v18 }
 0x41d   : > { %v3273_v3 = vsel %vm3272_vm1, %v3270_v11, %v3267_v28  ;;  %v4884_v0 = vpop.eup %4883  ;;  %4899 = vpow2.f32 %v3192_v56  ;;  %v3396_v39 = vmul.f32 %v4882_v36, %v6165_v32  ;;  %v3194_v34 = vmul.f32 1.442695, %v3166_v45 }
 0x41e   : > { %v3353_v30 = vadd.f32 %v3273_v3, %v3097_v16  ;;  %4901 = vtanh.f32 %v3367_v37  ;;  %v4886_v47 = vpop.eup %4885  ;;  %v3394_v25 = vmul.f32 %v4884_v0, %v6158_v50  ;;  %v3196_v4 = vmul.f32 1.442695, %v3167_v40 }
 0x41f   : > { %v3168_v32 = vsub.f32 0.0, %v3152_v21  ;;  %v3397_v44 = vmul.f32 %v4886_v47, %v6169_v27  ;;  %v3169_v14 = vsub.f32 0.0, %v3153_v9  ;;  %v3280_v50 = vand.u32 2147483647, %v6287_v55 }
 0x420   : > { %v3369_v12 = vsel %vm3113_vm2, %v6185_v52, %v3353_v30  ;;  %v4888_v19 = vpop.eup %4887  ;;  %v3410_v13 = vpack.c.bf16 %v3396_v39, %v3394_v25  ;;  %v3279_v59 = vmul.f32 %v6287_v55, %v3278_v7  ;;  %v3287_v41 = vadd.f32 1.0, %v3286_v6 }
 0x421   : > { %4903 = vtanh.f32 %v3369_v12  ;;  %v4890_v1 = vpop.eup %4889  ;;  %v3198_v2 = vmul.f32 1.442695, %v3168_v32  ;;  %v3395_v48 = vmul.f32 %v4888_v19, %v6161_v22  ;;  %v3200_v10 = vmul.f32 1.442695, %v3169_v14 }
 0x422   : > { %4905 = vpow2.f32 %v3194_v34  ;;  %v4892_v42 = vpop.eup %4891  ;;  %v3276_v35 = vmul.f32 0.6931472, %v4890_v1  ;;  %v3289_v23 = vand.u32 2147483647, %v6319_v31  ;;  %vm6374_vm3 = vcmp.lt.f32.partialorder %v3280_v50, 0.0004427343 }
 0x423   : > { %4907 = vpow2.f32 %v3196_v4  ;;  %v4894_v49 = vpop.eup %4893  ;;  %v3411_v46 = vpack.c.bf16 %v3397_v44, %v3395_v48  ;;  %v3398_v57 = vmul.f32 %v4892_v42, %v6174_v61  ;;  %v3098_v61 = vmax.f32 %v6190_v5, 0.0 }
 0x424   : > { %v3292_v17 = vadd.f32 1.0, %v4894_v49  ;;  %4909 = vpow2.f32 %v3198_v2  ;;  %v3282_v54 = vsel %vm6374_vm3, %v3279_v59, %v3276_v35  ;;  %v3295_v28 = vmul.f32 -0.5, %v4894_v49 }
 0x425   : > { %v4896_v63 = vpop.eup %4895  ;;  %3585 = vmatprep.mubr.bf16.mxu1 %v3411_v46  ;;  %vm6385_vm4 = vcmp.lt.f32.partialorder %v3289_v23, 0.0004427343  ;;  %v3354_v24 = vadd.f32 %v3282_v54, %v3098_v61  ;;  %v3298_v39 = vand.u32 2147483647, %v4894_v49  ;;  %v3099_v12 = vmax.f32 %v6211_v29, 0.0 }
 0x426   : > { %v4898_v33 = vpop.eup %4897  ;;  %4911 = vlog2.f32 %v3292_v17  ;;  %v3400_v20 = vmul.f32 %v4896_v63, %v6182_v53  ;;  %3586 = vmatmul.mubr.bf16.vlgmr.msra.gmra.mrb[32].mxu1 %v3410_v13  ;;  %v3288_v53 = vmul.f32 %v6319_v31, %v3287_v41  ;;  %v3296_v45 = vadd.f32 1.0, %v3295_v28 }
 0x427   : > { %v6369_v27 = vpop.eup %4899  ;;  %4913 = vpow2.f32 %v3200_v10  ;;  %v3285_v16 = vmul.f32 0.6931472, %v4898_v33  ;;  %vm3114_vm5 = vcmp.ne.f32.partialorder %v6190_v5, %v6190_v5  ;;  %vm3115_vm6 = vcmp.ne.f32.partialorder %v6211_v29, %v6211_v29 }
 0x428   : > { %v4902_v62 = vpop.eup %4901  ;;  %v3301_v55 = vadd.f32 1.0, %v6369_v27  ;;  %v3412_v11 = vpack.c.bf16 %v3400_v20, %v3398_v57  ;;  %v3304_v30 = vmul.f32 -0.5, %v6369_v27  ;;  %v3370_v21 = vsel %vm3114_vm5, %v6190_v5, %v3354_v24 }
 0x429   : > { %v3399_v38 = vmul.f32 %v4902_v62, %v6177_v26  ;;  %v3291_v0 = vsel %vm6385_vm4, %v3288_v53, %v3285_v16  ;;  %v3297_v32 = vmul.f32 %v4894_v49, %v3296_v45  ;;  %vm3299_vm7 = vcmp.lt.f32.partialorder %v3298_v39, 0.0004427343 }
 0x42a   : > { %4915 = vlog2.f32 %v3301_v55  ;;  %v3355_v19 = vadd.f32 %v3291_v0, %v3099_v12  ;;  %v3305_v25 = vadd.f32 1.0, %v3304_v30  ;;  %v3307_v42 = vand.u32 2147483647, %v6369_v27 }
 0x42b   : > { %v4904_v36 = vpop.eup %4903  ;;  %vm3116_vm8 = vcmp.ne.f32.partialorder %v6249_v51, %v6249_v51  ;;  %v3101_v2 = vmax.f32 %v6305_v43, 0.0  ;;  %vm3117_vm9 = vcmp.ne.f32.partialorder %v6305_v43, %v6305_v43  ;;  %v3102_v20 = vmax.f32 %v6337_v8, 0.0 }
 0x42c   : > { %v6383_v37 = vpop.eup %4905  ;;  %v3401_v3 = vmul.f32 %v4904_v36, %v6185_v52  ;;  %v3100_v52 = vmax.f32 %v6249_v51, 0.0  ;;  %v3371_v49 = vsel %vm3115_vm6, %v6211_v29, %v3355_v19  ;;  %v3306_v50 = vmul.f32 %v6369_v27, %v3305_v25 }
 0x42d   : > { %v6391_v15 = vpop.eup %4907  ;;  %v3310_v31 = vadd.f32 1.0, %v6383_v37  ;;  %v3313_v9 = vmul.f32 -0.5, %v6383_v37  ;;  %v3316_v33 = vand.u32 2147483647, %v6383_v37  ;;  %vm3308_vm10 = vcmp.lt.f32.partialorder %v3307_v42, 0.0004427343 }
 0x42e   : > { %v3319_v40 = vadd.f32 1.0, %v6391_v15  ;;  %v3413_v47 = vpack.c.bf16 %v3401_v3, %v3399_v38  ;;  %v6399_v26 = vpop.eup %4909  ;;  %v3322_v6 = vmul.f32 -0.5, %v6391_v15  ;;  %v3325_v46 = vand.u32 2147483647, %v6391_v15 }
 0x42f   : > { %4917 = vlog2.f32 %v3310_v31  ;;  %v3328_v4 = vadd.f32 1.0, %v6399_v26  ;;  %v3314_v48 = vadd.f32 1.0, %v3313_v9  ;;  %v3331_v35 = vmul.f32 -0.5, %v6399_v26 }
 0x430   : > { %4919 = vlog2.f32 %v3319_v40  ;;  %3593 = vmatprep.mubr.bf16.mxu1 %v3413_v47  ;;  %v4912_v34 = vpop.eup %4911  ;;  %v3323_v59 = vadd.f32 1.0, %v3322_v6  ;;  %v3103_v62 = vmax.f32 %v6342_v60, 0.0  ;;  %vm3317_vm11 = vcmp.lt.f32.partialorder %v3316_v33, 0.0004427343 }
 0x431   : > { %v6408_v1 = vpop.eup %4913  ;;  %v3294_v7 = vmul.f32 0.6931472, %v4912_v34  ;;  %3594 = vmatmul.mubr.bf16.gmra.mrb[36].mxu1 %v3412_v11  ;;  %4921 = vlog2.f32 %v3328_v4  ;;  %v3315_v55 = vmul.f32 %v6383_v37, %v3314_v48  ;;  %v3332_v54 = vadd.f32 1.0, %v3331_v35 }
 0x432   : > { %v3337_v44 = vadd.f32 1.0, %v6408_v1  ;;  %4923 = vtanh.f32 %v3370_v21  ;;  %v3340_v27 = vmul.f32 -0.5, %v6408_v1  ;;  %v3324_v36 = vmul.f32 %v6391_v15, %v3323_v59  ;;  %v4191_v59 = vld [vmem:[%s6666_s9] ss:$0 sm:$0xff] }
 0x433   : > { %v3300_v13 = vsel %vm3299_vm7, %v3297_v32, %v3294_v7  ;;  %v3334_v61 = vand.u32 2147483647, %v6399_v26  ;;  %vm3326_vm12 = vcmp.lt.f32.partialorder %v3325_v46, 0.0004427343  ;;  %v3343_v37 = vand.u32 2147483647, %v6408_v1 }
 0x434   : > { %v4916_v14 = vpop.eup %4915  ;;  %v3356_v63 = vadd.f32 %v3300_v13, %v3100_v52  ;;  %4925 = vlog2.f32 %v3337_v44  ;;  %v3341_v56 = vadd.f32 1.0, %v3340_v27  ;;  %vm3118_vm13 = vcmp.ne.f32.partialorder %v6337_v8, %v6337_v8 }
 0x435   : > { %v3303_v17 = vmul.f32 0.6931472, %v4916_v14  ;;  %v3333_v45 = vmul.f32 %v6399_v26, %v3332_v54  ;;  %vm3119_vm14 = vcmp.ne.f32.partialorder %v6342_v60, %v6342_v60  ;;  %v3104_v40 = vmax.f32 %v6351_v58, 0.0 }
 0x436   : > { %v3372_v10 = vsel %vm3116_vm8, %v6249_v51, %v3356_v63  ;;  %vm3335_vm15 = vcmp.lt.f32.partialorder %v3334_v61, 0.0004427343  ;;  %v3342_v34 = vmul.f32 %v6408_v1, %v3341_v56  ;;  %v3105_v19 = vmax.f32 %v6355_v18, 0.0 }
 0x437   : > { %4927 = vtanh.f32 %v3372_v10  ;;  %v3309_v41 = vsel %vm3308_vm10, %v3306_v50, %v3303_v17  ;;  %vm3344_vm0 = vcmp.lt.f32.partialorder %v3343_v37, 0.0004427343  ;;  %vm3120_vm1 = vcmp.ne.f32.partialorder %v6351_v58, %v6351_v58 }
 0x438   : > { %4929 = vtanh.f32 %v3371_v49  ;;  %v3357_v57 = vadd.f32 %v3309_v41, %v3101_v2  ;;  %vm3121_vm2 = vcmp.ne.f32.partialorder %v6355_v18, %v6355_v18 }
 0x439   : > { %v4918_v23 = vpop.eup %4917 }
 0x43a   : > { %v4920_v22 = vpop.eup %4919  ;;  %v3312_v16 = vmul.f32 0.6931472, %v4918_v23  ;;  %v3373_v28 = vsel %vm3117_vm9, %v6305_v43, %v3357_v57 }
 0x43b   : > { %v3321_v11 = vmul.f32 0.6931472, %v4920_v22  ;;  %4931 = vtanh.f32 %v3373_v28  ;;  %v4922_v38 = vpop.eup %4921 }
 0x43c   : > { %v3318_v53 = vsel %vm3317_vm11, %v3315_v55, %v3312_v16  ;;  %v4924_v0 = vpop.eup %4923  ;;  %v3330_v31 = vmul.f32 0.6931472, %v4922_v38 }
 0x43d   : > { %v3358_v3 = vadd.f32 %v3318_v53, %v3102_v20  ;;  %v3327_v24 = vsel %vm3326_vm12, %v3324_v36, %v3321_v11  ;;  %v3402_v4 = vmul.f32 %v4924_v0, %v6190_v5 }
 0x43e   : > { %v3359_v30 = vadd.f32 %v3327_v24, %v3103_v62  ;;  %v4926_v15 = vpop.eup %4925  ;;  %v3336_v12 = vsel %vm3335_vm15, %v3333_v45, %v3330_v31 }
 0x43f   : > { %v3374_v39 = vsel %vm3118_vm13, %v6337_v8, %v3358_v3  ;;  %v3339_v52 = vmul.f32 0.6931472, %v4926_v15  ;;  %v3360_v21 = vadd.f32 %v3336_v12, %v3104_v40 }
 0x440   : > { %v3375_v47 = vsel %vm3119_vm14, %v6342_v60, %v3359_v30  ;;  %4933 = vtanh.f32 %v3374_v39 }
 0x441   : > { %v4928_v26 = vpop.eup %4927  ;;  %v3345_v25 = vsel %vm3344_vm0, %v3342_v34, %v3339_v52  ;;  %4935 = vtanh.f32 %v3375_v47  ;;  %v3376_v32 = vsel %vm3120_vm1, %v6351_v58, %v3360_v21 }
 0x442   : > { %v4930_v7 = vpop.eup %4929  ;;  %v3361_v9 = vadd.f32 %v3345_v25, %v3105_v19  ;;  %v3404_v42 = vmul.f32 %v4928_v26, %v6249_v51  ;;  %4937 = vtanh.f32 %v3376_v32 }
 0x443   : > { %v3403_v13 = vmul.f32 %v4930_v7, %v6211_v29 }
 0x444   : > { %v3377_v1 = vsel %vm3121_vm2, %v6355_v18, %v3361_v9  ;;  %v3414_v6 = vpack.c.bf16 %v3404_v42, %v3402_v4 }
 0x445   : > { %v4932_v44 = vpop.eup %4931  ;;  %4939 = vtanh.f32 %v3377_v1 }
 0x446   : > { %v3405_v5 = vmul.f32 %v4932_v44, %v6305_v43 }
 0x448   : > { %v3415_v2 = vpack.c.bf16 %v3405_v5, %v3403_v13 }
 0x44a   : > { %3601 = vmatprep.mubr.bf16.mxu1 %v3415_v2  ;;  %v4934_v14 = vpop.eup %4933 }
 0x44b   : > { %3602 = vmatmul.mubr.bf16.gmra.mrb[40].mxu1 %v3414_v6  ;;  %v4936_v49 = vpop.eup %4935  ;;  %v3406_v51 = vmul.f32 %v4934_v14, %v6337_v8 }
 0x44c   : > { %v4938_v63 = vpop.eup %4937  ;;  %v3407_v48 = vmul.f32 %v4936_v49, %v6342_v60 }
 0x44d   : > { %v3408_v50 = vmul.f32 %v4938_v63, %v6351_v58 }
 0x44f   : > { %v4940_v17 = vpop.eup %4939  ;;  %v3416_v35 = vpack.c.bf16 %v3408_v50, %v3406_v51 }
 0x450   : > { %v3409_v33 = vmul.f32 %v4940_v17, %v6355_v18 }
 0x452   : > { %v3417_v10 = vpack.c.bf16 %v3409_v33, %v3407_v48 }
 0x454   : > { %3609 = vmatprep.mubr.bf16.mxu1 %v3417_v10 }
 0x455   : > { %3610 = vmatmul.mubr.bf16.gmra.mrb[44].mxu1 %v3416_v35 }
 0x4f9   : > { %v4234_v29 = vpop.f32.mrb[32].mxu1 }
 0x4fa   : > { %v4235_v43 = vpop.f32.mrb[33].mxu1 }
 0x4fb   : > { %v4236_v41 = vadd.f32 %v4235_v43, %v4234_v29  ;;  %v4237_v46 = vpop.f32.mrb[34].mxu1 }
 0x4fc   : > { %v4238_v8 = vpop.f32.mrb[35].mxu1 }
 0x4fd   : > { %v4239_v27 = vadd.f32 %v4238_v8, %v4237_v46  ;;  %v3588_v58 = vadd.f32 %v4236_v41, %v4191_v59 }
 0x4ff   : > { %3618 = vmax.xlane.f32.xlu0 %v3588_v58  ;;  %v3591_v60 = vadd.f32 %v4239_v27, %v4191_v59 }
 0x503   : > { %3620 = vmax.xlane.f32.xlu0 %v3591_v60 }
 0x504   : > { %v4240_v23 = vpop.f32.mrb[36].mxu1 }
 0x505   : > { %v4241_v57 = vpop.f32.mrb[37].mxu1 }
 0x506   : > { %v4242_v18 = vadd.f32 %v4241_v57, %v4240_v23  ;;  %v4243_v20 = vpop.f32.mrb[38].mxu1 }
 0x507   : > { %v4244_v62 = vpop.f32.mrb[39].mxu1 }
 0x508   : > { %v4245_v22 = vadd.f32 %v4244_v62, %v4243_v20  ;;  %v3596_v16 = vadd.f32 %v4242_v18, %v4191_v59 }
 0x50a   : > { %3622 = vmax.xlane.f32.xlu1 %v3596_v16  ;;  %v3599_v55 = vadd.f32 %v4245_v22, %v4191_v59 }
 0x50e   : > { %3624 = vmax.xlane.f32.xlu1 %v3599_v55 }
 0x51e   : > { %v4246_v54 = vpop.f32.mrb[40].mxu1 }
 0x51f   : > { %v4247_v28 = vpop.f32.mrb[41].mxu1 }
 0x520   : > { %v4248_v11 = vadd.f32 %v4247_v28, %v4246_v54  ;;  %v4249_v36 = vpop.f32.mrb[42].mxu1 }
 0x521   : > { %v4250_v61 = vpop.f32.mrb[43].mxu1 }
 0x522   : > { %v4251_v53 = vadd.f32 %v4250_v61, %v4249_v36  ;;  %v3604_v56 = vadd.f32 %v4248_v11, %v4191_v59 }
 0x524   : > { %3626 = vmax.xlane.f32.xlu0 %v3604_v56  ;;  %v3607_v38 = vadd.f32 %v4251_v53, %v4191_v59 }
 0x526   : > { %3628 = vmax.xlane.f32.xlu1 %v3607_v38 }
 0x528   : > { %v4252_v3 = vpop.f32.mrb[44].mxu1 }
 0x529   : > { %v4253_v24 = vpop.f32.mrb[45].mxu1 }
 0x52a   : > { %v4254_v37 = vadd.f32 %v4253_v24, %v4252_v3  ;;  %v4255_v0 = vpop.f32.mrb[46].mxu1 }
 0x52b   : > { %v4256_v30 = vpop.f32.mrb[47].mxu1 }
 0x52c   : > { %v4257_v31 = vadd.f32 %v4256_v30, %v4255_v0  ;;  %v3612_v45 = vadd.f32 %v4254_v37, %v4191_v59 }
 0x52e   : > { %3630 = vmax.xlane.f32.xlu0 %v3612_v45  ;;  %v3615_v15 = vadd.f32 %v4257_v31, %v4191_v59 }
 0x530   : > { %3632 = vmax.xlane.f32.xlu1 %v3615_v15 }
 0x58c   : > { %v3619_v39 = vpop.xlane.xlu0 %3618 }
 0x58d   : > { %v3634_v40 = vsub.f32 %v3588_v58, %v3619_v39 }
 0x58f   : > { %v3642_v47 = vmul.f32 1.442695, %v3634_v40 }
 0x590   : > { %v3621_v12 = vpop.xlane.xlu0 %3620 }
 0x591   : > { %4941 = vpow2.f32 %v3642_v47  ;;  %v3635_v52 = vsub.f32 %v3591_v60, %v3621_v12 }
 0x593   : > { %v3644_v34 = vmul.f32 1.442695, %v3635_v52 }
 0x595   : > { %4943 = vpow2.f32 %v3644_v34 }
 0x597   : > { %v3623_v21 = vpop.xlane.xlu1 %3622 }
 0x598   : > { %v3636_v19 = vsub.f32 %v3596_v16, %v3623_v21 }
 0x59a   : > { %v3646_v26 = vmul.f32 1.442695, %v3636_v19 }
 0x59b   : > { %v3625_v25 = vpop.xlane.xlu1 %3624  ;;  %v4942_v7 = vpop.eup %4941 }
 0x59c   : > { %4945 = vpow2.f32 %v3646_v26  ;;  %v3637_v4 = vsub.f32 %v3599_v55, %v3625_v25  ;;  %3658 = vadd.xlane.f32.xlu0 %v4942_v7 }
 0x59e   : > { %v3648_v32 = vmul.f32 1.442695, %v3637_v4 }
 0x59f   : > { %v4944_v9 = vpop.eup %4943 }
 0x5a0   : > { %4947 = vpow2.f32 %v3648_v32  ;;  %3660 = vadd.xlane.f32.xlu1 %v4944_v9 }
 0x5a6   : > { %v4946_v42 = vpop.eup %4945 }
 0x5a7   : > { %3662 = vadd.xlane.f32.xlu0 %v4946_v42 }
 0x5aa   : > { %v4948_v1 = vpop.eup %4947 }
 0x5ab   : > { %3664 = vadd.xlane.f32.xlu1 %v4948_v1 }
 0x5b1   : > { %v3627_v6 = vpop.xlane.xlu0 %3626 }
 0x5b2   : > { %v3638_v44 = vsub.f32 %v3604_v56, %v3627_v6 }
 0x5b3   : > { %v3629_v13 = vpop.xlane.xlu1 %3628 }
 0x5b4   : > { %v3650_v5 = vmul.f32 1.442695, %v3638_v44  ;;  %v3639_v2 = vsub.f32 %v3607_v38, %v3629_v13 }
 0x5b6   : > { %4949 = vpow2.f32 %v3650_v5  ;;  %v3652_v14 = vmul.f32 1.442695, %v3639_v2 }
 0x5b8   : > { %4951 = vpow2.f32 %v3652_v14 }
 0x5bb   : > { %v3631_v49 = vpop.xlane.xlu0 %3630 }
 0x5bc   : > { %v6466_v63 = vsub.f32 %v3612_v45, %v3631_v49 }
 0x5bd   : > { %v3633_v51 = vpop.xlane.xlu1 %3632 }
 0x5be   : > { %v3654_v50 = vmul.f32 1.442695, %v6466_v63  ;;  %v6469_v17 = vsub.f32 %v3615_v15, %v3633_v51 }
 0x5c0   : > { %v4950_v48 = vpop.eup %4949  ;;  %4953 = vpow2.f32 %v3654_v50  ;;  %v3656_v33 = vmul.f32 1.442695, %v6469_v17 }
 0x5c1   : > { %3666 = vadd.xlane.f32.xlu0 %v4950_v48 }
 0x5c2   : > { %v4952_v35 = vpop.eup %4951  ;;  %4955 = vpow2.f32 %v3656_v33 }
 0x5c3   : > { %3668 = vadd.xlane.f32.xlu1 %v4952_v35 }
 0x5ca   : > { %v4954_v10 = vpop.eup %4953 }
 0x5cb   : > { %3670 = vadd.xlane.f32.xlu0 %v4954_v10 }
 0x5cc   : > { %v4956_v29 = vpop.eup %4955 }
 0x5cd   : > { %3672 = vadd.xlane.f32.xlu1 %v4956_v29 }
 0x629   : > { %v3659_v43 = vpop.xlane.xlu0 %3658 }
 0x62a   : > { %4957 = vlog2.f32 %v3659_v43 }
 0x62d   : > { %v3661_v59 = vpop.xlane.xlu1 %3660 }
 0x62e   : > { %4959 = vlog2.f32 %v3661_v59 }
 0x634   : > { %v3663_v41 = vpop.xlane.xlu0 %3662  ;;  %v4958_v46 = vpop.eup %4957 }
 0x635   : > { %4961 = vlog2.f32 %v3663_v41  ;;  %v3675_v8 = vmul.f32 0.6931472, %v4958_v46 }
 0x637   : > { %v3690_v58 = vsub.f32 %v3634_v40, %v3675_v8 }
 0x638   : > { %v3665_v27 = vpop.xlane.xlu1 %3664  ;;  %v4960_v23 = vpop.eup %4959 }
 0x639   : > { %4963 = vlog2.f32 %v3665_v27  ;;  %3698 = vst [vmem:[%s5847_s14] sm:$0xff] %v3690_v58  ;;  %v3677_v60 = vmul.f32 0.6931472, %v4960_v23 }
 0x63b   : > { %v3691_v57 = vsub.f32 %v3635_v52, %v3677_v60 }
 0x63d   : > { %3699 = vst [vmem:[%s5847_s14 + $0x8] sm:$0xff] %v3691_v57 }
 0x63f   : > { %v4962_v18 = vpop.eup %4961 }
 0x640   : > { %v3679_v20 = vmul.f32 0.6931472, %v4962_v18 }
 0x642   : > { %v3692_v62 = vsub.f32 %v3636_v19, %v3679_v20 }
 0x643   : > { %v4964_v22 = vpop.eup %4963 }
 0x644   : > { %3700 = vst [vmem:[%s5847_s14 + $0x10] sm:$0xff] %v3692_v62  ;;  %v3681_v16 = vmul.f32 0.6931472, %v4964_v22 }
 0x646   : > { %v3693_v55 = vsub.f32 %v3637_v4, %v3681_v16 }
 0x648   : > { %3701 = vst [vmem:[%s5847_s14 + $0x18] sm:$0xff] %v3693_v55 }
 0x64e   : > { %v3667_v54 = vpop.xlane.xlu0 %3666 }
 0x64f   : > { %4965 = vlog2.f32 %v3667_v54 }
 0x650   : > { %v3669_v28 = vpop.xlane.xlu1 %3668 }
 0x651   : > { %4967 = vlog2.f32 %v3669_v28 }
 0x658   : > { %v3671_v11 = vpop.xlane.xlu0 %3670 }
 0x659   : > { %v4966_v36 = vpop.eup %4965  ;;  %4969 = vlog2.f32 %v3671_v11 }
 0x65a   : > { %v3683_v61 = vmul.f32 0.6931472, %v4966_v36  ;;  %v3673_v53 = vpop.xlane.xlu1 %3672 }
 0x65b   : > { %v4968_v56 = vpop.eup %4967  ;;  %4971 = vlog2.f32 %v3673_v53 }
 0x65c   : > { %v3694_v38 = vsub.f32 %v3638_v44, %v3683_v61  ;;  %v3685_v3 = vmul.f32 0.6931472, %v4968_v56 }
 0x65e   : > { %3702 = vst [vmem:[%s5847_s14 + $0x20] sm:$0xff] %v3694_v38  ;;  %v3695_v24 = vsub.f32 %v3639_v2, %v3685_v3 }
 0x660   : > { %3703 = vst [vmem:[%s5847_s14 + $0x28] sm:$0xff] %v3695_v24 }
 0x663   : > { %v4970_v37 = vpop.eup %4969 }
 0x664   : > { %v3687_v0 = vmul.f32 0.6931472, %v4970_v37 }
 0x665   : > { %v4972_v30 = vpop.eup %4971 }
 0x666   : > { %v3696_v31 = vsub.f32 %v6466_v63, %v3687_v0  ;;  %v3689_v45 = vmul.f32 0.6931472, %v4972_v30 }
 0x668   : > { %3704 = vst [vmem:[%s5847_s14 + $0x30] sm:$0xff] %v3696_v31  ;;  %v3697_v15 = vsub.f32 %v6469_v17, %v3689_v45 }
 0x66a   : > { %3705 = vst [vmem:[%s5847_s14 + $0x38] sm:$0xff] %v3697_v15 }
 0x66b   : > { %5193 = shalt.err (!%p5190_p1)
}
 0x66c   : > { %s5194_s20 = scalar_lea.hbm %s6485_s1, 1024  ;;  %s5198_s27 = scalar_lea.hbm %s6671_s24, 4096 }
 0x66d   : > { %p5195_p13 = scmp.ne.s32.totalorder %s6485_s1, %s5194_s20  ;;  %p5199_p4 = scmp.lt.u32.totalorder %s6485_s1, %s6671_s24 }
 0x66e   : > { %p5200_p6 = scmp.lt.u32.totalorder %s5198_s27, %s5194_s20  ;;  %p5202_p5 = scmp.lt.u32.totalorder %s5194_s20, %s6485_s1 }
 0x66f   : > { %p5196_p12 = pnand %p5195_p13, %p6672_p8 }
 0x670   : > { %p5201_p10 = por %p5200_p6, %p5199_p4 }
 0x671   : > { %p5197_p7 = pneg %p5196_p12 }
 0x672   : > { %p5203_p0 = por %p5202_p5, %p5201_p10 }
 0x674   : > { %p5204_p11 = pnand %p5203_p0, %p5197_p7 }
 0x676   : > { %5207 = shalt.err (!%p5204_p11)
}
 0x677   : > { %s5333_s21 = smov 128   ;;  %s5334_s4 = smov 8  }
 0x678   : > { %4358 = dma.vmem_to_hbm [thread:$0]  (%p6672_p8), %s6487_s11, 1024, %s6485_s1, %s6494_s22, %s5333_s21, %s5333_s21, %s5334_s4  }
 0x679 PF: > { %s6673_s30 = sld [smem:[#allocation22_spill]]  ;;  %s6674_s7 = sld [smem:[#allocation30_spill]] }
 0x67a   : > { %p4394_p3 = scmp.ge.s32.totalorder %s5318_s23, 2 }
 0x67f   : > { %s3737_s13 = sand.u32 1, %s6673_s30   ;;  %p6675_p2 = scmp.ne.s32.totalorder %s6674_s7, 0 }
 0x680   : > { %s3738_s10 = scalar_lea.sflag [#allocation5], %s3737_s13 }
 0x681   : > { %p4384_p9 = pnand %p4394_p3, %p6675_p2 }
 0x683   : > { %5273 = dma.done.wait (!%p4384_p9), %s3738_s10, 1024  }
 0x684   : > { %5275 = vsyncadd (!%p4384_p9), %s3738_s10, 4294966272  ;;  %s33_s23 = sadd.s32 1, %s5318_s23   ;;  %s6676_s13 = sld [smem:[#allocation23_spill]] }
 0x685   : > { %p30_p1 = scmp.ge.s32.totalorder %s33_s23, 6   ;;  %s6677_s25 = sld [smem:[#allocation33_spill]] }
 0x686   : > { %s6678_s11 = sld [smem:[#allocation26_spill]]  ;;  %s6679_s20 = sld [smem:[#allocation27_spill]] }
 0x687   : > { %s6680_s21 = sld [smem:[#allocation31_spill]]  ;;  %s6681_s22 = sld [smem:[#allocation32_spill]] }
 0x688   : > { %s6682_s14 = smov %s5286_s15  ;;  %s6683_s15 = smov %s5588_s19 }
 0x689   : > { %s6684_s16 = smov %s5294_s17  ;;  %s6685_s17 = smov %s5298_s18 }
 0x68a   :  { %32 = sbr.rel (!%p30_p1) target bundleno = 23 (0x17), region = 178 }
 0x68b   : > { %s6686_s18 = smov %s6677_s25 }
 0x68c   : > { %s6687_s19 = smov %s6678_s11 }
 0x691   :  { %3743 = vsyncpa [#allocation4], 1 }
 0x692   :  { %3745 = vsyncpa [#allocation4 + $0x1], 1 }
 0x693   :  { %3746 = vsyncpa [#allocation7], 1 }
 0x694   :  { %3748 = vsyncpa [#allocation7 + $0x1], 1 }
 0x695   :  { %3749 = vsyncpa [#allocation10], 1 }
 0x696   :  { %3751 = vsyncpa [#allocation10 + $0x1], 1 }
 0x697   :  { %3752 = vsyncpa [#allocation13], 1 }
 0x698   :  { %3753 = vsyncpa [#allocation5], 1 }
 0x699   :  { %3755 = vsyncpa [#allocation5 + $0x1], 1 }

</bundles_post_ra>
